<compile_context>
chip_gen: v7x
topology: tpu7x:2x2x1
jax: 0.10.0
libtpu: 0.0.40
codegen_flags: <defaults>
</compile_context>

<pallas_src>
import functools

import numpy as np
import jax
import jax.numpy as jnp
from jax.experimental import pallas as pl
from jax.experimental.pallas import tpu as pltpu

D_MODEL = 512
N_HEAD = 4
HEAD_DIM = D_MODEL // N_HEAD          # 128
DIM_FF = 2048
IN_FEAT = 1024
N_CLASSES = 8
LN_EPS = 1e-5
NUM_ENCODERS = 1
NEG_INF = -1e30


# ----------------------------------------------------------------------------
# positional embeddings (trace-time numpy constant; identical formula to torch)
# ----------------------------------------------------------------------------
def _positional_embeddings_np(seq_len, dim):
    i = np.arange(seq_len, dtype=np.float64)[:, None]
    j = np.arange(dim, dtype=np.float64)[None, :]
    expo = np.where(j % 2 == 0, j / dim, (j - 1) / dim)
    angle = i / (10000.0 ** expo)
    return np.where(j % 2 == 0, np.sin(angle), np.cos(angle)).astype(np.float32)


# ----------------------------------------------------------------------------
# the single fused kernel
# ----------------------------------------------------------------------------
def _layernorm(y, gamma, beta):
    mean = jnp.mean(y, axis=-1, keepdims=True)
    var = jnp.mean(jnp.square(y - mean), axis=-1, keepdims=True)
    return (y - mean) * jax.lax.rsqrt(var + LN_EPS) * gamma + beta


def _vit_fused_kernel(
    rgb_ref, flow_ref, modw_ref, modb_ref,
    rgbt_ref, flowt_ref, clst_ref, pos_tok_ref, pos_cls_ref,
    inw_ref, inb_ref, outw_ref, outb_ref,
    g1_ref, b1_ref, ffw1_ref, ffb1_ref, ffw2_ref, ffb2_ref, g2_ref, b2_ref,
    o_ref,
    x_scr, attn_scr,
    *, seq_len, batch,
):
    S, B = seq_len, batch
    M = (2 * S + 1) * B                                 # total tokens * batch

    # --- token projection + tagging (bias + learned token + positional) ------
    rgb_tok = (
        jnp.dot(rgb_ref[...], modw_ref[0], preferred_element_type=jnp.float32)
        + modb_ref[0] + rgbt_ref[...] + pos_tok_ref[...]
    )                                                   # (S*B, E) f32
    flow_tok = (
        jnp.dot(flow_ref[...], modw_ref[1], preferred_element_type=jnp.float32)
        + modb_ref[1] + flowt_ref[...] + pos_tok_ref[...]
    )                                                   # (S*B, E) f32
    cls_rows = jnp.broadcast_to(clst_ref[...] + pos_cls_ref[...], (B, D_MODEL))

    # assemble the seq-major slab (row = l*B + b) directly in VMEM scratch
    x_scr[0:S * B, :] = rgb_tok
    x_scr[S * B:2 * S * B, :] = flow_tok
    x_scr[2 * S * B:M, :] = cls_rows
    x = x_scr[...]                                      # (M, E) f32

    # --- in-kernel block-diagonal same-batch mask (no (M,M) HBM operand) ----
    # row batch id = r mod B, computed with exact f32 floor-division (valid
    # for M < 2^24); only VPU ops, free filler under the weight DMA.
    ri = jax.lax.broadcasted_iota(jnp.int32, (M, M), 0).astype(jnp.float32)
    ci = jax.lax.broadcasted_iota(jnp.int32, (M, M), 1).astype(jnp.float32)
    bf = float(B)
    rb = ri - jnp.floor(ri / bf) * bf
    cb = ci - jnp.floor(ci / bf) * bf
    same_batch = rb == cb                               # (M, M) bool

    scale = 1.0 / float(np.sqrt(HEAD_DIM))

    # PyTorch's ViT re-applies the SAME encoder layer NUM_ENCODERS times, so
    # the weight refs are simply reused; activations never leave VMEM.
    for _ in range(NUM_ENCODERS):
        xb = x.astype(jnp.bfloat16)

        # self attention: all batches & heads in this single grid step
        qkv = (
            jnp.dot(xb, inw_ref[...], preferred_element_type=jnp.float32)
            + inb_ref[...]
        )                                               # (M, 3E) f32
        for h in range(N_HEAD):
            c0 = h * HEAD_DIM
            q = qkv[:, c0:c0 + HEAD_DIM].astype(jnp.bfloat16)
            k = qkv[:, D_MODEL + c0:D_MODEL + c0 + HEAD_DIM].astype(jnp.bfloat16)
            v = qkv[:, 2 * D_MODEL + c0:2 * D_MODEL + c0 + HEAD_DIM].astype(jnp.bfloat16)
            s = jax.lax.dot_general(
                q, k, (((1,), (1,)), ((), ())),
                preferred_element_type=jnp.float32) * scale
            s = jnp.where(same_batch, s, NEG_INF)       # cross-batch masked out
            m = jnp.max(s, axis=-1, keepdims=True)
            p = jnp.exp(s - m)
            p = p * pl.reciprocal(jnp.sum(p, axis=-1, keepdims=True), approx=True)
            # write the head output straight into its column slot (lane aligned)
            attn_scr[:, c0:c0 + HEAD_DIM] = jnp.dot(
                p.astype(jnp.bfloat16), v, preferred_element_type=jnp.float32)

        attn = (
            jnp.dot(attn_scr[...].astype(jnp.bfloat16), outw_ref[...],
                    preferred_element_type=jnp.float32)
            + outb_ref[...]
        )

        # residual + norm1   (dropout1: identity in eval mode)
        src = _layernorm(x + attn, g1_ref[...], b1_ref[...])

        # feed forward; the (M, 2048) hidden stays in VMEM
        h1 = (
            jnp.dot(src.astype(jnp.bfloat16), ffw1_ref[...],
                    preferred_element_type=jnp.float32)
            + ffb1_ref[...]
        )
        h1 = jnp.maximum(h1, 0.0)                       # relu (dropout: identity)
        ff = (
            jnp.dot(h1.astype(jnp.bfloat16), ffw2_ref[...],
                    preferred_element_type=jnp.float32)
            + ffb2_ref[...]
        )

        # residual + norm2   (dropout2: identity in eval mode)
        x = _layernorm(src + ff, g2_ref[...], b2_ref[...])

    # only the cls token rows (last B rows, seq position 2S) are needed downstream
    o_ref[...] = x[M - B:, :]


def vit_encoder_fused(params, rgb2d_bf16, flow2d_bf16, pos_tok, pos_cls, S, B):
    """One pallas_call for projection + tagging + concat + encoder layer(s).

    Returns the encoded cls-token features, shape (B, D_MODEL) f32.
    """
    M = (2 * S + 1) * B

    operands = [
        rgb2d_bf16, flow2d_bf16,
        params["mod_w"], params["mod_b"],
        params["rgb_token"], params["flow_token"], params["cls_token"],
        pos_tok, pos_cls,
        params["in_proj_w"], params["in_proj_b"],
        params["out_proj_w"], params["out_proj_b"],
        params["ln1_g"], params["ln1_b"],
        params["ff_w1"], params["ff_b1"],
        params["ff_w2"], params["ff_b2"],
        params["ln2_g"], params["ln2_b"],
    ]
    # every operand is a single full-array block (block dims == array dims)
    in_specs = [
        pl.BlockSpec(op.shape, lambda i, n=op.ndim: (0,) * n) for op in operands
    ]

    return pl.pallas_call(
        functools.partial(_vit_fused_kernel, seq_len=S, batch=B),
        out_shape=jax.ShapeDtypeStruct((B, D_MODEL), jnp.float32),
        grid=(1,),
        in_specs=in_specs,
        out_specs=pl.BlockSpec((B, D_MODEL), lambda i: (0, 0)),
        scratch_shapes=[
            pltpu.VMEM((M, D_MODEL), jnp.float32),      # token slab assembly
            pltpu.VMEM((M, D_MODEL), jnp.float32),      # per-head attn outputs
        ],
        compiler_params=pltpu.CompilerParams(
            dimension_semantics=("arbitrary",),
            vmem_limit_bytes=40 * 1024 * 1024,
        ),
    )(*operands)


# ----------------------------------------------------------------------------
# parameter init + forward wiring
# ----------------------------------------------------------------------------
def init_params(key):
    ks = jax.random.split(key, 9)

    def wbf16(k, shape, scale=0.02):
        return (jax.random.normal(k, shape, jnp.float32) * scale).astype(jnp.bfloat16)

    def uni(k, shape):
        return jax.random.uniform(k, shape, jnp.float32)

    p = {}
    # token projections (only *_linear_layer_2 of the PyTorch module is used)
    p["mod_w"] = wbf16(ks[0], (2, IN_FEAT, D_MODEL))          # stacked [rgb, flow]
    p["mod_b"] = jnp.zeros((2, 1, D_MODEL), jnp.float32)
    # learned tokens
    p["cls_token"] = uni(ks[1], (1, D_MODEL))
    p["rgb_token"] = uni(ks[2], (1, D_MODEL))
    p["flow_token"] = uni(ks[3], (1, D_MODEL))
    # encoder: self-attention (in_proj stored pre-transposed: (E, 3E))
    p["in_proj_w"] = wbf16(ks[4], (D_MODEL, 3 * D_MODEL))
    p["in_proj_b"] = jnp.zeros((1, 3 * D_MODEL), jnp.float32)
    p["out_proj_w"] = wbf16(ks[5], (D_MODEL, D_MODEL))
    p["out_proj_b"] = jnp.zeros((1, D_MODEL), jnp.float32)
    # encoder: feed-forward
    p["ff_w1"] = wbf16(ks[6], (D_MODEL, DIM_FF))
    p["ff_b1"] = jnp.zeros((1, DIM_FF), jnp.float32)
    p["ff_w2"] = wbf16(ks[7], (DIM_FF, D_MODEL))
    p["ff_b2"] = jnp.zeros((1, D_MODEL), jnp.float32)
    # layer norms (fp32)
    p["ln1_g"] = jnp.ones((1, D_MODEL), jnp.float32)
    p["ln1_b"] = jnp.zeros((1, D_MODEL), jnp.float32)
    p["ln2_g"] = jnp.ones((1, D_MODEL), jnp.float32)
    p["ln2_b"] = jnp.zeros((1, D_MODEL), jnp.float32)
    # classification head (kept in plain XLA; lane-sparse N=8 output)
    p["cls_w"] = jax.random.normal(ks[8], (D_MODEL, N_CLASSES), jnp.float32) * 0.02
    p["cls_b"] = jnp.zeros((N_CLASSES,), jnp.float32)
    return p


def vit_forward(params, rgb_features, flow_features):
    """rgb/flow_features: (S, B, 1024), seq-major -> logits (B, 8)."""
    S, B, _ = rgb_features.shape

    # cast activations to bf16 in XLA (halves the activation-input DMA)
    rgb2d = rgb_features.reshape(S * B, IN_FEAT).astype(jnp.bfloat16)
    flow2d = flow_features.reshape(S * B, IN_FEAT).astype(jnp.bfloat16)

    # positional embeddings: pure function of (S, B, dim) -> trace-time constant
    pe = _positional_embeddings_np(S + 1, D_MODEL)               # (S+1, 512)
    pos_tok = jnp.asarray(np.repeat(pe[:-1], B, axis=0))         # (S*B, 512), row = s*B + b
    pos_cls = jnp.asarray(pe[-1:])                               # (1, 512)

    cls_feats = vit_encoder_fused(params, rgb2d, flow2d, pos_tok, pos_cls, S, B)

    # classification head on the cls token — trivial (B, 8) matmul kept in
    # plain XLA to avoid a lane-sparse (N=8) Pallas output.
    return cls_feats @ params["cls_w"] + params["cls_b"]


if __name__ == "__main__":
    key = jax.random.PRNGKey(0)
    k_param, k_rgb, k_flow = jax.random.split(key, 3)

    params = init_params(k_param)

    S, B = 3, 2  # small shapes: 3 feature tokens per modality, batch 2
    rgb_features = jax.random.normal(k_rgb, (S, B, IN_FEAT), jnp.float32)
    flow_features = jax.random.normal(k_flow, (S, B, IN_FEAT), jnp.float32)

    logits = jax.jit(vit_forward)(params, rgb_features, flow_features)
    jax.block_until_ready(logits)

    assert logits.shape == (B, N_CLASSES)
    assert bool(jnp.all(jnp.isfinite(logits)))
    print("KERNEL_OK")
</pallas_src>

<mosaic_0001>
module attributes {stable_mosaic.version = 11 : i64} {
  func.func @_vit_fused_kernel(%arg0: i32, %arg1: memref<6x1024xbf16, #tpu.memory_space<vmem>>, %arg2: memref<6x1024xbf16, #tpu.memory_space<vmem>>, %arg3: memref<2x1024x512xbf16, #tpu.memory_space<vmem>>, %arg4: memref<2x1x512xf32, #tpu.memory_space<vmem>>, %arg5: memref<1x512xf32, #tpu.memory_space<vmem>>, %arg6: memref<1x512xf32, #tpu.memory_space<vmem>>, %arg7: memref<1x512xf32, #tpu.memory_space<vmem>>, %arg8: memref<6x512xf32, #tpu.memory_space<vmem>>, %arg9: memref<1x512xf32, #tpu.memory_space<vmem>>, %arg10: memref<512x1536xbf16, #tpu.memory_space<vmem>>, %arg11: memref<1x1536xf32, #tpu.memory_space<vmem>>, %arg12: memref<512x512xbf16, #tpu.memory_space<vmem>>, %arg13: memref<1x512xf32, #tpu.memory_space<vmem>>, %arg14: memref<1x512xf32, #tpu.memory_space<vmem>>, %arg15: memref<1x512xf32, #tpu.memory_space<vmem>>, %arg16: memref<512x2048xbf16, #tpu.memory_space<vmem>>, %arg17: memref<1x2048xf32, #tpu.memory_space<vmem>>, %arg18: memref<2048x512xbf16, #tpu.memory_space<vmem>>, %arg19: memref<1x512xf32, #tpu.memory_space<vmem>>, %arg20: memref<1x512xf32, #tpu.memory_space<vmem>>, %arg21: memref<1x512xf32, #tpu.memory_space<vmem>>, %arg22: memref<2x512xf32, #tpu.memory_space<vmem>>, %arg23: memref<14x512xf32, #tpu.memory_space<vmem>>, %arg24: memref<14x512xf32, #tpu.memory_space<vmem>>) attributes {dimension_semantics = [#tpu.dimension_semantics<arbitrary>], iteration_bounds = array<i64: 1>, scalar_prefetch = 0 : i64, scratch_operands = 2 : i64, tpu.core_type = #tpu.core_type<tc>, window_params = [{pipeline_mode = #tpu.pipeline_mode<synchronous>, transform_indices = @transform_0, window_bounds = array<i64: 6, 1024>}, {pipeline_mode = #tpu.pipeline_mode<synchronous>, transform_indices = @transform_1, window_bounds = array<i64: 6, 1024>}, {pipeline_mode = #tpu.pipeline_mode<synchronous>, transform_indices = @transform_2, window_bounds = array<i64: 2, 1024, 512>}, {pipeline_mode = #tpu.pipeline_mode<synchronous>, transform_indices = @transform_3, window_bounds = array<i64: 2, 1, 512>}, {pipeline_mode = #tpu.pipeline_mode<synchronous>, transform_indices = @transform_4, window_bounds = array<i64: 1, 512>}, {pipeline_mode = #tpu.pipeline_mode<synchronous>, transform_indices = @transform_5, window_bounds = array<i64: 1, 512>}, {pipeline_mode = #tpu.pipeline_mode<synchronous>, transform_indices = @transform_6, window_bounds = array<i64: 1, 512>}, {pipeline_mode = #tpu.pipeline_mode<synchronous>, transform_indices = @transform_7, window_bounds = array<i64: 6, 512>}, {pipeline_mode = #tpu.pipeline_mode<synchronous>, transform_indices = @transform_8, window_bounds = array<i64: 1, 512>}, {pipeline_mode = #tpu.pipeline_mode<synchronous>, transform_indices = @transform_9, window_bounds = array<i64: 512, 1536>}, {pipeline_mode = #tpu.pipeline_mode<synchronous>, transform_indices = @transform_10, window_bounds = array<i64: 1, 1536>}, {pipeline_mode = #tpu.pipeline_mode<synchronous>, transform_indices = @transform_11, window_bounds = array<i64: 512, 512>}, {pipeline_mode = #tpu.pipeline_mode<synchronous>, transform_indices = @transform_12, window_bounds = array<i64: 1, 512>}, {pipeline_mode = #tpu.pipeline_mode<synchronous>, transform_indices = @transform_13, window_bounds = array<i64: 1, 512>}, {pipeline_mode = #tpu.pipeline_mode<synchronous>, transform_indices = @transform_14, window_bounds = array<i64: 1, 512>}, {pipeline_mode = #tpu.pipeline_mode<synchronous>, transform_indices = @transform_15, window_bounds = array<i64: 512, 2048>}, {pipeline_mode = #tpu.pipeline_mode<synchronous>, transform_indices = @transform_16, window_bounds = array<i64: 1, 2048>}, {pipeline_mode = #tpu.pipeline_mode<synchronous>, transform_indices = @transform_17, window_bounds = array<i64: 2048, 512>}, {pipeline_mode = #tpu.pipeline_mode<synchronous>, transform_indices = @transform_18, window_bounds = array<i64: 1, 512>}, {pipeline_mode = #tpu.pipeline_mode<synchronous>, transform_indices = @transform_19, window_bounds = array<i64: 1, 512>}, {pipeline_mode = #tpu.pipeline_mode<synchronous>, transform_indices = @transform_20, window_bounds = array<i64: 1, 512>}, {pipeline_mode = #tpu.pipeline_mode<synchronous>, transform_indices = @transform_21, window_bounds = array<i64: 2, 512>}]} {
    %c0 = arith.constant 0 : index
    %c0_0 = arith.constant 0 : index
    %0 = vector.load %arg1[%c0, %c0_0] : memref<6x1024xbf16, #tpu.memory_space<vmem>>, vector<6x1024xbf16>
    %c0_1 = arith.constant 0 : index
    %c0_2 = arith.constant 0 : index
    %c0_3 = arith.constant 0 : index
    %1 = vector.load %arg3[%c0_1, %c0_2, %c0_3] : memref<2x1024x512xbf16, #tpu.memory_space<vmem>>, vector<1x1024x512xbf16>
    %2 = vector.shape_cast %1 : vector<1x1024x512xbf16> to vector<1024x512xbf16>
    %cst = arith.constant dense<0.000000e+00> : vector<6x512xf32>
    %3 = tpu.matmul %0, %2, %cst {dimension_numbers = #tpu.dot_dimension_numbers<[1], [0], [0], [1], [0, 0, 1, 1], [], []>} : vector<6x1024xbf16>, vector<1024x512xbf16>, vector<6x512xf32> -> vector<6x512xf32>
    %c0_4 = arith.constant 0 : index
    %c0_5 = arith.constant 0 : index
    %c0_6 = arith.constant 0 : index
    %4 = vector.load %arg4[%c0_4, %c0_5, %c0_6] : memref<2x1x512xf32, #tpu.memory_space<vmem>>, vector<1x1x512xf32>
    %5 = vector.shape_cast %4 : vector<1x1x512xf32> to vector<1x512xf32>
    %6 = vector.broadcast %5 : vector<1x512xf32> to vector<6x512xf32>
    %7 = arith.addf %3, %6 : vector<6x512xf32>
    %c0_7 = arith.constant 0 : index
    %c0_8 = arith.constant 0 : index
    %8 = vector.load %arg5[%c0_7, %c0_8] : memref<1x512xf32, #tpu.memory_space<vmem>>, vector<1x512xf32>
    %9 = vector.broadcast %8 : vector<1x512xf32> to vector<6x512xf32>
    %10 = arith.addf %7, %9 : vector<6x512xf32>
    %c0_9 = arith.constant 0 : index
    %c0_10 = arith.constant 0 : index
    %11 = vector.load %arg8[%c0_9, %c0_10] : memref<6x512xf32, #tpu.memory_space<vmem>>, vector<6x512xf32>
    %12 = arith.addf %10, %11 : vector<6x512xf32>
    %c0_11 = arith.constant 0 : index
    %c0_12 = arith.constant 0 : index
    %13 = vector.load %arg2[%c0_11, %c0_12] : memref<6x1024xbf16, #tpu.memory_space<vmem>>, vector<6x1024xbf16>
    %c1 = arith.constant 1 : index
    %c0_13 = arith.constant 0 : index
    %c0_14 = arith.constant 0 : index
    %14 = vector.load %arg3[%c1, %c0_13, %c0_14] : memref<2x1024x512xbf16, #tpu.memory_space<vmem>>, vector<1x1024x512xbf16>
    %15 = vector.shape_cast %14 : vector<1x1024x512xbf16> to vector<1024x512xbf16>
    %cst_15 = arith.constant dense<0.000000e+00> : vector<6x512xf32>
    %16 = tpu.matmul %13, %15, %cst_15 {dimension_numbers = #tpu.dot_dimension_numbers<[1], [0], [0], [1], [0, 0, 1, 1], [], []>} : vector<6x1024xbf16>, vector<1024x512xbf16>, vector<6x512xf32> -> vector<6x512xf32>
    %c1_16 = arith.constant 1 : index
    %c0_17 = arith.constant 0 : index
    %c0_18 = arith.constant 0 : index
    %17 = vector.load %arg4[%c1_16, %c0_17, %c0_18] : memref<2x1x512xf32, #tpu.memory_space<vmem>>, vector<1x1x512xf32>
    %18 = vector.shape_cast %17 : vector<1x1x512xf32> to vector<1x512xf32>
    %19 = vector.broadcast %18 : vector<1x512xf32> to vector<6x512xf32>
    %20 = arith.addf %16, %19 : vector<6x512xf32>
    %c0_19 = arith.constant 0 : index
    %c0_20 = arith.constant 0 : index
    %21 = vector.load %arg6[%c0_19, %c0_20] : memref<1x512xf32, #tpu.memory_space<vmem>>, vector<1x512xf32>
    %22 = vector.broadcast %21 : vector<1x512xf32> to vector<6x512xf32>
    %23 = arith.addf %20, %22 : vector<6x512xf32>
    %c0_21 = arith.constant 0 : index
    %c0_22 = arith.constant 0 : index
    %24 = vector.load %arg8[%c0_21, %c0_22] : memref<6x512xf32, #tpu.memory_space<vmem>>, vector<6x512xf32>
    %25 = arith.addf %23, %24 : vector<6x512xf32>
    %c0_23 = arith.constant 0 : index
    %c0_24 = arith.constant 0 : index
    %26 = vector.load %arg7[%c0_23, %c0_24] : memref<1x512xf32, #tpu.memory_space<vmem>>, vector<1x512xf32>
    %c0_25 = arith.constant 0 : index
    %c0_26 = arith.constant 0 : index
    %27 = vector.load %arg9[%c0_25, %c0_26] : memref<1x512xf32, #tpu.memory_space<vmem>>, vector<1x512xf32>
    %28 = arith.addf %26, %27 : vector<1x512xf32>
    %29 = vector.shape_cast %28 : vector<1x512xf32> to vector<1x512xf32>
    %30 = vector.broadcast %29 : vector<1x512xf32> to vector<2x512xf32>
    %c0_27 = arith.constant 0 : index
    %c0_28 = arith.constant 0 : index
    %31 = vector.load %arg23[%c0_27, %c0_28] : memref<14x512xf32, #tpu.memory_space<vmem>>, vector<6x512xf32>
    tpu.vector_store %arg23[%c0_27, %c0_28], %12 {strides = array<i32>} : memref<14x512xf32, #tpu.memory_space<vmem>>, vector<6x512xf32>,
    %c6 = arith.constant 6 : index
    %c0_29 = arith.constant 0 : index
    %32 = vector.load %arg23[%c6, %c0_29] : memref<14x512xf32, #tpu.memory_space<vmem>>, vector<6x512xf32>
    tpu.vector_store %arg23[%c6, %c0_29], %25 {strides = array<i32>} : memref<14x512xf32, #tpu.memory_space<vmem>>, vector<6x512xf32>,
    %c12 = arith.constant 12 : index
    %c0_30 = arith.constant 0 : index
    %33 = vector.load %arg23[%c12, %c0_30] : memref<14x512xf32, #tpu.memory_space<vmem>>, vector<2x512xf32>
    tpu.vector_store %arg23[%c12, %c0_30], %30 {strides = array<i32>} : memref<14x512xf32, #tpu.memory_space<vmem>>, vector<2x512xf32>,
    %c0_31 = arith.constant 0 : index
    %c0_32 = arith.constant 0 : index
    %34 = vector.load %arg23[%c0_31, %c0_32] : memref<14x512xf32, #tpu.memory_space<vmem>>, vector<14x512xf32>
    %35 = tpu.iota {dimensions = array<i32: 0>} : vector<14x14xi32>
    %36 = arith.sitofp %35 : vector<14x14xi32> to vector<14x14xf32>
    %37 = tpu.iota {dimensions = array<i32: 1>} : vector<14x14xi32>
    %38 = arith.sitofp %37 : vector<14x14xi32> to vector<14x14xf32>
    %cst_33 = arith.constant 2.000000e+00 : f32
    %39 = vector.broadcast %cst_33 : f32 to vector<14x14xf32>
    %40 = arith.divf %36, %39 : vector<14x14xf32>
    %41 = math.floor %40 : vector<14x14xf32>
    %cst_34 = arith.constant 2.000000e+00 : f32
    %42 = vector.broadcast %cst_34 : f32 to vector<14x14xf32>
    %43 = arith.mulf %41, %42 : vector<14x14xf32>
    %44 = arith.subf %36, %43 : vector<14x14xf32>
    %cst_35 = arith.constant 2.000000e+00 : f32
    %45 = vector.broadcast %cst_35 : f32 to vector<14x14xf32>
    %46 = arith.divf %38, %45 : vector<14x14xf32>
    %47 = math.floor %46 : vector<14x14xf32>
    %cst_36 = arith.constant 2.000000e+00 : f32
    %48 = vector.broadcast %cst_36 : f32 to vector<14x14xf32>
    %49 = arith.mulf %47, %48 : vector<14x14xf32>
    %50 = arith.subf %38, %49 : vector<14x14xf32>
    %51 = arith.cmpf oeq, %44, %50 : vector<14x14xf32>
    %52 = arith.truncf %34 : vector<14x512xf32> to vector<14x512xbf16>
    %c0_37 = arith.constant 0 : index
    %c0_38 = arith.constant 0 : index
    %53 = vector.load %arg10[%c0_37, %c0_38] : memref<512x1536xbf16, #tpu.memory_space<vmem>>, vector<512x1536xbf16>
    %cst_39 = arith.constant dense<0.000000e+00> : vector<14x1536xf32>
    %54 = tpu.matmul %52, %53, %cst_39 {dimension_numbers = #tpu.dot_dimension_numbers<[1], [0], [0], [1], [0, 0, 1, 1], [], []>} : vector<14x512xbf16>, vector<512x1536xbf16>, vector<14x1536xf32> -> vector<14x1536xf32>
    %c0_40 = arith.constant 0 : index
    %c0_41 = arith.constant 0 : index
    %55 = vector.load %arg11[%c0_40, %c0_41] : memref<1x1536xf32, #tpu.memory_space<vmem>>, vector<1x1536xf32>
    %56 = vector.broadcast %55 : vector<1x1536xf32> to vector<14x1536xf32>
    %57 = arith.addf %54, %56 : vector<14x1536xf32>
    %58 = vector.extract_strided_slice %57 {offsets = [0, 0], sizes = [14, 128], strides = [1, 1]} : vector<14x1536xf32> to vector<14x128xf32>
    %59 = arith.truncf %58 : vector<14x128xf32> to vector<14x128xbf16>
    %60 = vector.extract_strided_slice %57 {offsets = [0, 512], sizes = [14, 128], strides = [1, 1]} : vector<14x1536xf32> to vector<14x128xf32>
    %61 = arith.truncf %60 : vector<14x128xf32> to vector<14x128xbf16>
    %62 = vector.extract_strided_slice %57 {offsets = [0, 1024], sizes = [14, 128], strides = [1, 1]} : vector<14x1536xf32> to vector<14x128xf32>
    %63 = arith.truncf %62 : vector<14x128xf32> to vector<14x128xbf16>
    %cst_42 = arith.constant dense<0.000000e+00> : vector<14x14xf32>
    %64 = tpu.matmul %59, %61, %cst_42 {dimension_numbers = #tpu.dot_dimension_numbers<[1], [1], [0], [0], [0, 0, 1, 0], [], []>} : vector<14x128xbf16>, vector<14x128xbf16>, vector<14x14xf32> -> vector<14x14xf32>
    %cst_43 = arith.constant 0.0883883461 : f32
    %65 = vector.broadcast %cst_43 : f32 to vector<14x14xf32>
    %66 = arith.mulf %64, %65 : vector<14x14xf32>
    %cst_44 = arith.constant -1.000000e+30 : f32
    %67 = vector.broadcast %cst_44 : f32 to vector<14x14xf32>
    %68 = arith.select %51, %66, %67 : vector<14x14xi1>, vector<14x14xf32>
    %cst_45 = arith.constant dense<0xFF800000> : vector<14xf32>
    %69 = vector.multi_reduction <maximumf>, %68, %cst_45 [1] : vector<14x14xf32> to vector<14xf32>
    %70 = vector.shape_cast %69 : vector<14xf32> to vector<14x1xf32>
    %71 = vector.broadcast %70 : vector<14x1xf32> to vector<14x14xf32>
    %72 = arith.subf %68, %71 : vector<14x14xf32>
    %73 = math.exp %72 : vector<14x14xf32>
    %cst_46 = arith.constant dense<0.000000e+00> : vector<14xf32>
    %74 = vector.multi_reduction <add>, %73, %cst_46 [1] : vector<14x14xf32> to vector<14xf32>
    %75 = vector.shape_cast %74 : vector<14xf32> to vector<14x1xf32>
    %76 = tpu.reciprocal %75 {approx = true} : vector<14x1xf32> -> vector<14x1xf32>
    %77 = vector.broadcast %76 : vector<14x1xf32> to vector<14x14xf32>
    %78 = arith.mulf %73, %77 : vector<14x14xf32>
    %79 = arith.truncf %78 : vector<14x14xf32> to vector<14x14xbf16>
    %cst_47 = arith.constant dense<0.000000e+00> : vector<14x128xf32>
    %80 = tpu.matmul %79, %63, %cst_47 {dimension_numbers = #tpu.dot_dimension_numbers<[1], [0], [0], [1], [0, 0, 1, 1], [], []>} : vector<14x14xbf16>, vector<14x128xbf16>, vector<14x128xf32> -> vector<14x128xf32>
    %c0_48 = arith.constant 0 : index
    %c0_49 = arith.constant 0 : index
    %81 = vector.load %arg24[%c0_48, %c0_49] : memref<14x512xf32, #tpu.memory_space<vmem>>, vector<14x128xf32>
    tpu.vector_store %arg24[%c0_48, %c0_49], %80 {strides = array<i32>} : memref<14x512xf32, #tpu.memory_space<vmem>>, vector<14x128xf32>,
    %82 = vector.extract_strided_slice %57 {offsets = [0, 128], sizes = [14, 128], strides = [1, 1]} : vector<14x1536xf32> to vector<14x128xf32>
    %83 = arith.truncf %82 : vector<14x128xf32> to vector<14x128xbf16>
    %84 = vector.extract_strided_slice %57 {offsets = [0, 640], sizes = [14, 128], strides = [1, 1]} : vector<14x1536xf32> to vector<14x128xf32>
    %85 = arith.truncf %84 : vector<14x128xf32> to vector<14x128xbf16>
    %86 = vector.extract_strided_slice %57 {offsets = [0, 1152], sizes = [14, 128], strides = [1, 1]} : vector<14x1536xf32> to vector<14x128xf32>
    %87 = arith.truncf %86 : vector<14x128xf32> to vector<14x128xbf16>
    %cst_50 = arith.constant dense<0.000000e+00> : vector<14x14xf32>
    %88 = tpu.matmul %83, %85, %cst_50 {dimension_numbers = #tpu.dot_dimension_numbers<[1], [1], [0], [0], [0, 0, 1, 0], [], []>} : vector<14x128xbf16>, vector<14x128xbf16>, vector<14x14xf32> -> vector<14x14xf32>
    %cst_51 = arith.constant 0.0883883461 : f32
    %89 = vector.broadcast %cst_51 : f32 to vector<14x14xf32>
    %90 = arith.mulf %88, %89 : vector<14x14xf32>
    %cst_52 = arith.constant -1.000000e+30 : f32
    %91 = vector.broadcast %cst_52 : f32 to vector<14x14xf32>
    %92 = arith.select %51, %90, %91 : vector<14x14xi1>, vector<14x14xf32>
    %cst_53 = arith.constant dense<0xFF800000> : vector<14xf32>
    %93 = vector.multi_reduction <maximumf>, %92, %cst_53 [1] : vector<14x14xf32> to vector<14xf32>
    %94 = vector.shape_cast %93 : vector<14xf32> to vector<14x1xf32>
    %95 = vector.broadcast %94 : vector<14x1xf32> to vector<14x14xf32>
    %96 = arith.subf %92, %95 : vector<14x14xf32>
    %97 = math.exp %96 : vector<14x14xf32>
    %cst_54 = arith.constant dense<0.000000e+00> : vector<14xf32>
    %98 = vector.multi_reduction <add>, %97, %cst_54 [1] : vector<14x14xf32> to vector<14xf32>
    %99 = vector.shape_cast %98 : vector<14xf32> to vector<14x1xf32>
    %100 = tpu.reciprocal %99 {approx = true} : vector<14x1xf32> -> vector<14x1xf32>
    %101 = vector.broadcast %100 : vector<14x1xf32> to vector<14x14xf32>
    %102 = arith.mulf %97, %101 : vector<14x14xf32>
    %103 = arith.truncf %102 : vector<14x14xf32> to vector<14x14xbf16>
    %cst_55 = arith.constant dense<0.000000e+00> : vector<14x128xf32>
    %104 = tpu.matmul %103, %87, %cst_55 {dimension_numbers = #tpu.dot_dimension_numbers<[1], [0], [0], [1], [0, 0, 1, 1], [], []>} : vector<14x14xbf16>, vector<14x128xbf16>, vector<14x128xf32> -> vector<14x128xf32>
    %c0_56 = arith.constant 0 : index
    %c128 = arith.constant 128 : index
    %105 = vector.load %arg24[%c0_56, %c128] : memref<14x512xf32, #tpu.memory_space<vmem>>, vector<14x128xf32>
    tpu.vector_store %arg24[%c0_56, %c128], %104 {strides = array<i32>} : memref<14x512xf32, #tpu.memory_space<vmem>>, vector<14x128xf32>,
    %106 = vector.extract_strided_slice %57 {offsets = [0, 256], sizes = [14, 128], strides = [1, 1]} : vector<14x1536xf32> to vector<14x128xf32>
    %107 = arith.truncf %106 : vector<14x128xf32> to vector<14x128xbf16>
    %108 = vector.extract_strided_slice %57 {offsets = [0, 768], sizes = [14, 128], strides = [1, 1]} : vector<14x1536xf32> to vector<14x128xf32>
    %109 = arith.truncf %108 : vector<14x128xf32> to vector<14x128xbf16>
    %110 = vector.extract_strided_slice %57 {offsets = [0, 1280], sizes = [14, 128], strides = [1, 1]} : vector<14x1536xf32> to vector<14x128xf32>
    %111 = arith.truncf %110 : vector<14x128xf32> to vector<14x128xbf16>
    %cst_57 = arith.constant dense<0.000000e+00> : vector<14x14xf32>
    %112 = tpu.matmul %107, %109, %cst_57 {dimension_numbers = #tpu.dot_dimension_numbers<[1], [1], [0], [0], [0, 0, 1, 0], [], []>} : vector<14x128xbf16>, vector<14x128xbf16>, vector<14x14xf32> -> vector<14x14xf32>
    %cst_58 = arith.constant 0.0883883461 : f32
    %113 = vector.broadcast %cst_58 : f32 to vector<14x14xf32>
    %114 = arith.mulf %112, %113 : vector<14x14xf32>
    %cst_59 = arith.constant -1.000000e+30 : f32
    %115 = vector.broadcast %cst_59 : f32 to vector<14x14xf32>
    %116 = arith.select %51, %114, %115 : vector<14x14xi1>, vector<14x14xf32>
    %cst_60 = arith.constant dense<0xFF800000> : vector<14xf32>
    %117 = vector.multi_reduction <maximumf>, %116, %cst_60 [1] : vector<14x14xf32> to vector<14xf32>
    %118 = vector.shape_cast %117 : vector<14xf32> to vector<14x1xf32>
    %119 = vector.broadcast %118 : vector<14x1xf32> to vector<14x14xf32>
    %120 = arith.subf %116, %119 : vector<14x14xf32>
    %121 = math.exp %120 : vector<14x14xf32>
    %cst_61 = arith.constant dense<0.000000e+00> : vector<14xf32>
    %122 = vector.multi_reduction <add>, %121, %cst_61 [1] : vector<14x14xf32> to vector<14xf32>
    %123 = vector.shape_cast %122 : vector<14xf32> to vector<14x1xf32>
    %124 = tpu.reciprocal %123 {approx = true} : vector<14x1xf32> -> vector<14x1xf32>
    %125 = vector.broadcast %124 : vector<14x1xf32> to vector<14x14xf32>
    %126 = arith.mulf %121, %125 : vector<14x14xf32>
    %127 = arith.truncf %126 : vector<14x14xf32> to vector<14x14xbf16>
    %cst_62 = arith.constant dense<0.000000e+00> : vector<14x128xf32>
    %128 = tpu.matmul %127, %111, %cst_62 {dimension_numbers = #tpu.dot_dimension_numbers<[1], [0], [0], [1], [0, 0, 1, 1], [], []>} : vector<14x14xbf16>, vector<14x128xbf16>, vector<14x128xf32> -> vector<14x128xf32>
    %c0_63 = arith.constant 0 : index
    %c256 = arith.constant 256 : index
    %129 = vector.load %arg24[%c0_63, %c256] : memref<14x512xf32, #tpu.memory_space<vmem>>, vector<14x128xf32>
    tpu.vector_store %arg24[%c0_63, %c256], %128 {strides = array<i32>} : memref<14x512xf32, #tpu.memory_space<vmem>>, vector<14x128xf32>,
    %130 = vector.extract_strided_slice %57 {offsets = [0, 384], sizes = [14, 128], strides = [1, 1]} : vector<14x1536xf32> to vector<14x128xf32>
    %131 = arith.truncf %130 : vector<14x128xf32> to vector<14x128xbf16>
    %132 = vector.extract_strided_slice %57 {offsets = [0, 896], sizes = [14, 128], strides = [1, 1]} : vector<14x1536xf32> to vector<14x128xf32>
    %133 = arith.truncf %132 : vector<14x128xf32> to vector<14x128xbf16>
    %134 = vector.extract_strided_slice %57 {offsets = [0, 1408], sizes = [14, 128], strides = [1, 1]} : vector<14x1536xf32> to vector<14x128xf32>
    %135 = arith.truncf %134 : vector<14x128xf32> to vector<14x128xbf16>
    %cst_64 = arith.constant dense<0.000000e+00> : vector<14x14xf32>
    %136 = tpu.matmul %131, %133, %cst_64 {dimension_numbers = #tpu.dot_dimension_numbers<[1], [1], [0], [0], [0, 0, 1, 0], [], []>} : vector<14x128xbf16>, vector<14x128xbf16>, vector<14x14xf32> -> vector<14x14xf32>
    %cst_65 = arith.constant 0.0883883461 : f32
    %137 = vector.broadcast %cst_65 : f32 to vector<14x14xf32>
    %138 = arith.mulf %136, %137 : vector<14x14xf32>
    %cst_66 = arith.constant -1.000000e+30 : f32
    %139 = vector.broadcast %cst_66 : f32 to vector<14x14xf32>
    %140 = arith.select %51, %138, %139 : vector<14x14xi1>, vector<14x14xf32>
    %cst_67 = arith.constant dense<0xFF800000> : vector<14xf32>
    %141 = vector.multi_reduction <maximumf>, %140, %cst_67 [1] : vector<14x14xf32> to vector<14xf32>
    %142 = vector.shape_cast %141 : vector<14xf32> to vector<14x1xf32>
    %143 = vector.broadcast %142 : vector<14x1xf32> to vector<14x14xf32>
    %144 = arith.subf %140, %143 : vector<14x14xf32>
    %145 = math.exp %144 : vector<14x14xf32>
    %cst_68 = arith.constant dense<0.000000e+00> : vector<14xf32>
    %146 = vector.multi_reduction <add>, %145, %cst_68 [1] : vector<14x14xf32> to vector<14xf32>
    %147 = vector.shape_cast %146 : vector<14xf32> to vector<14x1xf32>
    %148 = tpu.reciprocal %147 {approx = true} : vector<14x1xf32> -> vector<14x1xf32>
    %149 = vector.broadcast %148 : vector<14x1xf32> to vector<14x14xf32>
    %150 = arith.mulf %145, %149 : vector<14x14xf32>
    %151 = arith.truncf %150 : vector<14x14xf32> to vector<14x14xbf16>
    %cst_69 = arith.constant dense<0.000000e+00> : vector<14x128xf32>
    %152 = tpu.matmul %151, %135, %cst_69 {dimension_numbers = #tpu.dot_dimension_numbers<[1], [0], [0], [1], [0, 0, 1, 1], [], []>} : vector<14x14xbf16>, vector<14x128xbf16>, vector<14x128xf32> -> vector<14x128xf32>
    %c0_70 = arith.constant 0 : index
    %c384 = arith.constant 384 : index
    %153 = vector.load %arg24[%c0_70, %c384] : memref<14x512xf32, #tpu.memory_space<vmem>>, vector<14x128xf32>
    tpu.vector_store %arg24[%c0_70, %c384], %152 {strides = array<i32>} : memref<14x512xf32, #tpu.memory_space<vmem>>, vector<14x128xf32>,
    %c0_71 = arith.constant 0 : index
    %c0_72 = arith.constant 0 : index
    %154 = vector.load %arg24[%c0_71, %c0_72] : memref<14x512xf32, #tpu.memory_space<vmem>>, vector<14x512xf32>
    %155 = arith.truncf %154 : vector<14x512xf32> to vector<14x512xbf16>
    %c0_73 = arith.constant 0 : index
    %c0_74 = arith.constant 0 : index
    %156 = vector.load %arg12[%c0_73, %c0_74] : memref<512x512xbf16, #tpu.memory_space<vmem>>, vector<512x512xbf16>
    %cst_75 = arith.constant dense<0.000000e+00> : vector<14x512xf32>
    %157 = tpu.matmul %155, %156, %cst_75 {dimension_numbers = #tpu.dot_dimension_numbers<[1], [0], [0], [1], [0, 0, 1, 1], [], []>} : vector<14x512xbf16>, vector<512x512xbf16>, vector<14x512xf32> -> vector<14x512xf32>
    %c0_76 = arith.constant 0 : index
    %c0_77 = arith.constant 0 : index
    %158 = vector.load %arg13[%c0_76, %c0_77] : memref<1x512xf32, #tpu.memory_space<vmem>>, vector<1x512xf32>
    %159 = vector.broadcast %158 : vector<1x512xf32> to vector<14x512xf32>
    %160 = arith.addf %157, %159 : vector<14x512xf32>
    %161 = arith.addf %34, %160 : vector<14x512xf32>
    %c0_78 = arith.constant 0 : index
    %c0_79 = arith.constant 0 : index
    %162 = vector.load %arg14[%c0_78, %c0_79] : memref<1x512xf32, #tpu.memory_space<vmem>>, vector<1x512xf32>
    %c0_80 = arith.constant 0 : index
    %c0_81 = arith.constant 0 : index
    %163 = vector.load %arg15[%c0_80, %c0_81] : memref<1x512xf32, #tpu.memory_space<vmem>>, vector<1x512xf32>
    %cst_82 = arith.constant dense<0.000000e+00> : vector<14xf32>
    %164 = vector.multi_reduction <add>, %161, %cst_82 [1] : vector<14x512xf32> to vector<14xf32>
    %165 = vector.shape_cast %164 : vector<14xf32> to vector<14x1xf32>
    %cst_83 = arith.constant 5.120000e+02 : f32
    %166 = vector.broadcast %cst_83 : f32 to vector<14x1xf32>
    %167 = arith.divf %165, %166 : vector<14x1xf32>
    %168 = vector.broadcast %167 : vector<14x1xf32> to vector<14x512xf32>
    %169 = arith.subf %161, %168 : vector<14x512xf32>
    %170 = arith.mulf %169, %169 : vector<14x512xf32>
    %cst_84 = arith.constant dense<0.000000e+00> : vector<14xf32>
    %171 = vector.multi_reduction <add>, %170, %cst_84 [1] : vector<14x512xf32> to vector<14xf32>
    %172 = vector.shape_cast %171 : vector<14xf32> to vector<14x1xf32>
    %cst_85 = arith.constant 5.120000e+02 : f32
    %173 = vector.broadcast %cst_85 : f32 to vector<14x1xf32>
    %174 = arith.divf %172, %173 : vector<14x1xf32>
    %175 = vector.broadcast %167 : vector<14x1xf32> to vector<14x512xf32>
    %176 = arith.subf %161, %175 : vector<14x512xf32>
    %cst_86 = arith.constant 9.99999974E-6 : f32
    %177 = vector.broadcast %cst_86 : f32 to vector<14x1xf32>
    %178 = arith.addf %174, %177 : vector<14x1xf32>
    %179 = math.rsqrt %178 : vector<14x1xf32>
    %180 = vector.broadcast %179 : vector<14x1xf32> to vector<14x512xf32>
    %181 = arith.mulf %176, %180 : vector<14x512xf32>
    %182 = vector.broadcast %162 : vector<1x512xf32> to vector<14x512xf32>
    %183 = arith.mulf %181, %182 : vector<14x512xf32>
    %184 = vector.broadcast %163 : vector<1x512xf32> to vector<14x512xf32>
    %185 = arith.addf %183, %184 : vector<14x512xf32>
    %186 = arith.truncf %185 : vector<14x512xf32> to vector<14x512xbf16>
    %c0_87 = arith.constant 0 : index
    %c0_88 = arith.constant 0 : index
    %187 = vector.load %arg16[%c0_87, %c0_88] : memref<512x2048xbf16, #tpu.memory_space<vmem>>, vector<512x2048xbf16>
    %cst_89 = arith.constant dense<0.000000e+00> : vector<14x2048xf32>
    %188 = tpu.matmul %186, %187, %cst_89 {dimension_numbers = #tpu.dot_dimension_numbers<[1], [0], [0], [1], [0, 0, 1, 1], [], []>} : vector<14x512xbf16>, vector<512x2048xbf16>, vector<14x2048xf32> -> vector<14x2048xf32>
    %c0_90 = arith.constant 0 : index
    %c0_91 = arith.constant 0 : index
    %189 = vector.load %arg17[%c0_90, %c0_91] : memref<1x2048xf32, #tpu.memory_space<vmem>>, vector<1x2048xf32>
    %190 = vector.broadcast %189 : vector<1x2048xf32> to vector<14x2048xf32>
    %191 = arith.addf %188, %190 : vector<14x2048xf32>
    %cst_92 = arith.constant 0.000000e+00 : f32
    %192 = vector.broadcast %cst_92 : f32 to vector<14x2048xf32>
    %193 = arith.maximumf %191, %192 : vector<14x2048xf32>
    %194 = arith.truncf %193 : vector<14x2048xf32> to vector<14x2048xbf16>
    %c0_93 = arith.constant 0 : index
    %c0_94 = arith.constant 0 : index
    %195 = vector.load %arg18[%c0_93, %c0_94] : memref<2048x512xbf16, #tpu.memory_space<vmem>>, vector<2048x512xbf16>
    %cst_95 = arith.constant dense<0.000000e+00> : vector<14x512xf32>
    %196 = tpu.matmul %194, %195, %cst_95 {dimension_numbers = #tpu.dot_dimension_numbers<[1], [0], [0], [1], [0, 0, 1, 1], [], []>} : vector<14x2048xbf16>, vector<2048x512xbf16>, vector<14x512xf32> -> vector<14x512xf32>
    %c0_96 = arith.constant 0 : index
    %c0_97 = arith.constant 0 : index
    %197 = vector.load %arg19[%c0_96, %c0_97] : memref<1x512xf32, #tpu.memory_space<vmem>>, vector<1x512xf32>
    %198 = vector.broadcast %197 : vector<1x512xf32> to vector<14x512xf32>
    %199 = arith.addf %196, %198 : vector<14x512xf32>
    %200 = arith.addf %185, %199 : vector<14x512xf32>
    %c0_98 = arith.constant 0 : index
    %c0_99 = arith.constant 0 : index
    %201 = vector.load %arg20[%c0_98, %c0_99] : memref<1x512xf32, #tpu.memory_space<vmem>>, vector<1x512xf32>
    %c0_100 = arith.constant 0 : index
    %c0_101 = arith.constant 0 : index
    %202 = vector.load %arg21[%c0_100, %c0_101] : memref<1x512xf32, #tpu.memory_space<vmem>>, vector<1x512xf32>
    %cst_102 = arith.constant dense<0.000000e+00> : vector<14xf32>
    %203 = vector.multi_reduction <add>, %200, %cst_102 [1] : vector<14x512xf32> to vector<14xf32>
    %204 = vector.shape_cast %203 : vector<14xf32> to vector<14x1xf32>
    %cst_103 = arith.constant 5.120000e+02 : f32
    %205 = vector.broadcast %cst_103 : f32 to vector<14x1xf32>
    %206 = arith.divf %204, %205 : vector<14x1xf32>
    %207 = vector.broadcast %206 : vector<14x1xf32> to vector<14x512xf32>
    %208 = arith.subf %200, %207 : vector<14x512xf32>
    %209 = arith.mulf %208, %208 : vector<14x512xf32>
    %cst_104 = arith.constant dense<0.000000e+00> : vector<14xf32>
    %210 = vector.multi_reduction <add>, %209, %cst_104 [1] : vector<14x512xf32> to vector<14xf32>
    %211 = vector.shape_cast %210 : vector<14xf32> to vector<14x1xf32>
    %cst_105 = arith.constant 5.120000e+02 : f32
    %212 = vector.broadcast %cst_105 : f32 to vector<14x1xf32>
    %213 = arith.divf %211, %212 : vector<14x1xf32>
    %214 = vector.broadcast %206 : vector<14x1xf32> to vector<14x512xf32>
    %215 = arith.subf %200, %214 : vector<14x512xf32>
    %cst_106 = arith.constant 9.99999974E-6 : f32
    %216 = vector.broadcast %cst_106 : f32 to vector<14x1xf32>
    %217 = arith.addf %213, %216 : vector<14x1xf32>
    %218 = math.rsqrt %217 : vector<14x1xf32>
    %219 = vector.broadcast %218 : vector<14x1xf32> to vector<14x512xf32>
    %220 = arith.mulf %215, %219 : vector<14x512xf32>
    %221 = vector.broadcast %201 : vector<1x512xf32> to vector<14x512xf32>
    %222 = arith.mulf %220, %221 : vector<14x512xf32>
    %223 = vector.broadcast %202 : vector<1x512xf32> to vector<14x512xf32>
    %224 = arith.addf %222, %223 : vector<14x512xf32>
    %225 = vector.extract_strided_slice %224 {offsets = [12, 0], sizes = [2, 512], strides = [1, 1]} : vector<14x512xf32> to vector<2x512xf32>
    %c0_107 = arith.constant 0 : index
    %c0_108 = arith.constant 0 : index
    %226 = vector.load %arg22[%c0_107, %c0_108] : memref<2x512xf32, #tpu.memory_space<vmem>>, vector<2x512xf32>
    tpu.vector_store %arg22[%c0_107, %c0_108], %225 {strides = array<i32>} : memref<2x512xf32, #tpu.memory_space<vmem>>, vector<2x512xf32>,
    return
  }
  func.func @transform_0(%arg0: i32) -> (i32, i32) {
    %c0_i32 = arith.constant 0 : i32
    %c0_i32_0 = arith.constant 0 : i32
    %c0_i32_1 = arith.constant 0 : i32
    return %c0_i32, %c0_i32_0 : i32, i32
  }
  func.func @transform_1(%arg0: i32) -> (i32, i32) {
    %c0_i32 = arith.constant 0 : i32
    %c0_i32_0 = arith.constant 0 : i32
    %c0_i32_1 = arith.constant 0 : i32
    return %c0_i32, %c0_i32_0 : i32, i32
  }
  func.func @transform_2(%arg0: i32) -> (i32, i32, i32) {
    %c0_i32 = arith.constant 0 : i32
    %c0_i32_0 = arith.constant 0 : i32
    %c0_i32_1 = arith.constant 0 : i32
    %c0_i32_2 = arith.constant 0 : i32
    return %c0_i32, %c0_i32_0, %c0_i32_1 : i32, i32, i32
  }
  func.func @transform_3(%arg0: i32) -> (i32, i32, i32) {
    %c0_i32 = arith.constant 0 : i32
    %c0_i32_0 = arith.constant 0 : i32
    %c0_i32_1 = arith.constant 0 : i32
    %c0_i32_2 = arith.constant 0 : i32
    return %c0_i32, %c0_i32_0, %c0_i32_1 : i32, i32, i32
  }
  func.func @transform_4(%arg0: i32) -> (i32, i32) {
    %c0_i32 = arith.constant 0 : i32
    %c0_i32_0 = arith.constant 0 : i32
    %c0_i32_1 = arith.constant 0 : i32
    return %c0_i32, %c0_i32_0 : i32, i32
  }
  func.func @transform_5(%arg0: i32) -> (i32, i32) {
    %c0_i32 = arith.constant 0 : i32
    %c0_i32_0 = arith.constant 0 : i32
    %c0_i32_1 = arith.constant 0 : i32
    return %c0_i32, %c0_i32_0 : i32, i32
  }
  func.func @transform_6(%arg0: i32) -> (i32, i32) {
    %c0_i32 = arith.constant 0 : i32
    %c0_i32_0 = arith.constant 0 : i32
    %c0_i32_1 = arith.constant 0 : i32
    return %c0_i32, %c0_i32_0 : i32, i32
  }
  func.func @transform_7(%arg0: i32) -> (i32, i32) {
    %c0_i32 = arith.constant 0 : i32
    %c0_i32_0 = arith.constant 0 : i32
    %c0_i32_1 = arith.constant 0 : i32
    return %c0_i32, %c0_i32_0 : i32, i32
  }
  func.func @transform_8(%arg0: i32) -> (i32, i32) {
    %c0_i32 = arith.constant 0 : i32
    %c0_i32_0 = arith.constant 0 : i32
    %c0_i32_1 = arith.constant 0 : i32
    return %c0_i32, %c0_i32_0 : i32, i32
  }
  func.func @transform_9(%arg0: i32) -> (i32, i32) {
    %c0_i32 = arith.constant 0 : i32
    %c0_i32_0 = arith.constant 0 : i32
    %c0_i32_1 = arith.constant 0 : i32
    return %c0_i32, %c0_i32_0 : i32, i32
  }
  func.func @transform_10(%arg0: i32) -> (i32, i32) {
    %c0_i32 = arith.constant 0 : i32
    %c0_i32_0 = arith.constant 0 : i32
    %c0_i32_1 = arith.constant 0 : i32
    return %c0_i32, %c0_i32_0 : i32, i32
  }
  func.func @transform_11(%arg0: i32) -> (i32, i32) {
    %c0_i32 = arith.constant 0 : i32
    %c0_i32_0 = arith.constant 0 : i32
    %c0_i32_1 = arith.constant 0 : i32
    return %c0_i32, %c0_i32_0 : i32, i32
  }
  func.func @transform_12(%arg0: i32) -> (i32, i32) {
    %c0_i32 = arith.constant 0 : i32
    %c0_i32_0 = arith.constant 0 : i32
    %c0_i32_1 = arith.constant 0 : i32
    return %c0_i32, %c0_i32_0 : i32, i32
  }
  func.func @transform_13(%arg0: i32) -> (i32, i32) {
    %c0_i32 = arith.constant 0 : i32
    %c0_i32_0 = arith.constant 0 : i32
    %c0_i32_1 = arith.constant 0 : i32
    return %c0_i32, %c0_i32_0 : i32, i32
  }
  func.func @transform_14(%arg0: i32) -> (i32, i32) {
    %c0_i32 = arith.constant 0 : i32
    %c0_i32_0 = arith.constant 0 : i32
    %c0_i32_1 = arith.constant 0 : i32
    return %c0_i32, %c0_i32_0 : i32, i32
  }
  func.func @transform_15(%arg0: i32) -> (i32, i32) {
    %c0_i32 = arith.constant 0 : i32
    %c0_i32_0 = arith.constant 0 : i32
    %c0_i32_1 = arith.constant 0 : i32
    return %c0_i32, %c0_i32_0 : i32, i32
  }
  func.func @transform_16(%arg0: i32) -> (i32, i32) {
    %c0_i32 = arith.constant 0 : i32
    %c0_i32_0 = arith.constant 0 : i32
    %c0_i32_1 = arith.constant 0 : i32
    return %c0_i32, %c0_i32_0 : i32, i32
  }
  func.func @transform_17(%arg0: i32) -> (i32, i32) {
    %c0_i32 = arith.constant 0 : i32
    %c0_i32_0 = arith.constant 0 : i32
    %c0_i32_1 = arith.constant 0 : i32
    return %c0_i32, %c0_i32_0 : i32, i32
  }
  func.func @transform_18(%arg0: i32) -> (i32, i32) {
    %c0_i32 = arith.constant 0 : i32
    %c0_i32_0 = arith.constant 0 : i32
    %c0_i32_1 = arith.constant 0 : i32
    return %c0_i32, %c0_i32_0 : i32, i32
  }
  func.func @transform_19(%arg0: i32) -> (i32, i32) {
    %c0_i32 = arith.constant 0 : i32
    %c0_i32_0 = arith.constant 0 : i32
    %c0_i32_1 = arith.constant 0 : i32
    return %c0_i32, %c0_i32_0 : i32, i32
  }
  func.func @transform_20(%arg0: i32) -> (i32, i32) {
    %c0_i32 = arith.constant 0 : i32
    %c0_i32_0 = arith.constant 0 : i32
    %c0_i32_1 = arith.constant 0 : i32
    return %c0_i32, %c0_i32_0 : i32, i32
  }
  func.func @transform_21(%arg0: i32) -> (i32, i32) {
    %c0_i32 = arith.constant 0 : i32
    %c0_i32_0 = arith.constant 0 : i32
    %c0_i32_1 = arith.constant 0 : i32
    return %c0_i32, %c0_i32_0 : i32, i32
  }
}

</mosaic_0001>

<bundles_post_ra>
// kernel: vit_forward.1
= control target key start
LH: loop header
LB: loop body
LE: loop exit
PB: predicated region body
PF: predicated region fallthrough
CT: control target
= control target key end

     0   :  { %s22728_s0 = inlined_call_operand.vmem [shape: bf16[6,1024], index: 0, kind: input, shape index: {}]   ;;  %s22729_s1 = inlined_call_operand.vmem [shape: bf16[6,1024], index: 1, kind: input, shape index: {}]   ;;  %s22730_s2 = inlined_call_operand.hbm [shape: bf16[2,1024,512], index: 2, kind: input, shape index: {}]   ;;  %s22731_s3 = inlined_call_operand.hbm [shape: f32[2,1,512], index: 3, kind: input, shape index: {}]   ;;  %s22732_s4 = inlined_call_operand.hbm [shape: f32[1,512], index: 4, kind: input, shape index: {}]   ;;  %s22733_s5 = inlined_call_operand.hbm [shape: f32[1,512], index: 5, kind: input, shape index: {}]   ;;  %s22734_s6 = inlined_call_operand.hbm [shape: f32[1,512], index: 6, kind: input, shape index: {}]   ;;  %s22735_s7 = inlined_call_operand.hbm [shape: f32[6,512], index: 7, kind: input, shape index: {}]   ;;  %s22736_s8 = inlined_call_operand.hbm [shape: f32[1,512], index: 8, kind: input, shape index: {}]   ;;  %s22737_s9 = inlined_call_operand.hbm [shape: bf16[512,1536], index: 9, kind: input, shape index: {}]   ;;  %s22738_s10 = inlined_call_operand.hbm [shape: f32[1,1536], index: 10, kind: input, shape index: {}]   ;;  %s22739_s11 = inlined_call_operand.hbm [shape: bf16[512,512], index: 11, kind: input, shape index: {}]   ;;  %s22740_s12 = inlined_call_operand.hbm [shape: f32[1,512], index: 12, kind: input, shape index: {}]   ;;  %s22741_s13 = inlined_call_operand.hbm [shape: f32[1,512], index: 13, kind: input, shape index: {}]   ;;  %s22742_s14 = inlined_call_operand.hbm [shape: f32[1,512], index: 14, kind: input, shape index: {}]   ;;  %s22743_s15 = inlined_call_operand.hbm [shape: bf16[512,2048], index: 15, kind: input, shape index: {}]   ;;  %s22744_s16 = inlined_call_operand.hbm [shape: f32[1,2048], index: 16, kind: input, shape index: {}]   ;;  %s22745_s17 = inlined_call_operand.hbm [shape: bf16[2048,512], index: 17, kind: input, shape index: {}]   ;;  %s22746_s18 = inlined_call_operand.hbm [shape: f32[1,512], index: 18, kind: input, shape index: {}]   ;;  %s22747_s19 = inlined_call_operand.hbm [shape: f32[1,512], index: 19, kind: input, shape index: {}]   ;;  %s22748_s20 = inlined_call_operand.hbm [shape: f32[1,512], index: 20, kind: input, shape index: {}]   ;;  %s22749_s21 = inlined_call_operand.vmem [shape: f32[2,512], index: 21, kind: output, shape index: {}]  }
   0x1   :  { %22758 = sst [smem:[#allocation43_spill]] %s22728_s0 }
   0x2   :  { %22759 = sst [smem:[#allocation44_spill]] %s22729_s1 }
   0x3   :  { %22760 = sst [smem:[#allocation45_spill]] %s22730_s2 }
   0x4   :  { %22761 = sst [smem:[#allocation46_spill]] %s22731_s3 }
   0x5   :  { %22762 = sst [smem:[#allocation47_spill]] %s22732_s4 }
   0x6   :  { %22763 = sst [smem:[#allocation48_spill]] %s22733_s5 }
   0x7   :  { %22764 = sst [smem:[#allocation49_spill]] %s22746_s18 }
   0x8   :  { %22765 = sst [smem:[#allocation50_spill]] %s22748_s20 }
   0x9   :  { %22766 = sst [smem:[#allocation51_spill]] %s22749_s21 }
   0xa   :  { %26 = vsyncpa [#allocation5], 0 }
   0xb   :  { %27 = vsyncpa [#allocation7], 0 }
   0xc   :  { %28 = vsyncpa [#allocation10], 0 }
   0xd   :  { %29 = vsyncpa [#allocation13], 0 }
   0xe   :  { %30 = vsyncpa [#allocation16], 0 }
   0xf   :  { %31 = vsyncpa [#allocation19], 0 }
  0x10   :  { %32 = vsyncpa [#allocation22], 0 }
  0x11   :  { %33 = vsyncpa [#allocation25], 0 }
  0x12   :  { %34 = vsyncpa [#allocation28], 0 }
  0x13   :  { %35 = vsyncpa [#allocation31], 0  ;;  %s21634_s2 = smov [#allocation6]   ;;  %s22767_s3 = sld [smem:[#allocation46_spill]] }
  0x14   :  { %s57_s25 = sshll.u32 %s21634_s2, 4  ;;  %s58_s25 = int_to_ptr.vmem [resolvable:$true] %s57_s25 }
  0x19   :  { %s21196_s28 = scalar_lea.hbm %s22767_s3, 128 }
  0x1a   :  { %p21197_p0 = scmp.ne.s32.totalorder %s22767_s3, %s21196_s28  ;;  %p21200_p1 = scmp.lt.u32.totalorder %s21196_s28, %s22767_s3 }
  0x1c   :  { %p21202_p2 = pnand %p21200_p1, %p21197_p0 }
  0x1e   :  { %21205 = shalt.err (!%p21202_p2)
}
  0x1f   :  { %s21206_s5 = scalar_lea.vmem %s58_s25, 128  ;;  %p21211_p4 = scmp.lt.s32.totalorder %s58_s25, %s58_s25 }
  0x20   :  { %p21207_p3 = scmp.ne.s32.totalorder %s58_s25, %s21206_s5  ;;  %p21212_p5 = scmp.lt.s32.totalorder %s21206_s5, %s21206_s5 }
  0x22   :  { %p21213_p6 = por %p21212_p5, %p21211_p4 }
  0x24   :  { %p21214_p7 = pnand %p21213_p6, %p21207_p3 }
  0x26   :  { %21217 = shalt.err (!%p21214_p7)
}
  0x27   :  { %s21635_s22 = smov 64   ;;  %s21636_s23 = smov 4  }
  0x28   :  { %63 = dma.hbm_to_vmem [thread:$0]  %s22767_s3, 128, %s58_s25, [#allocation7], %s21635_s22, %s21635_s22, %s21636_s23  }
  0x29   :  { %s21637_s2 = smov [#allocation9]   ;;  %s21638_s27 = smov [#allocation12]  }
  0x2a   :  { %s80_s26 = sshll.u32 %s21637_s2, 4  ;;  %s100_s28 = sshll.u32 %s21638_s27, 4  ;;  %s81_s26 = int_to_ptr.vmem [resolvable:$true] %s80_s26  ;;  %s101_s28 = int_to_ptr.vmem [resolvable:$true] %s100_s28 }
  0x2b   :  { %s22768_s4 = sld [smem:[#allocation48_spill]] }
  0x31   :  { %s21218_s30 = scalar_lea.hbm %s22768_s4, 64 }
  0x32   :  { %p21219_p8 = scmp.ne.s32.totalorder %s22768_s4, %s21218_s30  ;;  %p21222_p9 = scmp.lt.u32.totalorder %s21218_s30, %s22768_s4 }
  0x34   :  { %p21224_p10 = pnand %p21222_p9, %p21219_p8 }
  0x36   :  { %21227 = shalt.err (!%p21224_p10)
}
  0x37   :  { %s21228_s25 = scalar_lea.vmem %s81_s26, 64  ;;  %p21233_p12 = scmp.lt.s32.totalorder %s81_s26, %s81_s26 }
  0x38   :  { %p21229_p11 = scmp.ne.s32.totalorder %s81_s26, %s21228_s25  ;;  %p21234_p13 = scmp.lt.s32.totalorder %s21228_s25, %s21228_s25 }
  0x3a   :  { %p21235_p0 = por %p21234_p13, %p21233_p12 }
  0x3c   :  { %p21236_p1 = pnand %p21235_p0, %p21229_p11 }
  0x3e   :  { %21239 = shalt.err (!%p21236_p1)
}
  0x3f   :  { %83 = dma.hbm_to_vmem [thread:$0]  %s22768_s4, 64, %s81_s26, [#allocation10]  }
  0x40   :  { %s21240_s24 = scalar_lea.hbm %s22735_s7, 512 }
  0x41   :  { %p21241_p2 = scmp.ne.s32.totalorder %s22735_s7, %s21240_s24  ;;  %p21244_p3 = scmp.lt.u32.totalorder %s21240_s24, %s22735_s7 }
  0x43   :  { %p21246_p4 = pnand %p21244_p3, %p21241_p2 }
  0x45   :  { %21249 = shalt.err (!%p21246_p4)
}
  0x46   :  { %s21250_s29 = scalar_lea.vmem %s101_s28, 512  ;;  %p21255_p6 = scmp.lt.s32.totalorder %s101_s28, %s101_s28 }
  0x47   :  { %p21251_p5 = scmp.ne.s32.totalorder %s101_s28, %s21250_s29  ;;  %p21256_p7 = scmp.lt.s32.totalorder %s21250_s29, %s21250_s29 }
  0x49   :  { %p21257_p8 = por %p21256_p7, %p21255_p6 }
  0x4b   :  { %p21258_p9 = pnand %p21257_p8, %p21251_p5 }
  0x4d   :  { %21261 = shalt.err (!%p21258_p9)
}
  0x4e   :  { %103 = dma.hbm_to_vmem [thread:$0]  %s22735_s7, 512, %s101_s28, [#allocation13]  }
  0x4f   :  { %s21639_s4 = smov [#allocation15]   ;;  %s21262_s3 = scalar_lea.hbm %s22737_s9, 49152 }
  0x50   :  { %s119_s30 = sshll.u32 %s21639_s4, 4  ;;  %p21263_p10 = scmp.ne.s32.totalorder %s22737_s9, %s21262_s3  ;;  %s120_s30 = int_to_ptr.vmem [resolvable:$true] %s119_s30 }
  0x51   :  { %p21266_p11 = scmp.lt.u32.totalorder %s21262_s3, %s22737_s9 }
  0x53   :  { %p21268_p12 = pnand %p21266_p11, %p21263_p10 }
  0x55   :  { %21271 = shalt.err (!%p21268_p12)
}
  0x56   :  { %s21272_s18 = scalar_lea.vmem %s120_s30, 49152  ;;  %p21277_p0 = scmp.lt.s32.totalorder %s120_s30, %s120_s30 }
  0x57   :  { %p21273_p13 = scmp.ne.s32.totalorder %s120_s30, %s21272_s18  ;;  %p21278_p1 = scmp.lt.s32.totalorder %s21272_s18, %s21272_s18 }
  0x59   :  { %p21279_p2 = por %p21278_p1, %p21277_p0 }
  0x5b   :  { %p21280_p3 = pnand %p21279_p2, %p21273_p13 }
  0x5d   :  { %21283 = shalt.err (!%p21280_p3)
}
  0x5e   :  { %s21640_s7 = smov 768   ;;  %s21641_s28 = smov 48  }
  0x5f   :  { %125 = dma.hbm_to_vmem [thread:$0]  %s22737_s9, 49152, %s120_s30, [#allocation16], %s21640_s7, %s21640_s7, %s21641_s28  }
  0x60   :  { %s21642_s27 = smov [#allocation18]   ;;  %s21643_s26 = smov [#allocation21]  }
  0x61   :  { %s141_s29 = sshll.u32 %s21642_s27, 4  ;;  %s164_s0 = sshll.u32 %s21643_s26, 4  ;;  %s142_s29 = int_to_ptr.vmem [resolvable:$true] %s141_s29  ;;  %s165_s0 = int_to_ptr.vmem [resolvable:$true] %s164_s0 }
  0x62   :  { %s21284_s25 = scalar_lea.hbm %s22739_s11, 16384 }
  0x63   :  { %p21285_p4 = scmp.ne.s32.totalorder %s22739_s11, %s21284_s25  ;;  %p21288_p5 = scmp.lt.u32.totalorder %s21284_s25, %s22739_s11 }
  0x65   :  { %p21290_p6 = pnand %p21288_p5, %p21285_p4 }
  0x67   :  { %21293 = shalt.err (!%p21290_p6)
}
  0x68   :  { %s21294_s9 = scalar_lea.vmem %s142_s29, 16384  ;;  %p21299_p8 = scmp.lt.s32.totalorder %s142_s29, %s142_s29 }
  0x69   :  { %p21295_p7 = scmp.ne.s32.totalorder %s142_s29, %s21294_s9  ;;  %p21300_p9 = scmp.lt.s32.totalorder %s21294_s9, %s21294_s9 }
  0x6b   :  { %p21301_p10 = por %p21300_p9, %p21299_p8 }
  0x6d   :  { %p21302_p11 = pnand %p21301_p10, %p21295_p7 }
  0x6f   :  { %21305 = shalt.err (!%p21302_p11)
}
  0x70   :  { %s21644_s30 = smov 256   ;;  %s21645_s24 = smov 16  }
  0x71   :  { %147 = dma.hbm_to_vmem [thread:$0]  %s22739_s11, 16384, %s142_s29, [#allocation19], %s21644_s30, %s21644_s30, %s21645_s24  }
  0x72   :  { %s21306_s2 = scalar_lea.hbm %s22741_s13, 64 }
  0x73   :  { %p21307_p12 = scmp.ne.s32.totalorder %s22741_s13, %s21306_s2  ;;  %p21310_p13 = scmp.lt.u32.totalorder %s21306_s2, %s22741_s13 }
  0x75   :  { %p21312_p0 = pnand %p21310_p13, %p21307_p12 }
  0x77   :  { %21315 = shalt.err (!%p21312_p0)
}
  0x78   :  { %s21316_s25 = scalar_lea.vmem %s165_s0, 64  ;;  %p21321_p2 = scmp.lt.s32.totalorder %s165_s0, %s165_s0 }
  0x79   :  { %p21317_p1 = scmp.ne.s32.totalorder %s165_s0, %s21316_s25  ;;  %p21322_p3 = scmp.lt.s32.totalorder %s21316_s25, %s21316_s25 }
  0x7b   :  { %p21323_p4 = por %p21322_p3, %p21321_p2 }
  0x7d   :  { %p21324_p5 = pnand %p21323_p4, %p21317_p1 }
  0x7f   :  { %21327 = shalt.err (!%p21324_p5)
}
  0x80   :  { %167 = dma.hbm_to_vmem [thread:$0]  %s22741_s13, 64, %s165_s0, [#allocation22]  }
  0x81   :  { %s21646_s3 = smov [#allocation24]   ;;  %s21647_s21 = smov [#allocation27]  }
  0x82   :  { %s183_s23 = sshll.u32 %s21646_s3, 4  ;;  %s205_s1 = sshll.u32 %s21647_s21, 4  ;;  %s184_s23 = int_to_ptr.vmem [resolvable:$true] %s183_s23  ;;  %s206_s1 = int_to_ptr.vmem [resolvable:$true] %s205_s1 }
  0x83   :  { %s21328_s7 = scalar_lea.hbm %s22743_s15, 65536 }
  0x84   :  { %p21329_p6 = scmp.ne.s32.totalorder %s22743_s15, %s21328_s7  ;;  %p21332_p7 = scmp.lt.u32.totalorder %s21328_s7, %s22743_s15 }
  0x86   :  { %p21334_p8 = pnand %p21332_p7, %p21329_p6 }
  0x88   :  { %21337 = shalt.err (!%p21334_p8)
}
  0x89   :  { %s21338_s13 = scalar_lea.vmem %s184_s23, 65536  ;;  %p21343_p10 = scmp.lt.s32.totalorder %s184_s23, %s184_s23 }
  0x8a   :  { %p21339_p9 = scmp.ne.s32.totalorder %s184_s23, %s21338_s13  ;;  %p21344_p11 = scmp.lt.s32.totalorder %s21338_s13, %s21338_s13 }
  0x8c   :  { %p21345_p12 = por %p21344_p11, %p21343_p10 }
  0x8e   :  { %p21346_p13 = pnand %p21345_p12, %p21339_p9 }
  0x90   :  { %21349 = shalt.err (!%p21346_p13)
}
  0x91   :  { %s21648_s0 = smov 1024   ;;  %s21350_s11 = scalar_lea.hbm %s22745_s17, 65536 }
  0x92   :  { %189 = dma.hbm_to_vmem [thread:$0]  %s22743_s15, 65536, %s184_s23, [#allocation25], %s21648_s0, %s21648_s0, %s21635_s22  }
  0x93   :  { %p21351_p0 = scmp.ne.s32.totalorder %s22745_s17, %s21350_s11  ;;  %p21354_p1 = scmp.lt.u32.totalorder %s21350_s11, %s22745_s17 }
  0x95   :  { %p21356_p2 = pnand %p21354_p1, %p21351_p0 }
  0x97   :  { %21359 = shalt.err (!%p21356_p2)
}
  0x98   :  { %s21360_s18 = scalar_lea.vmem %s206_s1, 65536  ;;  %p21365_p4 = scmp.lt.s32.totalorder %s206_s1, %s206_s1 }
  0x99   :  { %p21361_p3 = scmp.ne.s32.totalorder %s206_s1, %s21360_s18  ;;  %p21366_p5 = scmp.lt.s32.totalorder %s21360_s18, %s21360_s18 }
  0x9b   :  { %p21367_p6 = por %p21366_p5, %p21365_p4 }
  0x9d   :  { %p21368_p7 = pnand %p21367_p6, %p21361_p3 }
  0x9f   :  { %21371 = shalt.err (!%p21368_p7)
}
  0xa0   :  { %211 = dma.hbm_to_vmem [thread:$0]  %s22745_s17, 65536, %s206_s1, [#allocation28], %s21644_s30, %s21644_s30, %s21645_s24  }
  0xa1   :  { %s21649_s23 = smov [#allocation30]   ;;  %s21650_s28 = smov [#allocation4]  }
  0xa2   :  { %s228_s7 = sshll.u32 %s21649_s23, 4  ;;  %s45_s20 = sshll.u32 %s21650_s28, 4  ;;  %s229_s7 = int_to_ptr.vmem [resolvable:$true] %s228_s7  ;;  %s46_s20 = int_to_ptr.vmem [resolvable:$true] %s45_s20 }
  0xa3   :  { %s21372_s13 = scalar_lea.hbm %s22747_s19, 64 }
  0xa4   :  { %p21373_p8 = scmp.ne.s32.totalorder %s22747_s19, %s21372_s13  ;;  %p21376_p9 = scmp.lt.u32.totalorder %s21372_s13, %s22747_s19 }
  0xa6   :  { %p21378_p10 = pnand %p21376_p9, %p21373_p8 }
  0xa8   :  { %21381 = shalt.err (!%p21378_p10)
}
  0xa9   :  { %s21382_s17 = scalar_lea.vmem %s229_s7, 64  ;;  %p21387_p12 = scmp.lt.s32.totalorder %s229_s7, %s229_s7 }
  0xaa   :  { %p21383_p11 = scmp.ne.s32.totalorder %s229_s7, %s21382_s17  ;;  %p21388_p13 = scmp.lt.s32.totalorder %s21382_s17, %s21382_s17 }
  0xac   :  { %p21389_p0 = por %p21388_p13, %p21387_p12 }
  0xae   :  { %p21390_p1 = pnand %p21389_p0, %p21383_p11 }
  0xb0   :  { %21393 = shalt.err (!%p21390_p1)
}
  0xb1   :  { %231 = dma.hbm_to_vmem [thread:$0]  %s22747_s19, 64, %s229_s7, [#allocation31]  }
  0xb2   :  { %s22769_s3 = sld [smem:[#allocation45_spill]] }
  0xb8   :  { %s21394_s21 = scalar_lea.hbm %s22769_s3, 65536 }
  0xb9   :  { %p21395_p2 = scmp.ne.s32.totalorder %s22769_s3, %s21394_s21  ;;  %p21398_p3 = scmp.lt.u32.totalorder %s21394_s21, %s22769_s3 }
  0xbb   :  { %p21400_p4 = pnand %p21398_p3, %p21395_p2 }
  0xbd   :  { %21403 = shalt.err (!%p21400_p4)
}
  0xbe   :  { %s21404_s23 = scalar_lea.vmem %s46_s20, 65536  ;;  %p21409_p6 = scmp.lt.s32.totalorder %s46_s20, %s46_s20 }
  0xbf   :  { %p21405_p5 = scmp.ne.s32.totalorder %s46_s20, %s21404_s23  ;;  %p21410_p7 = scmp.lt.s32.totalorder %s21404_s23, %s21404_s23 }
  0xc1   :  { %p21411_p8 = por %p21410_p7, %p21409_p6 }
  0xc3   :  { %p21412_p9 = pnand %p21411_p8, %p21405_p5 }
  0xc5   :  { %21415 = shalt.err (!%p21412_p9)
}
  0xc6   :  { %51 = dma.hbm_to_vmem [thread:$0]  %s22769_s3, 65536, %s46_s20, [#allocation5], %s21644_s30, %s21644_s30, %s21645_s24  }
  0xc7   :  { %s21651_s28 = smov [#allocation8]   ;;  %s21652_s27 = smov [#allocation11]  }
  0xc8   :  { %s70_s2 = sshll.u32 %s21651_s28, 4  ;;  %s90_s13 = sshll.u32 %s21652_s27, 4  ;;  %s71_s2 = int_to_ptr.vmem [resolvable:$true] %s70_s2  ;;  %s91_s13 = int_to_ptr.vmem [resolvable:$true] %s90_s13 }
  0xc9   :  { %s22770_s4 = sld [smem:[#allocation47_spill]] }
  0xcf   :  { %s21416_s5 = scalar_lea.hbm %s22770_s4, 64 }
  0xd0   :  { %p21417_p10 = scmp.ne.s32.totalorder %s22770_s4, %s21416_s5  ;;  %p21420_p11 = scmp.lt.u32.totalorder %s21416_s5, %s22770_s4 }
  0xd2   :  { %p21422_p12 = pnand %p21420_p11, %p21417_p10 }
  0xd4   :  { %21425 = shalt.err (!%p21422_p12)
}
  0xd5   :  { %s21426_s30 = scalar_lea.vmem %s71_s2, 64  ;;  %p21431_p0 = scmp.lt.s32.totalorder %s71_s2, %s71_s2 }
  0xd6   :  { %p21427_p13 = scmp.ne.s32.totalorder %s71_s2, %s21426_s30  ;;  %p21432_p1 = scmp.lt.s32.totalorder %s21426_s30, %s21426_s30 }
  0xd8   :  { %p21433_p2 = por %p21432_p1, %p21431_p0 }
  0xda   :  { %p21434_p3 = pnand %p21433_p2, %p21427_p13 }
  0xdc   :  { %21437 = shalt.err (!%p21434_p3)
}
  0xdd   :  { %73 = dma.hbm_to_vmem [thread:$0]  %s22770_s4, 64, %s71_s2, [#allocation7]  }
  0xde   :  { %s21438_s21 = scalar_lea.hbm %s22734_s6, 64 }
  0xdf   :  { %p21439_p4 = scmp.ne.s32.totalorder %s22734_s6, %s21438_s21  ;;  %p21442_p5 = scmp.lt.u32.totalorder %s21438_s21, %s22734_s6 }
  0xe1   :  { %p21444_p6 = pnand %p21442_p5, %p21439_p4 }
  0xe3   :  { %21447 = shalt.err (!%p21444_p6)
}
  0xe4   :  { %s21448_s23 = scalar_lea.vmem %s91_s13, 64  ;;  %p21453_p8 = scmp.lt.s32.totalorder %s91_s13, %s91_s13 }
  0xe5   :  { %p21449_p7 = scmp.ne.s32.totalorder %s91_s13, %s21448_s23  ;;  %p21454_p9 = scmp.lt.s32.totalorder %s21448_s23, %s21448_s23 }
  0xe7   :  { %p21455_p10 = por %p21454_p9, %p21453_p8 }
  0xe9   :  { %p21456_p11 = pnand %p21455_p10, %p21449_p7 }
  0xeb   :  { %21459 = shalt.err (!%p21456_p11)
}
  0xec   :  { %93 = dma.hbm_to_vmem [thread:$0]  %s22734_s6, 64, %s91_s13, [#allocation10]  }
  0xed   :  { %s21653_s28 = smov [#allocation14]   ;;  %s21654_s27 = smov [#allocation17]  }
  0xee   :  { %s110_s2 = sshll.u32 %s21653_s28, 4  ;;  %s132_s0 = sshll.u32 %s21654_s27, 4  ;;  %s111_s2 = int_to_ptr.vmem [resolvable:$true] %s110_s2  ;;  %s133_s0 = int_to_ptr.vmem [resolvable:$true] %s132_s0 }
  0xef   :  { %s21460_s5 = scalar_lea.hbm %s22736_s8, 64 }
  0xf0   :  { %p21461_p12 = scmp.ne.s32.totalorder %s22736_s8, %s21460_s5  ;;  %p21464_p13 = scmp.lt.u32.totalorder %s21460_s5, %s22736_s8 }
  0xf2   :  { %p21466_p0 = pnand %p21464_p13, %p21461_p12 }
  0xf4   :  { %21469 = shalt.err (!%p21466_p0)
}
  0xf5   :  { %s21470_s6 = scalar_lea.vmem %s111_s2, 64  ;;  %p21475_p2 = scmp.lt.s32.totalorder %s111_s2, %s111_s2 }
  0xf6   :  { %p21471_p1 = scmp.ne.s32.totalorder %s111_s2, %s21470_s6  ;;  %p21476_p3 = scmp.lt.s32.totalorder %s21470_s6, %s21470_s6 }
  0xf8   :  { %p21477_p4 = por %p21476_p3, %p21475_p2 }
  0xfa   :  { %p21478_p5 = pnand %p21477_p4, %p21471_p1 }
  0xfc   :  { %21481 = shalt.err (!%p21478_p5)
}
  0xfd   :  { %113 = dma.hbm_to_vmem [thread:$0]  %s22736_s8, 64, %s111_s2, [#allocation13]  }
  0xfe   :  { %s21482_s29 = scalar_lea.hbm %s22738_s10, 192 }
  0xff   :  { %p21483_p6 = scmp.ne.s32.totalorder %s22738_s10, %s21482_s29  ;;  %p21486_p7 = scmp.lt.u32.totalorder %s21482_s29, %s22738_s10 }
 0x101   :  { %p21488_p8 = pnand %p21486_p7, %p21483_p6 }
 0x103   :  { %21491 = shalt.err (!%p21488_p8)
}
 0x104   :  { %s21492_s15 = scalar_lea.vmem %s133_s0, 192  ;;  %p21497_p10 = scmp.lt.s32.totalorder %s133_s0, %s133_s0 }
 0x105   :  { %p21493_p9 = scmp.ne.s32.totalorder %s133_s0, %s21492_s15  ;;  %p21498_p11 = scmp.lt.s32.totalorder %s21492_s15, %s21492_s15 }
 0x107   :  { %p21499_p12 = por %p21498_p11, %p21497_p10 }
 0x109   :  { %p21500_p13 = pnand %p21499_p12, %p21493_p9 }
 0x10b   :  { %21503 = shalt.err (!%p21500_p13)
}
 0x10c   :  { %135 = dma.hbm_to_vmem [thread:$0]  %s22738_s10, 192, %s133_s0, [#allocation16]  }
 0x10d   :  { %s21655_s23 = smov [#allocation20]   ;;  %s21656_s7 = smov [#allocation23]  }
 0x10e   :  { %s154_s19 = sshll.u32 %s21655_s23, 4  ;;  %s174_s28 = sshll.u32 %s21656_s7, 4  ;;  %s155_s19 = int_to_ptr.vmem [resolvable:$true] %s154_s19  ;;  %s175_s28 = int_to_ptr.vmem [resolvable:$true] %s174_s28 }
 0x10f   :  { %s21504_s26 = scalar_lea.hbm %s22740_s12, 64 }
 0x110   :  { %p21505_p0 = scmp.ne.s32.totalorder %s22740_s12, %s21504_s26  ;;  %p21508_p1 = scmp.lt.u32.totalorder %s21504_s26, %s22740_s12 }
 0x112   :  { %p21510_p2 = pnand %p21508_p1, %p21505_p0 }
 0x114   :  { %21513 = shalt.err (!%p21510_p2)
}
 0x115   :  { %s21514_s10 = scalar_lea.vmem %s155_s19, 64  ;;  %p21519_p4 = scmp.lt.s32.totalorder %s155_s19, %s155_s19 }
 0x116   :  { %p21515_p3 = scmp.ne.s32.totalorder %s155_s19, %s21514_s10  ;;  %p21520_p5 = scmp.lt.s32.totalorder %s21514_s10, %s21514_s10 }
 0x118   :  { %p21521_p6 = por %p21520_p5, %p21519_p4 }
 0x11a   :  { %p21522_p7 = pnand %p21521_p6, %p21515_p3 }
 0x11c   :  { %21525 = shalt.err (!%p21522_p7)
}
 0x11d   :  { %157 = dma.hbm_to_vmem [thread:$0]  %s22740_s12, 64, %s155_s19, [#allocation19]  }
 0x11e   :  { %s21526_s13 = scalar_lea.hbm %s22742_s14, 64 }
 0x11f   :  { %p21527_p8 = scmp.ne.s32.totalorder %s22742_s14, %s21526_s13  ;;  %p21530_p9 = scmp.lt.u32.totalorder %s21526_s13, %s22742_s14 }
 0x121   :  { %p21532_p10 = pnand %p21530_p9, %p21527_p8 }
 0x123   :  { %21535 = shalt.err (!%p21532_p10)
}
 0x124   :  { %s21536_s3 = scalar_lea.vmem %s175_s28, 64  ;;  %p21541_p12 = scmp.lt.s32.totalorder %s175_s28, %s175_s28 }
 0x125   :  { %p21537_p11 = scmp.ne.s32.totalorder %s175_s28, %s21536_s3  ;;  %p21542_p13 = scmp.lt.s32.totalorder %s21536_s3, %s21536_s3 }
 0x127   :  { %p21543_p0 = por %p21542_p13, %p21541_p12 }
 0x129   :  { %p21544_p1 = pnand %p21543_p0, %p21537_p11 }
 0x12b   :  { %21547 = shalt.err (!%p21544_p1)
}
 0x12c   :  { %177 = dma.hbm_to_vmem [thread:$0]  %s22742_s14, 64, %s175_s28, [#allocation22]  }
 0x12d   :  { %s21657_s9 = smov [#allocation26]   ;;  %s21658_s15 = smov [#allocation29]  }
 0x12e   :  { %s196_s18 = sshll.u32 %s21657_s9, 4  ;;  %s218_s8 = sshll.u32 %s21658_s15, 4  ;;  %s197_s18 = int_to_ptr.vmem [resolvable:$true] %s196_s18  ;;  %s219_s8 = int_to_ptr.vmem [resolvable:$true] %s218_s8 }
 0x12f   :  { %s21548_s19 = scalar_lea.hbm %s22744_s16, 256 }
 0x130   :  { %p21549_p2 = scmp.ne.s32.totalorder %s22744_s16, %s21548_s19  ;;  %p21552_p3 = scmp.lt.u32.totalorder %s21548_s19, %s22744_s16 }
 0x132   :  { %p21554_p4 = pnand %p21552_p3, %p21549_p2 }
 0x134   :  { %21557 = shalt.err (!%p21554_p4)
}
 0x135   :  { %s21558_s14 = scalar_lea.vmem %s197_s18, 256  ;;  %p21563_p6 = scmp.lt.s32.totalorder %s197_s18, %s197_s18 }
 0x136   :  { %p21559_p5 = scmp.ne.s32.totalorder %s197_s18, %s21558_s14  ;;  %p21564_p7 = scmp.lt.s32.totalorder %s21558_s14, %s21558_s14 }
 0x138   :  { %p21565_p8 = por %p21564_p7, %p21563_p6 }
 0x13a   :  { %p21566_p9 = pnand %p21565_p8, %p21559_p5 }
 0x13c   :  { %21569 = shalt.err (!%p21566_p9)
}
 0x13d   :  { %199 = dma.hbm_to_vmem [thread:$0]  %s22744_s16, 256, %s197_s18, [#allocation25]  }
 0x13e   :  { %s22771_s1 = sld [smem:[#allocation49_spill]] }
 0x144   :  { %s21570_s10 = scalar_lea.hbm %s22771_s1, 64 }
 0x145   :  { %p21571_p10 = scmp.ne.s32.totalorder %s22771_s1, %s21570_s10  ;;  %p21574_p11 = scmp.lt.u32.totalorder %s21570_s10, %s22771_s1 }
 0x147   :  { %p21576_p12 = pnand %p21574_p11, %p21571_p10 }
 0x149   :  { %21579 = shalt.err (!%p21576_p12)
}
 0x14a   :  { %s21580_s13 = scalar_lea.vmem %s219_s8, 64  ;;  %p21585_p0 = scmp.lt.s32.totalorder %s219_s8, %s219_s8 }
 0x14b   :  { %p21581_p13 = scmp.ne.s32.totalorder %s219_s8, %s21580_s13  ;;  %p21586_p1 = scmp.lt.s32.totalorder %s21580_s13, %s21580_s13 }
 0x14d   :  { %p21587_p2 = por %p21586_p1, %p21585_p0 }
 0x14f   :  { %p21588_p3 = pnand %p21587_p2, %p21581_p13 }
 0x151   :  { %21591 = shalt.err (!%p21588_p3)
}
 0x152   :  { %221 = dma.hbm_to_vmem [thread:$0]  %s22771_s1, 64, %s219_s8, [#allocation28]  }
 0x153   :  { %s21659_s24 = smov [#allocation32]   ;;  %s22772_s12 = sld [smem:[#allocation50_spill]] }
 0x154   :  { %s238_s20 = sshll.u32 %s21659_s24, 4  ;;  %s239_s20 = int_to_ptr.vmem [resolvable:$true] %s238_s20 }
 0x159   :  { %s21592_s21 = scalar_lea.hbm %s22772_s12, 64 }
 0x15a   :  { %p21593_p4 = scmp.ne.s32.totalorder %s22772_s12, %s21592_s21  ;;  %p21596_p5 = scmp.lt.u32.totalorder %s21592_s21, %s22772_s12 }
 0x15c   :  { %p21598_p6 = pnand %p21596_p5, %p21593_p4 }
 0x15e   :  { %21601 = shalt.err (!%p21598_p6)
}
 0x15f   :  { %s21602_s23 = scalar_lea.vmem %s239_s20, 64  ;;  %p21607_p8 = scmp.lt.s32.totalorder %s239_s20, %s239_s20 }
 0x160   :  { %p21603_p7 = scmp.ne.s32.totalorder %s239_s20, %s21602_s23  ;;  %p21608_p9 = scmp.lt.s32.totalorder %s21602_s23, %s21602_s23 }
 0x162   :  { %p21609_p10 = por %p21608_p9, %p21607_p8 }
 0x164   :  { %p21610_p11 = pnand %p21609_p10, %p21603_p7 }
 0x166   :  { %21613 = shalt.err (!%p21610_p11)
}
 0x167   :  { %241 = dma.hbm_to_vmem [thread:$0]  %s22772_s12, 64, %s239_s20, [#allocation31]  }
 0x168   :  { %21614 = dma.done.wait [#allocation5], 65536  }
 0x169   :  { %21615 = vsyncadd [#allocation5], 4294901760 }
 0x16a   :  { %21616 = dma.done.wait [#allocation7], 192  }
 0x16b   :  { %21617 = vsyncadd [#allocation7], 4294967104 }
 0x16c   :  { %21618 = dma.done.wait [#allocation10], 128  }
 0x16d   :  { %21619 = vsyncadd [#allocation10], 4294967168 }
 0x16e   :  { %21620 = dma.done.wait [#allocation13], 576  }
 0x16f   :  { %21621 = vsyncadd [#allocation13], 4294966720 }
 0x170   :  { %21622 = dma.done.wait [#allocation16], 49344  }
 0x171   :  { %21623 = vsyncadd [#allocation16], 4294917952 }
 0x172   :  { %21624 = dma.done.wait [#allocation19], 16448  }
 0x173   :  { %21625 = vsyncadd [#allocation19], 4294950848 }
 0x174   :  { %21626 = dma.done.wait [#allocation22], 128  }
 0x175   :  { %21627 = vsyncadd [#allocation22], 4294967168 }
 0x176   :  { %21628 = dma.done.wait [#allocation25], 65792  }
 0x177   :  { %21629 = vsyncadd [#allocation25], 4294901504 }
 0x178   :  { %21630 = dma.done.wait [#allocation28], 65600  }
 0x179   :  { %21631 = vsyncadd [#allocation28], 4294901696 }
 0x17a   :  { %21632 = dma.done.wait [#allocation31], 128  }
 0x17b   :  { %21633 = vsyncadd [#allocation31], 4294967168  ;;  %v18822_v0 = vld [vmem:[#allocation4 + $0x4] ss:$16 sps:$4 sm:$0xff]   ;;  %v18826_v2 = vld [vmem:[#allocation4] ss:$16 sps:$4 sm:$0xff]  }
 0x17c   :  { %v18824_v1 = vld [vmem:[#allocation4 + $0x204] ss:$16 sps:$4 sm:$0xff]   ;;  %1890 = vmatprep.subr.bf16.mxu0 %v18822_v0  ;;  %v18827_v3 = vld [vmem:[#allocation4 + $0x200] ss:$16 sps:$4 sm:$0xff]   ;;  %s22773_s27 = sld [smem:[#allocation43_spill]]  ;;  %s22774_s0 = sld [smem:[#allocation44_spill]] }
 0x17d   :  { %1931 = vmatprep.subr.bf16.mxu1 %v18824_v1  ;;  %v18828_v4 = vld [vmem:[#allocation4 + $0x24] ss:$16 sps:$4 sm:$0xff]   ;;  %1891 = vmatpush1.bf16.msra.mxu0 %v18826_v2  ;;  %v18832_v6 = vld [vmem:[#allocation4 + $0x20] ss:$16 sps:$4 sm:$0xff]   ;;  %vm21661_vm0 = vmmov 0   ;;  %vm7249_vm1 = vcmask 1046528  }
 0x17e   :  { %1932 = vmatpush1.bf16.msra.mxu1 %v18827_v3  ;;  %v18830_v5 = vld [vmem:[#allocation4 + $0x224] ss:$16 sps:$4 sm:$0xff]   ;;  %1892 = vmatprep.subr.bf16.mxu0 %v18828_v4  ;;  %v18833_v7 = vld [vmem:[#allocation4 + $0x220] ss:$16 sps:$4 sm:$0xff]   ;;  %vm7221_vm3 = vcmask 113664   ;;  %vm7225_vm5 = vcmask 111616  }
 0x17f   :  { %1933 = vmatprep.subr.bf16.mxu1 %v18830_v5  ;;  %v18834_v8 = vld [vmem:[#allocation4 + $0x44] ss:$16 sps:$4 sm:$0xff]   ;;  %v18838_v10 = vld [vmem:[#allocation4 + $0x40] ss:$16 sps:$4 sm:$0xff]   ;;  %vm8645_vm6 = vcmask 1045504   ;;  %s22775_s29 = sld [smem:[#allocation51_spill]] }
 0x180   :  { %v18836_v9 = vld [vmem:[#allocation4 + $0x244] ss:$16 sps:$4 sm:$0xff]   ;;  %v18839_v11 = vld [vmem:[#allocation4 + $0x240] ss:$16 sps:$4 sm:$0xff]  }
 0x181   :  { %1893 = vmatpush1.bf16.msra.mxu0 %v18832_v6  ;;  %v18840_v12 = vld [vmem:[#allocation4 + $0x64] ss:$16 sps:$4 sm:$0xff]   ;;  %v18844_v14 = vld [vmem:[#allocation4 + $0x60] ss:$16 sps:$4 sm:$0xff]  }
 0x182   :  { %1934 = vmatpush1.bf16.msra.mxu1 %v18833_v7  ;;  %1894 = vmatprep.subr.bf16.mxu0 %v18834_v8  ;;  %v18842_v13 = vld [vmem:[#allocation4 + $0x264] ss:$16 sps:$4 sm:$0xff]   ;;  %v18845_v15 = vld [vmem:[#allocation4 + $0x260] ss:$16 sps:$4 sm:$0xff]   ;;  %v301_v48 = vld [vmem:[%s22773_s27 + $0x8] sm:$0x77] }
 0x183   :  { %1935 = vmatprep.subr.bf16.mxu1 %v18836_v9  ;;  %v18846_v16 = vld [vmem:[#allocation4 + $0x84] ss:$16 sps:$4 sm:$0xff]   ;;  %v18850_v18 = vld [vmem:[#allocation4 + $0x80] ss:$16 sps:$4 sm:$0xff]   ;;  %v22021_v51 = vcombine.high %v301_v48, %v301_v48  ;;  %v22027_v7 = vcombine.low %v301_v48, %v301_v48 }
 0x184   :  { %v18848_v17 = vld [vmem:[#allocation4 + $0x284] ss:$16 sps:$4 sm:$0xff]   ;;  %v18851_v19 = vld [vmem:[#allocation4 + $0x280] ss:$16 sps:$4 sm:$0xff]  }
 0x185   :  { %1895 = vmatpush1.bf16.msra.mxu0 %v18838_v10  ;;  %v18852_v20 = vld [vmem:[#allocation4 + $0xa4] ss:$16 sps:$4 sm:$0xff]   ;;  %v18856_v22 = vld [vmem:[#allocation4 + $0xa0] ss:$16 sps:$4 sm:$0xff]   ;;  %1963 = vmatprep.mubr.bf16.mxu1 %v22021_v51 }
 0x186   :  { %1936 = vmatpush1.bf16.msra.mxu1 %v18839_v11  ;;  %1896 = vmatprep.subr.bf16.mxu0 %v18840_v12  ;;  %v18854_v21 = vld [vmem:[#allocation4 + $0x2a4] ss:$16 sps:$4 sm:$0xff]   ;;  %v18857_v23 = vld [vmem:[#allocation4 + $0x2a0] ss:$16 sps:$4 sm:$0xff]  }
 0x187   :  { %1937 = vmatprep.subr.bf16.mxu1 %v18842_v13  ;;  %v18858_v24 = vld [vmem:[#allocation4 + $0xc4] ss:$16 sps:$4 sm:$0xff]   ;;  %v18862_v26 = vld [vmem:[#allocation4 + $0xc0] ss:$16 sps:$4 sm:$0xff]  }
 0x188   :  { %v18860_v25 = vld [vmem:[#allocation4 + $0x2c4] ss:$16 sps:$4 sm:$0xff]   ;;  %v18863_v27 = vld [vmem:[#allocation4 + $0x2c0] ss:$16 sps:$4 sm:$0xff]  }
 0x189   :  { %1897 = vmatpush1.bf16.msra.mxu0 %v18844_v14  ;;  %v18864_v28 = vld [vmem:[#allocation4 + $0xe4] ss:$16 sps:$4 sm:$0xff]   ;;  %v18868_v30 = vld [vmem:[#allocation4 + $0xe0] ss:$16 sps:$4 sm:$0xff]  }
 0x18a   :  { %1938 = vmatpush1.bf16.msra.mxu1 %v18845_v15  ;;  %1898 = vmatprep.subr.bf16.mxu0 %v18846_v16  ;;  %v18866_v29 = vld [vmem:[#allocation4 + $0x2e4] ss:$16 sps:$4 sm:$0xff]   ;;  %v18869_v31 = vld [vmem:[#allocation4 + $0x2e0] ss:$16 sps:$4 sm:$0xff]  }
 0x18b   :  { %1939 = vmatprep.subr.bf16.mxu1 %v18848_v17  ;;  %v18870_v32 = vld [vmem:[#allocation4 + $0x104] ss:$16 sps:$4 sm:$0xff]   ;;  %v18874_v34 = vld [vmem:[#allocation4 + $0x100] ss:$16 sps:$4 sm:$0xff]  }
 0x18c   :  { %v18872_v33 = vld [vmem:[#allocation4 + $0x304] ss:$16 sps:$4 sm:$0xff]   ;;  %v18875_v35 = vld [vmem:[#allocation4 + $0x300] ss:$16 sps:$4 sm:$0xff]  }
 0x18d   :  { %1899 = vmatpush1.bf16.msra.mxu0 %v18850_v18  ;;  %v18876_v36 = vld [vmem:[#allocation4 + $0x124] ss:$16 sps:$4 sm:$0xff]   ;;  %v18880_v38 = vld [vmem:[#allocation4 + $0x120] ss:$16 sps:$4 sm:$0xff]  }
 0x18e   :  { %1940 = vmatpush1.bf16.msra.mxu1 %v18851_v19  ;;  %1900 = vmatprep.subr.bf16.mxu0 %v18852_v20  ;;  %v18878_v37 = vld [vmem:[#allocation4 + $0x324] ss:$16 sps:$4 sm:$0xff]   ;;  %v18881_v39 = vld [vmem:[#allocation4 + $0x320] ss:$16 sps:$4 sm:$0xff]  }
 0x18f   :  { %1941 = vmatprep.subr.bf16.mxu1 %v18854_v21  ;;  %v18882_v40 = vld [vmem:[#allocation4 + $0x144] ss:$16 sps:$4 sm:$0xff]   ;;  %v18886_v42 = vld [vmem:[#allocation4 + $0x140] ss:$16 sps:$4 sm:$0xff]  }
 0x190   :  { %v18884_v41 = vld [vmem:[#allocation4 + $0x344] ss:$16 sps:$4 sm:$0xff]   ;;  %v18887_v43 = vld [vmem:[#allocation4 + $0x340] ss:$16 sps:$4 sm:$0xff]  }
 0x191   :  { %1901 = vmatpush1.bf16.msra.mxu0 %v18856_v22  ;;  %v18888_v44 = vld [vmem:[#allocation4 + $0x164] ss:$16 sps:$4 sm:$0xff]   ;;  %v18892_v49 = vld [vmem:[#allocation4 + $0x160] ss:$16 sps:$4 sm:$0xff]  }
 0x192   :  { %1942 = vmatpush1.bf16.msra.mxu1 %v18857_v23  ;;  %1902 = vmatprep.subr.bf16.mxu0 %v18858_v24  ;;  %v18890_v45 = vld [vmem:[#allocation4 + $0x364] ss:$16 sps:$4 sm:$0xff]   ;;  %v18893_v50 = vld [vmem:[#allocation4 + $0x360] ss:$16 sps:$4 sm:$0xff]  }
 0x193   :  { %1943 = vmatprep.subr.bf16.mxu1 %v18860_v25  ;;  %v300_v46 = vld [vmem:[%s22773_s27] sm:$0x77] }
 0x194   :  { %v22016_v47 = vcombine.high %v300_v46, %v300_v46  ;;  %v18894_v52 = vld [vmem:[#allocation4 + $0x184] ss:$16 sps:$4 sm:$0xff]   ;;  %v18898_v54 = vld [vmem:[#allocation4 + $0x180] ss:$16 sps:$4 sm:$0xff]   ;;  %v22025_v6 = vcombine.low %v300_v46, %v300_v46 }
 0x195   :  { %1903 = vmatpush1.bf16.msra.mxu0 %v18862_v26  ;;  %v18896_v53 = vld [vmem:[#allocation4 + $0x384] ss:$16 sps:$4 sm:$0xff]   ;;  %v18899_v55 = vld [vmem:[#allocation4 + $0x380] ss:$16 sps:$4 sm:$0xff]  }
 0x196   :  { %1944 = vmatpush1.bf16.msra.mxu1 %v18863_v27  ;;  %1904 = vmatprep.subr.bf16.mxu0 %v18864_v28  ;;  %v18900_v56 = vld [vmem:[#allocation4 + $0x1a4] ss:$16 sps:$4 sm:$0xff]   ;;  %v18904_v58 = vld [vmem:[#allocation4 + $0x1a0] ss:$16 sps:$4 sm:$0xff]  }
 0x197   :  { %1945 = vmatprep.subr.bf16.mxu1 %v18866_v29  ;;  %1922 = vmatprep.mubr.bf16.mxu0 %v22016_v47  ;;  %v18902_v57 = vld [vmem:[#allocation4 + $0x3a4] ss:$16 sps:$4 sm:$0xff]   ;;  %v18905_v59 = vld [vmem:[#allocation4 + $0x3a0] ss:$16 sps:$4 sm:$0xff]  }
 0x198   :  { %v18906_v60 = vld [vmem:[#allocation4 + $0x1c4] ss:$16 sps:$4 sm:$0xff]   ;;  %v18910_v62 = vld [vmem:[#allocation4 + $0x1c0] ss:$16 sps:$4 sm:$0xff]  }
 0x199   :  { %1905 = vmatpush1.bf16.msra.mxu0 %v18868_v30  ;;  %v18908_v61 = vld [vmem:[#allocation4 + $0x3c4] ss:$16 sps:$4 sm:$0xff]   ;;  %v18911_v63 = vld [vmem:[#allocation4 + $0x3c0] ss:$16 sps:$4 sm:$0xff]  }
 0x19a   :  { %1946 = vmatpush1.bf16.msra.mxu1 %v18869_v31  ;;  %1906 = vmatprep.subr.bf16.mxu0 %v18870_v32  ;;  %v18912_v0 = vld [vmem:[#allocation4 + $0x1e4] ss:$16 sps:$4 sm:$0xff]   ;;  %v18916_v2 = vld [vmem:[#allocation4 + $0x1e0] ss:$16 sps:$4 sm:$0xff]  }
 0x19b   :  { %1947 = vmatprep.subr.bf16.mxu1 %v18872_v33  ;;  %v18914_v1 = vld [vmem:[#allocation4 + $0x3e4] ss:$16 sps:$4 sm:$0xff]   ;;  %v18917_v3 = vld [vmem:[#allocation4 + $0x3e0] ss:$16 sps:$4 sm:$0xff]   ;;  %v22039_v33 = vld [vmem:[%s22773_s27 + $0x18] sm:$0x77] }
 0x19c   :  { %v18924_v4 = vld [vmem:[#allocation4 + $0x404] ss:$16 sps:$4 sm:$0xff]   ;;  %v18922_v8 = vld [vmem:[#allocation4 + $0x400] ss:$16 sps:$4 sm:$0xff]  }
 0x19d   :  { %1907 = vmatpush1.bf16.msra.mxu0 %v18874_v34  ;;  %v18927_v5 = vld [vmem:[#allocation4 + $0x604] ss:$16 sps:$4 sm:$0xff]   ;;  %v18925_v9 = vld [vmem:[#allocation4 + $0x600] ss:$16 sps:$4 sm:$0xff]  }
 0x19e   :  { %1948 = vmatpush1.bf16.msra.mxu1 %v18875_v35  ;;  %1908 = vmatprep.subr.bf16.mxu0 %v18876_v36  ;;  %v18930_v10 = vld [vmem:[#allocation4 + $0x424] ss:$16 sps:$4 sm:$0xff]   ;;  %v18928_v12 = vld [vmem:[#allocation4 + $0x420] ss:$16 sps:$4 sm:$0xff]  }
 0x19f   :  { %1949 = vmatprep.subr.bf16.mxu1 %v18878_v37  ;;  %v18933_v11 = vld [vmem:[#allocation4 + $0x624] ss:$16 sps:$4 sm:$0xff]   ;;  %v18931_v13 = vld [vmem:[#allocation4 + $0x620] ss:$16 sps:$4 sm:$0xff]   ;;  %v22047_v37 = vcombine.high %v22039_v33, %v22039_v33 }
 0x1a0   :  { %v18936_v14 = vld [vmem:[#allocation4 + $0x444] ss:$16 sps:$4 sm:$0xff]   ;;  %v18934_v16 = vld [vmem:[#allocation4 + $0x440] ss:$16 sps:$4 sm:$0xff]  }
 0x1a1   :  { %1909 = vmatpush1.bf16.msra.mxu0 %v18880_v38  ;;  %v18939_v15 = vld [vmem:[#allocation4 + $0x644] ss:$16 sps:$4 sm:$0xff]   ;;  %v18937_v17 = vld [vmem:[#allocation4 + $0x640] ss:$16 sps:$4 sm:$0xff]  }
 0x1a2   :  { %1950 = vmatpush1.bf16.msra.mxu1 %v18881_v39  ;;  %1910 = vmatprep.subr.bf16.mxu0 %v18882_v40  ;;  %v18942_v18 = vld [vmem:[#allocation4 + $0x464] ss:$16 sps:$4 sm:$0xff]   ;;  %v18940_v20 = vld [vmem:[#allocation4 + $0x460] ss:$16 sps:$4 sm:$0xff]  }
 0x1a3   :  { %1951 = vmatprep.subr.bf16.mxu1 %v18884_v41  ;;  %v18945_v19 = vld [vmem:[#allocation4 + $0x664] ss:$16 sps:$4 sm:$0xff]   ;;  %v18943_v21 = vld [vmem:[#allocation4 + $0x660] ss:$16 sps:$4 sm:$0xff]  }
 0x1a4   :  { %v18948_v22 = vld [vmem:[#allocation4 + $0x484] ss:$16 sps:$4 sm:$0xff]   ;;  %v18946_v24 = vld [vmem:[#allocation4 + $0x480] ss:$16 sps:$4 sm:$0xff]  }
 0x1a5   :  { %1911 = vmatpush1.bf16.msra.mxu0 %v18886_v42  ;;  %v18951_v23 = vld [vmem:[#allocation4 + $0x684] ss:$16 sps:$4 sm:$0xff]   ;;  %v18949_v25 = vld [vmem:[#allocation4 + $0x680] ss:$16 sps:$4 sm:$0xff]  }
 0x1a6   :  { %1952 = vmatpush1.bf16.msra.mxu1 %v18887_v43  ;;  %1912 = vmatprep.subr.bf16.mxu0 %v18888_v44  ;;  %v18954_v26 = vld [vmem:[#allocation4 + $0x4a4] ss:$16 sps:$4 sm:$0xff]   ;;  %v18952_v28 = vld [vmem:[#allocation4 + $0x4a0] ss:$16 sps:$4 sm:$0xff]  }
 0x1a7   :  { %1953 = vmatprep.subr.bf16.mxu1 %v18890_v45  ;;  %v18957_v27 = vld [vmem:[#allocation4 + $0x6a4] ss:$16 sps:$4 sm:$0xff]   ;;  %v18955_v29 = vld [vmem:[#allocation4 + $0x6a0] ss:$16 sps:$4 sm:$0xff]  }
 0x1a8   :  { %v18960_v30 = vld [vmem:[#allocation4 + $0x4c4] ss:$16 sps:$4 sm:$0xff]   ;;  %v18958_v34 = vld [vmem:[#allocation4 + $0x4c0] ss:$16 sps:$4 sm:$0xff]  }
 0x1a9   :  { %1913 = vmatpush1.bf16.msra.mxu0 %v18892_v49  ;;  %v18963_v31 = vld [vmem:[#allocation4 + $0x6c4] ss:$16 sps:$4 sm:$0xff]   ;;  %v18961_v35 = vld [vmem:[#allocation4 + $0x6c0] ss:$16 sps:$4 sm:$0xff]  }
 0x1aa   :  { %1954 = vmatpush1.bf16.msra.mxu1 %v18893_v50  ;;  %1914 = vmatprep.subr.bf16.mxu0 %v18894_v52  ;;  %v22034_v32 = vld [vmem:[%s22773_s27 + $0x10] sm:$0x77] }
 0x1ab   :  { %1955 = vmatprep.subr.bf16.mxu1 %v18896_v53  ;;  %v22043_v36 = vcombine.high %v22034_v32, %v22034_v32  ;;  %v18966_v38 = vld [vmem:[#allocation4 + $0x4e4] ss:$16 sps:$4 sm:$0xff]   ;;  %v18964_v40 = vld [vmem:[#allocation4 + $0x4e0] ss:$16 sps:$4 sm:$0xff]  }
 0x1ac   :  { %v18969_v39 = vld [vmem:[#allocation4 + $0x6e4] ss:$16 sps:$4 sm:$0xff]   ;;  %v18967_v41 = vld [vmem:[#allocation4 + $0x6e0] ss:$16 sps:$4 sm:$0xff]  }
 0x1ad   :  { %1915 = vmatpush1.bf16.msra.mxu0 %v18898_v54  ;;  %v18972_v42 = vld [vmem:[#allocation4 + $0x504] ss:$16 sps:$4 sm:$0xff]   ;;  %v18970_v44 = vld [vmem:[#allocation4 + $0x500] ss:$16 sps:$4 sm:$0xff]  }
 0x1ae   :  { %1956 = vmatpush1.bf16.msra.mxu1 %v18899_v55  ;;  %1916 = vmatprep.subr.bf16.mxu0 %v18900_v56  ;;  %v18975_v43 = vld [vmem:[#allocation4 + $0x704] ss:$16 sps:$4 sm:$0xff]   ;;  %v18973_v45 = vld [vmem:[#allocation4 + $0x700] ss:$16 sps:$4 sm:$0xff]  }
 0x1af   :  { %1957 = vmatprep.subr.bf16.mxu1 %v18902_v57  ;;  %v18978_v46 = vld [vmem:[#allocation4 + $0x524] ss:$16 sps:$4 sm:$0xff]   ;;  %v18976_v49 = vld [vmem:[#allocation4 + $0x520] ss:$16 sps:$4 sm:$0xff]  }
 0x1b0   :  { %v18981_v48 = vld [vmem:[#allocation4 + $0x724] ss:$16 sps:$4 sm:$0xff]   ;;  %v18979_v50 = vld [vmem:[#allocation4 + $0x720] ss:$16 sps:$4 sm:$0xff]  }
 0x1b1   :  { %1917 = vmatpush1.bf16.msra.mxu0 %v18904_v58  ;;  %v18984_v52 = vld [vmem:[#allocation4 + $0x544] ss:$16 sps:$4 sm:$0xff]   ;;  %v18982_v54 = vld [vmem:[#allocation4 + $0x540] ss:$16 sps:$4 sm:$0xff]  }
 0x1b2   :  { %1958 = vmatpush1.bf16.msra.mxu1 %v18905_v59  ;;  %1918 = vmatprep.subr.bf16.mxu0 %v18906_v60  ;;  %v18987_v53 = vld [vmem:[#allocation4 + $0x744] ss:$16 sps:$4 sm:$0xff]   ;;  %v18985_v55 = vld [vmem:[#allocation4 + $0x740] ss:$16 sps:$4 sm:$0xff]  }
 0x1b3   :  { %1959 = vmatprep.subr.bf16.mxu1 %v18908_v61  ;;  %v18990_v56 = vld [vmem:[#allocation4 + $0x564] ss:$16 sps:$4 sm:$0xff]   ;;  %v18988_v58 = vld [vmem:[#allocation4 + $0x560] ss:$16 sps:$4 sm:$0xff]  }
 0x1b4   :  { %v18993_v57 = vld [vmem:[#allocation4 + $0x764] ss:$16 sps:$4 sm:$0xff]   ;;  %v18991_v59 = vld [vmem:[#allocation4 + $0x760] ss:$16 sps:$4 sm:$0xff]  }
 0x1b5   :  { %1919 = vmatpush1.bf16.msra.mxu0 %v18910_v62  ;;  %v18996_v60 = vld [vmem:[#allocation4 + $0x584] ss:$16 sps:$4 sm:$0xff]   ;;  %v18994_v62 = vld [vmem:[#allocation4 + $0x580] ss:$16 sps:$4 sm:$0xff]  }
 0x1b6   :  { %1960 = vmatpush1.bf16.msra.mxu1 %v18911_v63  ;;  %1920 = vmatprep.subr.bf16.mxu0 %v18912_v0  ;;  %v18999_v61 = vld [vmem:[#allocation4 + $0x784] ss:$16 sps:$4 sm:$0xff]   ;;  %v18997_v63 = vld [vmem:[#allocation4 + $0x780] ss:$16 sps:$4 sm:$0xff]  }
 0x1b7   :  { %1961 = vmatprep.subr.bf16.mxu1 %v18914_v1  ;;  %v19002_v0 = vld [vmem:[#allocation4 + $0x5a4] ss:$16 sps:$4 sm:$0xff]  }
 0x1b8   :  { %v19005_v1 = vld [vmem:[#allocation4 + $0x7a4] ss:$16 sps:$4 sm:$0xff]  }
 0x1b9   :  { %1921 = vmatpush1.bf16.msra.mxu0 %v18916_v2  ;;  %v19000_v2 = vld [vmem:[#allocation4 + $0x5a0] ss:$16 sps:$4 sm:$0xff]  }
 0x1ba   :  { %1962 = vmatpush1.bf16.msra.mxu1 %v18917_v3  ;;  %1972 = vmatprep.subr.bf16.mxu0 %v18924_v4  ;;  %v19003_v3 = vld [vmem:[#allocation4 + $0x7a0] ss:$16 sps:$4 sm:$0xff]   ;;  %v19008_v4 = vld [vmem:[#allocation4 + $0x5c4] ss:$16 sps:$4 sm:$0xff]  }
 0x1bb   :  { %2013 = vmatprep.subr.bf16.mxu1 %v18927_v5  ;;  %v19011_v5 = vld [vmem:[#allocation4 + $0x7c4] ss:$16 sps:$4 sm:$0xff]  }
 0x1bc   :  { %1923 = vmatmul.mubr.bf16.vlgmr.msra.gmra.mrb[0].mxu0 %v22025_v6 }
 0x1bd   :  { %1964 = vmatmul.mubr.bf16.vlgmr.msra.gmra.mrb[0].mxu1 %v22027_v7  ;;  %1973 = vmatpush1.bf16.msra.mxu0 %v18922_v8  ;;  %v19006_v8 = vld [vmem:[#allocation4 + $0x5c0] ss:$16 sps:$4 sm:$0xff]  }
 0x1be   :  { %2014 = vmatpush1.bf16.msra.mxu1 %v18925_v9  ;;  %1974 = vmatprep.subr.bf16.mxu0 %v18930_v10  ;;  %v19009_v9 = vld [vmem:[#allocation4 + $0x7c0] ss:$16 sps:$4 sm:$0xff]   ;;  %v19014_v10 = vld [vmem:[#allocation4 + $0x5e4] ss:$16 sps:$4 sm:$0xff]  }
 0x1bf   :  { %2015 = vmatprep.subr.bf16.mxu1 %v18933_v11  ;;  %2004 = vmatprep.mubr.bf16.mxu0 %v22043_v36  ;;  %v19017_v11 = vld [vmem:[#allocation4 + $0x7e4] ss:$16 sps:$4 sm:$0xff]  }
 0x1c0   :  { %2045 = vmatprep.mubr.bf16.mxu1 %v22047_v37 }
 0x1c1   :  { %1975 = vmatpush1.bf16.msra.mxu0 %v18928_v12  ;;  %v19012_v12 = vld [vmem:[#allocation4 + $0x5e0] ss:$16 sps:$4 sm:$0xff]  }
 0x1c2   :  { %2016 = vmatpush1.bf16.msra.mxu1 %v18931_v13  ;;  %1976 = vmatprep.subr.bf16.mxu0 %v18936_v14  ;;  %v19015_v13 = vld [vmem:[#allocation4 + $0x7e0] ss:$16 sps:$4 sm:$0xff]   ;;  %v19024_v14 = vld [vmem:[#allocation4 + $0xc] ss:$16 sps:$4 sm:$0xff]  }
 0x1c3   :  { %2017 = vmatprep.subr.bf16.mxu1 %v18939_v15  ;;  %v19027_v15 = vld [vmem:[#allocation4 + $0x20c] ss:$16 sps:$4 sm:$0xff]  }
 0x1c5   :  { %1977 = vmatpush1.bf16.msra.mxu0 %v18934_v16  ;;  %v22053_v16 = vcombine.low %v22034_v32, %v22034_v32  ;;  %v19048_v32 = vld [vmem:[#allocation4 + $0x8c] ss:$16 sps:$4 sm:$0xff]  }
 0x1c6   :  { %2018 = vmatpush1.bf16.msra.mxu1 %v18937_v17  ;;  %1978 = vmatprep.subr.bf16.mxu0 %v18942_v18  ;;  %v22057_v17 = vcombine.low %v22039_v33, %v22039_v33  ;;  %v19022_v18 = vld [vmem:[#allocation4 + $0x8] ss:$16 sps:$4 sm:$0xff]   ;;  %v19051_v33 = vld [vmem:[#allocation4 + $0x28c] ss:$16 sps:$4 sm:$0xff]  }
 0x1c7   :  { %2019 = vmatprep.subr.bf16.mxu1 %v18945_v19  ;;  %v19025_v19 = vld [vmem:[#allocation4 + $0x208] ss:$16 sps:$4 sm:$0xff]  }
 0x1c9   :  { %1979 = vmatpush1.bf16.msra.mxu0 %v18940_v20  ;;  %v19030_v20 = vld [vmem:[#allocation4 + $0x2c] ss:$16 sps:$4 sm:$0xff]  }
 0x1ca   :  { %2020 = vmatpush1.bf16.msra.mxu1 %v18943_v21  ;;  %1980 = vmatprep.subr.bf16.mxu0 %v18948_v22  ;;  %v19033_v21 = vld [vmem:[#allocation4 + $0x22c] ss:$16 sps:$4 sm:$0xff]   ;;  %v19028_v22 = vld [vmem:[#allocation4 + $0x28] ss:$16 sps:$4 sm:$0xff]  }
 0x1cb   :  { %2021 = vmatprep.subr.bf16.mxu1 %v18951_v23  ;;  %v19031_v23 = vld [vmem:[#allocation4 + $0x228] ss:$16 sps:$4 sm:$0xff]  }
 0x1cd   :  { %1981 = vmatpush1.bf16.msra.mxu0 %v18946_v24  ;;  %v19036_v24 = vld [vmem:[#allocation4 + $0x4c] ss:$16 sps:$4 sm:$0xff]  }
 0x1ce   :  { %2022 = vmatpush1.bf16.msra.mxu1 %v18949_v25  ;;  %1982 = vmatprep.subr.bf16.mxu0 %v18954_v26  ;;  %v19039_v25 = vld [vmem:[#allocation4 + $0x24c] ss:$16 sps:$4 sm:$0xff]   ;;  %v19034_v26 = vld [vmem:[#allocation4 + $0x48] ss:$16 sps:$4 sm:$0xff]  }
 0x1cf   :  { %2023 = vmatprep.subr.bf16.mxu1 %v18957_v27  ;;  %v19037_v27 = vld [vmem:[#allocation4 + $0x248] ss:$16 sps:$4 sm:$0xff]  }
 0x1d1   :  { %1983 = vmatpush1.bf16.msra.mxu0 %v18952_v28  ;;  %v19042_v28 = vld [vmem:[#allocation4 + $0x6c] ss:$16 sps:$4 sm:$0xff]  }
 0x1d2   :  { %2024 = vmatpush1.bf16.msra.mxu1 %v18955_v29  ;;  %1984 = vmatprep.subr.bf16.mxu0 %v18960_v30  ;;  %v19045_v29 = vld [vmem:[#allocation4 + $0x26c] ss:$16 sps:$4 sm:$0xff]   ;;  %v19040_v30 = vld [vmem:[#allocation4 + $0x68] ss:$16 sps:$4 sm:$0xff]  }
 0x1d3   :  { %2025 = vmatprep.subr.bf16.mxu1 %v18963_v31  ;;  %v19043_v31 = vld [vmem:[#allocation4 + $0x268] ss:$16 sps:$4 sm:$0xff]  }
 0x1d5   :  { %1985 = vmatpush1.bf16.msra.mxu0 %v18958_v34  ;;  %v19046_v34 = vld [vmem:[#allocation4 + $0x88] ss:$16 sps:$4 sm:$0xff]  }
 0x1d6   :  { %2026 = vmatpush1.bf16.msra.mxu1 %v18961_v35  ;;  %1986 = vmatprep.subr.bf16.mxu0 %v18966_v38  ;;  %v19057_v35 = vld [vmem:[#allocation4 + $0x2ac] ss:$16 sps:$4 sm:$0xff]   ;;  %v19052_v38 = vld [vmem:[#allocation4 + $0xa8] ss:$16 sps:$4 sm:$0xff]  }
 0x1d7   :  { %2027 = vmatprep.subr.bf16.mxu1 %v18969_v39  ;;  %v19055_v39 = vld [vmem:[#allocation4 + $0x2a8] ss:$16 sps:$4 sm:$0xff]  }
 0x1d9   :  { %1987 = vmatpush1.bf16.msra.mxu0 %v18964_v40  ;;  %v19060_v40 = vld [vmem:[#allocation4 + $0xcc] ss:$16 sps:$4 sm:$0xff]  }
 0x1da   :  { %2028 = vmatpush1.bf16.msra.mxu1 %v18967_v41  ;;  %1988 = vmatprep.subr.bf16.mxu0 %v18972_v42  ;;  %v19063_v41 = vld [vmem:[#allocation4 + $0x2cc] ss:$16 sps:$4 sm:$0xff]   ;;  %v19058_v42 = vld [vmem:[#allocation4 + $0xc8] ss:$16 sps:$4 sm:$0xff]  }
 0x1db   :  { %2029 = vmatprep.subr.bf16.mxu1 %v18975_v43  ;;  %v19061_v43 = vld [vmem:[#allocation4 + $0x2c8] ss:$16 sps:$4 sm:$0xff]  }
 0x1dd   :  { %1989 = vmatpush1.bf16.msra.mxu0 %v18970_v44  ;;  %v19066_v44 = vld [vmem:[#allocation4 + $0xec] ss:$16 sps:$4 sm:$0xff]  }
 0x1de   :  { %2030 = vmatpush1.bf16.msra.mxu1 %v18973_v45  ;;  %1990 = vmatprep.subr.bf16.mxu0 %v18978_v46  ;;  %v19069_v45 = vld [vmem:[#allocation4 + $0x2ec] ss:$16 sps:$4 sm:$0xff]   ;;  %v19064_v46 = vld [vmem:[#allocation4 + $0xe8] ss:$16 sps:$4 sm:$0xff]  }
 0x1df   :  { %2031 = vmatprep.subr.bf16.mxu1 %v18981_v48  ;;  %v19067_v48 = vld [vmem:[#allocation4 + $0x2e8] ss:$16 sps:$4 sm:$0xff]  }
 0x1e1   :  { %1991 = vmatpush1.bf16.msra.mxu0 %v18976_v49  ;;  %v19072_v49 = vld [vmem:[#allocation4 + $0x10c] ss:$16 sps:$4 sm:$0xff]  }
 0x1e2   :  { %2032 = vmatpush1.bf16.msra.mxu1 %v18979_v50  ;;  %1992 = vmatprep.subr.bf16.mxu0 %v18984_v52  ;;  %v19075_v50 = vld [vmem:[#allocation4 + $0x30c] ss:$16 sps:$4 sm:$0xff]   ;;  %v19070_v52 = vld [vmem:[#allocation4 + $0x108] ss:$16 sps:$4 sm:$0xff]  }
 0x1e3   :  { %2033 = vmatprep.subr.bf16.mxu1 %v18987_v53  ;;  %v19073_v53 = vld [vmem:[#allocation4 + $0x308] ss:$16 sps:$4 sm:$0xff]  }
 0x1e5   :  { %1993 = vmatpush1.bf16.msra.mxu0 %v18982_v54  ;;  %v19078_v54 = vld [vmem:[#allocation4 + $0x12c] ss:$16 sps:$4 sm:$0xff]  }
 0x1e6   :  { %2034 = vmatpush1.bf16.msra.mxu1 %v18985_v55  ;;  %1994 = vmatprep.subr.bf16.mxu0 %v18990_v56  ;;  %v19081_v55 = vld [vmem:[#allocation4 + $0x32c] ss:$16 sps:$4 sm:$0xff]   ;;  %v19076_v56 = vld [vmem:[#allocation4 + $0x128] ss:$16 sps:$4 sm:$0xff]  }
 0x1e7   :  { %2035 = vmatprep.subr.bf16.mxu1 %v18993_v57  ;;  %v19079_v57 = vld [vmem:[#allocation4 + $0x328] ss:$16 sps:$4 sm:$0xff]  }
 0x1e9   :  { %1995 = vmatpush1.bf16.msra.mxu0 %v18988_v58  ;;  %v19084_v58 = vld [vmem:[#allocation4 + $0x14c] ss:$16 sps:$4 sm:$0xff]  }
 0x1ea   :  { %2036 = vmatpush1.bf16.msra.mxu1 %v18991_v59  ;;  %1996 = vmatprep.subr.bf16.mxu0 %v18996_v60  ;;  %v19087_v59 = vld [vmem:[#allocation4 + $0x34c] ss:$16 sps:$4 sm:$0xff]   ;;  %v19082_v60 = vld [vmem:[#allocation4 + $0x148] ss:$16 sps:$4 sm:$0xff]  }
 0x1eb   :  { %2037 = vmatprep.subr.bf16.mxu1 %v18999_v61  ;;  %v19085_v61 = vld [vmem:[#allocation4 + $0x348] ss:$16 sps:$4 sm:$0xff]  }
 0x1ed   :  { %1997 = vmatpush1.bf16.msra.mxu0 %v18994_v62  ;;  %v19090_v62 = vld [vmem:[#allocation4 + $0x16c] ss:$16 sps:$4 sm:$0xff]  }
 0x1ee   :  { %2038 = vmatpush1.bf16.msra.mxu1 %v18997_v63  ;;  %1998 = vmatprep.subr.bf16.mxu0 %v19002_v0  ;;  %v19093_v63 = vld [vmem:[#allocation4 + $0x36c] ss:$16 sps:$4 sm:$0xff]   ;;  %v19088_v0 = vld [vmem:[#allocation4 + $0x168] ss:$16 sps:$4 sm:$0xff]  }
 0x1ef   :  { %2039 = vmatprep.subr.bf16.mxu1 %v19005_v1  ;;  %v19091_v1 = vld [vmem:[#allocation4 + $0x368] ss:$16 sps:$4 sm:$0xff]  }
 0x1f1   :  { %1999 = vmatpush1.bf16.msra.mxu0 %v19000_v2  ;;  %v19096_v2 = vld [vmem:[#allocation4 + $0x18c] ss:$16 sps:$4 sm:$0xff]  }
 0x1f2   :  { %2040 = vmatpush1.bf16.msra.mxu1 %v19003_v3  ;;  %2000 = vmatprep.subr.bf16.mxu0 %v19008_v4  ;;  %v19099_v3 = vld [vmem:[#allocation4 + $0x38c] ss:$16 sps:$4 sm:$0xff]   ;;  %v19094_v4 = vld [vmem:[#allocation4 + $0x188] ss:$16 sps:$4 sm:$0xff]  }
 0x1f3   :  { %2041 = vmatprep.subr.bf16.mxu1 %v19011_v5  ;;  %v19097_v5 = vld [vmem:[#allocation4 + $0x388] ss:$16 sps:$4 sm:$0xff]  }
 0x1f5   :  { %2001 = vmatpush1.bf16.msra.mxu0 %v19006_v8  ;;  %v19102_v8 = vld [vmem:[#allocation4 + $0x1ac] ss:$16 sps:$4 sm:$0xff]  }
 0x1f6   :  { %2042 = vmatpush1.bf16.msra.mxu1 %v19009_v9  ;;  %2002 = vmatprep.subr.bf16.mxu0 %v19014_v10  ;;  %v19105_v9 = vld [vmem:[#allocation4 + $0x3ac] ss:$16 sps:$4 sm:$0xff]   ;;  %v19100_v10 = vld [vmem:[#allocation4 + $0x1a8] ss:$16 sps:$4 sm:$0xff]  }
 0x1f7   :  { %2043 = vmatprep.subr.bf16.mxu1 %v19017_v11  ;;  %v19103_v11 = vld [vmem:[#allocation4 + $0x3a8] ss:$16 sps:$4 sm:$0xff]  }
 0x1f9   :  { %2003 = vmatpush1.bf16.msra.mxu0 %v19012_v12  ;;  %v19108_v12 = vld [vmem:[#allocation4 + $0x1cc] ss:$16 sps:$4 sm:$0xff]  }
 0x1fa   :  { %2044 = vmatpush1.bf16.msra.mxu1 %v19015_v13  ;;  %2054 = vmatprep.subr.bf16.mxu0 %v19024_v14  ;;  %v19111_v13 = vld [vmem:[#allocation4 + $0x3cc] ss:$16 sps:$4 sm:$0xff]   ;;  %v19106_v14 = vld [vmem:[#allocation4 + $0x1c8] ss:$16 sps:$4 sm:$0xff]  }
 0x1fb   :  { %2095 = vmatprep.subr.bf16.mxu1 %v19027_v15  ;;  %v19109_v15 = vld [vmem:[#allocation4 + $0x3c8] ss:$16 sps:$4 sm:$0xff]  }
 0x1fc   :  { %2005 = vmatmul.mubr.bf16.vlgmr.msra.gmra.mrb[4].mxu0 %v22053_v16 }
 0x1fd   :  { %2046 = vmatmul.mubr.bf16.vlgmr.msra.gmra.mrb[4].mxu1 %v22057_v17  ;;  %2055 = vmatpush1.bf16.msra.mxu0 %v19022_v18  ;;  %v19114_v18 = vld [vmem:[#allocation4 + $0x1ec] ss:$16 sps:$4 sm:$0xff]  }
 0x1fe   :  { %2096 = vmatpush1.bf16.msra.mxu1 %v19025_v19  ;;  %2056 = vmatprep.subr.bf16.mxu0 %v19030_v20  ;;  %v19117_v19 = vld [vmem:[#allocation4 + $0x3ec] ss:$16 sps:$4 sm:$0xff]   ;;  %v19112_v20 = vld [vmem:[#allocation4 + $0x1e8] ss:$16 sps:$4 sm:$0xff]  }
 0x1ff   :  { %2097 = vmatprep.subr.bf16.mxu1 %v19033_v21  ;;  %2086 = vmatprep.mubr.bf16.mxu0 %v22016_v47  ;;  %v19049_v47 = vld [vmem:[#allocation4 + $0x288] ss:$16 sps:$4 sm:$0xff]  }
 0x200   :  { %2127 = vmatprep.mubr.bf16.mxu1 %v22021_v51  ;;  %v19054_v51 = vld [vmem:[#allocation4 + $0xac] ss:$16 sps:$4 sm:$0xff]   ;;  %v19115_v21 = vld [vmem:[#allocation4 + $0x3e8] ss:$16 sps:$4 sm:$0xff]  }
 0x201   :  { %2057 = vmatpush1.bf16.msra.mxu0 %v19028_v22  ;;  %v19120_v22 = vld [vmem:[#allocation4 + $0x40c] ss:$16 sps:$4 sm:$0xff]  }
 0x202   :  { %2098 = vmatpush1.bf16.msra.mxu1 %v19031_v23  ;;  %2058 = vmatprep.subr.bf16.mxu0 %v19036_v24  ;;  %v19123_v23 = vld [vmem:[#allocation4 + $0x60c] ss:$16 sps:$4 sm:$0xff]   ;;  %v19118_v24 = vld [vmem:[#allocation4 + $0x408] ss:$16 sps:$4 sm:$0xff]  }
 0x203   :  { %2099 = vmatprep.subr.bf16.mxu1 %v19039_v25  ;;  %v19121_v25 = vld [vmem:[#allocation4 + $0x608] ss:$16 sps:$4 sm:$0xff]  }
 0x205   :  { %2059 = vmatpush1.bf16.msra.mxu0 %v19034_v26  ;;  %v19126_v26 = vld [vmem:[#allocation4 + $0x42c] ss:$16 sps:$4 sm:$0xff]  }
 0x206   :  { %2100 = vmatpush1.bf16.msra.mxu1 %v19037_v27  ;;  %2060 = vmatprep.subr.bf16.mxu0 %v19042_v28  ;;  %v19129_v27 = vld [vmem:[#allocation4 + $0x62c] ss:$16 sps:$4 sm:$0xff]   ;;  %v19124_v28 = vld [vmem:[#allocation4 + $0x428] ss:$16 sps:$4 sm:$0xff]  }
 0x207   :  { %2101 = vmatprep.subr.bf16.mxu1 %v19045_v29  ;;  %v19127_v29 = vld [vmem:[#allocation4 + $0x628] ss:$16 sps:$4 sm:$0xff]  }
 0x209   :  { %2061 = vmatpush1.bf16.msra.mxu0 %v19040_v30  ;;  %v19132_v30 = vld [vmem:[#allocation4 + $0x44c] ss:$16 sps:$4 sm:$0xff]  }
 0x20a   :  { %2102 = vmatpush1.bf16.msra.mxu1 %v19043_v31  ;;  %2062 = vmatprep.subr.bf16.mxu0 %v19048_v32  ;;  %v19135_v31 = vld [vmem:[#allocation4 + $0x64c] ss:$16 sps:$4 sm:$0xff]   ;;  %v19130_v32 = vld [vmem:[#allocation4 + $0x448] ss:$16 sps:$4 sm:$0xff]  }
 0x20b   :  { %2103 = vmatprep.subr.bf16.mxu1 %v19051_v33  ;;  %v19133_v33 = vld [vmem:[#allocation4 + $0x648] ss:$16 sps:$4 sm:$0xff]  }
 0x20d   :  { %2063 = vmatpush1.bf16.msra.mxu0 %v19046_v34  ;;  %v19136_v34 = vld [vmem:[#allocation4 + $0x468] ss:$16 sps:$4 sm:$0xff]  }
 0x20e   :  { %2104 = vmatpush1.bf16.msra.mxu1 %v19049_v47  ;;  %2064 = vmatprep.subr.bf16.mxu0 %v19054_v51  ;;  %v19139_v47 = vld [vmem:[#allocation4 + $0x668] ss:$16 sps:$4 sm:$0xff]   ;;  %v19144_v51 = vld [vmem:[#allocation4 + $0x48c] ss:$16 sps:$4 sm:$0xff]  }
 0x20f   :  { %2105 = vmatprep.subr.bf16.mxu1 %v19057_v35  ;;  %v19147_v35 = vld [vmem:[#allocation4 + $0x68c] ss:$16 sps:$4 sm:$0xff]  }
 0x211   :  { %2065 = vmatpush1.bf16.msra.mxu0 %v19052_v38  ;;  %v19142_v38 = vld [vmem:[#allocation4 + $0x488] ss:$16 sps:$4 sm:$0xff]  }
 0x212   :  { %2106 = vmatpush1.bf16.msra.mxu1 %v19055_v39  ;;  %2066 = vmatprep.subr.bf16.mxu0 %v19060_v40  ;;  %v19153_v39 = vld [vmem:[#allocation4 + $0x6ac] ss:$16 sps:$4 sm:$0xff]   ;;  %v19148_v40 = vld [vmem:[#allocation4 + $0x4a8] ss:$16 sps:$4 sm:$0xff]  }
 0x213   :  { %2107 = vmatprep.subr.bf16.mxu1 %v19063_v41  ;;  %v19151_v41 = vld [vmem:[#allocation4 + $0x6a8] ss:$16 sps:$4 sm:$0xff]  }
 0x215   :  { %2067 = vmatpush1.bf16.msra.mxu0 %v19058_v42  ;;  %v19156_v42 = vld [vmem:[#allocation4 + $0x4cc] ss:$16 sps:$4 sm:$0xff]  }
 0x216   :  { %2108 = vmatpush1.bf16.msra.mxu1 %v19061_v43  ;;  %2068 = vmatprep.subr.bf16.mxu0 %v19066_v44  ;;  %v19159_v43 = vld [vmem:[#allocation4 + $0x6cc] ss:$16 sps:$4 sm:$0xff]   ;;  %v19154_v44 = vld [vmem:[#allocation4 + $0x4c8] ss:$16 sps:$4 sm:$0xff]  }
 0x217   :  { %2109 = vmatprep.subr.bf16.mxu1 %v19069_v45  ;;  %v19157_v45 = vld [vmem:[#allocation4 + $0x6c8] ss:$16 sps:$4 sm:$0xff]  }
 0x219   :  { %2069 = vmatpush1.bf16.msra.mxu0 %v19064_v46  ;;  %v19162_v46 = vld [vmem:[#allocation4 + $0x4ec] ss:$16 sps:$4 sm:$0xff]  }
 0x21a   :  { %2110 = vmatpush1.bf16.msra.mxu1 %v19067_v48  ;;  %2070 = vmatprep.subr.bf16.mxu0 %v19072_v49  ;;  %v19165_v48 = vld [vmem:[#allocation4 + $0x6ec] ss:$16 sps:$4 sm:$0xff]   ;;  %v19160_v49 = vld [vmem:[#allocation4 + $0x4e8] ss:$16 sps:$4 sm:$0xff]  }
 0x21b   :  { %2111 = vmatprep.subr.bf16.mxu1 %v19075_v50  ;;  %v19163_v50 = vld [vmem:[#allocation4 + $0x6e8] ss:$16 sps:$4 sm:$0xff]  }
 0x21d   :  { %2071 = vmatpush1.bf16.msra.mxu0 %v19070_v52  ;;  %v19168_v52 = vld [vmem:[#allocation4 + $0x50c] ss:$16 sps:$4 sm:$0xff]  }
 0x21e   :  { %2112 = vmatpush1.bf16.msra.mxu1 %v19073_v53  ;;  %2072 = vmatprep.subr.bf16.mxu0 %v19078_v54  ;;  %v19171_v53 = vld [vmem:[#allocation4 + $0x70c] ss:$16 sps:$4 sm:$0xff]   ;;  %v19166_v54 = vld [vmem:[#allocation4 + $0x508] ss:$16 sps:$4 sm:$0xff]  }
 0x21f   :  { %2113 = vmatprep.subr.bf16.mxu1 %v19081_v55  ;;  %v19169_v55 = vld [vmem:[#allocation4 + $0x708] ss:$16 sps:$4 sm:$0xff]  }
 0x221   :  { %2073 = vmatpush1.bf16.msra.mxu0 %v19076_v56  ;;  %v19174_v56 = vld [vmem:[#allocation4 + $0x52c] ss:$16 sps:$4 sm:$0xff]  }
 0x222   :  { %2114 = vmatpush1.bf16.msra.mxu1 %v19079_v57  ;;  %2074 = vmatprep.subr.bf16.mxu0 %v19084_v58  ;;  %v19177_v57 = vld [vmem:[#allocation4 + $0x72c] ss:$16 sps:$4 sm:$0xff]   ;;  %v19172_v58 = vld [vmem:[#allocation4 + $0x528] ss:$16 sps:$4 sm:$0xff]  }
 0x223   :  { %2115 = vmatprep.subr.bf16.mxu1 %v19087_v59  ;;  %v19175_v59 = vld [vmem:[#allocation4 + $0x728] ss:$16 sps:$4 sm:$0xff]  }
 0x225   :  { %2075 = vmatpush1.bf16.msra.mxu0 %v19082_v60  ;;  %v19180_v60 = vld [vmem:[#allocation4 + $0x54c] ss:$16 sps:$4 sm:$0xff]  }
 0x226   :  { %2116 = vmatpush1.bf16.msra.mxu1 %v19085_v61  ;;  %2076 = vmatprep.subr.bf16.mxu0 %v19090_v62  ;;  %v19183_v61 = vld [vmem:[#allocation4 + $0x74c] ss:$16 sps:$4 sm:$0xff]   ;;  %v19178_v62 = vld [vmem:[#allocation4 + $0x548] ss:$16 sps:$4 sm:$0xff]  }
 0x227   :  { %2117 = vmatprep.subr.bf16.mxu1 %v19093_v63  ;;  %v19181_v63 = vld [vmem:[#allocation4 + $0x748] ss:$16 sps:$4 sm:$0xff]  }
 0x229   :  { %2077 = vmatpush1.bf16.msra.mxu0 %v19088_v0  ;;  %v19186_v0 = vld [vmem:[#allocation4 + $0x56c] ss:$16 sps:$4 sm:$0xff]  }
 0x22a   :  { %2118 = vmatpush1.bf16.msra.mxu1 %v19091_v1  ;;  %2078 = vmatprep.subr.bf16.mxu0 %v19096_v2  ;;  %v19189_v1 = vld [vmem:[#allocation4 + $0x76c] ss:$16 sps:$4 sm:$0xff]   ;;  %v19184_v2 = vld [vmem:[#allocation4 + $0x568] ss:$16 sps:$4 sm:$0xff]  }
 0x22b   :  { %2119 = vmatprep.subr.bf16.mxu1 %v19099_v3  ;;  %v19187_v3 = vld [vmem:[#allocation4 + $0x768] ss:$16 sps:$4 sm:$0xff]  }
 0x22d   :  { %2079 = vmatpush1.bf16.msra.mxu0 %v19094_v4  ;;  %v19192_v4 = vld [vmem:[#allocation4 + $0x58c] ss:$16 sps:$4 sm:$0xff]  }
 0x22e   :  { %2120 = vmatpush1.bf16.msra.mxu1 %v19097_v5  ;;  %2080 = vmatprep.subr.bf16.mxu0 %v19102_v8  ;;  %v19195_v5 = vld [vmem:[#allocation4 + $0x78c] ss:$16 sps:$4 sm:$0xff]   ;;  %v19190_v8 = vld [vmem:[#allocation4 + $0x588] ss:$16 sps:$4 sm:$0xff]  }
 0x22f   :  { %2121 = vmatprep.subr.bf16.mxu1 %v19105_v9  ;;  %v19193_v9 = vld [vmem:[#allocation4 + $0x788] ss:$16 sps:$4 sm:$0xff]  }
 0x231   :  { %2081 = vmatpush1.bf16.msra.mxu0 %v19100_v10  ;;  %v19198_v10 = vld [vmem:[#allocation4 + $0x5ac] ss:$16 sps:$4 sm:$0xff]  }
 0x232   :  { %2122 = vmatpush1.bf16.msra.mxu1 %v19103_v11  ;;  %2082 = vmatprep.subr.bf16.mxu0 %v19108_v12  ;;  %v19201_v11 = vld [vmem:[#allocation4 + $0x7ac] ss:$16 sps:$4 sm:$0xff]   ;;  %v19196_v12 = vld [vmem:[#allocation4 + $0x5a8] ss:$16 sps:$4 sm:$0xff]  }
 0x233   :  { %2123 = vmatprep.subr.bf16.mxu1 %v19111_v13  ;;  %v19199_v13 = vld [vmem:[#allocation4 + $0x7a8] ss:$16 sps:$4 sm:$0xff]  }
 0x235   :  { %2083 = vmatpush1.bf16.msra.mxu0 %v19106_v14  ;;  %v19204_v14 = vld [vmem:[#allocation4 + $0x5cc] ss:$16 sps:$4 sm:$0xff]  }
 0x236   :  { %2124 = vmatpush1.bf16.msra.mxu1 %v19109_v15  ;;  %2084 = vmatprep.subr.bf16.mxu0 %v19114_v18  ;;  %v19207_v15 = vld [vmem:[#allocation4 + $0x7cc] ss:$16 sps:$4 sm:$0xff]   ;;  %v19202_v18 = vld [vmem:[#allocation4 + $0x5c8] ss:$16 sps:$4 sm:$0xff]  }
 0x237   :  { %2125 = vmatprep.subr.bf16.mxu1 %v19117_v19  ;;  %v19205_v19 = vld [vmem:[#allocation4 + $0x7c8] ss:$16 sps:$4 sm:$0xff]  }
 0x239   :  { %2085 = vmatpush1.bf16.msra.mxu0 %v19112_v20  ;;  %v19210_v20 = vld [vmem:[#allocation4 + $0x5ec] ss:$16 sps:$4 sm:$0xff]  }
 0x23a   :  { %2126 = vmatpush1.bf16.msra.mxu1 %v19115_v21  ;;  %2136 = vmatprep.subr.bf16.mxu0 %v19120_v22  ;;  %v19213_v21 = vld [vmem:[#allocation4 + $0x7ec] ss:$16 sps:$4 sm:$0xff]   ;;  %v19208_v22 = vld [vmem:[#allocation4 + $0x5e8] ss:$16 sps:$4 sm:$0xff]  }
 0x23b   :  { %2177 = vmatprep.subr.bf16.mxu1 %v19123_v23  ;;  %v19211_v23 = vld [vmem:[#allocation4 + $0x7e8] ss:$16 sps:$4 sm:$0xff]  }
 0x23c   :  { %2087 = vmatmul.mubr.bf16.vlgmr.msra.gmra.mrb[8].mxu0 %v22025_v6  ;;  %v19138_v6 = vld [vmem:[#allocation4 + $0x46c] ss:$16 sps:$4 sm:$0xff]  }
 0x23d   :  { %2128 = vmatmul.mubr.bf16.vlgmr.msra.gmra.mrb[8].mxu1 %v22027_v7  ;;  %2137 = vmatpush1.bf16.msra.mxu0 %v19118_v24  ;;  %v19141_v7 = vld [vmem:[#allocation4 + $0x66c] ss:$16 sps:$4 sm:$0xff]   ;;  %v19216_v24 = vld [vmem:[#allocation4 + $0x804] ss:$16 sps:$4 sm:$0xff]  }
 0x23e   :  { %2178 = vmatpush1.bf16.msra.mxu1 %v19121_v25  ;;  %2138 = vmatprep.subr.bf16.mxu0 %v19126_v26  ;;  %v19219_v25 = vld [vmem:[#allocation4 + $0xa04] ss:$16 sps:$4 sm:$0xff]  }
 0x23f   :  { %2179 = vmatprep.subr.bf16.mxu1 %v19129_v27  ;;  %2168 = vmatprep.mubr.bf16.mxu0 %v22043_v36  ;;  %v19145_v36 = vld [vmem:[#allocation4 + $0x688] ss:$16 sps:$4 sm:$0xff]   ;;  %v22070_v26 = vld [vmem:[%s22774_s0] sm:$0x77] }
 0x240   :  { %2209 = vmatprep.mubr.bf16.mxu1 %v22047_v37  ;;  %v19150_v37 = vld [vmem:[#allocation4 + $0x4ac] ss:$16 sps:$4 sm:$0xff]  }
 0x241   :  { %2139 = vmatpush1.bf16.msra.mxu0 %v19124_v28  ;;  %v22075_v27 = vld [vmem:[%s22774_s0 + $0x8] sm:$0x77]  ;;  %v19214_v28 = vld [vmem:[#allocation4 + $0x800] ss:$16 sps:$4 sm:$0xff]  }
 0x242   :  { %2180 = vmatpush1.bf16.msra.mxu1 %v19127_v29  ;;  %2140 = vmatprep.subr.bf16.mxu0 %v19132_v30  ;;  %v19217_v29 = vld [vmem:[#allocation4 + $0xa00] ss:$16 sps:$4 sm:$0xff]   ;;  %v19222_v30 = vld [vmem:[#allocation4 + $0x824] ss:$16 sps:$4 sm:$0xff]  }
 0x243   :  { %2181 = vmatprep.subr.bf16.mxu1 %v19135_v31  ;;  %v19225_v31 = vld [vmem:[#allocation4 + $0xa24] ss:$16 sps:$4 sm:$0xff]  }
 0x245   :  { %2141 = vmatpush1.bf16.msra.mxu0 %v19130_v32  ;;  %v22079_v32 = vcombine.high %v22070_v26, %v22070_v26 }
 0x246   :  { %2182 = vmatpush1.bf16.msra.mxu1 %v19133_v33  ;;  %2142 = vmatprep.subr.bf16.mxu0 %v19138_v6  ;;  %v22083_v33 = vcombine.high %v22075_v27, %v22075_v27  ;;  %v19220_v6 = vld [vmem:[#allocation4 + $0x820] ss:$16 sps:$4 sm:$0xff]  }
 0x247   :  { %2183 = vmatprep.subr.bf16.mxu1 %v19141_v7  ;;  %v19223_v7 = vld [vmem:[#allocation4 + $0xa20] ss:$16 sps:$4 sm:$0xff]  }
 0x249   :  { %2143 = vmatpush1.bf16.msra.mxu0 %v19136_v34  ;;  %v19228_v34 = vld [vmem:[#allocation4 + $0x844] ss:$16 sps:$4 sm:$0xff]  }
 0x24a   :  { %2184 = vmatpush1.bf16.msra.mxu1 %v19139_v47  ;;  %2144 = vmatprep.subr.bf16.mxu0 %v19144_v51  ;;  %v19231_v47 = vld [vmem:[#allocation4 + $0xa44] ss:$16 sps:$4 sm:$0xff]   ;;  %v19226_v51 = vld [vmem:[#allocation4 + $0x840] ss:$16 sps:$4 sm:$0xff]  }
 0x24b   :  { %2185 = vmatprep.subr.bf16.mxu1 %v19147_v35  ;;  %v19229_v35 = vld [vmem:[#allocation4 + $0xa40] ss:$16 sps:$4 sm:$0xff]  }
 0x24d   :  { %2145 = vmatpush1.bf16.msra.mxu0 %v19142_v38  ;;  %v562_v38 = vlaneseq }
 0x24e   :  { %2186 = vmatpush1.bf16.msra.mxu1 %v19145_v36  ;;  %2146 = vmatprep.subr.bf16.mxu0 %v19150_v37  ;;  %v19232_v36 = vld [vmem:[#allocation4 + $0x860] ss:$16 sps:$4 sm:$0xff]  }
 0x24f   :  { %2187 = vmatprep.subr.bf16.mxu1 %v19153_v39  ;;  %v19235_v37 = vld [vmem:[#allocation4 + $0xa60] ss:$16 sps:$4 sm:$0xff]   ;;  %v22090_v39 = vshrl.u32 %v562_v38, 7 }
 0x251   :  { %2147 = vmatpush1.bf16.msra.mxu0 %v19148_v40  ;;  %v19240_v40 = vld [vmem:[#allocation4 + $0x884] ss:$16 sps:$4 sm:$0xff]  }
 0x252   :  { %2188 = vmatpush1.bf16.msra.mxu1 %v19151_v41  ;;  %2148 = vmatprep.subr.bf16.mxu0 %v19156_v42  ;;  %v19243_v41 = vld [vmem:[#allocation4 + $0xa84] ss:$16 sps:$4 sm:$0xff]   ;;  %v19238_v42 = vld [vmem:[#allocation4 + $0x880] ss:$16 sps:$4 sm:$0xff]  }
 0x253   :  { %2189 = vmatprep.subr.bf16.mxu1 %v19159_v43  ;;  %v22093_v43 = vsub.s32 0, %v22090_v39 }
 0x255   :  { %2149 = vmatpush1.bf16.msra.mxu0 %v19154_v44  ;;  %v19241_v44 = vld [vmem:[#allocation4 + $0xa80] ss:$16 sps:$4 sm:$0xff]  }
 0x256   :  { %2190 = vmatpush1.bf16.msra.mxu1 %v19157_v45  ;;  %2150 = vmatprep.subr.bf16.mxu0 %v19162_v46  ;;  %v560_v45 = vld [vmem:[#allocation6] sm:$0xf]  ;;  %v22096_v46 = vsub.s32 1, %v22090_v39 }
 0x257   :  { %2191 = vmatprep.subr.bf16.mxu1 %v19165_v48  ;;  %v19246_v48 = vld [vmem:[#allocation4 + $0x8a4] ss:$16 sps:$4 sm:$0xff]  }
 0x259   :  { %2151 = vmatpush1.bf16.msra.mxu0 %v19160_v49  ;;  %v19249_v49 = vld [vmem:[#allocation4 + $0xaa4] ss:$16 sps:$4 sm:$0xff]  }
 0x25a   :  { %2192 = vmatpush1.bf16.msra.mxu1 %v19163_v50  ;;  %2152 = vmatprep.subr.bf16.mxu0 %v19168_v52  ;;  %v19244_v50 = vld [vmem:[#allocation4 + $0x8a0] ss:$16 sps:$4 sm:$0xff]  }
 0x25b   :  { %2193 = vmatprep.subr.bf16.mxu1 %v19171_v53  ;;  %v19247_v52 = vld [vmem:[#allocation4 + $0xaa0] ss:$16 sps:$4 sm:$0xff]   ;;  %v565_v53 = vrot.slane %v560_v45, %v22093_v43 }
 0x25d   :  { %2153 = vmatpush1.bf16.msra.mxu0 %v19166_v54  ;;  %v569_v54 = vrot.slane %v560_v45, %v22096_v46  ;;  %v19309_v45 = vld [vmem:[#allocation4 + $0xbe4] ss:$16 sps:$4 sm:$0xff]  }
 0x25e   :  { %2194 = vmatpush1.bf16.msra.mxu1 %v19169_v55  ;;  %2154 = vmatprep.subr.bf16.mxu0 %v19174_v56  ;;  %v19252_v55 = vld [vmem:[#allocation4 + $0x8c4] ss:$16 sps:$4 sm:$0xff]  }
 0x25f   :  { %2195 = vmatprep.subr.bf16.mxu1 %v19177_v57  ;;  %v19255_v56 = vld [vmem:[#allocation4 + $0xac4] ss:$16 sps:$4 sm:$0xff]  }
 0x261   :  { %2155 = vmatpush1.bf16.msra.mxu0 %v19172_v58 }
 0x262   :  { %2196 = vmatpush1.bf16.msra.mxu1 %v19175_v59  ;;  %2156 = vmatprep.subr.bf16.mxu0 %v19180_v60  ;;  %v19250_v59 = vld [vmem:[#allocation4 + $0x8c0] ss:$16 sps:$4 sm:$0xff]  }
 0x263   :  { %2197 = vmatprep.subr.bf16.mxu1 %v19183_v61  ;;  %v19253_v60 = vld [vmem:[#allocation4 + $0xac0] ss:$16 sps:$4 sm:$0xff]  }
 0x265   :  { %2157 = vmatpush1.bf16.msra.mxu0 %v19178_v62 }
 0x266   :  { %2198 = vmatpush1.bf16.msra.mxu1 %v19181_v63  ;;  %2158 = vmatprep.subr.bf16.mxu0 %v19186_v0 }
 0x267   :  { %2199 = vmatprep.subr.bf16.mxu1 %v19189_v1 }
 0x269   :  { %2159 = vmatpush1.bf16.msra.mxu0 %v19184_v2 }
 0x26a   :  { %2200 = vmatpush1.bf16.msra.mxu1 %v19187_v3  ;;  %2160 = vmatprep.subr.bf16.mxu0 %v19192_v4 }
 0x26b   :  { %2201 = vmatprep.subr.bf16.mxu1 %v19195_v5 }
 0x26d   :  { %2161 = vmatpush1.bf16.msra.mxu0 %v19190_v8  ;;  %v19258_v8 = vld [vmem:[#allocation4 + $0x8e4] ss:$16 sps:$4 sm:$0xff]  }
 0x26e   :  { %2202 = vmatpush1.bf16.msra.mxu1 %v19193_v9  ;;  %2162 = vmatprep.subr.bf16.mxu0 %v19198_v10  ;;  %v19261_v9 = vld [vmem:[#allocation4 + $0xae4] ss:$16 sps:$4 sm:$0xff]  }
 0x26f   :  { %2203 = vmatprep.subr.bf16.mxu1 %v19201_v11  ;;  %v19256_v11 = vld [vmem:[#allocation4 + $0x8e0] ss:$16 sps:$4 sm:$0xff]  }
 0x271   :  { %2163 = vmatpush1.bf16.msra.mxu0 %v19196_v12  ;;  %v19259_v12 = vld [vmem:[#allocation4 + $0xae0] ss:$16 sps:$4 sm:$0xff]  }
 0x272   :  { %2204 = vmatpush1.bf16.msra.mxu1 %v19199_v13  ;;  %2164 = vmatprep.subr.bf16.mxu0 %v19204_v14  ;;  %v19264_v13 = vld [vmem:[#allocation4 + $0x904] ss:$16 sps:$4 sm:$0xff]  }
 0x273   :  { %2205 = vmatprep.subr.bf16.mxu1 %v19207_v15  ;;  %v19267_v14 = vld [vmem:[#allocation4 + $0xb04] ss:$16 sps:$4 sm:$0xff]   ;;  %v19262_v15 = vld [vmem:[#allocation4 + $0x900] ss:$16 sps:$4 sm:$0xff]  }
 0x275   :  { %2165 = vmatpush1.bf16.msra.mxu0 %v19202_v18  ;;  %v19265_v18 = vld [vmem:[#allocation4 + $0xb00] ss:$16 sps:$4 sm:$0xff]  }
 0x276   :  { %2206 = vmatpush1.bf16.msra.mxu1 %v19205_v19  ;;  %2166 = vmatprep.subr.bf16.mxu0 %v19210_v20  ;;  %v19270_v19 = vld [vmem:[#allocation4 + $0x924] ss:$16 sps:$4 sm:$0xff]  }
 0x277   :  { %2207 = vmatprep.subr.bf16.mxu1 %v19213_v21  ;;  %v19273_v20 = vld [vmem:[#allocation4 + $0xb24] ss:$16 sps:$4 sm:$0xff]   ;;  %v19268_v21 = vld [vmem:[#allocation4 + $0x920] ss:$16 sps:$4 sm:$0xff]  }
 0x279   :  { %2167 = vmatpush1.bf16.msra.mxu0 %v19208_v22  ;;  %v19271_v22 = vld [vmem:[#allocation4 + $0xb20] ss:$16 sps:$4 sm:$0xff]  }
 0x27a   :  { %2208 = vmatpush1.bf16.msra.mxu1 %v19211_v23  ;;  %3844 = vmatprep.subr.bf16.mxu0 %v19216_v24  ;;  %v19276_v23 = vld [vmem:[#allocation4 + $0x944] ss:$16 sps:$4 sm:$0xff]  }
 0x27b   :  { %3885 = vmatprep.subr.bf16.mxu1 %v19219_v25  ;;  %v19279_v24 = vld [vmem:[#allocation4 + $0xb44] ss:$16 sps:$4 sm:$0xff]   ;;  %v19274_v25 = vld [vmem:[#allocation4 + $0x940] ss:$16 sps:$4 sm:$0xff]  }
 0x27c   :  { %2169 = vmatmul.mubr.bf16.vlgmr.msra.gmra.mrb[12].mxu0 %v22053_v16  ;;  %v19234_v16 = vld [vmem:[#allocation4 + $0x864] ss:$16 sps:$4 sm:$0xff]  }
 0x27d   :  { %2210 = vmatmul.mubr.bf16.vlgmr.msra.gmra.mrb[12].mxu1 %v22057_v17  ;;  %3845 = vmatpush1.bf16.msra.mxu0 %v19214_v28  ;;  %v19237_v17 = vld [vmem:[#allocation4 + $0xa64] ss:$16 sps:$4 sm:$0xff]   ;;  %v19277_v28 = vld [vmem:[#allocation4 + $0xb40] ss:$16 sps:$4 sm:$0xff]  }
 0x27e   :  { %3886 = vmatpush1.bf16.msra.mxu1 %v19217_v29  ;;  %3846 = vmatprep.subr.bf16.mxu0 %v19222_v30  ;;  %v19282_v29 = vld [vmem:[#allocation4 + $0x964] ss:$16 sps:$4 sm:$0xff]  }
 0x27f   :  { %3887 = vmatprep.subr.bf16.mxu1 %v19225_v31  ;;  %3876 = vmatprep.mubr.bf16.mxu0 %v22079_v32  ;;  %v19285_v30 = vld [vmem:[#allocation4 + $0xb64] ss:$16 sps:$4 sm:$0xff]   ;;  %v19280_v31 = vld [vmem:[#allocation4 + $0x960] ss:$16 sps:$4 sm:$0xff]  }
 0x280   :  { %3917 = vmatprep.mubr.bf16.mxu1 %v22083_v33 }
 0x281   :  { %3847 = vmatpush1.bf16.msra.mxu0 %v19220_v6  ;;  %v19283_v6 = vld [vmem:[#allocation4 + $0xb60] ss:$16 sps:$4 sm:$0xff]  }
 0x282   :  { %3888 = vmatpush1.bf16.msra.mxu1 %v19223_v7  ;;  %3848 = vmatprep.subr.bf16.mxu0 %v19228_v34  ;;  %v19288_v7 = vld [vmem:[#allocation4 + $0x984] ss:$16 sps:$4 sm:$0xff]  }
 0x283   :  { %3889 = vmatprep.subr.bf16.mxu1 %v19231_v47  ;;  %v19291_v34 = vld [vmem:[#allocation4 + $0xb84] ss:$16 sps:$4 sm:$0xff]   ;;  %v19286_v47 = vld [vmem:[#allocation4 + $0x980] ss:$16 sps:$4 sm:$0xff]  }
 0x285   :  { %3849 = vmatpush1.bf16.msra.mxu0 %v19226_v51  ;;  %v19289_v51 = vld [vmem:[#allocation4 + $0xb80] ss:$16 sps:$4 sm:$0xff]  }
 0x286   :  { %3890 = vmatpush1.bf16.msra.mxu1 %v19229_v35  ;;  %3850 = vmatprep.subr.bf16.mxu0 %v19234_v16  ;;  %v19294_v35 = vld [vmem:[#allocation4 + $0x9a4] ss:$16 sps:$4 sm:$0xff]  }
 0x287   :  { %3891 = vmatprep.subr.bf16.mxu1 %v19237_v17  ;;  %v19297_v16 = vld [vmem:[#allocation4 + $0xba4] ss:$16 sps:$4 sm:$0xff]   ;;  %v19292_v17 = vld [vmem:[#allocation4 + $0x9a0] ss:$16 sps:$4 sm:$0xff]  }
 0x289   :  { %3851 = vmatpush1.bf16.msra.mxu0 %v19232_v36  ;;  %v19295_v36 = vld [vmem:[#allocation4 + $0xba0] ss:$16 sps:$4 sm:$0xff]  }
 0x28a   :  { %3892 = vmatpush1.bf16.msra.mxu1 %v19235_v37  ;;  %3852 = vmatprep.subr.bf16.mxu0 %v19240_v40  ;;  %v19300_v37 = vld [vmem:[#allocation4 + $0x9c4] ss:$16 sps:$4 sm:$0xff]  }
 0x28b   :  { %3893 = vmatprep.subr.bf16.mxu1 %v19243_v41  ;;  %v19303_v40 = vld [vmem:[#allocation4 + $0xbc4] ss:$16 sps:$4 sm:$0xff]   ;;  %v19298_v41 = vld [vmem:[#allocation4 + $0x9c0] ss:$16 sps:$4 sm:$0xff]  }
 0x28d   :  { %3853 = vmatpush1.bf16.msra.mxu0 %v19238_v42  ;;  %v19301_v42 = vld [vmem:[#allocation4 + $0xbc0] ss:$16 sps:$4 sm:$0xff]  }
 0x28e   :  { %3894 = vmatpush1.bf16.msra.mxu1 %v19241_v44  ;;  %3854 = vmatprep.subr.bf16.mxu0 %v19246_v48  ;;  %v19306_v44 = vld [vmem:[#allocation4 + $0x9e4] ss:$16 sps:$4 sm:$0xff]   ;;  %v19304_v48 = vld [vmem:[#allocation4 + $0x9e0] ss:$16 sps:$4 sm:$0xff]  }
 0x28f   :  { %3895 = vmatprep.subr.bf16.mxu1 %v19249_v49  ;;  %v1924_v57 = vpop.f32.mrb[0].mxu0  ;;  %v19307_v49 = vld [vmem:[#allocation4 + $0xbe0] ss:$16 sps:$4 sm:$0xff]  }
 0x290   :  { %v1965_v58 = vpop.f32.mrb[0].mxu1  ;;  %v1925_v61 = vadd.f32 %v1924_v57, %v565_v53  ;;  %v1926_v62 = vpop.f32.mrb[1].mxu0  ;;  %v22107_v53 = vld [vmem:[%s22774_s0 + $0x10] sm:$0x77]  ;;  %v22116_v57 = vcombine.low %v22070_v26, %v22070_v26 }
 0x291   :  { %v1967_v63 = vpop.f32.mrb[1].mxu1  ;;  %v1927_v0 = vadd.f32 %v1926_v62, %v569_v54  ;;  %v1928_v1 = vpop.f32.mrb[2].mxu0  ;;  %3855 = vmatpush1.bf16.msra.mxu0 %v19244_v50  ;;  %v19316_v50 = vld [vmem:[#allocation4 + $0xc04] ss:$16 sps:$4 sm:$0xff]   ;;  %v22112_v54 = vld [vmem:[%s22774_s0 + $0x18] sm:$0x77] }
 0x292   :  { %v1969_v2 = vpop.f32.mrb[2].mxu1  ;;  %3896 = vmatpush1.bf16.msra.mxu1 %v19247_v52  ;;  %v22100_v3 = vadd.f32 %v1965_v58, %v1925_v61  ;;  %v1929_v4 = vpop.f32.mrb[3].mxu0  ;;  %3856 = vmatprep.subr.bf16.mxu0 %v19252_v55  ;;  %v19319_v52 = vld [vmem:[#allocation4 + $0xe04] ss:$16 sps:$4 sm:$0xff]   ;;  %v19314_v55 = vld [vmem:[#allocation4 + $0xc00] ss:$16 sps:$4 sm:$0xff]   ;;  %v22120_v58 = vcombine.low %v22075_v27, %v22075_v27  ;;  %v22124_v61 = vcombine.high %v22107_v53, %v22107_v53 }
 0x293   :  { %v1970_v5 = vpop.f32.mrb[3].mxu1  ;;  %3897 = vmatprep.subr.bf16.mxu1 %v19255_v56  ;;  %v22102_v10 = vadd.f32 %v1967_v63, %v1927_v0  ;;  %v19317_v56 = vld [vmem:[#allocation4 + $0xe00] ss:$16 sps:$4 sm:$0xff]   ;;  %v22128_v62 = vcombine.high %v22112_v54, %v22112_v54  ;;  %v19328_v63 = vld [vmem:[#allocation4 + $0xc44] ss:$16 sps:$4 sm:$0xff]  }
 0x294   :  { %v19320_v26 = vld [vmem:[#allocation4 + $0xc20] ss:$16 sps:$4 sm:$0xff]   ;;  %v19331_v0 = vld [vmem:[#allocation4 + $0xe44] ss:$16 sps:$4 sm:$0xff]  }
 0x295   :  { %3857 = vmatpush1.bf16.msra.mxu0 %v19250_v59  ;;  %v19322_v59 = vld [vmem:[#allocation4 + $0xc24] ss:$16 sps:$4 sm:$0xff]   ;;  %v19323_v27 = vld [vmem:[#allocation4 + $0xe20] ss:$16 sps:$4 sm:$0xff]  }
 0x296   :  { %3898 = vmatpush1.bf16.msra.mxu1 %v19253_v60  ;;  %3858 = vmatprep.subr.bf16.mxu0 %v19258_v8  ;;  %v19325_v60 = vld [vmem:[#allocation4 + $0xe24] ss:$16 sps:$4 sm:$0xff]   ;;  %v19326_v1 = vld [vmem:[#allocation4 + $0xc40] ss:$16 sps:$4 sm:$0xff]  }
 0x297   :  { %3899 = vmatprep.subr.bf16.mxu1 %v19261_v9  ;;  %v19329_v2 = vld [vmem:[#allocation4 + $0xe40] ss:$16 sps:$4 sm:$0xff]   ;;  %v19334_v4 = vld [vmem:[#allocation4 + $0xc64] ss:$16 sps:$4 sm:$0xff]  }
 0x298   :  { %v19337_v5 = vld [vmem:[#allocation4 + $0xe64] ss:$16 sps:$4 sm:$0xff]   ;;  %v19332_v8 = vld [vmem:[#allocation4 + $0xc60] ss:$16 sps:$4 sm:$0xff]  }
 0x299   :  { %3859 = vmatpush1.bf16.msra.mxu0 %v19256_v11  ;;  %v19335_v9 = vld [vmem:[#allocation4 + $0xe60] ss:$16 sps:$4 sm:$0xff]   ;;  %v19340_v11 = vld [vmem:[#allocation4 + $0xc84] ss:$16 sps:$4 sm:$0xff]  }
 0x29a   :  { %3900 = vmatpush1.bf16.msra.mxu1 %v19259_v12  ;;  %3860 = vmatprep.subr.bf16.mxu0 %v19264_v13  ;;  %v19343_v12 = vld [vmem:[#allocation4 + $0xe84] ss:$16 sps:$4 sm:$0xff]   ;;  %v19338_v13 = vld [vmem:[#allocation4 + $0xc80] ss:$16 sps:$4 sm:$0xff]  }
 0x29b   :  { %3901 = vmatprep.subr.bf16.mxu1 %v19267_v14  ;;  %v19341_v14 = vld [vmem:[#allocation4 + $0xe80] ss:$16 sps:$4 sm:$0xff]  }
 0x29d   :  { %3861 = vmatpush1.bf16.msra.mxu0 %v19262_v15  ;;  %v19346_v15 = vld [vmem:[#allocation4 + $0xca4] ss:$16 sps:$4 sm:$0xff]  }
 0x29e   :  { %3902 = vmatpush1.bf16.msra.mxu1 %v19265_v18  ;;  %3862 = vmatprep.subr.bf16.mxu0 %v19270_v19  ;;  %v19349_v18 = vld [vmem:[#allocation4 + $0xea4] ss:$16 sps:$4 sm:$0xff]   ;;  %v2218_v19 = vld [vmem:[#allocation8] sm:$0xf] }
 0x29f   :  { %3903 = vmatprep.subr.bf16.mxu1 %v19273_v20  ;;  %v19344_v20 = vld [vmem:[#allocation4 + $0xca0] ss:$16 sps:$4 sm:$0xff]  }
 0x2a1   :  { %3863 = vmatpush1.bf16.msra.mxu0 %v19268_v21  ;;  %v19347_v21 = vld [vmem:[#allocation4 + $0xea0] ss:$16 sps:$4 sm:$0xff]  }
 0x2a2   :  { %3904 = vmatpush1.bf16.msra.mxu1 %v19271_v22  ;;  %3864 = vmatprep.subr.bf16.mxu0 %v19276_v23  ;;  %v19352_v22 = vld [vmem:[#allocation4 + $0xcc4] ss:$16 sps:$4 sm:$0xff]  }
 0x2a3   :  { %3905 = vmatprep.subr.bf16.mxu1 %v19279_v24  ;;  %v19355_v23 = vld [vmem:[#allocation4 + $0xec4] ss:$16 sps:$4 sm:$0xff]  }
 0x2a5   :  { %3865 = vmatpush1.bf16.msra.mxu0 %v19274_v25 }
 0x2a6   :  { %3906 = vmatpush1.bf16.msra.mxu1 %v19277_v28  ;;  %3866 = vmatprep.subr.bf16.mxu0 %v19282_v29  ;;  %v19350_v28 = vld [vmem:[#allocation4 + $0xcc0] ss:$16 sps:$4 sm:$0xff]  }
 0x2a7   :  { %3907 = vmatprep.subr.bf16.mxu1 %v19285_v30  ;;  %v19353_v29 = vld [vmem:[#allocation4 + $0xec0] ss:$16 sps:$4 sm:$0xff]  }
 0x2a9   :  { %3867 = vmatpush1.bf16.msra.mxu0 %v19280_v31  ;;  %v2223_v31 = vrot.slane %v2218_v19, %v22093_v43 }
 0x2aa   :  { %3908 = vmatpush1.bf16.msra.mxu1 %v19283_v6  ;;  %3868 = vmatprep.subr.bf16.mxu0 %v19288_v7 }
 0x2ab   :  { %3909 = vmatprep.subr.bf16.mxu1 %v19291_v34  ;;  %v2244_v34 = vld [vmem:[#allocation12] sm:$0x3f] }
 0x2ad   :  { %3869 = vmatpush1.bf16.msra.mxu0 %v19286_v47 }
 0x2ae   :  { %3910 = vmatpush1.bf16.msra.mxu1 %v19289_v51  ;;  %3870 = vmatprep.subr.bf16.mxu0 %v19294_v35  ;;  %v2227_v51 = vrot.slane %v2218_v19, %v22096_v46  ;;  %v19397_v19 = vld [vmem:[#allocation4 + $0xfa4] ss:$16 sps:$4 sm:$0xff]  }
 0x2af   :  { %3911 = vmatprep.subr.bf16.mxu1 %v19297_v16 }
 0x2b1   :  { %3871 = vmatpush1.bf16.msra.mxu0 %v19292_v17 }
 0x2b2   :  { %3912 = vmatpush1.bf16.msra.mxu1 %v19295_v36  ;;  %3872 = vmatprep.subr.bf16.mxu0 %v19300_v37 }
 0x2b3   :  { %3913 = vmatprep.subr.bf16.mxu1 %v19303_v40  ;;  %v19358_v40 = vld [vmem:[#allocation4 + $0xce4] ss:$16 sps:$4 sm:$0xff]  }
 0x2b5   :  { %3873 = vmatpush1.bf16.msra.mxu0 %v19298_v41 }
 0x2b6   :  { %3914 = vmatpush1.bf16.msra.mxu1 %v19301_v42  ;;  %3874 = vmatprep.subr.bf16.mxu0 %v19306_v44  ;;  %v2245_v42 = vld [vmem:[#allocation12 + $0x8] sm:$0x3f] }
 0x2b7   :  { %3915 = vmatprep.subr.bf16.mxu1 %v19309_v45  ;;  %v19356_v44 = vld [vmem:[#allocation4 + $0xce0] ss:$16 sps:$4 sm:$0xff]  }
 0x2b9   :  { %3875 = vmatpush1.bf16.msra.mxu0 %v19304_v48  ;;  %v19359_v48 = vld [vmem:[#allocation4 + $0xee0] ss:$16 sps:$4 sm:$0xff]  }
 0x2ba   :  { %3916 = vmatpush1.bf16.msra.mxu1 %v19307_v49  ;;  %3926 = vmatprep.subr.bf16.mxu0 %v19316_v50  ;;  %v19364_v50 = vld [vmem:[#allocation4 + $0xd04] ss:$16 sps:$4 sm:$0xff]  }
 0x2bb   :  { %3967 = vmatprep.subr.bf16.mxu1 %v19319_v52  ;;  %v19367_v52 = vld [vmem:[#allocation4 + $0xf04] ss:$16 sps:$4 sm:$0xff]  }
 0x2bc   :  { %3877 = vmatmul.mubr.bf16.vlgmr.msra.gmra.mrb[16].mxu0 %v22116_v57 }
 0x2bd   :  { %3918 = vmatmul.mubr.bf16.vlgmr.msra.gmra.mrb[16].mxu1 %v22120_v58  ;;  %3927 = vmatpush1.bf16.msra.mxu0 %v19314_v55 }
 0x2be   :  { %3968 = vmatpush1.bf16.msra.mxu1 %v19317_v56  ;;  %3928 = vmatprep.subr.bf16.mxu0 %v19322_v59  ;;  %v19362_v56 = vld [vmem:[#allocation4 + $0xd00] ss:$16 sps:$4 sm:$0xff]  }
 0x2bf   :  { %3969 = vmatprep.subr.bf16.mxu1 %v19325_v60  ;;  %3958 = vmatprep.mubr.bf16.mxu0 %v22124_v61  ;;  %v19365_v59 = vld [vmem:[#allocation4 + $0xf00] ss:$16 sps:$4 sm:$0xff]   ;;  %v19370_v60 = vld [vmem:[#allocation4 + $0xd24] ss:$16 sps:$4 sm:$0xff]  }
 0x2c0   :  { %3999 = vmatprep.mubr.bf16.mxu1 %v22128_v62 }
 0x2c1   :  { %3929 = vmatpush1.bf16.msra.mxu0 %v19320_v26  ;;  %v19373_v26 = vld [vmem:[#allocation4 + $0xf24] ss:$16 sps:$4 sm:$0xff]  }
 0x2c2   :  { %3970 = vmatpush1.bf16.msra.mxu1 %v19323_v27  ;;  %3930 = vmatprep.subr.bf16.mxu0 %v19328_v63  ;;  %v19368_v27 = vld [vmem:[#allocation4 + $0xd20] ss:$16 sps:$4 sm:$0xff]  }
 0x2c3   :  { %3971 = vmatprep.subr.bf16.mxu1 %v19331_v0  ;;  %v19371_v63 = vld [vmem:[#allocation4 + $0xf20] ss:$16 sps:$4 sm:$0xff]   ;;  %v19376_v0 = vld [vmem:[#allocation4 + $0xd44] ss:$16 sps:$4 sm:$0xff]  }
 0x2c5   :  { %3931 = vmatpush1.bf16.msra.mxu0 %v19326_v1  ;;  %v19379_v1 = vld [vmem:[#allocation4 + $0xf44] ss:$16 sps:$4 sm:$0xff]  }
 0x2c6   :  { %3972 = vmatpush1.bf16.msra.mxu1 %v19329_v2  ;;  %3932 = vmatprep.subr.bf16.mxu0 %v19334_v4  ;;  %v19374_v2 = vld [vmem:[#allocation4 + $0xd40] ss:$16 sps:$4 sm:$0xff]  }
 0x2c7   :  { %3973 = vmatprep.subr.bf16.mxu1 %v19337_v5  ;;  %v19377_v4 = vld [vmem:[#allocation4 + $0xf40] ss:$16 sps:$4 sm:$0xff]   ;;  %v19382_v5 = vld [vmem:[#allocation4 + $0xd64] ss:$16 sps:$4 sm:$0xff]  }
 0x2c9   :  { %3933 = vmatpush1.bf16.msra.mxu0 %v19332_v8  ;;  %v19385_v8 = vld [vmem:[#allocation4 + $0xf64] ss:$16 sps:$4 sm:$0xff]  }
 0x2ca   :  { %3974 = vmatpush1.bf16.msra.mxu1 %v19335_v9  ;;  %3934 = vmatprep.subr.bf16.mxu0 %v19340_v11  ;;  %v19380_v9 = vld [vmem:[#allocation4 + $0xd60] ss:$16 sps:$4 sm:$0xff]  }
 0x2cb   :  { %3975 = vmatprep.subr.bf16.mxu1 %v19343_v12  ;;  %v19383_v11 = vld [vmem:[#allocation4 + $0xf60] ss:$16 sps:$4 sm:$0xff]   ;;  %v19388_v12 = vld [vmem:[#allocation4 + $0xd84] ss:$16 sps:$4 sm:$0xff]  }
 0x2cd   :  { %3935 = vmatpush1.bf16.msra.mxu0 %v19338_v13  ;;  %v19391_v13 = vld [vmem:[#allocation4 + $0xf84] ss:$16 sps:$4 sm:$0xff]  }
 0x2ce   :  { %3976 = vmatpush1.bf16.msra.mxu1 %v19341_v14  ;;  %3936 = vmatprep.subr.bf16.mxu0 %v19346_v15  ;;  %v19386_v14 = vld [vmem:[#allocation4 + $0xd80] ss:$16 sps:$4 sm:$0xff]  }
 0x2cf   :  { %3977 = vmatprep.subr.bf16.mxu1 %v19349_v18  ;;  %v2006_v24 = vpop.f32.mrb[4].mxu0  ;;  %v19389_v15 = vld [vmem:[#allocation4 + $0xf80] ss:$16 sps:$4 sm:$0xff]   ;;  %v19394_v18 = vld [vmem:[#allocation4 + $0xda4] ss:$16 sps:$4 sm:$0xff]  }
 0x2d0   :  { %v2047_v25 = vpop.f32.mrb[4].mxu1  ;;  %v2007_v30 = vadd.f32 %v2006_v24, %v22100_v3  ;;  %v2008_v6 = vpop.f32.mrb[5].mxu0  ;;  %v19361_v3 = vld [vmem:[#allocation4 + $0xee4] ss:$16 sps:$4 sm:$0xff]   ;;  %v19398_v24 = vld [vmem:[#allocation4 + $0xdc0] ss:$16 sps:$4 sm:$0xff]  }
 0x2d1   :  { %v2049_v7 = vpop.f32.mrb[5].mxu1  ;;  %v2009_v47 = vadd.f32 %v2008_v6, %v22102_v10  ;;  %v2010_v35 = vpop.f32.mrb[6].mxu0  ;;  %3937 = vmatpush1.bf16.msra.mxu0 %v19344_v20  ;;  %v19392_v20 = vld [vmem:[#allocation4 + $0xda0] ss:$16 sps:$4 sm:$0xff]   ;;  %v19416_v6 = vld [vmem:[#allocation4 + $0x80c] ss:$16 sps:$4 sm:$0xff]  }
 0x2d2   :  { %v2051_v16 = vpop.f32.mrb[6].mxu1  ;;  %3978 = vmatpush1.bf16.msra.mxu1 %v19347_v21  ;;  %v2048_v17 = vadd.f32 %v2047_v25, %v2007_v30  ;;  %v2011_v36 = vpop.f32.mrb[7].mxu0  ;;  %3938 = vmatprep.subr.bf16.mxu0 %v19352_v22  ;;  %v19395_v21 = vld [vmem:[#allocation4 + $0xfa0] ss:$16 sps:$4 sm:$0xff]   ;;  %v19400_v22 = vld [vmem:[#allocation4 + $0xdc4] ss:$16 sps:$4 sm:$0xff]   ;;  %v22144_v35 = vcombine.low %v22112_v54, %v22112_v54 }
 0x2d3   :  { %v2052_v37 = vpop.f32.mrb[7].mxu1  ;;  %3979 = vmatprep.subr.bf16.mxu1 %v19355_v23  ;;  %v2050_v41 = vadd.f32 %v2049_v7, %v2009_v47  ;;  %v19403_v23 = vld [vmem:[#allocation4 + $0xfc4] ss:$16 sps:$4 sm:$0xff]   ;;  %v19401_v25 = vld [vmem:[#allocation4 + $0xfc0] ss:$16 sps:$4 sm:$0xff]  }
 0x2d4   :  { %v2240_v45 = vadd.f32 %v2223_v31, %v2048_v17  ;;  %v19404_v30 = vld [vmem:[#allocation4 + $0xde0] ss:$16 sps:$4 sm:$0xff]   ;;  %v19419_v7 = vld [vmem:[#allocation4 + $0xa0c] ss:$16 sps:$4 sm:$0xff]   ;;  %v19417_v47 = vld [vmem:[#allocation4 + $0xa08] ss:$16 sps:$4 sm:$0xff]  }
 0x2d5   :  { %v2241_v49 = vadd.f32 %v2227_v51, %v2050_v41  ;;  %3939 = vmatpush1.bf16.msra.mxu0 %v19350_v28  ;;  %v19406_v28 = vld [vmem:[#allocation4 + $0xde4] ss:$16 sps:$4 sm:$0xff]   ;;  %v19407_v31 = vld [vmem:[#allocation4 + $0xfe0] ss:$16 sps:$4 sm:$0xff]   ;;  %v22140_v51 = vcombine.low %v22107_v53, %v22107_v53  ;;  %v19422_v16 = vld [vmem:[#allocation4 + $0x82c] ss:$16 sps:$4 sm:$0xff]  }
 0x2d6   :  { %3980 = vmatpush1.bf16.msra.mxu1 %v19353_v29  ;;  %v2248_v10 = vadd.f32 %v2244_v34, %v2240_v45  ;;  %3940 = vmatprep.subr.bf16.mxu0 %v19358_v40  ;;  %v19409_v29 = vld [vmem:[#allocation4 + $0xfe4] ss:$16 sps:$4 sm:$0xff]   ;;  %v19414_v34 = vld [vmem:[#allocation4 + $0x808] ss:$16 sps:$4 sm:$0xff]   ;;  %v19425_v17 = vld [vmem:[#allocation4 + $0xa2c] ss:$16 sps:$4 sm:$0xff]  }
 0x2d7   :  { %3981 = vmatprep.subr.bf16.mxu1 %v19361_v3  ;;  %v2249_v55 = vadd.f32 %v2245_v42, %v2241_v49  ;;  %v19420_v36 = vld [vmem:[#allocation4 + $0x828] ss:$16 sps:$4 sm:$0xff]   ;;  %v19428_v40 = vld [vmem:[#allocation4 + $0x84c] ss:$16 sps:$4 sm:$0xff]  }
 0x2d8   :  { %4226 = vst [vmem:[#allocation2] sm:$0x3f] %v2248_v10  ;;  %v19423_v37 = vld [vmem:[#allocation4 + $0xa28] ss:$16 sps:$4 sm:$0xff]   ;;  %v19431_v3 = vld [vmem:[#allocation4 + $0xa4c] ss:$16 sps:$4 sm:$0xff]  }
 0x2d9   :  { %4227 = vst [vmem:[#allocation2 + $0x8] sm:$0x3f] %v2249_v55  ;;  %3941 = vmatpush1.bf16.msra.mxu0 %v19356_v44  ;;  %v19426_v53 = vld [vmem:[#allocation4 + $0x848] ss:$16 sps:$4 sm:$0xff]   ;;  %v19434_v41 = vld [vmem:[#allocation4 + $0x86c] ss:$16 sps:$4 sm:$0xff]  }
 0x2da   :  { %3982 = vmatpush1.bf16.msra.mxu1 %v19359_v48  ;;  %3942 = vmatprep.subr.bf16.mxu0 %v19364_v50  ;;  %v19429_v54 = vld [vmem:[#allocation4 + $0xa48] ss:$16 sps:$4 sm:$0xff]   ;;  %v19437_v42 = vld [vmem:[#allocation4 + $0xa6c] ss:$16 sps:$4 sm:$0xff]   ;;  %v22154_v55 = vsub.s32 3, %v22090_v39 }
 0x2db   :  { %3983 = vmatprep.subr.bf16.mxu1 %v19367_v52  ;;  %v19432_v44 = vld [vmem:[#allocation4 + $0x868] ss:$16 sps:$4 sm:$0xff]   ;;  %v19440_v48 = vld [vmem:[#allocation4 + $0x88c] ss:$16 sps:$4 sm:$0xff]  }
 0x2dc   :  { %v19435_v45 = vld [vmem:[#allocation4 + $0xa68] ss:$16 sps:$4 sm:$0xff]   ;;  %v19443_v49 = vld [vmem:[#allocation4 + $0xa8c] ss:$16 sps:$4 sm:$0xff]  }
 0x2dd   :  { %3943 = vmatpush1.bf16.msra.mxu0 %v19362_v56  ;;  %v19438_v10 = vld [vmem:[#allocation4 + $0x888] ss:$16 sps:$4 sm:$0xff]   ;;  %v19449_v52 = vld [vmem:[#allocation4 + $0xaac] ss:$16 sps:$4 sm:$0xff]  }
 0x2de   :  { %3984 = vmatpush1.bf16.msra.mxu1 %v19365_v59  ;;  %3944 = vmatprep.subr.bf16.mxu0 %v19370_v60  ;;  %v19441_v50 = vld [vmem:[#allocation4 + $0xa88] ss:$16 sps:$4 sm:$0xff]   ;;  %v21180_v60 = vld [vmem:[#allocation6] sm:$0xf] }
 0x2df   :  { %3985 = vmatprep.subr.bf16.mxu1 %v19373_v26  ;;  %v19444_v56 = vld [vmem:[#allocation4 + $0x8a8] ss:$16 sps:$4 sm:$0xff]  }
 0x2e0   :  { %v19447_v59 = vld [vmem:[#allocation4 + $0xaa8] ss:$16 sps:$4 sm:$0xff]  }
 0x2e1   :  { %3945 = vmatpush1.bf16.msra.mxu0 %v19368_v27  ;;  %v19452_v27 = vld [vmem:[#allocation4 + $0x8cc] ss:$16 sps:$4 sm:$0xff]  }
 0x2e2   :  { %3986 = vmatpush1.bf16.msra.mxu1 %v19371_v63  ;;  %3946 = vmatprep.subr.bf16.mxu0 %v19376_v0  ;;  %v19455_v63 = vld [vmem:[#allocation4 + $0xacc] ss:$16 sps:$4 sm:$0xff]   ;;  %v577_v0 = vrot.slane %v21180_v60, %v22154_v55 }
 0x2e3   :  { %3987 = vmatprep.subr.bf16.mxu1 %v19379_v1 }
 0x2e5   :  { %3947 = vmatpush1.bf16.msra.mxu0 %v19374_v2 }
 0x2e6   :  { %3988 = vmatpush1.bf16.msra.mxu1 %v19377_v4  ;;  %3948 = vmatprep.subr.bf16.mxu0 %v19382_v5  ;;  %v19450_v4 = vld [vmem:[#allocation4 + $0x8c8] ss:$16 sps:$4 sm:$0xff]  }
 0x2e7   :  { %3989 = vmatprep.subr.bf16.mxu1 %v19385_v8  ;;  %v19453_v5 = vld [vmem:[#allocation4 + $0xac8] ss:$16 sps:$4 sm:$0xff]  }
 0x2e9   :  { %3949 = vmatpush1.bf16.msra.mxu0 %v19380_v9 }
 0x2ea   :  { %3990 = vmatpush1.bf16.msra.mxu1 %v19383_v11  ;;  %3950 = vmatprep.subr.bf16.mxu0 %v19388_v12  ;;  %v19458_v12 = vld [vmem:[#allocation4 + $0x8ec] ss:$16 sps:$4 sm:$0xff]  }
 0x2eb   :  { %3991 = vmatprep.subr.bf16.mxu1 %v19391_v13  ;;  %v19461_v13 = vld [vmem:[#allocation4 + $0xaec] ss:$16 sps:$4 sm:$0xff]  }
 0x2ed   :  { %3951 = vmatpush1.bf16.msra.mxu0 %v19386_v14 }
 0x2ee   :  { %3992 = vmatpush1.bf16.msra.mxu1 %v19389_v15  ;;  %3952 = vmatprep.subr.bf16.mxu0 %v19394_v18 }
 0x2ef   :  { %3993 = vmatprep.subr.bf16.mxu1 %v19397_v19 }
 0x2f1   :  { %3953 = vmatpush1.bf16.msra.mxu0 %v19392_v20 }
 0x2f2   :  { %3994 = vmatpush1.bf16.msra.mxu1 %v19395_v21  ;;  %3954 = vmatprep.subr.bf16.mxu0 %v19400_v22 }
 0x2f3   :  { %3995 = vmatprep.subr.bf16.mxu1 %v19403_v23  ;;  %v19456_v23 = vld [vmem:[#allocation4 + $0x8e8] ss:$16 sps:$4 sm:$0xff]  }
 0x2f5   :  { %3955 = vmatpush1.bf16.msra.mxu0 %v19398_v24  ;;  %v19459_v24 = vld [vmem:[#allocation4 + $0xae8] ss:$16 sps:$4 sm:$0xff]  }
 0x2f6   :  { %3996 = vmatpush1.bf16.msra.mxu1 %v19401_v25  ;;  %3956 = vmatprep.subr.bf16.mxu0 %v19406_v28  ;;  %v19464_v25 = vld [vmem:[#allocation4 + $0x90c] ss:$16 sps:$4 sm:$0xff]  }
 0x2f7   :  { %3997 = vmatprep.subr.bf16.mxu1 %v19409_v29  ;;  %v19467_v28 = vld [vmem:[#allocation4 + $0xb0c] ss:$16 sps:$4 sm:$0xff]   ;;  %v19462_v29 = vld [vmem:[#allocation4 + $0x908] ss:$16 sps:$4 sm:$0xff]  }
 0x2f9   :  { %3957 = vmatpush1.bf16.msra.mxu0 %v19404_v30  ;;  %v19465_v30 = vld [vmem:[#allocation4 + $0xb08] ss:$16 sps:$4 sm:$0xff]  }
 0x2fa   :  { %3998 = vmatpush1.bf16.msra.mxu1 %v19407_v31  ;;  %4008 = vmatprep.subr.bf16.mxu0 %v19416_v6  ;;  %v19470_v31 = vld [vmem:[#allocation4 + $0x92c] ss:$16 sps:$4 sm:$0xff]  }
 0x2fb   :  { %4049 = vmatprep.subr.bf16.mxu1 %v19419_v7  ;;  %v19473_v6 = vld [vmem:[#allocation4 + $0xb2c] ss:$16 sps:$4 sm:$0xff]   ;;  %v19468_v7 = vld [vmem:[#allocation4 + $0x928] ss:$16 sps:$4 sm:$0xff]  }
 0x2fc   :  { %3959 = vmatmul.mubr.bf16.vlgmr.msra.gmra.mrb[20].mxu0 %v22140_v51 }
 0x2fd   :  { %4000 = vmatmul.mubr.bf16.vlgmr.msra.gmra.mrb[20].mxu1 %v22144_v35  ;;  %4009 = vmatpush1.bf16.msra.mxu0 %v19414_v34  ;;  %v19471_v34 = vld [vmem:[#allocation4 + $0xb28] ss:$16 sps:$4 sm:$0xff]  }
 0x2fe   :  { %4050 = vmatpush1.bf16.msra.mxu1 %v19417_v47  ;;  %4010 = vmatprep.subr.bf16.mxu0 %v19422_v16  ;;  %v19476_v47 = vld [vmem:[#allocation4 + $0x94c] ss:$16 sps:$4 sm:$0xff]  }
 0x2ff   :  { %4051 = vmatprep.subr.bf16.mxu1 %v19425_v17  ;;  %4040 = vmatprep.mubr.bf16.mxu0 %v22079_v32  ;;  %v22151_v32 = vsub.s32 2, %v22090_v39  ;;  %v19479_v16 = vld [vmem:[#allocation4 + $0xb4c] ss:$16 sps:$4 sm:$0xff]   ;;  %v19474_v17 = vld [vmem:[#allocation4 + $0x948] ss:$16 sps:$4 sm:$0xff]  }
 0x300   :  { %4081 = vmatprep.mubr.bf16.mxu1 %v22083_v33  ;;  %v19446_v33 = vld [vmem:[#allocation4 + $0x8ac] ss:$16 sps:$4 sm:$0xff]  }
 0x301   :  { %4011 = vmatpush1.bf16.msra.mxu0 %v19420_v36  ;;  %v573_v26 = vrot.slane %v21180_v60, %v22151_v32  ;;  %v19477_v36 = vld [vmem:[#allocation4 + $0xb48] ss:$16 sps:$4 sm:$0xff]   ;;  %v19509_v60 = vld [vmem:[#allocation4 + $0xbec] ss:$16 sps:$4 sm:$0xff]  }
 0x302   :  { %4052 = vmatpush1.bf16.msra.mxu1 %v19423_v37  ;;  %4012 = vmatprep.subr.bf16.mxu0 %v19428_v40  ;;  %v19482_v37 = vld [vmem:[#allocation4 + $0x96c] ss:$16 sps:$4 sm:$0xff]  }
 0x303   :  { %4053 = vmatprep.subr.bf16.mxu1 %v19431_v3  ;;  %v19485_v40 = vld [vmem:[#allocation4 + $0xb6c] ss:$16 sps:$4 sm:$0xff]   ;;  %v19480_v3 = vld [vmem:[#allocation4 + $0x968] ss:$16 sps:$4 sm:$0xff]  }
 0x305   :  { %4013 = vmatpush1.bf16.msra.mxu0 %v19426_v53  ;;  %v19483_v53 = vld [vmem:[#allocation4 + $0xb68] ss:$16 sps:$4 sm:$0xff]  }
 0x306   :  { %4054 = vmatpush1.bf16.msra.mxu1 %v19429_v54  ;;  %4014 = vmatprep.subr.bf16.mxu0 %v19434_v41  ;;  %v19488_v54 = vld [vmem:[#allocation4 + $0x98c] ss:$16 sps:$4 sm:$0xff]  }
 0x307   :  { %4055 = vmatprep.subr.bf16.mxu1 %v19437_v42  ;;  %v19491_v41 = vld [vmem:[#allocation4 + $0xb8c] ss:$16 sps:$4 sm:$0xff]   ;;  %v19486_v42 = vld [vmem:[#allocation4 + $0x988] ss:$16 sps:$4 sm:$0xff]  }
 0x309   :  { %4015 = vmatpush1.bf16.msra.mxu0 %v19432_v44  ;;  %v19489_v44 = vld [vmem:[#allocation4 + $0xb88] ss:$16 sps:$4 sm:$0xff]  }
 0x30a   :  { %4056 = vmatpush1.bf16.msra.mxu1 %v19435_v45  ;;  %4016 = vmatprep.subr.bf16.mxu0 %v19440_v48  ;;  %v19494_v45 = vld [vmem:[#allocation4 + $0x9ac] ss:$16 sps:$4 sm:$0xff]  }
 0x30b   :  { %4057 = vmatprep.subr.bf16.mxu1 %v19443_v49  ;;  %v19497_v48 = vld [vmem:[#allocation4 + $0xbac] ss:$16 sps:$4 sm:$0xff]   ;;  %v19492_v49 = vld [vmem:[#allocation4 + $0x9a8] ss:$16 sps:$4 sm:$0xff]  }
 0x30d   :  { %4017 = vmatpush1.bf16.msra.mxu0 %v19438_v10  ;;  %v19495_v10 = vld [vmem:[#allocation4 + $0xba8] ss:$16 sps:$4 sm:$0xff]  }
 0x30e   :  { %4058 = vmatpush1.bf16.msra.mxu1 %v19441_v50  ;;  %4018 = vmatprep.subr.bf16.mxu0 %v19446_v33  ;;  %v19500_v50 = vld [vmem:[#allocation4 + $0x9cc] ss:$16 sps:$4 sm:$0xff]  }
 0x30f   :  { %4059 = vmatprep.subr.bf16.mxu1 %v19449_v52  ;;  %v2088_v1 = vpop.f32.mrb[8].mxu0  ;;  %v19503_v33 = vld [vmem:[#allocation4 + $0xbcc] ss:$16 sps:$4 sm:$0xff]   ;;  %v19498_v52 = vld [vmem:[#allocation4 + $0x9c8] ss:$16 sps:$4 sm:$0xff]  }
 0x310   :  { %v2129_v2 = vpop.f32.mrb[8].mxu1  ;;  %v2089_v8 = vadd.f32 %v2088_v1, %v573_v26  ;;  %v2090_v9 = vpop.f32.mrb[9].mxu0  ;;  %v19504_v26 = vld [vmem:[#allocation4 + $0x9e8] ss:$16 sps:$4 sm:$0xff]  }
 0x311   :  { %v2131_v11 = vpop.f32.mrb[9].mxu1  ;;  %v2091_v14 = vadd.f32 %v2090_v9, %v577_v0  ;;  %v2092_v15 = vpop.f32.mrb[10].mxu0  ;;  %4019 = vmatpush1.bf16.msra.mxu0 %v19444_v56  ;;  %v19501_v56 = vld [vmem:[#allocation4 + $0xbc8] ss:$16 sps:$4 sm:$0xff]   ;;  %v19515_v0 = vld [vmem:[#allocation4 + $0xe0c] ss:$16 sps:$4 sm:$0xff]  }
 0x312   :  { %v2133_v18 = vpop.f32.mrb[10].mxu1  ;;  %4060 = vmatpush1.bf16.msra.mxu1 %v19447_v59  ;;  %v22158_v19 = vadd.f32 %v2129_v2, %v2089_v8  ;;  %v2093_v20 = vpop.f32.mrb[11].mxu0  ;;  %4020 = vmatprep.subr.bf16.mxu0 %v19452_v27  ;;  %v19506_v59 = vld [vmem:[#allocation4 + $0x9ec] ss:$16 sps:$4 sm:$0xff]   ;;  %v19507_v27 = vld [vmem:[#allocation4 + $0xbe8] ss:$16 sps:$4 sm:$0xff]  }
 0x313   :  { %v2134_v21 = vpop.f32.mrb[11].mxu1  ;;  %4061 = vmatprep.subr.bf16.mxu1 %v19455_v63  ;;  %v22160_v22 = vadd.f32 %v2131_v11, %v2091_v14  ;;  %v19512_v63 = vld [vmem:[#allocation4 + $0xc0c] ss:$16 sps:$4 sm:$0xff]   ;;  %v19510_v1 = vld [vmem:[#allocation4 + $0xc08] ss:$16 sps:$4 sm:$0xff]  }
 0x314   :  { %v19513_v2 = vld [vmem:[#allocation4 + $0xe08] ss:$16 sps:$4 sm:$0xff]   ;;  %v19524_v11 = vld [vmem:[#allocation4 + $0xc4c] ss:$16 sps:$4 sm:$0xff]  }
 0x315   :  { %4021 = vmatpush1.bf16.msra.mxu0 %v19450_v4  ;;  %v19518_v4 = vld [vmem:[#allocation4 + $0xc2c] ss:$16 sps:$4 sm:$0xff]   ;;  %v19516_v8 = vld [vmem:[#allocation4 + $0xc28] ss:$16 sps:$4 sm:$0xff]  }
 0x316   :  { %4062 = vmatpush1.bf16.msra.mxu1 %v19453_v5  ;;  %4022 = vmatprep.subr.bf16.mxu0 %v19458_v12  ;;  %v19521_v5 = vld [vmem:[#allocation4 + $0xe2c] ss:$16 sps:$4 sm:$0xff]   ;;  %v19519_v9 = vld [vmem:[#allocation4 + $0xe28] ss:$16 sps:$4 sm:$0xff]  }
 0x317   :  { %4063 = vmatprep.subr.bf16.mxu1 %v19461_v13  ;;  %v19527_v12 = vld [vmem:[#allocation4 + $0xe4c] ss:$16 sps:$4 sm:$0xff]   ;;  %v19522_v13 = vld [vmem:[#allocation4 + $0xc48] ss:$16 sps:$4 sm:$0xff]  }
 0x318   :  { %v19525_v14 = vld [vmem:[#allocation4 + $0xe48] ss:$16 sps:$4 sm:$0xff]   ;;  %v19530_v15 = vld [vmem:[#allocation4 + $0xc6c] ss:$16 sps:$4 sm:$0xff]  }
 0x319   :  { %4023 = vmatpush1.bf16.msra.mxu0 %v19456_v23  ;;  %v19533_v18 = vld [vmem:[#allocation4 + $0xe6c] ss:$16 sps:$4 sm:$0xff]   ;;  %v19534_v23 = vld [vmem:[#allocation4 + $0xc88] ss:$16 sps:$4 sm:$0xff]  }
 0x31a   :  { %4064 = vmatpush1.bf16.msra.mxu1 %v19459_v24  ;;  %4024 = vmatprep.subr.bf16.mxu0 %v19464_v25  ;;  %v19536_v20 = vld [vmem:[#allocation4 + $0xc8c] ss:$16 sps:$4 sm:$0xff]   ;;  %v19537_v24 = vld [vmem:[#allocation4 + $0xe88] ss:$16 sps:$4 sm:$0xff]  }
 0x31b   :  { %4065 = vmatprep.subr.bf16.mxu1 %v19467_v28  ;;  %v19539_v21 = vld [vmem:[#allocation4 + $0xe8c] ss:$16 sps:$4 sm:$0xff]   ;;  %v19543_v28 = vld [vmem:[#allocation4 + $0xea8] ss:$16 sps:$4 sm:$0xff]  }
 0x31c   :  { %v19542_v25 = vld [vmem:[#allocation4 + $0xcac] ss:$16 sps:$4 sm:$0xff]  }
 0x31d   :  { %4025 = vmatpush1.bf16.msra.mxu0 %v19462_v29  ;;  %v19548_v29 = vld [vmem:[#allocation4 + $0xccc] ss:$16 sps:$4 sm:$0xff]  }
 0x31e   :  { %4066 = vmatpush1.bf16.msra.mxu1 %v19465_v30  ;;  %4026 = vmatprep.subr.bf16.mxu0 %v19470_v31  ;;  %v19551_v30 = vld [vmem:[#allocation4 + $0xecc] ss:$16 sps:$4 sm:$0xff]  }
 0x31f   :  { %4067 = vmatprep.subr.bf16.mxu1 %v19473_v6 }
 0x321   :  { %4027 = vmatpush1.bf16.msra.mxu0 %v19468_v7 }
 0x322   :  { %4068 = vmatpush1.bf16.msra.mxu1 %v19471_v34  ;;  %4028 = vmatprep.subr.bf16.mxu0 %v19476_v47  ;;  %v21181_v34 = vld [vmem:[#allocation8] sm:$0xf] }
 0x323   :  { %4069 = vmatprep.subr.bf16.mxu1 %v19479_v16  ;;  %v2231_v47 = vrot.slane %v21181_v34, %v22151_v32 }
 0x325   :  { %4029 = vmatpush1.bf16.msra.mxu0 %v19474_v17 }
 0x326   :  { %4070 = vmatpush1.bf16.msra.mxu1 %v19477_v36  ;;  %4030 = vmatprep.subr.bf16.mxu0 %v19482_v37  ;;  %v19546_v36 = vld [vmem:[#allocation4 + $0xcc8] ss:$16 sps:$4 sm:$0xff]  }
 0x327   :  { %4071 = vmatprep.subr.bf16.mxu1 %v19485_v40  ;;  %v19549_v37 = vld [vmem:[#allocation4 + $0xec8] ss:$16 sps:$4 sm:$0xff]  }
 0x328   :  { %v2246_v40 = vld [vmem:[#allocation12 + $0x10] sm:$0x3f] }
 0x329   :  { %4031 = vmatpush1.bf16.msra.mxu0 %v19480_v3 }
 0x32a   :  { %4072 = vmatpush1.bf16.msra.mxu1 %v19483_v53  ;;  %4032 = vmatprep.subr.bf16.mxu0 %v19488_v54  ;;  %v2235_v53 = vrot.slane %v21181_v34, %v22154_v55  ;;  %v19597_v34 = vld [vmem:[#allocation4 + $0xfc8] ss:$16 sps:$4 sm:$0xff]  }
 0x32b   :  { %4073 = vmatprep.subr.bf16.mxu1 %v19491_v41 }
 0x32d   :  { %4033 = vmatpush1.bf16.msra.mxu0 %v19486_v42  ;;  %v19554_v42 = vld [vmem:[#allocation4 + $0xcec] ss:$16 sps:$4 sm:$0xff]  }
 0x32e   :  { %4074 = vmatpush1.bf16.msra.mxu1 %v19489_v44  ;;  %4034 = vmatprep.subr.bf16.mxu0 %v19494_v45  ;;  %v2247_v45 = vld [vmem:[#allocation12 + $0x18] sm:$0x3f] }
 0x32f   :  { %4075 = vmatprep.subr.bf16.mxu1 %v19497_v48 }
 0x331   :  { %4035 = vmatpush1.bf16.msra.mxu0 %v19492_v49  ;;  %v19557_v49 = vld [vmem:[#allocation4 + $0xeec] ss:$16 sps:$4 sm:$0xff]  }
 0x332   :  { %4076 = vmatpush1.bf16.msra.mxu1 %v19495_v10  ;;  %4036 = vmatprep.subr.bf16.mxu0 %v19500_v50 }
 0x333   :  { %4077 = vmatprep.subr.bf16.mxu1 %v19503_v33  ;;  %v19552_v33 = vld [vmem:[#allocation4 + $0xce8] ss:$16 sps:$4 sm:$0xff]  }
 0x335   :  { %4037 = vmatpush1.bf16.msra.mxu0 %v19498_v52  ;;  %v19555_v52 = vld [vmem:[#allocation4 + $0xee8] ss:$16 sps:$4 sm:$0xff]  }
 0x336   :  { %4078 = vmatpush1.bf16.msra.mxu1 %v19501_v56  ;;  %4038 = vmatprep.subr.bf16.mxu0 %v19506_v59  ;;  %v19563_v59 = vld [vmem:[#allocation4 + $0xf0c] ss:$16 sps:$4 sm:$0xff]  }
 0x337   :  { %4079 = vmatprep.subr.bf16.mxu1 %v19509_v60  ;;  %v4202_v60 = vld [vmem:[#allocation11] sm:$0xf] }
 0x339   :  { %4039 = vmatpush1.bf16.msra.mxu0 %v19504_v26 }
 0x33a   :  { %4080 = vmatpush1.bf16.msra.mxu1 %v19507_v27  ;;  %4090 = vmatprep.subr.bf16.mxu0 %v19512_v63  ;;  %v4203_v27 = vld [vmem:[#allocation14] sm:$0xf] }
 0x33b   :  { %4131 = vmatprep.subr.bf16.mxu1 %v19515_v0  ;;  %v22170_v0 = vadd.f32 %v4203_v27, %v4202_v60  ;;  %v19638_v60 = vld [vmem:[#allocation15 + $0x1e4] ss:$48 sps:$4 sm:$0xff]   ;;  %v19636_v27 = vld [vmem:[#allocation15 + $0x1e0] ss:$48 sps:$4 sm:$0xff]  }
 0x33c   :  { %4041 = vmatmul.mubr.bf16.vlgmr.msra.gmra.mrb[24].mxu0 %v22116_v57  ;;  %v19528_v57 = vld [vmem:[#allocation4 + $0xc68] ss:$16 sps:$4 sm:$0xff]  }
 0x33d   :  { %4082 = vmatmul.mubr.bf16.vlgmr.msra.gmra.mrb[24].mxu1 %v22120_v58  ;;  %4091 = vmatpush1.bf16.msra.mxu0 %v19510_v1  ;;  %v19531_v58 = vld [vmem:[#allocation4 + $0xe68] ss:$16 sps:$4 sm:$0xff]  }
 0x33e   :  { %4132 = vmatpush1.bf16.msra.mxu1 %v19513_v2  ;;  %4092 = vmatprep.subr.bf16.mxu0 %v19518_v4  ;;  %v19558_v1 = vld [vmem:[#allocation4 + $0xd08] ss:$16 sps:$4 sm:$0xff]   ;;  %v19566_v4 = vld [vmem:[#allocation4 + $0xd2c] ss:$16 sps:$4 sm:$0xff]  }
 0x33f   :  { %4133 = vmatprep.subr.bf16.mxu1 %v19521_v5  ;;  %4122 = vmatprep.mubr.bf16.mxu0 %v22124_v61  ;;  %v19545_v61 = vld [vmem:[#allocation4 + $0xeac] ss:$16 sps:$4 sm:$0xff]   ;;  %v19561_v2 = vld [vmem:[#allocation4 + $0xf08] ss:$16 sps:$4 sm:$0xff]  }
 0x340   :  { %4163 = vmatprep.mubr.bf16.mxu1 %v22128_v62  ;;  %v19540_v62 = vld [vmem:[#allocation4 + $0xca8] ss:$16 sps:$4 sm:$0xff]   ;;  %v19569_v5 = vld [vmem:[#allocation4 + $0xf2c] ss:$16 sps:$4 sm:$0xff]  }
 0x341   :  { %4093 = vmatpush1.bf16.msra.mxu0 %v19516_v8  ;;  %v4213_v8 = vrot.slane %v22170_v0, %v22096_v46 }
 0x342   :  { %4134 = vmatpush1.bf16.msra.mxu1 %v19519_v9  ;;  %4094 = vmatprep.subr.bf16.mxu0 %v19524_v11  ;;  %v4209_v9 = vrot.slane %v22170_v0, %v22093_v43  ;;  %v19564_v11 = vld [vmem:[#allocation4 + $0xd28] ss:$16 sps:$4 sm:$0xff]  }
 0x343   :  { %4135 = vmatprep.subr.bf16.mxu1 %v19527_v12  ;;  %4251 = vst [vmem:[#allocation2 + $0x28] sm:$0x30] %v4213_v8  ;;  %v19567_v12 = vld [vmem:[#allocation4 + $0xf28] ss:$16 sps:$4 sm:$0xff]  }
 0x344   :  { %4250 = vst [vmem:[#allocation2 + $0x20] sm:$0x30] %v4209_v9 }
 0x345   :  { %4095 = vmatpush1.bf16.msra.mxu0 %v19522_v13  ;;  %v19572_v13 = vld [vmem:[#allocation4 + $0xd4c] ss:$16 sps:$4 sm:$0xff]  }
 0x346   :  { %4136 = vmatpush1.bf16.msra.mxu1 %v19525_v14  ;;  %4096 = vmatprep.subr.bf16.mxu0 %v19530_v15  ;;  %v19575_v14 = vld [vmem:[#allocation4 + $0xf4c] ss:$16 sps:$4 sm:$0xff]   ;;  %v19570_v15 = vld [vmem:[#allocation4 + $0xd48] ss:$16 sps:$4 sm:$0xff]  }
 0x347   :  { %4137 = vmatprep.subr.bf16.mxu1 %v19533_v18  ;;  %v19573_v18 = vld [vmem:[#allocation4 + $0xf48] ss:$16 sps:$4 sm:$0xff]  }
 0x349   :  { %4097 = vmatpush1.bf16.msra.mxu0 %v19528_v57  ;;  %v19578_v57 = vld [vmem:[#allocation4 + $0xd6c] ss:$16 sps:$4 sm:$0xff]  }
 0x34a   :  { %4138 = vmatpush1.bf16.msra.mxu1 %v19531_v58  ;;  %4098 = vmatprep.subr.bf16.mxu0 %v19536_v20  ;;  %v19581_v58 = vld [vmem:[#allocation4 + $0xf6c] ss:$16 sps:$4 sm:$0xff]   ;;  %v19576_v20 = vld [vmem:[#allocation4 + $0xd68] ss:$16 sps:$4 sm:$0xff]  }
 0x34b   :  { %4139 = vmatprep.subr.bf16.mxu1 %v19539_v21  ;;  %v19579_v21 = vld [vmem:[#allocation4 + $0xf68] ss:$16 sps:$4 sm:$0xff]  }
 0x34d   :  { %4099 = vmatpush1.bf16.msra.mxu0 %v19534_v23  ;;  %v19584_v23 = vld [vmem:[#allocation4 + $0xd8c] ss:$16 sps:$4 sm:$0xff]  }
 0x34e   :  { %4140 = vmatpush1.bf16.msra.mxu1 %v19537_v24  ;;  %4100 = vmatprep.subr.bf16.mxu0 %v19542_v25  ;;  %v19587_v24 = vld [vmem:[#allocation4 + $0xf8c] ss:$16 sps:$4 sm:$0xff]   ;;  %v19582_v25 = vld [vmem:[#allocation4 + $0xd88] ss:$16 sps:$4 sm:$0xff]  }
 0x34f   :  { %4141 = vmatprep.subr.bf16.mxu1 %v19545_v61  ;;  %v2170_v31 = vpop.f32.mrb[12].mxu0  ;;  %v19585_v61 = vld [vmem:[#allocation4 + $0xf88] ss:$16 sps:$4 sm:$0xff]  }
 0x350   :  { %v2211_v6 = vpop.f32.mrb[12].mxu1  ;;  %v2171_v7 = vadd.f32 %v2170_v31, %v22158_v19  ;;  %v2172_v16 = vpop.f32.mrb[13].mxu0  ;;  %v19596_v31 = vld [vmem:[#allocation4 + $0xdcc] ss:$16 sps:$4 sm:$0xff]  }
 0x351   :  { %v2213_v17 = vpop.f32.mrb[13].mxu1  ;;  %v2173_v3 = vadd.f32 %v2172_v16, %v22160_v22  ;;  %v2174_v54 = vpop.f32.mrb[14].mxu0  ;;  %4101 = vmatpush1.bf16.msra.mxu0 %v19540_v62  ;;  %v19560_v22 = vld [vmem:[#allocation4 + $0xd0c] ss:$16 sps:$4 sm:$0xff]  }
 0x352   :  { %v2215_v41 = vpop.f32.mrb[14].mxu1  ;;  %4142 = vmatpush1.bf16.msra.mxu1 %v19543_v28  ;;  %v2212_v44 = vadd.f32 %v2211_v6, %v2171_v7  ;;  %v2175_v19 = vpop.f32.mrb[15].mxu0  ;;  %4102 = vmatprep.subr.bf16.mxu0 %v19548_v29  ;;  %v19590_v62 = vld [vmem:[#allocation4 + $0xdac] ss:$16 sps:$4 sm:$0xff]   ;;  %v19588_v29 = vld [vmem:[#allocation4 + $0xda8] ss:$16 sps:$4 sm:$0xff]  }
 0x353   :  { %v2216_v48 = vpop.f32.mrb[15].mxu1  ;;  %4143 = vmatprep.subr.bf16.mxu1 %v19551_v30  ;;  %v2214_v10 = vadd.f32 %v2213_v17, %v2173_v3  ;;  %v19593_v28 = vld [vmem:[#allocation4 + $0xfac] ss:$16 sps:$4 sm:$0xff]   ;;  %v19591_v30 = vld [vmem:[#allocation4 + $0xfa8] ss:$16 sps:$4 sm:$0xff]  }
 0x354   :  { %v2242_v50 = vadd.f32 %v2231_v47, %v2212_v44  ;;  %v19599_v6 = vld [vmem:[#allocation4 + $0xfcc] ss:$16 sps:$4 sm:$0xff]   ;;  %v19594_v7 = vld [vmem:[#allocation4 + $0xdc8] ss:$16 sps:$4 sm:$0xff]   ;;  %v19617_v41 = vld [vmem:[#allocation15 + $0x6c] ss:$48 sps:$4 sm:$0xff]  }
 0x355   :  { %v2243_v56 = vadd.f32 %v2235_v53, %v2214_v10  ;;  %4103 = vmatpush1.bf16.msra.mxu0 %v19546_v36  ;;  %v19602_v47 = vld [vmem:[#allocation4 + $0xdec] ss:$16 sps:$4 sm:$0xff]   ;;  %v19600_v17 = vld [vmem:[#allocation4 + $0xde8] ss:$16 sps:$4 sm:$0xff]   ;;  %v19609_v53 = vld [vmem:[#allocation15 + $0x8] ss:$48 sps:$4 sm:$0xff]  }
 0x356   :  { %4144 = vmatpush1.bf16.msra.mxu1 %v19549_v37  ;;  %v2250_v26 = vadd.f32 %v2246_v40, %v2242_v50  ;;  %4104 = vmatprep.subr.bf16.mxu0 %v19554_v42  ;;  %v19605_v16 = vld [vmem:[#allocation4 + $0xfec] ss:$16 sps:$4 sm:$0xff]   ;;  %v19603_v36 = vld [vmem:[#allocation4 + $0xfe8] ss:$16 sps:$4 sm:$0xff]   ;;  %v19611_v40 = vld [vmem:[#allocation15 + $0xc] ss:$48 sps:$4 sm:$0xff]  }
 0x357   :  { %4145 = vmatprep.subr.bf16.mxu1 %v19557_v49  ;;  %v2251_v63 = vadd.f32 %v2247_v45, %v2243_v56  ;;  %v19608_v37 = vld [vmem:[#allocation15 + $0x4] ss:$48 sps:$4 sm:$0xff]   ;;  %v19606_v3 = vld [vmem:[#allocation15] ss:$48 sps:$4 sm:$0xff]   ;;  %v19615_v44 = vld [vmem:[#allocation15 + $0x68] ss:$48 sps:$4 sm:$0xff]  }
 0x358   :  { %4228 = vst [vmem:[#allocation2 + $0x10] sm:$0x3f] %v2250_v26  ;;  %v19614_v54 = vld [vmem:[#allocation15 + $0x64] ss:$48 sps:$4 sm:$0xff]   ;;  %v19612_v42 = vld [vmem:[#allocation15 + $0x60] ss:$48 sps:$4 sm:$0xff]  }
 0x359   :  { %4229 = vst [vmem:[#allocation2 + $0x18] sm:$0x3f] %v2251_v63  ;;  %4105 = vmatpush1.bf16.msra.mxu0 %v19552_v33  ;;  %v19620_v45 = vld [vmem:[#allocation15 + $0xc4] ss:$48 sps:$4 sm:$0xff]   ;;  %v19623_v19 = vld [vmem:[#allocation15 + $0xcc] ss:$48 sps:$4 sm:$0xff]  }
 0x35a   :  { %4146 = vmatpush1.bf16.msra.mxu1 %v19555_v52  ;;  %4106 = vmatprep.subr.bf16.mxu0 %v19560_v22  ;;  %v19618_v48 = vld [vmem:[#allocation15 + $0xc0] ss:$48 sps:$4 sm:$0xff]   ;;  %v19621_v49 = vld [vmem:[#allocation15 + $0xc8] ss:$48 sps:$4 sm:$0xff]   ;;  %v19626_v10 = vld [vmem:[#allocation15 + $0x124] ss:$48 sps:$4 sm:$0xff]  }
 0x35b   :  { %4147 = vmatprep.subr.bf16.mxu1 %v19563_v59  ;;  %v19629_v50 = vld [vmem:[#allocation15 + $0x12c] ss:$48 sps:$4 sm:$0xff]   ;;  %v19624_v33 = vld [vmem:[#allocation15 + $0x120] ss:$48 sps:$4 sm:$0xff]   ;;  %v19627_v52 = vld [vmem:[#allocation15 + $0x128] ss:$48 sps:$4 sm:$0xff]  }
 0x35c   :  { %v19632_v56 = vld [vmem:[#allocation15 + $0x184] ss:$48 sps:$4 sm:$0xff]   ;;  %v19630_v22 = vld [vmem:[#allocation15 + $0x180] ss:$48 sps:$4 sm:$0xff]   ;;  %v19633_v59 = vld [vmem:[#allocation15 + $0x188] ss:$48 sps:$4 sm:$0xff]  }
 0x35d   :  { %4107 = vmatpush1.bf16.msra.mxu0 %v19558_v1  ;;  %v19641_v26 = vld [vmem:[#allocation15 + $0x1ec] ss:$48 sps:$4 sm:$0xff]   ;;  %v19639_v63 = vld [vmem:[#allocation15 + $0x1e8] ss:$48 sps:$4 sm:$0xff]  }
 0x35e   :  { %4148 = vmatpush1.bf16.msra.mxu1 %v19561_v2  ;;  %4108 = vmatprep.subr.bf16.mxu0 %v19566_v4  ;;  %v19644_v2 = vld [vmem:[#allocation15 + $0x244] ss:$48 sps:$4 sm:$0xff]   ;;  %v19647_v4 = vld [vmem:[#allocation15 + $0x24c] ss:$48 sps:$4 sm:$0xff]  }
 0x35f   :  { %4149 = vmatprep.subr.bf16.mxu1 %v19569_v5 }
 0x361   :  { %4109 = vmatpush1.bf16.msra.mxu0 %v19564_v11  ;;  %v19642_v11 = vld [vmem:[#allocation15 + $0x240] ss:$48 sps:$4 sm:$0xff]  }
 0x362   :  { %4150 = vmatpush1.bf16.msra.mxu1 %v19567_v12  ;;  %4110 = vmatprep.subr.bf16.mxu0 %v19572_v13  ;;  %v19645_v12 = vld [vmem:[#allocation15 + $0x248] ss:$48 sps:$4 sm:$0xff]  }
 0x363   :  { %4151 = vmatprep.subr.bf16.mxu1 %v19575_v14 }
 0x365   :  { %4111 = vmatpush1.bf16.msra.mxu0 %v19570_v15 }
 0x366   :  { %4152 = vmatpush1.bf16.msra.mxu1 %v19573_v18  ;;  %4112 = vmatprep.subr.bf16.mxu0 %v19578_v57  ;;  %v19650_v18 = vld [vmem:[#allocation15 + $0x2a4] ss:$48 sps:$4 sm:$0xff]   ;;  %v19653_v57 = vld [vmem:[#allocation15 + $0x2ac] ss:$48 sps:$4 sm:$0xff]  }
 0x367   :  { %4153 = vmatprep.subr.bf16.mxu1 %v19581_v58 }
 0x369   :  { %4113 = vmatpush1.bf16.msra.mxu0 %v19576_v20 }
 0x36a   :  { %4154 = vmatpush1.bf16.msra.mxu1 %v19579_v21  ;;  %4114 = vmatprep.subr.bf16.mxu0 %v19584_v23 }
 0x36b   :  { %4155 = vmatprep.subr.bf16.mxu1 %v19587_v24 }
 0x36d   :  { %4115 = vmatpush1.bf16.msra.mxu0 %v19582_v25 }
 0x36e   :  { %4156 = vmatpush1.bf16.msra.mxu1 %v19585_v61  ;;  %4116 = vmatprep.subr.bf16.mxu0 %v19590_v62  ;;  %v19648_v62 = vld [vmem:[#allocation15 + $0x2a0] ss:$48 sps:$4 sm:$0xff]  }
 0x36f   :  { %4157 = vmatprep.subr.bf16.mxu1 %v19593_v28  ;;  %v19651_v28 = vld [vmem:[#allocation15 + $0x2a8] ss:$48 sps:$4 sm:$0xff]  }
 0x371   :  { %4117 = vmatpush1.bf16.msra.mxu0 %v19588_v29  ;;  %v19656_v29 = vld [vmem:[#allocation15 + $0x304] ss:$48 sps:$4 sm:$0xff]  }
 0x372   :  { %4158 = vmatpush1.bf16.msra.mxu1 %v19591_v30  ;;  %4118 = vmatprep.subr.bf16.mxu0 %v19596_v31  ;;  %v19659_v30 = vld [vmem:[#allocation15 + $0x30c] ss:$48 sps:$4 sm:$0xff]   ;;  %v19654_v31 = vld [vmem:[#allocation15 + $0x300] ss:$48 sps:$4 sm:$0xff]  }
 0x373   :  { %4159 = vmatprep.subr.bf16.mxu1 %v19599_v6  ;;  %v19657_v6 = vld [vmem:[#allocation15 + $0x308] ss:$48 sps:$4 sm:$0xff]  }
 0x375   :  { %4119 = vmatpush1.bf16.msra.mxu0 %v19594_v7  ;;  %v19662_v7 = vld [vmem:[#allocation15 + $0x364] ss:$48 sps:$4 sm:$0xff]  }
 0x376   :  { %4160 = vmatpush1.bf16.msra.mxu1 %v19597_v34  ;;  %4120 = vmatprep.subr.bf16.mxu0 %v19602_v47  ;;  %v19665_v34 = vld [vmem:[#allocation15 + $0x36c] ss:$48 sps:$4 sm:$0xff]   ;;  %v19660_v47 = vld [vmem:[#allocation15 + $0x360] ss:$48 sps:$4 sm:$0xff]  }
 0x377   :  { %4161 = vmatprep.subr.bf16.mxu1 %v19605_v16  ;;  %v19663_v16 = vld [vmem:[#allocation15 + $0x368] ss:$48 sps:$4 sm:$0xff]  }
 0x379   :  { %4121 = vmatpush1.bf16.msra.mxu0 %v19600_v17  ;;  %v19668_v17 = vld [vmem:[#allocation15 + $0x3c4] ss:$48 sps:$4 sm:$0xff]  }
 0x37a   :  { %4162 = vmatpush1.bf16.msra.mxu1 %v19603_v36  ;;  %6657 = vmatprep.subr.bf16.mxu0 %v19608_v37  ;;  %v19671_v36 = vld [vmem:[#allocation15 + $0x3cc] ss:$48 sps:$4 sm:$0xff]   ;;  %v19666_v37 = vld [vmem:[#allocation15 + $0x3c0] ss:$48 sps:$4 sm:$0xff]  }
 0x37b   :  { %6743 = vmatprep.subr.bf16.mxu1 %v19611_v40  ;;  %v19669_v40 = vld [vmem:[#allocation15 + $0x3c8] ss:$48 sps:$4 sm:$0xff]  }
 0x37c   :  { %4123 = vmatmul.mubr.bf16.vlgmr.msra.gmra.mrb[28].mxu0 %v22140_v51  ;;  %v19635_v51 = vld [vmem:[#allocation15 + $0x18c] ss:$48 sps:$4 sm:$0xff]  }
 0x37d   :  { %4164 = vmatmul.mubr.bf16.vlgmr.msra.gmra.mrb[28].mxu1 %v22144_v35  ;;  %6658 = vmatpush1.bf16.msra.mxu0 %v19606_v3  ;;  %v2514_v35 = vld [vmem:[#allocation6 + $0x4] sm:$0xf]  ;;  %v19674_v3 = vld [vmem:[#allocation15 + $0x424] ss:$48 sps:$4 sm:$0xff]  }
 0x37e   :  { %6744 = vmatpush1.bf16.msra.mxu1 %v19609_v53  ;;  %6659 = vmatprep.subr.bf16.mxu0 %v19614_v54  ;;  %v2519_v1 = vrot.slane %v2514_v35, %v22093_v43  ;;  %v2523_v5 = vrot.slane %v2514_v35, %v22096_v46  ;;  %v19677_v53 = vld [vmem:[#allocation15 + $0x42c] ss:$48 sps:$4 sm:$0xff]   ;;  %v19672_v54 = vld [vmem:[#allocation15 + $0x420] ss:$48 sps:$4 sm:$0xff]   ;;  %v19698_v35 = vld [vmem:[#allocation15 + $0x5a4] ss:$48 sps:$4 sm:$0xff]  }
 0x37f   :  { %6745 = vmatprep.subr.bf16.mxu1 %v19617_v41  ;;  %v19675_v41 = vld [vmem:[#allocation15 + $0x428] ss:$48 sps:$4 sm:$0xff]  }
 0x381   :  { %6660 = vmatpush1.bf16.msra.mxu0 %v19612_v42  ;;  %v19680_v42 = vld [vmem:[#allocation15 + $0x484] ss:$48 sps:$4 sm:$0xff]  }
 0x382   :  { %6746 = vmatpush1.bf16.msra.mxu1 %v19615_v44  ;;  %6661 = vmatprep.subr.bf16.mxu0 %v19620_v45  ;;  %v19683_v44 = vld [vmem:[#allocation15 + $0x48c] ss:$48 sps:$4 sm:$0xff]   ;;  %v19678_v45 = vld [vmem:[#allocation15 + $0x480] ss:$48 sps:$4 sm:$0xff]  }
 0x383   :  { %6747 = vmatprep.subr.bf16.mxu1 %v19623_v19  ;;  %v19681_v19 = vld [vmem:[#allocation15 + $0x488] ss:$48 sps:$4 sm:$0xff]  }
 0x385   :  { %6662 = vmatpush1.bf16.msra.mxu0 %v19618_v48  ;;  %v19686_v48 = vld [vmem:[#allocation15 + $0x4e4] ss:$48 sps:$4 sm:$0xff]  }
 0x386   :  { %6748 = vmatpush1.bf16.msra.mxu1 %v19621_v49  ;;  %6663 = vmatprep.subr.bf16.mxu0 %v19626_v10  ;;  %v19689_v49 = vld [vmem:[#allocation15 + $0x4ec] ss:$48 sps:$4 sm:$0xff]   ;;  %v19684_v10 = vld [vmem:[#allocation15 + $0x4e0] ss:$48 sps:$4 sm:$0xff]  }
 0x387   :  { %6749 = vmatprep.subr.bf16.mxu1 %v19629_v50  ;;  %v19687_v50 = vld [vmem:[#allocation15 + $0x4e8] ss:$48 sps:$4 sm:$0xff]  }
 0x389   :  { %6664 = vmatpush1.bf16.msra.mxu0 %v19624_v33  ;;  %v19692_v33 = vld [vmem:[#allocation15 + $0x544] ss:$48 sps:$4 sm:$0xff]  }
 0x38a   :  { %6750 = vmatpush1.bf16.msra.mxu1 %v19627_v52  ;;  %6665 = vmatprep.subr.bf16.mxu0 %v19632_v56  ;;  %v19695_v52 = vld [vmem:[#allocation15 + $0x54c] ss:$48 sps:$4 sm:$0xff]   ;;  %v19690_v56 = vld [vmem:[#allocation15 + $0x540] ss:$48 sps:$4 sm:$0xff]  }
 0x38b   :  { %6751 = vmatprep.subr.bf16.mxu1 %v19635_v51  ;;  %v19693_v51 = vld [vmem:[#allocation15 + $0x548] ss:$48 sps:$4 sm:$0xff]  }
 0x38d   :  { %6666 = vmatpush1.bf16.msra.mxu0 %v19630_v22  ;;  %v19701_v22 = vld [vmem:[#allocation15 + $0x5ac] ss:$48 sps:$4 sm:$0xff]  }
 0x38e   :  { %6752 = vmatpush1.bf16.msra.mxu1 %v19633_v59  ;;  %6667 = vmatprep.subr.bf16.mxu0 %v19638_v60  ;;  %v19696_v59 = vld [vmem:[#allocation15 + $0x5a0] ss:$48 sps:$4 sm:$0xff]   ;;  %v19699_v60 = vld [vmem:[#allocation15 + $0x5a8] ss:$48 sps:$4 sm:$0xff]  }
 0x38f   :  { %6753 = vmatprep.subr.bf16.mxu1 %v19641_v26  ;;  %v3878_v8 = vpop.f32.mrb[16].mxu0  ;;  %v19704_v26 = vld [vmem:[#allocation15 + $0x604] ss:$48 sps:$4 sm:$0xff]  }
 0x390   :  { %v3919_v9 = vpop.f32.mrb[16].mxu1  ;;  %v3879_v13 = vadd.f32 %v3878_v8, %v2519_v1  ;;  %v3880_v14 = vpop.f32.mrb[17].mxu0 }
 0x391   :  { %v3921_v15 = vpop.f32.mrb[17].mxu1  ;;  %v3881_v58 = vadd.f32 %v3880_v14, %v2523_v5  ;;  %v3882_v20 = vpop.f32.mrb[18].mxu0  ;;  %6668 = vmatpush1.bf16.msra.mxu0 %v19636_v27  ;;  %v19707_v27 = vld [vmem:[#allocation15 + $0x60c] ss:$48 sps:$4 sm:$0xff]  }
 0x392   :  { %v3923_v21 = vpop.f32.mrb[18].mxu1  ;;  %6754 = vmatpush1.bf16.msra.mxu1 %v19639_v63  ;;  %v22180_v23 = vadd.f32 %v3919_v9, %v3879_v13  ;;  %v3883_v24 = vpop.f32.mrb[19].mxu0  ;;  %6669 = vmatprep.subr.bf16.mxu0 %v19644_v2  ;;  %v22184_v63 = vld [vmem:[#allocation9] sm:$0xf] }
 0x393   :  { %v3924_v25 = vpop.f32.mrb[19].mxu1  ;;  %6755 = vmatprep.subr.bf16.mxu1 %v19647_v4  ;;  %v22182_v61 = vadd.f32 %v3921_v15, %v3881_v58  ;;  %v4177_v5 = vrot.slane %v22184_v63, %v22093_v43  ;;  %v21182_v24 = vld [vmem:[#allocation12] sm:$0x3f] }
 0x394   :  { %v21183_v25 = vld [vmem:[#allocation12 + $0x8] sm:$0x3f] }
 0x395   :  { %6670 = vmatpush1.bf16.msra.mxu0 %v19642_v11 }
 0x396   :  { %6756 = vmatpush1.bf16.msra.mxu1 %v19645_v12  ;;  %6671 = vmatprep.subr.bf16.mxu0 %v19650_v18  ;;  %v4181_v12 = vrot.slane %v22184_v63, %v22096_v46 }
 0x397   :  { %6757 = vmatprep.subr.bf16.mxu1 %v19653_v57 }
 0x399   :  { %6672 = vmatpush1.bf16.msra.mxu0 %v19648_v62 }
 0x39a   :  { %6758 = vmatpush1.bf16.msra.mxu1 %v19651_v28  ;;  %6673 = vmatprep.subr.bf16.mxu0 %v19656_v29  ;;  %v4217_v29 = vrot.slane %v22170_v0, %v22151_v32 }
 0x39b   :  { %6759 = vmatprep.subr.bf16.mxu1 %v19659_v30  ;;  %v4221_v30 = vrot.slane %v22170_v0, %v22154_v55  ;;  %v19708_v0 = vld [vmem:[#allocation15 + $0x660] ss:$48 sps:$4 sm:$0xff]  }
 0x39c   :  { %4252 = vst [vmem:[#allocation2 + $0x30] sm:$0x30] %v4217_v29 }
 0x39d   :  { %6674 = vmatpush1.bf16.msra.mxu0 %v19654_v31  ;;  %4253 = vst [vmem:[#allocation2 + $0x38] sm:$0x30] %v4221_v30  ;;  %v19771_v30 = vld [vmem:[#allocation15 + $0xa28] ss:$48 sps:$4 sm:$0xff]  }
 0x39e   :  { %6760 = vmatpush1.bf16.msra.mxu1 %v19657_v6  ;;  %6675 = vmatprep.subr.bf16.mxu0 %v19662_v7 }
 0x39f   :  { %6761 = vmatprep.subr.bf16.mxu1 %v19665_v34 }
 0x3a1   :  { %6676 = vmatpush1.bf16.msra.mxu0 %v19660_v47 }
 0x3a2   :  { %6762 = vmatpush1.bf16.msra.mxu1 %v19663_v16  ;;  %6677 = vmatprep.subr.bf16.mxu0 %v19668_v17  ;;  %v19702_v16 = vld [vmem:[#allocation15 + $0x600] ss:$48 sps:$4 sm:$0xff]   ;;  %v19705_v17 = vld [vmem:[#allocation15 + $0x608] ss:$48 sps:$4 sm:$0xff]  }
 0x3a3   :  { %6763 = vmatprep.subr.bf16.mxu1 %v19671_v36 }
 0x3a5   :  { %6678 = vmatpush1.bf16.msra.mxu0 %v19666_v37  ;;  %v19710_v37 = vld [vmem:[#allocation15 + $0x664] ss:$48 sps:$4 sm:$0xff]  }
 0x3a6   :  { %6764 = vmatpush1.bf16.msra.mxu1 %v19669_v40  ;;  %6679 = vmatprep.subr.bf16.mxu0 %v19674_v3  ;;  %v19713_v40 = vld [vmem:[#allocation15 + $0x66c] ss:$48 sps:$4 sm:$0xff]   ;;  %v19711_v3 = vld [vmem:[#allocation15 + $0x668] ss:$48 sps:$4 sm:$0xff]  }
 0x3a7   :  { %6765 = vmatprep.subr.bf16.mxu1 %v19677_v53  ;;  %v19716_v53 = vld [vmem:[#allocation15 + $0x6c4] ss:$48 sps:$4 sm:$0xff]  }
 0x3a9   :  { %6680 = vmatpush1.bf16.msra.mxu0 %v19672_v54  ;;  %v19719_v54 = vld [vmem:[#allocation15 + $0x6cc] ss:$48 sps:$4 sm:$0xff]  }
 0x3aa   :  { %6766 = vmatpush1.bf16.msra.mxu1 %v19675_v41  ;;  %6681 = vmatprep.subr.bf16.mxu0 %v19680_v42  ;;  %v19714_v41 = vld [vmem:[#allocation15 + $0x6c0] ss:$48 sps:$4 sm:$0xff]   ;;  %v19717_v42 = vld [vmem:[#allocation15 + $0x6c8] ss:$48 sps:$4 sm:$0xff]  }
 0x3ab   :  { %6767 = vmatprep.subr.bf16.mxu1 %v19683_v44  ;;  %v19722_v44 = vld [vmem:[#allocation15 + $0x724] ss:$48 sps:$4 sm:$0xff]  }
 0x3ad   :  { %6682 = vmatpush1.bf16.msra.mxu0 %v19678_v45  ;;  %v19725_v45 = vld [vmem:[#allocation15 + $0x72c] ss:$48 sps:$4 sm:$0xff]  }
 0x3ae   :  { %6768 = vmatpush1.bf16.msra.mxu1 %v19681_v19  ;;  %6683 = vmatprep.subr.bf16.mxu0 %v19686_v48  ;;  %v19720_v19 = vld [vmem:[#allocation15 + $0x720] ss:$48 sps:$4 sm:$0xff]   ;;  %v19723_v48 = vld [vmem:[#allocation15 + $0x728] ss:$48 sps:$4 sm:$0xff]  }
 0x3af   :  { %6769 = vmatprep.subr.bf16.mxu1 %v19689_v49  ;;  %v19728_v49 = vld [vmem:[#allocation15 + $0x784] ss:$48 sps:$4 sm:$0xff]  }
 0x3b1   :  { %6684 = vmatpush1.bf16.msra.mxu0 %v19684_v10  ;;  %v19731_v10 = vld [vmem:[#allocation15 + $0x78c] ss:$48 sps:$4 sm:$0xff]  }
 0x3b2   :  { %6770 = vmatpush1.bf16.msra.mxu1 %v19687_v50  ;;  %6685 = vmatprep.subr.bf16.mxu0 %v19692_v33  ;;  %v19726_v50 = vld [vmem:[#allocation15 + $0x780] ss:$48 sps:$4 sm:$0xff]   ;;  %v19729_v33 = vld [vmem:[#allocation15 + $0x788] ss:$48 sps:$4 sm:$0xff]  }
 0x3b3   :  { %6771 = vmatprep.subr.bf16.mxu1 %v19695_v52  ;;  %v19734_v52 = vld [vmem:[#allocation15 + $0x7e4] ss:$48 sps:$4 sm:$0xff]  }
 0x3b5   :  { %6686 = vmatpush1.bf16.msra.mxu0 %v19690_v56  ;;  %v19737_v56 = vld [vmem:[#allocation15 + $0x7ec] ss:$48 sps:$4 sm:$0xff]  }
 0x3b6   :  { %6772 = vmatpush1.bf16.msra.mxu1 %v19693_v51  ;;  %6687 = vmatprep.subr.bf16.mxu0 %v19698_v35  ;;  %v19732_v51 = vld [vmem:[#allocation15 + $0x7e0] ss:$48 sps:$4 sm:$0xff]   ;;  %v19735_v35 = vld [vmem:[#allocation15 + $0x7e8] ss:$48 sps:$4 sm:$0xff]  }
 0x3b7   :  { %6773 = vmatprep.subr.bf16.mxu1 %v19701_v22  ;;  %v19740_v22 = vld [vmem:[#allocation15 + $0x844] ss:$48 sps:$4 sm:$0xff]  }
 0x3b9   :  { %6688 = vmatpush1.bf16.msra.mxu0 %v19696_v59  ;;  %v19743_v59 = vld [vmem:[#allocation15 + $0x84c] ss:$48 sps:$4 sm:$0xff]  }
 0x3ba   :  { %6774 = vmatpush1.bf16.msra.mxu1 %v19699_v60  ;;  %6700 = vmatprep.subr.bf16.mxu0 %v19704_v26  ;;  %v19738_v60 = vld [vmem:[#allocation15 + $0x840] ss:$48 sps:$4 sm:$0xff]   ;;  %v19741_v26 = vld [vmem:[#allocation15 + $0x848] ss:$48 sps:$4 sm:$0xff]  }
 0x3bb   :  { %6786 = vmatprep.subr.bf16.mxu1 %v19707_v27  ;;  %v19746_v27 = vld [vmem:[#allocation15 + $0x8a4] ss:$48 sps:$4 sm:$0xff]  }
 0x3cf   :  { %v3960_v1 = vpop.f32.mrb[20].mxu0 }
 0x3d0   :  { %v4001_v2 = vpop.f32.mrb[20].mxu1  ;;  %v3961_v4 = vadd.f32 %v3960_v1, %v22180_v23  ;;  %v3962_v8 = vpop.f32.mrb[21].mxu0  ;;  %v19749_v1 = vld [vmem:[#allocation15 + $0x8ac] ss:$48 sps:$4 sm:$0xff]  }
 0x3d1   :  { %v4003_v9 = vpop.f32.mrb[21].mxu1  ;;  %v3963_v11 = vadd.f32 %v3962_v8, %v22182_v61  ;;  %v3964_v13 = vpop.f32.mrb[22].mxu0  ;;  %v19755_v8 = vld [vmem:[#allocation15 + $0x90c] ss:$48 sps:$4 sm:$0xff]  }
 0x3d2   :  { %v4005_v14 = vpop.f32.mrb[22].mxu1  ;;  %v4002_v15 = vadd.f32 %v4001_v2, %v3961_v4  ;;  %v3965_v18 = vpop.f32.mrb[23].mxu0  ;;  %v19744_v2 = vld [vmem:[#allocation15 + $0x8a0] ss:$48 sps:$4 sm:$0xff]   ;;  %v19747_v4 = vld [vmem:[#allocation15 + $0x8a8] ss:$48 sps:$4 sm:$0xff]  }
 0x3d3   :  { %v4006_v57 = vpop.f32.mrb[23].mxu1  ;;  %v4004_v58 = vadd.f32 %v4003_v9, %v3963_v11  ;;  %v19750_v9 = vld [vmem:[#allocation15 + $0x900] ss:$48 sps:$4 sm:$0xff]   ;;  %v19753_v11 = vld [vmem:[#allocation15 + $0x908] ss:$48 sps:$4 sm:$0xff]  }
 0x3d4   :  { %v4194_v20 = vadd.f32 %v4177_v5, %v4002_v15  ;;  %v19752_v5 = vld [vmem:[#allocation15 + $0x904] ss:$48 sps:$4 sm:$0xff]   ;;  %v19761_v13 = vld [vmem:[#allocation15 + $0x96c] ss:$48 sps:$4 sm:$0xff]   ;;  %v19756_v14 = vld [vmem:[#allocation15 + $0x960] ss:$48 sps:$4 sm:$0xff]  }
 0x3d5   :  { %v4195_v21 = vadd.f32 %v4181_v12, %v4004_v58  ;;  %v19758_v12 = vld [vmem:[#allocation15 + $0x964] ss:$48 sps:$4 sm:$0xff]   ;;  %v19759_v15 = vld [vmem:[#allocation15 + $0x968] ss:$48 sps:$4 sm:$0xff]   ;;  %v19767_v57 = vld [vmem:[#allocation15 + $0x9cc] ss:$48 sps:$4 sm:$0xff]  }
 0x3d6   :  { %v4198_v23 = vadd.f32 %v21182_v24, %v4194_v20  ;;  %v19764_v18 = vld [vmem:[#allocation15 + $0x9c4] ss:$48 sps:$4 sm:$0xff]   ;;  %v19762_v58 = vld [vmem:[#allocation15 + $0x9c0] ss:$48 sps:$4 sm:$0xff]   ;;  %v19765_v20 = vld [vmem:[#allocation15 + $0x9c8] ss:$48 sps:$4 sm:$0xff]  }
 0x3d7   :  { %v4199_v62 = vadd.f32 %v21183_v25, %v4195_v21  ;;  %v21184_v21 = vld [vmem:[#allocation6 + $0x4] sm:$0xf] }
 0x3d8   :  { %v4234_v28 = vrot.slane %v4198_v23, 2  ;;  %v2527_v24 = vrot.slane %v21184_v21, %v22151_v32  ;;  %v19770_v23 = vld [vmem:[#allocation15 + $0xa24] ss:$48 sps:$4 sm:$0xff]   ;;  %v19773_v25 = vld [vmem:[#allocation15 + $0xa2c] ss:$48 sps:$4 sm:$0xff]  }
 0x3d9   :  { %v4235_v61 = vrot.slane %v4199_v62, 2  ;;  %v2531_v62 = vrot.slane %v21184_v21, %v22154_v55  ;;  %v21186_v21 = vld [vmem:[#allocation12 + $0x18] sm:$0x3f] }
 0x3da   :  { %4242 = vst [vmem:[#allocation2 + $0x20] ss:$-28 sps:$4 sm:$0xcf] %v4234_v28  }
 0x3db   :  { %4243 = vst [vmem:[#allocation2 + $0x28] ss:$-28 sps:$4 sm:$0xcf] %v4235_v61   ;;  %v19768_v61 = vld [vmem:[#allocation15 + $0xa20] ss:$48 sps:$4 sm:$0xff]  }
 0x3e1   :  { %v4254_v31 = vld [vmem:[#allocation2] sm:$0xff] }
 0x3e2   :  { %v4258_v6 = vld [vmem:[#allocation2 + $0x20] sm:$0x3f]  ;;  %v4255_v7 = vld [vmem:[#allocation2 + $0x8] sm:$0xff] }
 0x3e3   :  { %v4259_v34 = vld [vmem:[#allocation2 + $0x28] sm:$0x3f]  ;;  %v22198_v36 = vpack.c.bf16 %v4258_v6, %v4254_v31 }
 0x3e4   :  { %v22196_v47 = vpack.c.bf16 %v4259_v34, %v4255_v7  ;;  %v19776_v34 = vld [vmem:[#allocation15 + $0xa84] ss:$48 sps:$4 sm:$0xff]  }
 0x3e6   :  { %6689 = vmatprep.mubr.bf16.mxu0 %v22196_v47  ;;  %6775 = vmatprep.mubr.bf16.mxu1 %v22196_v47 }
 0x3e7   :  { %6690 = vmatmul.mubr.bf16.vlgmr.msra.gmra.mrb[32].mxu0 %v22198_v36  ;;  %6776 = vmatmul.mubr.bf16.vlgmr.msra.gmra.mrb[32].mxu1 %v22198_v36 }
 0x3e8   :  { %6701 = vmatpush1.bf16.msra.mxu0 %v19702_v16  ;;  %6787 = vmatpush1.bf16.msra.mxu1 %v19705_v17  ;;  %v19779_v16 = vld [vmem:[#allocation15 + $0xa8c] ss:$48 sps:$4 sm:$0xff]  }
 0x3e9   :  { %6702 = vmatprep.subr.bf16.mxu0 %v19710_v37  ;;  %6788 = vmatprep.subr.bf16.mxu1 %v19713_v40 }
 0x3ec   :  { %6703 = vmatpush1.bf16.msra.mxu0 %v19708_v0  ;;  %6789 = vmatpush1.bf16.msra.mxu1 %v19711_v3 }
 0x3ed   :  { %6704 = vmatprep.subr.bf16.mxu0 %v19716_v53  ;;  %6790 = vmatprep.subr.bf16.mxu1 %v19719_v54 }
 0x3f0   :  { %6705 = vmatpush1.bf16.msra.mxu0 %v19714_v41  ;;  %6791 = vmatpush1.bf16.msra.mxu1 %v19717_v42  ;;  %v19774_v41 = vld [vmem:[#allocation15 + $0xa80] ss:$48 sps:$4 sm:$0xff]   ;;  %v19777_v42 = vld [vmem:[#allocation15 + $0xa88] ss:$48 sps:$4 sm:$0xff]  }
 0x3f1   :  { %6706 = vmatprep.subr.bf16.mxu0 %v19722_v44  ;;  %6792 = vmatprep.subr.bf16.mxu1 %v19725_v45  ;;  %v19782_v44 = vld [vmem:[#allocation15 + $0xae4] ss:$48 sps:$4 sm:$0xff]   ;;  %v19785_v45 = vld [vmem:[#allocation15 + $0xaec] ss:$48 sps:$4 sm:$0xff]  }
 0x3f4   :  { %6707 = vmatpush1.bf16.msra.mxu0 %v19720_v19  ;;  %6793 = vmatpush1.bf16.msra.mxu1 %v19723_v48  ;;  %v19780_v19 = vld [vmem:[#allocation15 + $0xae0] ss:$48 sps:$4 sm:$0xff]   ;;  %v19783_v48 = vld [vmem:[#allocation15 + $0xae8] ss:$48 sps:$4 sm:$0xff]  }
 0x3f5   :  { %6708 = vmatprep.subr.bf16.mxu0 %v19728_v49  ;;  %6794 = vmatprep.subr.bf16.mxu1 %v19731_v10  ;;  %v19788_v49 = vld [vmem:[#allocation15 + $0xb44] ss:$48 sps:$4 sm:$0xff]   ;;  %v19791_v10 = vld [vmem:[#allocation15 + $0xb4c] ss:$48 sps:$4 sm:$0xff]  }
 0x3f8   :  { %6709 = vmatpush1.bf16.msra.mxu0 %v19726_v50  ;;  %6795 = vmatpush1.bf16.msra.mxu1 %v19729_v33  ;;  %v19786_v50 = vld [vmem:[#allocation15 + $0xb40] ss:$48 sps:$4 sm:$0xff]   ;;  %v19789_v33 = vld [vmem:[#allocation15 + $0xb48] ss:$48 sps:$4 sm:$0xff]  }
 0x3f9   :  { %6710 = vmatprep.subr.bf16.mxu0 %v19734_v52  ;;  %6796 = vmatprep.subr.bf16.mxu1 %v19737_v56  ;;  %v19794_v52 = vld [vmem:[#allocation15 + $0xba4] ss:$48 sps:$4 sm:$0xff]   ;;  %v19797_v56 = vld [vmem:[#allocation15 + $0xbac] ss:$48 sps:$4 sm:$0xff]  }
 0x3fc   :  { %6711 = vmatpush1.bf16.msra.mxu0 %v19732_v51  ;;  %6797 = vmatpush1.bf16.msra.mxu1 %v19735_v35  ;;  %v19792_v51 = vld [vmem:[#allocation15 + $0xba0] ss:$48 sps:$4 sm:$0xff]   ;;  %v19795_v35 = vld [vmem:[#allocation15 + $0xba8] ss:$48 sps:$4 sm:$0xff]  }
 0x3fd   :  { %6712 = vmatprep.subr.bf16.mxu0 %v19740_v22  ;;  %6798 = vmatprep.subr.bf16.mxu1 %v19743_v59  ;;  %v19800_v22 = vld [vmem:[#allocation15 + $0x14] ss:$48 sps:$4 sm:$0xff]   ;;  %v19803_v59 = vld [vmem:[#allocation15 + $0x1c] ss:$48 sps:$4 sm:$0xff]  }
 0x400   :  { %6713 = vmatpush1.bf16.msra.mxu0 %v19738_v60  ;;  %6799 = vmatpush1.bf16.msra.mxu1 %v19741_v26 }
 0x401   :  { %6714 = vmatprep.subr.bf16.mxu0 %v19746_v27  ;;  %6800 = vmatprep.subr.bf16.mxu1 %v19749_v1  ;;  %v4185_v1 = vrot.slane %v22184_v63, %v22151_v32 }
 0x404   :  { %6715 = vmatpush1.bf16.msra.mxu0 %v19744_v2  ;;  %6801 = vmatpush1.bf16.msra.mxu1 %v19747_v4 }
 0x405   :  { %6716 = vmatprep.subr.bf16.mxu0 %v19752_v5  ;;  %6802 = vmatprep.subr.bf16.mxu1 %v19755_v8  ;;  %v4189_v8 = vrot.slane %v22184_v63, %v22154_v55 }
 0x408   :  { %6717 = vmatpush1.bf16.msra.mxu0 %v19750_v9  ;;  %6803 = vmatpush1.bf16.msra.mxu1 %v19753_v11 }
 0x409   :  { %6718 = vmatprep.subr.bf16.mxu0 %v19758_v12  ;;  %6804 = vmatprep.subr.bf16.mxu1 %v19761_v13 }
 0x40c   :  { %6719 = vmatpush1.bf16.msra.mxu0 %v19756_v14  ;;  %6805 = vmatpush1.bf16.msra.mxu1 %v19759_v15 }
 0x40d   :  { %6720 = vmatprep.subr.bf16.mxu0 %v19764_v18  ;;  %6806 = vmatprep.subr.bf16.mxu1 %v19767_v57 }
 0x40f   :  { %v4042_v28 = vpop.f32.mrb[24].mxu0 }
 0x410   :  { %v4083_v29 = vpop.f32.mrb[24].mxu1  ;;  %6721 = vmatpush1.bf16.msra.mxu0 %v19762_v58  ;;  %6807 = vmatpush1.bf16.msra.mxu1 %v19765_v20  ;;  %v4043_v31 = vadd.f32 %v4042_v28, %v2527_v24  ;;  %v4044_v6 = vpop.f32.mrb[25].mxu0  ;;  %v21185_v58 = vld [vmem:[#allocation12 + $0x10] sm:$0x3f]  ;;  %v19801_v28 = vld [vmem:[#allocation15 + $0x18] ss:$48 sps:$4 sm:$0xff]  }
 0x411   :  { %v4085_v7 = vpop.f32.mrb[25].mxu1  ;;  %6722 = vmatprep.subr.bf16.mxu0 %v19770_v23  ;;  %6808 = vmatprep.subr.bf16.mxu1 %v19773_v25  ;;  %v4045_v17 = vadd.f32 %v4044_v6, %v2531_v62  ;;  %v4046_v37 = vpop.f32.mrb[26].mxu0  ;;  %v19798_v62 = vld [vmem:[#allocation15 + $0x10] ss:$48 sps:$4 sm:$0xff]   ;;  %v19806_v6 = vld [vmem:[#allocation15 + $0x74] ss:$48 sps:$4 sm:$0xff]  }
 0x412   :  { %v4087_v40 = vpop.f32.mrb[26].mxu1  ;;  %v4084_v0 = vadd.f32 %v4083_v29, %v4043_v31  ;;  %v4047_v3 = vpop.f32.mrb[27].mxu0  ;;  %v19812_v37 = vld [vmem:[#allocation15 + $0xd4] ss:$48 sps:$4 sm:$0xff]  }
 0x413   :  { %v4088_v53 = vpop.f32.mrb[27].mxu1  ;;  %v4086_v54 = vadd.f32 %v4085_v7, %v4045_v17  ;;  %v19809_v17 = vld [vmem:[#allocation15 + $0x7c] ss:$48 sps:$4 sm:$0xff]   ;;  %v19813_v3 = vld [vmem:[#allocation15 + $0xd8] ss:$48 sps:$4 sm:$0xff]  }
 0x414   :  { %6723 = vmatpush1.bf16.msra.mxu0 %v19768_v61  ;;  %6809 = vmatpush1.bf16.msra.mxu1 %v19771_v30  ;;  %v19815_v40 = vld [vmem:[#allocation15 + $0xdc] ss:$48 sps:$4 sm:$0xff]   ;;  %v19818_v53 = vld [vmem:[#allocation15 + $0x134] ss:$48 sps:$4 sm:$0xff]  }
 0x415   :  { %6724 = vmatprep.subr.bf16.mxu0 %v19776_v34  ;;  %6810 = vmatprep.subr.bf16.mxu1 %v19779_v16  ;;  %v19804_v34 = vld [vmem:[#allocation15 + $0x70] ss:$48 sps:$4 sm:$0xff]   ;;  %v19807_v16 = vld [vmem:[#allocation15 + $0x78] ss:$48 sps:$4 sm:$0xff]  }
 0x418   :  { %6725 = vmatpush1.bf16.msra.mxu0 %v19774_v41  ;;  %6811 = vmatpush1.bf16.msra.mxu1 %v19777_v42  ;;  %v19816_v41 = vld [vmem:[#allocation15 + $0x130] ss:$48 sps:$4 sm:$0xff]   ;;  %v19819_v42 = vld [vmem:[#allocation15 + $0x138] ss:$48 sps:$4 sm:$0xff]  }
 0x419   :  { %6726 = vmatprep.subr.bf16.mxu0 %v19782_v44  ;;  %6812 = vmatprep.subr.bf16.mxu1 %v19785_v45  ;;  %v19824_v44 = vld [vmem:[#allocation15 + $0x194] ss:$48 sps:$4 sm:$0xff]   ;;  %v19827_v45 = vld [vmem:[#allocation15 + $0x19c] ss:$48 sps:$4 sm:$0xff]  }
 0x41c   :  { %6727 = vmatpush1.bf16.msra.mxu0 %v19780_v19  ;;  %6813 = vmatpush1.bf16.msra.mxu1 %v19783_v48  ;;  %v19822_v19 = vld [vmem:[#allocation15 + $0x190] ss:$48 sps:$4 sm:$0xff]   ;;  %v19825_v48 = vld [vmem:[#allocation15 + $0x198] ss:$48 sps:$4 sm:$0xff]  }
 0x41d   :  { %6728 = vmatprep.subr.bf16.mxu0 %v19788_v49  ;;  %6814 = vmatprep.subr.bf16.mxu1 %v19791_v10  ;;  %v19830_v49 = vld [vmem:[#allocation15 + $0x1f4] ss:$48 sps:$4 sm:$0xff]   ;;  %v19833_v10 = vld [vmem:[#allocation15 + $0x1fc] ss:$48 sps:$4 sm:$0xff]  }
 0x420   :  { %6729 = vmatpush1.bf16.msra.mxu0 %v19786_v50  ;;  %6815 = vmatpush1.bf16.msra.mxu1 %v19789_v33  ;;  %v19828_v50 = vld [vmem:[#allocation15 + $0x1f0] ss:$48 sps:$4 sm:$0xff]   ;;  %v19831_v33 = vld [vmem:[#allocation15 + $0x1f8] ss:$48 sps:$4 sm:$0xff]  }
 0x421   :  { %6730 = vmatprep.subr.bf16.mxu0 %v19794_v52  ;;  %6816 = vmatprep.subr.bf16.mxu1 %v19797_v56  ;;  %v19836_v52 = vld [vmem:[#allocation15 + $0x254] ss:$48 sps:$4 sm:$0xff]   ;;  %v19839_v56 = vld [vmem:[#allocation15 + $0x25c] ss:$48 sps:$4 sm:$0xff]  }
 0x424   :  { %6731 = vmatpush1.bf16.msra.mxu0 %v19792_v51  ;;  %6817 = vmatpush1.bf16.msra.mxu1 %v19795_v35  ;;  %v19834_v51 = vld [vmem:[#allocation15 + $0x250] ss:$48 sps:$4 sm:$0xff]   ;;  %v19837_v35 = vld [vmem:[#allocation15 + $0x258] ss:$48 sps:$4 sm:$0xff]  }
 0x425   :  { %6829 = vmatprep.subr.bf16.mxu0 %v19800_v22  ;;  %6915 = vmatprep.subr.bf16.mxu1 %v19803_v59  ;;  %v19842_v22 = vld [vmem:[#allocation15 + $0x2b4] ss:$48 sps:$4 sm:$0xff]   ;;  %v19845_v59 = vld [vmem:[#allocation15 + $0x2bc] ss:$48 sps:$4 sm:$0xff]  }
 0x44f   :  { %v4124_v60 = vpop.f32.mrb[28].mxu0 }
 0x450   :  { %v4165_v26 = vpop.f32.mrb[28].mxu1  ;;  %v4125_v27 = vadd.f32 %v4124_v60, %v4084_v0  ;;  %v4126_v2 = vpop.f32.mrb[29].mxu0  ;;  %v19810_v0 = vld [vmem:[#allocation15 + $0xd0] ss:$48 sps:$4 sm:$0xff]  }
 0x451   :  { %v4167_v4 = vpop.f32.mrb[29].mxu1  ;;  %v4127_v5 = vadd.f32 %v4126_v2, %v4086_v54  ;;  %v4128_v9 = vpop.f32.mrb[30].mxu0  ;;  %v19821_v54 = vld [vmem:[#allocation15 + $0x13c] ss:$48 sps:$4 sm:$0xff]   ;;  %v19840_v60 = vld [vmem:[#allocation15 + $0x2b0] ss:$48 sps:$4 sm:$0xff]  }
 0x452   :  { %v4169_v11 = vpop.f32.mrb[30].mxu1  ;;  %v4166_v12 = vadd.f32 %v4165_v26, %v4125_v27  ;;  %v4129_v13 = vpop.f32.mrb[31].mxu0  ;;  %v19843_v26 = vld [vmem:[#allocation15 + $0x2b8] ss:$48 sps:$4 sm:$0xff]   ;;  %v19848_v27 = vld [vmem:[#allocation15 + $0x314] ss:$48 sps:$4 sm:$0xff]  }
 0x453   :  { %v4170_v14 = vpop.f32.mrb[31].mxu1  ;;  %v4168_v15 = vadd.f32 %v4167_v4, %v4127_v5  ;;  %v19846_v2 = vld [vmem:[#allocation15 + $0x310] ss:$48 sps:$4 sm:$0xff]   ;;  %v19849_v4 = vld [vmem:[#allocation15 + $0x318] ss:$48 sps:$4 sm:$0xff]  }
 0x454   :  { %v4196_v18 = vadd.f32 %v4185_v1, %v4166_v12  ;;  %v19851_v1 = vld [vmem:[#allocation15 + $0x31c] ss:$48 sps:$4 sm:$0xff]   ;;  %v19854_v5 = vld [vmem:[#allocation15 + $0x374] ss:$48 sps:$4 sm:$0xff]   ;;  %v19852_v9 = vld [vmem:[#allocation15 + $0x370] ss:$48 sps:$4 sm:$0xff]  }
 0x455   :  { %v4197_v57 = vadd.f32 %v4189_v8, %v4168_v15  ;;  %v19857_v8 = vld [vmem:[#allocation15 + $0x37c] ss:$48 sps:$4 sm:$0xff]   ;;  %v19855_v11 = vld [vmem:[#allocation15 + $0x378] ss:$48 sps:$4 sm:$0xff]   ;;  %v19860_v12 = vld [vmem:[#allocation15 + $0x3d4] ss:$48 sps:$4 sm:$0xff]  }
 0x456   :  { %v4200_v20 = vadd.f32 %v21185_v58, %v4196_v18  ;;  %v19863_v13 = vld [vmem:[#allocation15 + $0x3dc] ss:$48 sps:$4 sm:$0xff]   ;;  %v19858_v14 = vld [vmem:[#allocation15 + $0x3d0] ss:$48 sps:$4 sm:$0xff]   ;;  %v19861_v15 = vld [vmem:[#allocation15 + $0x3d8] ss:$48 sps:$4 sm:$0xff]  }
 0x457   :  { %v4201_v24 = vadd.f32 %v21186_v21, %v4197_v57  ;;  %v19866_v18 = vld [vmem:[#allocation15 + $0x434] ss:$48 sps:$4 sm:$0xff]   ;;  %v19869_v57 = vld [vmem:[#allocation15 + $0x43c] ss:$48 sps:$4 sm:$0xff]   ;;  %v19864_v58 = vld [vmem:[#allocation15 + $0x430] ss:$48 sps:$4 sm:$0xff]  }
 0x458   :  { %v4236_v23 = vrot.slane %v4200_v20, 2  ;;  %v19867_v20 = vld [vmem:[#allocation15 + $0x438] ss:$48 sps:$4 sm:$0xff]   ;;  %v19872_v21 = vld [vmem:[#allocation15 + $0x494] ss:$48 sps:$4 sm:$0xff]  }
 0x459   :  { %v4237_v25 = vrot.slane %v4201_v24, 2  ;;  %v19875_v24 = vld [vmem:[#allocation15 + $0x49c] ss:$48 sps:$4 sm:$0xff]  }
 0x45a   :  { %4244 = vst [vmem:[#allocation2 + $0x30] ss:$-28 sps:$4 sm:$0xcf] %v4236_v23   ;;  %v19870_v23 = vld [vmem:[#allocation15 + $0x490] ss:$48 sps:$4 sm:$0xff]  }
 0x45b   :  { %4245 = vst [vmem:[#allocation2 + $0x38] ss:$-28 sps:$4 sm:$0xcf] %v4237_v25   ;;  %v19873_v25 = vld [vmem:[#allocation15 + $0x498] ss:$48 sps:$4 sm:$0xff]  }
 0x461   :  { %v4256_v29 = vld [vmem:[#allocation2 + $0x10] sm:$0xff] }
 0x462   :  { %v4260_v63 = vld [vmem:[#allocation2 + $0x30] sm:$0x3f]  ;;  %v4257_v61 = vld [vmem:[#allocation2 + $0x18] sm:$0xff] }
 0x463   :  { %v4261_v30 = vld [vmem:[#allocation2 + $0x38] sm:$0x3f]  ;;  %v22212_v7 = vpack.c.bf16 %v4260_v63, %v4256_v29  ;;  %v19879_v63 = vld [vmem:[#allocation15 + $0x4f8] ss:$48 sps:$4 sm:$0xff]  }
 0x464   :  { %v22210_v31 = vpack.c.bf16 %v4261_v30, %v4257_v61  ;;  %v19876_v29 = vld [vmem:[#allocation15 + $0x4f0] ss:$48 sps:$4 sm:$0xff]   ;;  %v19884_v61 = vld [vmem:[#allocation15 + $0x554] ss:$48 sps:$4 sm:$0xff]   ;;  %v19887_v30 = vld [vmem:[#allocation15 + $0x55c] ss:$48 sps:$4 sm:$0xff]  }
 0x466   :  { %6732 = vmatprep.mubr.bf16.mxu0 %v22210_v31  ;;  %6818 = vmatprep.mubr.bf16.mxu1 %v22210_v31 }
 0x467   :  { %6733 = vmatmul.mubr.bf16.vlgmr.msra.gmra.mrb[32].mxu0 %v22212_v7  ;;  %6819 = vmatmul.mubr.bf16.vlgmr.msra.gmra.mrb[32].mxu1 %v22212_v7 }
 0x468   :  { %6830 = vmatpush1.bf16.msra.mxu0 %v19798_v62  ;;  %6916 = vmatpush1.bf16.msra.mxu1 %v19801_v28  ;;  %v19878_v62 = vld [vmem:[#allocation15 + $0x4f4] ss:$48 sps:$4 sm:$0xff]   ;;  %v19881_v28 = vld [vmem:[#allocation15 + $0x4fc] ss:$48 sps:$4 sm:$0xff]  }
 0x469   :  { %6861 = vmatprep.mubr.bf16.mxu0 %v22196_v47  ;;  %6947 = vmatprep.mubr.bf16.mxu1 %v22196_v47 }
 0x46a   :  { %6831 = vmatprep.subr.bf16.mxu0 %v19806_v6  ;;  %6917 = vmatprep.subr.bf16.mxu1 %v19809_v17  ;;  %v19882_v6 = vld [vmem:[#allocation15 + $0x550] ss:$48 sps:$4 sm:$0xff]   ;;  %v19893_v17 = vld [vmem:[#allocation15 + $0x5bc] ss:$48 sps:$4 sm:$0xff]  }
 0x46c   :  { %6832 = vmatpush1.bf16.msra.mxu0 %v19804_v34  ;;  %6918 = vmatpush1.bf16.msra.mxu1 %v19807_v16  ;;  %v19885_v34 = vld [vmem:[#allocation15 + $0x558] ss:$48 sps:$4 sm:$0xff]   ;;  %v19890_v16 = vld [vmem:[#allocation15 + $0x5b4] ss:$48 sps:$4 sm:$0xff]  }
 0x46d   :  { %6833 = vmatprep.subr.bf16.mxu0 %v19812_v37  ;;  %6919 = vmatprep.subr.bf16.mxu1 %v19815_v40  ;;  %v19888_v37 = vld [vmem:[#allocation15 + $0x5b0] ss:$48 sps:$4 sm:$0xff]   ;;  %v19891_v40 = vld [vmem:[#allocation15 + $0x5b8] ss:$48 sps:$4 sm:$0xff]  }
 0x470   :  { %6834 = vmatpush1.bf16.msra.mxu0 %v19810_v0  ;;  %6920 = vmatpush1.bf16.msra.mxu1 %v19813_v3  ;;  %v19896_v0 = vld [vmem:[#allocation15 + $0x614] ss:$48 sps:$4 sm:$0xff]   ;;  %v19899_v3 = vld [vmem:[#allocation15 + $0x61c] ss:$48 sps:$4 sm:$0xff]  }
 0x471   :  { %6835 = vmatprep.subr.bf16.mxu0 %v19818_v53  ;;  %6921 = vmatprep.subr.bf16.mxu1 %v19821_v54  ;;  %v19894_v53 = vld [vmem:[#allocation15 + $0x610] ss:$48 sps:$4 sm:$0xff]   ;;  %v19897_v54 = vld [vmem:[#allocation15 + $0x618] ss:$48 sps:$4 sm:$0xff]  }
 0x474   :  { %6836 = vmatpush1.bf16.msra.mxu0 %v19816_v41  ;;  %6922 = vmatpush1.bf16.msra.mxu1 %v19819_v42  ;;  %v19902_v41 = vld [vmem:[#allocation15 + $0x674] ss:$48 sps:$4 sm:$0xff]   ;;  %v19905_v42 = vld [vmem:[#allocation15 + $0x67c] ss:$48 sps:$4 sm:$0xff]  }
 0x475   :  { %6837 = vmatprep.subr.bf16.mxu0 %v19824_v44  ;;  %6923 = vmatprep.subr.bf16.mxu1 %v19827_v45  ;;  %v19900_v44 = vld [vmem:[#allocation15 + $0x670] ss:$48 sps:$4 sm:$0xff]   ;;  %v19903_v45 = vld [vmem:[#allocation15 + $0x678] ss:$48 sps:$4 sm:$0xff]  }
 0x478   :  { %6838 = vmatpush1.bf16.msra.mxu0 %v19822_v19  ;;  %6924 = vmatpush1.bf16.msra.mxu1 %v19825_v48  ;;  %v19908_v19 = vld [vmem:[#allocation15 + $0x6d4] ss:$48 sps:$4 sm:$0xff]   ;;  %v19911_v48 = vld [vmem:[#allocation15 + $0x6dc] ss:$48 sps:$4 sm:$0xff]  }
 0x479   :  { %6839 = vmatprep.subr.bf16.mxu0 %v19830_v49  ;;  %6925 = vmatprep.subr.bf16.mxu1 %v19833_v10  ;;  %v19906_v49 = vld [vmem:[#allocation15 + $0x6d0] ss:$48 sps:$4 sm:$0xff]   ;;  %v19909_v10 = vld [vmem:[#allocation15 + $0x6d8] ss:$48 sps:$4 sm:$0xff]  }
 0x47c   :  { %6840 = vmatpush1.bf16.msra.mxu0 %v19828_v50  ;;  %6926 = vmatpush1.bf16.msra.mxu1 %v19831_v33  ;;  %v19914_v50 = vld [vmem:[#allocation15 + $0x734] ss:$48 sps:$4 sm:$0xff]   ;;  %v19917_v33 = vld [vmem:[#allocation15 + $0x73c] ss:$48 sps:$4 sm:$0xff]  }
 0x47d   :  { %6841 = vmatprep.subr.bf16.mxu0 %v19836_v52  ;;  %6927 = vmatprep.subr.bf16.mxu1 %v19839_v56  ;;  %v19912_v52 = vld [vmem:[#allocation15 + $0x730] ss:$48 sps:$4 sm:$0xff]   ;;  %v19915_v56 = vld [vmem:[#allocation15 + $0x738] ss:$48 sps:$4 sm:$0xff]  }
 0x480   :  { %6842 = vmatpush1.bf16.msra.mxu0 %v19834_v51  ;;  %6928 = vmatpush1.bf16.msra.mxu1 %v19837_v35  ;;  %v19920_v51 = vld [vmem:[#allocation15 + $0x794] ss:$48 sps:$4 sm:$0xff]   ;;  %v19923_v35 = vld [vmem:[#allocation15 + $0x79c] ss:$48 sps:$4 sm:$0xff]  }
 0x481   :  { %6843 = vmatprep.subr.bf16.mxu0 %v19842_v22  ;;  %6929 = vmatprep.subr.bf16.mxu1 %v19845_v59  ;;  %v19918_v22 = vld [vmem:[#allocation15 + $0x790] ss:$48 sps:$4 sm:$0xff]   ;;  %v19921_v59 = vld [vmem:[#allocation15 + $0x798] ss:$48 sps:$4 sm:$0xff]  }
 0x484   :  { %6844 = vmatpush1.bf16.msra.mxu0 %v19840_v60  ;;  %6930 = vmatpush1.bf16.msra.mxu1 %v19843_v26  ;;  %v19926_v60 = vld [vmem:[#allocation15 + $0x7f4] ss:$48 sps:$4 sm:$0xff]   ;;  %v19929_v26 = vld [vmem:[#allocation15 + $0x7fc] ss:$48 sps:$4 sm:$0xff]  }
 0x485   :  { %6845 = vmatprep.subr.bf16.mxu0 %v19848_v27  ;;  %6931 = vmatprep.subr.bf16.mxu1 %v19851_v1  ;;  %v19924_v27 = vld [vmem:[#allocation15 + $0x7f0] ss:$48 sps:$4 sm:$0xff]   ;;  %v19927_v1 = vld [vmem:[#allocation15 + $0x7f8] ss:$48 sps:$4 sm:$0xff]  }
 0x488   :  { %6846 = vmatpush1.bf16.msra.mxu0 %v19846_v2  ;;  %6932 = vmatpush1.bf16.msra.mxu1 %v19849_v4  ;;  %v19932_v2 = vld [vmem:[#allocation15 + $0x854] ss:$48 sps:$4 sm:$0xff]   ;;  %v19935_v4 = vld [vmem:[#allocation15 + $0x85c] ss:$48 sps:$4 sm:$0xff]  }
 0x489   :  { %6847 = vmatprep.subr.bf16.mxu0 %v19854_v5  ;;  %6933 = vmatprep.subr.bf16.mxu1 %v19857_v8  ;;  %v19930_v5 = vld [vmem:[#allocation15 + $0x850] ss:$48 sps:$4 sm:$0xff]   ;;  %v19933_v8 = vld [vmem:[#allocation15 + $0x858] ss:$48 sps:$4 sm:$0xff]  }
 0x48c   :  { %6848 = vmatpush1.bf16.msra.mxu0 %v19852_v9  ;;  %6934 = vmatpush1.bf16.msra.mxu1 %v19855_v11  ;;  %v19938_v9 = vld [vmem:[#allocation15 + $0x8b4] ss:$48 sps:$4 sm:$0xff]   ;;  %v19941_v11 = vld [vmem:[#allocation15 + $0x8bc] ss:$48 sps:$4 sm:$0xff]  }
 0x48d   :  { %6849 = vmatprep.subr.bf16.mxu0 %v19860_v12  ;;  %6935 = vmatprep.subr.bf16.mxu1 %v19863_v13  ;;  %v19936_v12 = vld [vmem:[#allocation15 + $0x8b0] ss:$48 sps:$4 sm:$0xff]   ;;  %v19939_v13 = vld [vmem:[#allocation15 + $0x8b8] ss:$48 sps:$4 sm:$0xff]  }
 0x490   :  { %6850 = vmatpush1.bf16.msra.mxu0 %v19858_v14  ;;  %6936 = vmatpush1.bf16.msra.mxu1 %v19861_v15  ;;  %v19944_v14 = vld [vmem:[#allocation15 + $0x914] ss:$48 sps:$4 sm:$0xff]   ;;  %v19947_v15 = vld [vmem:[#allocation15 + $0x91c] ss:$48 sps:$4 sm:$0xff]  }
 0x491   :  { %6851 = vmatprep.subr.bf16.mxu0 %v19866_v18  ;;  %6937 = vmatprep.subr.bf16.mxu1 %v19869_v57  ;;  %v19942_v18 = vld [vmem:[#allocation15 + $0x910] ss:$48 sps:$4 sm:$0xff]   ;;  %v19945_v57 = vld [vmem:[#allocation15 + $0x918] ss:$48 sps:$4 sm:$0xff]  }
 0x494   :  { %6852 = vmatpush1.bf16.msra.mxu0 %v19864_v58  ;;  %6938 = vmatpush1.bf16.msra.mxu1 %v19867_v20  ;;  %v19950_v58 = vld [vmem:[#allocation15 + $0x974] ss:$48 sps:$4 sm:$0xff]   ;;  %v19953_v20 = vld [vmem:[#allocation15 + $0x97c] ss:$48 sps:$4 sm:$0xff]  }
 0x495   :  { %6853 = vmatprep.subr.bf16.mxu0 %v19872_v21  ;;  %6939 = vmatprep.subr.bf16.mxu1 %v19875_v24  ;;  %v19948_v21 = vld [vmem:[#allocation15 + $0x970] ss:$48 sps:$4 sm:$0xff]   ;;  %v19951_v24 = vld [vmem:[#allocation15 + $0x978] ss:$48 sps:$4 sm:$0xff]  }
 0x498   :  { %6854 = vmatpush1.bf16.msra.mxu0 %v19870_v23  ;;  %6940 = vmatpush1.bf16.msra.mxu1 %v19873_v25  ;;  %v19956_v23 = vld [vmem:[#allocation15 + $0x9d4] ss:$48 sps:$4 sm:$0xff]   ;;  %v19959_v25 = vld [vmem:[#allocation15 + $0x9dc] ss:$48 sps:$4 sm:$0xff]  }
 0x499   :  { %6855 = vmatprep.subr.bf16.mxu0 %v19878_v62  ;;  %6941 = vmatprep.subr.bf16.mxu1 %v19881_v28  ;;  %v19954_v62 = vld [vmem:[#allocation15 + $0x9d0] ss:$48 sps:$4 sm:$0xff]   ;;  %v19957_v28 = vld [vmem:[#allocation15 + $0x9d8] ss:$48 sps:$4 sm:$0xff]  }
 0x49c   :  { %6856 = vmatpush1.bf16.msra.mxu0 %v19876_v29  ;;  %6942 = vmatpush1.bf16.msra.mxu1 %v19879_v63  ;;  %v19962_v29 = vld [vmem:[#allocation15 + $0xa34] ss:$48 sps:$4 sm:$0xff]   ;;  %v19965_v63 = vld [vmem:[#allocation15 + $0xa3c] ss:$48 sps:$4 sm:$0xff]  }
 0x49d   :  { %6857 = vmatprep.subr.bf16.mxu0 %v19884_v61  ;;  %6943 = vmatprep.subr.bf16.mxu1 %v19887_v30  ;;  %v19960_v61 = vld [vmem:[#allocation15 + $0xa30] ss:$48 sps:$4 sm:$0xff]   ;;  %v19963_v30 = vld [vmem:[#allocation15 + $0xa38] ss:$48 sps:$4 sm:$0xff]  }
 0x4a0   :  { %6858 = vmatpush1.bf16.msra.mxu0 %v19882_v6  ;;  %6944 = vmatpush1.bf16.msra.mxu1 %v19885_v34  ;;  %v19968_v6 = vld [vmem:[#allocation15 + $0xa94] ss:$48 sps:$4 sm:$0xff]   ;;  %v19971_v34 = vld [vmem:[#allocation15 + $0xa9c] ss:$48 sps:$4 sm:$0xff]  }
 0x4a1   :  { %6859 = vmatprep.subr.bf16.mxu0 %v19890_v16  ;;  %6945 = vmatprep.subr.bf16.mxu1 %v19893_v17  ;;  %v19966_v16 = vld [vmem:[#allocation15 + $0xa90] ss:$48 sps:$4 sm:$0xff]   ;;  %v19969_v17 = vld [vmem:[#allocation15 + $0xa98] ss:$48 sps:$4 sm:$0xff]  }
 0x4a4   :  { %6860 = vmatpush1.bf16.msra.mxu0 %v19888_v37  ;;  %6946 = vmatpush1.bf16.msra.mxu1 %v19891_v40  ;;  %v19974_v37 = vld [vmem:[#allocation15 + $0xaf4] ss:$48 sps:$4 sm:$0xff]   ;;  %v19977_v40 = vld [vmem:[#allocation15 + $0xafc] ss:$48 sps:$4 sm:$0xff]  }
 0x4a5   :  { %6872 = vmatprep.subr.bf16.mxu0 %v19896_v0  ;;  %6958 = vmatprep.subr.bf16.mxu1 %v19899_v3  ;;  %v19972_v0 = vld [vmem:[#allocation15 + $0xaf0] ss:$48 sps:$4 sm:$0xff]   ;;  %v19975_v3 = vld [vmem:[#allocation15 + $0xaf8] ss:$48 sps:$4 sm:$0xff]  }
 0x4a7   :  { %6862 = vmatmul.mubr.bf16.vlgmr.msra.gmra.mrb[36].mxu0 %v22198_v36  ;;  %6948 = vmatmul.mubr.bf16.vlgmr.msra.gmra.mrb[36].mxu1 %v22198_v36 }
 0x4a8   :  { %6873 = vmatpush1.bf16.msra.mxu0 %v19894_v53  ;;  %6904 = vmatprep.mubr.bf16.mxu0 %v22210_v31  ;;  %v19980_v53 = vld [vmem:[#allocation15 + $0xb54] ss:$48 sps:$4 sm:$0xff]  }
 0x4a9   :  { %6959 = vmatpush1.bf16.msra.mxu1 %v19897_v54  ;;  %6990 = vmatprep.mubr.bf16.mxu1 %v22210_v31  ;;  %v19983_v54 = vld [vmem:[#allocation15 + $0xb5c] ss:$48 sps:$4 sm:$0xff]  }
 0x4aa   :  { %6874 = vmatprep.subr.bf16.mxu0 %v19902_v41  ;;  %6960 = vmatprep.subr.bf16.mxu1 %v19905_v42  ;;  %v19978_v41 = vld [vmem:[#allocation15 + $0xb50] ss:$48 sps:$4 sm:$0xff]   ;;  %v19981_v42 = vld [vmem:[#allocation15 + $0xb58] ss:$48 sps:$4 sm:$0xff]  }
 0x4ac   :  { %6875 = vmatpush1.bf16.msra.mxu0 %v19900_v44  ;;  %v19986_v44 = vld [vmem:[#allocation15 + $0xbb4] ss:$48 sps:$4 sm:$0xff]  }
 0x4ad   :  { %6961 = vmatpush1.bf16.msra.mxu1 %v19903_v45  ;;  %6876 = vmatprep.subr.bf16.mxu0 %v19908_v19  ;;  %v19989_v45 = vld [vmem:[#allocation15 + $0xbbc] ss:$48 sps:$4 sm:$0xff]   ;;  %v19984_v19 = vld [vmem:[#allocation15 + $0xbb0] ss:$48 sps:$4 sm:$0xff]  }
 0x4ae   :  { %6962 = vmatprep.subr.bf16.mxu1 %v19911_v48  ;;  %v19987_v48 = vld [vmem:[#allocation15 + $0xbb8] ss:$48 sps:$4 sm:$0xff]  }
 0x4b0   :  { %6877 = vmatpush1.bf16.msra.mxu0 %v19906_v49  ;;  %v19992_v49 = vld [vmem:[#allocation15 + $0x24] ss:$48 sps:$4 sm:$0xff]  }
 0x4b1   :  { %6963 = vmatpush1.bf16.msra.mxu1 %v19909_v10  ;;  %6878 = vmatprep.subr.bf16.mxu0 %v19914_v50  ;;  %v19995_v10 = vld [vmem:[#allocation15 + $0x2c] ss:$48 sps:$4 sm:$0xff]   ;;  %v19990_v50 = vld [vmem:[#allocation15 + $0x20] ss:$48 sps:$4 sm:$0xff]  }
 0x4b2   :  { %6964 = vmatprep.subr.bf16.mxu1 %v19917_v33  ;;  %v19993_v33 = vld [vmem:[#allocation15 + $0x28] ss:$48 sps:$4 sm:$0xff]  }
 0x4b4   :  { %6879 = vmatpush1.bf16.msra.mxu0 %v19912_v52  ;;  %v19998_v52 = vld [vmem:[#allocation15 + $0x84] ss:$48 sps:$4 sm:$0xff]  }
 0x4b5   :  { %6965 = vmatpush1.bf16.msra.mxu1 %v19915_v56  ;;  %6880 = vmatprep.subr.bf16.mxu0 %v19920_v51  ;;  %v20001_v56 = vld [vmem:[#allocation15 + $0x8c] ss:$48 sps:$4 sm:$0xff]   ;;  %v19996_v51 = vld [vmem:[#allocation15 + $0x80] ss:$48 sps:$4 sm:$0xff]  }
 0x4b6   :  { %6966 = vmatprep.subr.bf16.mxu1 %v19923_v35  ;;  %v19999_v35 = vld [vmem:[#allocation15 + $0x88] ss:$48 sps:$4 sm:$0xff]  }
 0x4b8   :  { %6881 = vmatpush1.bf16.msra.mxu0 %v19918_v22  ;;  %v20004_v22 = vld [vmem:[#allocation15 + $0xe4] ss:$48 sps:$4 sm:$0xff]  }
 0x4b9   :  { %6967 = vmatpush1.bf16.msra.mxu1 %v19921_v59  ;;  %6882 = vmatprep.subr.bf16.mxu0 %v19926_v60  ;;  %v20007_v59 = vld [vmem:[#allocation15 + $0xec] ss:$48 sps:$4 sm:$0xff]   ;;  %v20002_v60 = vld [vmem:[#allocation15 + $0xe0] ss:$48 sps:$4 sm:$0xff]  }
 0x4ba   :  { %6968 = vmatprep.subr.bf16.mxu1 %v19929_v26  ;;  %v20005_v26 = vld [vmem:[#allocation15 + $0xe8] ss:$48 sps:$4 sm:$0xff]  }
 0x4bc   :  { %6883 = vmatpush1.bf16.msra.mxu0 %v19924_v27  ;;  %v20010_v27 = vld [vmem:[#allocation15 + $0x144] ss:$48 sps:$4 sm:$0xff]  }
 0x4bd   :  { %6969 = vmatpush1.bf16.msra.mxu1 %v19927_v1  ;;  %6884 = vmatprep.subr.bf16.mxu0 %v19932_v2  ;;  %v20013_v1 = vld [vmem:[#allocation15 + $0x14c] ss:$48 sps:$4 sm:$0xff]   ;;  %v20008_v2 = vld [vmem:[#allocation15 + $0x140] ss:$48 sps:$4 sm:$0xff]  }
 0x4be   :  { %6970 = vmatprep.subr.bf16.mxu1 %v19935_v4  ;;  %v20011_v4 = vld [vmem:[#allocation15 + $0x148] ss:$48 sps:$4 sm:$0xff]  }
 0x4c0   :  { %6885 = vmatpush1.bf16.msra.mxu0 %v19930_v5  ;;  %v20016_v5 = vld [vmem:[#allocation15 + $0x1a4] ss:$48 sps:$4 sm:$0xff]  }
 0x4c1   :  { %6971 = vmatpush1.bf16.msra.mxu1 %v19933_v8  ;;  %6886 = vmatprep.subr.bf16.mxu0 %v19938_v9  ;;  %v20019_v8 = vld [vmem:[#allocation15 + $0x1ac] ss:$48 sps:$4 sm:$0xff]   ;;  %v20017_v9 = vld [vmem:[#allocation15 + $0x1a8] ss:$48 sps:$4 sm:$0xff]  }
 0x4c2   :  { %6972 = vmatprep.subr.bf16.mxu1 %v19941_v11  ;;  %v20022_v11 = vld [vmem:[#allocation15 + $0x204] ss:$48 sps:$4 sm:$0xff]  }
 0x4c4   :  { %6887 = vmatpush1.bf16.msra.mxu0 %v19936_v12  ;;  %v20025_v12 = vld [vmem:[#allocation15 + $0x20c] ss:$48 sps:$4 sm:$0xff]  }
 0x4c5   :  { %6973 = vmatpush1.bf16.msra.mxu1 %v19939_v13  ;;  %6888 = vmatprep.subr.bf16.mxu0 %v19944_v14  ;;  %v20020_v13 = vld [vmem:[#allocation15 + $0x200] ss:$48 sps:$4 sm:$0xff]   ;;  %v20023_v14 = vld [vmem:[#allocation15 + $0x208] ss:$48 sps:$4 sm:$0xff]  }
 0x4c6   :  { %6974 = vmatprep.subr.bf16.mxu1 %v19947_v15  ;;  %v20028_v15 = vld [vmem:[#allocation15 + $0x264] ss:$48 sps:$4 sm:$0xff]  }
 0x4c8   :  { %6889 = vmatpush1.bf16.msra.mxu0 %v19942_v18  ;;  %v20031_v18 = vld [vmem:[#allocation15 + $0x26c] ss:$48 sps:$4 sm:$0xff]  }
 0x4c9   :  { %6975 = vmatpush1.bf16.msra.mxu1 %v19945_v57  ;;  %6890 = vmatprep.subr.bf16.mxu0 %v19950_v58  ;;  %v20026_v57 = vld [vmem:[#allocation15 + $0x260] ss:$48 sps:$4 sm:$0xff]   ;;  %v20029_v58 = vld [vmem:[#allocation15 + $0x268] ss:$48 sps:$4 sm:$0xff]  }
 0x4ca   :  { %6976 = vmatprep.subr.bf16.mxu1 %v19953_v20  ;;  %v20034_v20 = vld [vmem:[#allocation15 + $0x2c4] ss:$48 sps:$4 sm:$0xff]  }
 0x4cc   :  { %6891 = vmatpush1.bf16.msra.mxu0 %v19948_v21  ;;  %v20037_v21 = vld [vmem:[#allocation15 + $0x2cc] ss:$48 sps:$4 sm:$0xff]  }
 0x4cd   :  { %6977 = vmatpush1.bf16.msra.mxu1 %v19951_v24  ;;  %6892 = vmatprep.subr.bf16.mxu0 %v19956_v23  ;;  %v20032_v24 = vld [vmem:[#allocation15 + $0x2c0] ss:$48 sps:$4 sm:$0xff]   ;;  %v20035_v23 = vld [vmem:[#allocation15 + $0x2c8] ss:$48 sps:$4 sm:$0xff]  }
 0x4ce   :  { %6978 = vmatprep.subr.bf16.mxu1 %v19959_v25  ;;  %v20040_v25 = vld [vmem:[#allocation15 + $0x324] ss:$48 sps:$4 sm:$0xff]  }
 0x4d0   :  { %6893 = vmatpush1.bf16.msra.mxu0 %v19954_v62  ;;  %v20043_v62 = vld [vmem:[#allocation15 + $0x32c] ss:$48 sps:$4 sm:$0xff]  }
 0x4d1   :  { %6979 = vmatpush1.bf16.msra.mxu1 %v19957_v28  ;;  %6894 = vmatprep.subr.bf16.mxu0 %v19962_v29  ;;  %v20038_v28 = vld [vmem:[#allocation15 + $0x320] ss:$48 sps:$4 sm:$0xff]   ;;  %v20041_v29 = vld [vmem:[#allocation15 + $0x328] ss:$48 sps:$4 sm:$0xff]  }
 0x4d2   :  { %6980 = vmatprep.subr.bf16.mxu1 %v19965_v63  ;;  %v20046_v63 = vld [vmem:[#allocation15 + $0x384] ss:$48 sps:$4 sm:$0xff]  }
 0x4d4   :  { %6895 = vmatpush1.bf16.msra.mxu0 %v19960_v61  ;;  %v20049_v61 = vld [vmem:[#allocation15 + $0x38c] ss:$48 sps:$4 sm:$0xff]  }
 0x4d5   :  { %6981 = vmatpush1.bf16.msra.mxu1 %v19963_v30  ;;  %6896 = vmatprep.subr.bf16.mxu0 %v19968_v6  ;;  %v20044_v30 = vld [vmem:[#allocation15 + $0x380] ss:$48 sps:$4 sm:$0xff]   ;;  %v20047_v6 = vld [vmem:[#allocation15 + $0x388] ss:$48 sps:$4 sm:$0xff]  }
 0x4d6   :  { %6982 = vmatprep.subr.bf16.mxu1 %v19971_v34  ;;  %v20052_v34 = vld [vmem:[#allocation15 + $0x3e4] ss:$48 sps:$4 sm:$0xff]  }
 0x4d8   :  { %6897 = vmatpush1.bf16.msra.mxu0 %v19966_v16  ;;  %v20055_v16 = vld [vmem:[#allocation15 + $0x3ec] ss:$48 sps:$4 sm:$0xff]  }
 0x4d9   :  { %6983 = vmatpush1.bf16.msra.mxu1 %v19969_v17  ;;  %6898 = vmatprep.subr.bf16.mxu0 %v19974_v37  ;;  %v20050_v17 = vld [vmem:[#allocation15 + $0x3e0] ss:$48 sps:$4 sm:$0xff]   ;;  %v20053_v37 = vld [vmem:[#allocation15 + $0x3e8] ss:$48 sps:$4 sm:$0xff]  }
 0x4da   :  { %6984 = vmatprep.subr.bf16.mxu1 %v19977_v40  ;;  %v20058_v40 = vld [vmem:[#allocation15 + $0x444] ss:$48 sps:$4 sm:$0xff]  }
 0x4dc   :  { %6899 = vmatpush1.bf16.msra.mxu0 %v19972_v0  ;;  %v20061_v0 = vld [vmem:[#allocation15 + $0x44c] ss:$48 sps:$4 sm:$0xff]  }
 0x4dd   :  { %6985 = vmatpush1.bf16.msra.mxu1 %v19975_v3  ;;  %6900 = vmatprep.subr.bf16.mxu0 %v19980_v53  ;;  %v20056_v3 = vld [vmem:[#allocation15 + $0x440] ss:$48 sps:$4 sm:$0xff]   ;;  %v20059_v53 = vld [vmem:[#allocation15 + $0x448] ss:$48 sps:$4 sm:$0xff]  }
 0x4de   :  { %6986 = vmatprep.subr.bf16.mxu1 %v19983_v54  ;;  %v20064_v54 = vld [vmem:[#allocation15 + $0x4a4] ss:$48 sps:$4 sm:$0xff]  }
 0x4e0   :  { %6901 = vmatpush1.bf16.msra.mxu0 %v19978_v41  ;;  %v20067_v41 = vld [vmem:[#allocation15 + $0x4ac] ss:$48 sps:$4 sm:$0xff]  }
 0x4e1   :  { %6987 = vmatpush1.bf16.msra.mxu1 %v19981_v42  ;;  %6902 = vmatprep.subr.bf16.mxu0 %v19986_v44  ;;  %v20062_v42 = vld [vmem:[#allocation15 + $0x4a0] ss:$48 sps:$4 sm:$0xff]   ;;  %v20065_v44 = vld [vmem:[#allocation15 + $0x4a8] ss:$48 sps:$4 sm:$0xff]  }
 0x4e2   :  { %6988 = vmatprep.subr.bf16.mxu1 %v19989_v45  ;;  %v20070_v45 = vld [vmem:[#allocation15 + $0x504] ss:$48 sps:$4 sm:$0xff]  }
 0x4e4   :  { %6903 = vmatpush1.bf16.msra.mxu0 %v19984_v19  ;;  %v20073_v19 = vld [vmem:[#allocation15 + $0x50c] ss:$48 sps:$4 sm:$0xff]  }
 0x4e5   :  { %6989 = vmatpush1.bf16.msra.mxu1 %v19987_v48  ;;  %7001 = vmatprep.subr.bf16.mxu0 %v19992_v49  ;;  %v20068_v48 = vld [vmem:[#allocation15 + $0x500] ss:$48 sps:$4 sm:$0xff]   ;;  %v20071_v49 = vld [vmem:[#allocation15 + $0x508] ss:$48 sps:$4 sm:$0xff]  }
 0x4e6   :  { %7087 = vmatprep.subr.bf16.mxu1 %v19995_v10  ;;  %v20076_v10 = vld [vmem:[#allocation15 + $0x564] ss:$48 sps:$4 sm:$0xff]  }
 0x4e7   :  { %6905 = vmatmul.mubr.bf16.vlgmr.msra.gmra.mrb[36].mxu0 %v22212_v7 }
 0x4e8   :  { %6991 = vmatmul.mubr.bf16.vlgmr.msra.gmra.mrb[36].mxu1 %v22212_v7  ;;  %7002 = vmatpush1.bf16.msra.mxu0 %v19990_v50  ;;  %v20079_v50 = vld [vmem:[#allocation15 + $0x56c] ss:$48 sps:$4 sm:$0xff]  }
 0x4e9   :  { %7033 = vmatprep.mubr.bf16.mxu0 %v22196_v47  ;;  %7088 = vmatpush1.bf16.msra.mxu1 %v19993_v33  ;;  %v20074_v33 = vld [vmem:[#allocation15 + $0x560] ss:$48 sps:$4 sm:$0xff]  }
 0x4ea   :  { %7119 = vmatprep.mubr.bf16.mxu1 %v22196_v47  ;;  %7003 = vmatprep.subr.bf16.mxu0 %v19998_v52  ;;  %v20014_v47 = vld [vmem:[#allocation15 + $0x1a0] ss:$48 sps:$4 sm:$0xff]   ;;  %v20077_v52 = vld [vmem:[#allocation15 + $0x568] ss:$48 sps:$4 sm:$0xff]  }
 0x4eb   :  { %7089 = vmatprep.subr.bf16.mxu1 %v20001_v56  ;;  %v20082_v56 = vld [vmem:[#allocation15 + $0x5c4] ss:$48 sps:$4 sm:$0xff]  }
 0x4ec   :  { %7004 = vmatpush1.bf16.msra.mxu0 %v19996_v51  ;;  %v20085_v51 = vld [vmem:[#allocation15 + $0x5cc] ss:$48 sps:$4 sm:$0xff]  }
 0x4ed   :  { %7090 = vmatpush1.bf16.msra.mxu1 %v19999_v35  ;;  %7005 = vmatprep.subr.bf16.mxu0 %v20004_v22  ;;  %v20080_v35 = vld [vmem:[#allocation15 + $0x5c0] ss:$48 sps:$4 sm:$0xff]   ;;  %v20083_v22 = vld [vmem:[#allocation15 + $0x5c8] ss:$48 sps:$4 sm:$0xff]  }
 0x4ee   :  { %7091 = vmatprep.subr.bf16.mxu1 %v20007_v59  ;;  %v20088_v59 = vld [vmem:[#allocation15 + $0x624] ss:$48 sps:$4 sm:$0xff]  }
 0x4f0   :  { %7006 = vmatpush1.bf16.msra.mxu0 %v20002_v60  ;;  %v20091_v60 = vld [vmem:[#allocation15 + $0x62c] ss:$48 sps:$4 sm:$0xff]  }
 0x4f1   :  { %7092 = vmatpush1.bf16.msra.mxu1 %v20005_v26  ;;  %7007 = vmatprep.subr.bf16.mxu0 %v20010_v27  ;;  %v20086_v26 = vld [vmem:[#allocation15 + $0x620] ss:$48 sps:$4 sm:$0xff]   ;;  %v20089_v27 = vld [vmem:[#allocation15 + $0x628] ss:$48 sps:$4 sm:$0xff]  }
 0x4f2   :  { %7093 = vmatprep.subr.bf16.mxu1 %v20013_v1  ;;  %v20094_v1 = vld [vmem:[#allocation15 + $0x684] ss:$48 sps:$4 sm:$0xff]  }
 0x4f4   :  { %7008 = vmatpush1.bf16.msra.mxu0 %v20008_v2  ;;  %v20097_v2 = vld [vmem:[#allocation15 + $0x68c] ss:$48 sps:$4 sm:$0xff]  }
 0x4f5   :  { %7094 = vmatpush1.bf16.msra.mxu1 %v20011_v4  ;;  %7009 = vmatprep.subr.bf16.mxu0 %v20016_v5  ;;  %v20092_v4 = vld [vmem:[#allocation15 + $0x680] ss:$48 sps:$4 sm:$0xff]   ;;  %v20095_v5 = vld [vmem:[#allocation15 + $0x688] ss:$48 sps:$4 sm:$0xff]  }
 0x4f6   :  { %7095 = vmatprep.subr.bf16.mxu1 %v20019_v8  ;;  %v20100_v8 = vld [vmem:[#allocation15 + $0x6e4] ss:$48 sps:$4 sm:$0xff]  }
 0x4f8   :  { %7010 = vmatpush1.bf16.msra.mxu0 %v20014_v47  ;;  %v20103_v47 = vld [vmem:[#allocation15 + $0x6ec] ss:$48 sps:$4 sm:$0xff]  }
 0x4f9   :  { %7096 = vmatpush1.bf16.msra.mxu1 %v20017_v9  ;;  %7011 = vmatprep.subr.bf16.mxu0 %v20022_v11  ;;  %v20098_v9 = vld [vmem:[#allocation15 + $0x6e0] ss:$48 sps:$4 sm:$0xff]   ;;  %v20101_v11 = vld [vmem:[#allocation15 + $0x6e8] ss:$48 sps:$4 sm:$0xff]  }
 0x4fa   :  { %7097 = vmatprep.subr.bf16.mxu1 %v20025_v12  ;;  %v20106_v12 = vld [vmem:[#allocation15 + $0x744] ss:$48 sps:$4 sm:$0xff]  }
 0x4fc   :  { %7012 = vmatpush1.bf16.msra.mxu0 %v20020_v13  ;;  %v20104_v13 = vld [vmem:[#allocation15 + $0x740] ss:$48 sps:$4 sm:$0xff]  }
 0x4fd   :  { %7098 = vmatpush1.bf16.msra.mxu1 %v20023_v14  ;;  %7013 = vmatprep.subr.bf16.mxu0 %v20028_v15  ;;  %v20107_v14 = vld [vmem:[#allocation15 + $0x748] ss:$48 sps:$4 sm:$0xff]   ;;  %v20112_v15 = vld [vmem:[#allocation15 + $0x7a4] ss:$48 sps:$4 sm:$0xff]  }
 0x4fe   :  { %7099 = vmatprep.subr.bf16.mxu1 %v20031_v18  ;;  %v20115_v18 = vld [vmem:[#allocation15 + $0x7ac] ss:$48 sps:$4 sm:$0xff]  }
 0x500   :  { %7014 = vmatpush1.bf16.msra.mxu0 %v20026_v57  ;;  %v20113_v57 = vld [vmem:[#allocation15 + $0x7a8] ss:$48 sps:$4 sm:$0xff]  }
 0x501   :  { %7100 = vmatpush1.bf16.msra.mxu1 %v20029_v58  ;;  %7015 = vmatprep.subr.bf16.mxu0 %v20034_v20  ;;  %v22232_v58 = vld [vmem:[#allocation17] sm:$0xff] }
 0x502   :  { %7101 = vmatprep.subr.bf16.mxu1 %v20037_v21  ;;  %v20118_v20 = vld [vmem:[#allocation15 + $0x804] ss:$48 sps:$4 sm:$0xff]   ;;  %v20121_v21 = vld [vmem:[#allocation15 + $0x80c] ss:$48 sps:$4 sm:$0xff]  }
 0x504   :  { %7016 = vmatpush1.bf16.msra.mxu0 %v20032_v24  ;;  %v4680_v24 = vrot.slane %v22232_v58, %v22093_v43 }
 0x505   :  { %7102 = vmatpush1.bf16.msra.mxu1 %v20035_v23  ;;  %7017 = vmatprep.subr.bf16.mxu0 %v20040_v25  ;;  %v20116_v23 = vld [vmem:[#allocation15 + $0x800] ss:$48 sps:$4 sm:$0xff]   ;;  %v4688_v25 = vrot.slane %v22232_v58, %v22151_v32 }
 0x506   :  { %7103 = vmatprep.subr.bf16.mxu1 %v20043_v62  ;;  %v20119_v62 = vld [vmem:[#allocation15 + $0x808] ss:$48 sps:$4 sm:$0xff]  }
 0x508   :  { %7018 = vmatpush1.bf16.msra.mxu0 %v20038_v28  ;;  %v20124_v28 = vld [vmem:[#allocation15 + $0x864] ss:$48 sps:$4 sm:$0xff]  }
 0x509   :  { %7104 = vmatpush1.bf16.msra.mxu1 %v20041_v29  ;;  %7019 = vmatprep.subr.bf16.mxu0 %v20046_v63 }
 0x50a   :  { %7105 = vmatprep.subr.bf16.mxu1 %v20049_v61  ;;  %v4684_v61 = vrot.slane %v22232_v58, %v22096_v46 }
 0x50c   :  { %7020 = vmatpush1.bf16.msra.mxu0 %v20044_v30  ;;  %v4692_v30 = vrot.slane %v22232_v58, %v22154_v55 }
 0x50d   :  { %7106 = vmatpush1.bf16.msra.mxu1 %v20047_v6  ;;  %7021 = vmatprep.subr.bf16.mxu0 %v20052_v34  ;;  %v20127_v6 = vld [vmem:[#allocation15 + $0x86c] ss:$48 sps:$4 sm:$0xff]  }
 0x50e   :  { %7107 = vmatprep.subr.bf16.mxu1 %v20055_v16 }
 0x510   :  { %7022 = vmatpush1.bf16.msra.mxu0 %v20050_v17 }
 0x511   :  { %7108 = vmatpush1.bf16.msra.mxu1 %v20053_v37  ;;  %7023 = vmatprep.subr.bf16.mxu0 %v20058_v40 }
 0x512   :  { %7109 = vmatprep.subr.bf16.mxu1 %v20061_v0  ;;  %v20122_v0 = vld [vmem:[#allocation15 + $0x860] ss:$48 sps:$4 sm:$0xff]  }
 0x514   :  { %7024 = vmatpush1.bf16.msra.mxu0 %v20056_v3 }
 0x515   :  { %7110 = vmatpush1.bf16.msra.mxu1 %v20059_v53  ;;  %7025 = vmatprep.subr.bf16.mxu0 %v20064_v54 }
 0x516   :  { %7111 = vmatprep.subr.bf16.mxu1 %v20067_v41 }
 0x518   :  { %7026 = vmatpush1.bf16.msra.mxu0 %v20062_v42 }
 0x519   :  { %7112 = vmatpush1.bf16.msra.mxu1 %v20065_v44  ;;  %7027 = vmatprep.subr.bf16.mxu0 %v20070_v45  ;;  %v20125_v44 = vld [vmem:[#allocation15 + $0x868] ss:$48 sps:$4 sm:$0xff]   ;;  %v20130_v45 = vld [vmem:[#allocation15 + $0x8c4] ss:$48 sps:$4 sm:$0xff]  }
 0x51a   :  { %7113 = vmatprep.subr.bf16.mxu1 %v20073_v19 }
 0x51c   :  { %7028 = vmatpush1.bf16.msra.mxu0 %v20068_v48 }
 0x51d   :  { %7114 = vmatpush1.bf16.msra.mxu1 %v20071_v49  ;;  %7029 = vmatprep.subr.bf16.mxu0 %v20076_v10 }
 0x51e   :  { %7115 = vmatprep.subr.bf16.mxu1 %v20079_v50  ;;  %v20133_v50 = vld [vmem:[#allocation15 + $0x8cc] ss:$48 sps:$4 sm:$0xff]  }
 0x520   :  { %7030 = vmatpush1.bf16.msra.mxu0 %v20074_v33 }
 0x521   :  { %7116 = vmatpush1.bf16.msra.mxu1 %v20077_v52  ;;  %7031 = vmatprep.subr.bf16.mxu0 %v20082_v56 }
 0x522   :  { %7117 = vmatprep.subr.bf16.mxu1 %v20085_v51 }
 0x524   :  { %7032 = vmatpush1.bf16.msra.mxu0 %v20080_v35  ;;  %v20128_v35 = vld [vmem:[#allocation15 + $0x8c0] ss:$48 sps:$4 sm:$0xff]  }
 0x525   :  { %7118 = vmatpush1.bf16.msra.mxu1 %v20083_v22  ;;  %7044 = vmatprep.subr.bf16.mxu0 %v20088_v59  ;;  %v20131_v22 = vld [vmem:[#allocation15 + $0x8c8] ss:$48 sps:$4 sm:$0xff]   ;;  %v20136_v59 = vld [vmem:[#allocation15 + $0x924] ss:$48 sps:$4 sm:$0xff]  }
 0x526   :  { %7130 = vmatprep.subr.bf16.mxu1 %v20091_v60  ;;  %v20139_v60 = vld [vmem:[#allocation15 + $0x92c] ss:$48 sps:$4 sm:$0xff]  }
 0x527   :  { %7034 = vmatmul.mubr.bf16.vlgmr.msra.gmra.mrb[40].mxu0 %v22198_v36 }
 0x528   :  { %7120 = vmatmul.mubr.bf16.vlgmr.msra.gmra.mrb[40].mxu1 %v22198_v36  ;;  %7045 = vmatpush1.bf16.msra.mxu0 %v20086_v26  ;;  %v20109_v36 = vld [vmem:[#allocation15 + $0x74c] ss:$48 sps:$4 sm:$0xff]   ;;  %v20134_v26 = vld [vmem:[#allocation15 + $0x920] ss:$48 sps:$4 sm:$0xff]  }
 0x529   :  { %7076 = vmatprep.mubr.bf16.mxu0 %v22210_v31  ;;  %7131 = vmatpush1.bf16.msra.mxu1 %v20089_v27  ;;  %v20137_v27 = vld [vmem:[#allocation15 + $0x928] ss:$48 sps:$4 sm:$0xff]  }
 0x52a   :  { %7162 = vmatprep.mubr.bf16.mxu1 %v22210_v31  ;;  %7046 = vmatprep.subr.bf16.mxu0 %v20094_v1  ;;  %v20110_v31 = vld [vmem:[#allocation15 + $0x7a0] ss:$48 sps:$4 sm:$0xff]   ;;  %v20142_v1 = vld [vmem:[#allocation15 + $0x984] ss:$48 sps:$4 sm:$0xff]  }
 0x52b   :  { %7132 = vmatprep.subr.bf16.mxu1 %v20097_v2  ;;  %v20145_v2 = vld [vmem:[#allocation15 + $0x98c] ss:$48 sps:$4 sm:$0xff]  }
 0x52c   :  { %7047 = vmatpush1.bf16.msra.mxu0 %v20092_v4  ;;  %v20140_v4 = vld [vmem:[#allocation15 + $0x980] ss:$48 sps:$4 sm:$0xff]  }
 0x52d   :  { %7133 = vmatpush1.bf16.msra.mxu1 %v20095_v5  ;;  %7048 = vmatprep.subr.bf16.mxu0 %v20100_v8  ;;  %v20143_v5 = vld [vmem:[#allocation15 + $0x988] ss:$48 sps:$4 sm:$0xff]   ;;  %v20148_v8 = vld [vmem:[#allocation15 + $0x9e4] ss:$48 sps:$4 sm:$0xff]  }
 0x52e   :  { %7134 = vmatprep.subr.bf16.mxu1 %v20103_v47  ;;  %v20151_v47 = vld [vmem:[#allocation15 + $0x9ec] ss:$48 sps:$4 sm:$0xff]  }
 0x530   :  { %7049 = vmatpush1.bf16.msra.mxu0 %v20098_v9  ;;  %v20146_v9 = vld [vmem:[#allocation15 + $0x9e0] ss:$48 sps:$4 sm:$0xff]  }
 0x531   :  { %7135 = vmatpush1.bf16.msra.mxu1 %v20101_v11  ;;  %7050 = vmatprep.subr.bf16.mxu0 %v20106_v12  ;;  %v20149_v11 = vld [vmem:[#allocation15 + $0x9e8] ss:$48 sps:$4 sm:$0xff]   ;;  %v20154_v12 = vld [vmem:[#allocation15 + $0xa44] ss:$48 sps:$4 sm:$0xff]  }
 0x532   :  { %7136 = vmatprep.subr.bf16.mxu1 %v20109_v36  ;;  %v20157_v36 = vld [vmem:[#allocation15 + $0xa4c] ss:$48 sps:$4 sm:$0xff]  }
 0x534   :  { %7051 = vmatpush1.bf16.msra.mxu0 %v20104_v13  ;;  %v20152_v13 = vld [vmem:[#allocation15 + $0xa40] ss:$48 sps:$4 sm:$0xff]  }
 0x535   :  { %7137 = vmatpush1.bf16.msra.mxu1 %v20107_v14  ;;  %7052 = vmatprep.subr.bf16.mxu0 %v20112_v15  ;;  %v20155_v14 = vld [vmem:[#allocation15 + $0xa48] ss:$48 sps:$4 sm:$0xff]   ;;  %v20160_v15 = vld [vmem:[#allocation15 + $0xaa4] ss:$48 sps:$4 sm:$0xff]  }
 0x536   :  { %7138 = vmatprep.subr.bf16.mxu1 %v20115_v18  ;;  %v20163_v18 = vld [vmem:[#allocation15 + $0xaac] ss:$48 sps:$4 sm:$0xff]  }
 0x538   :  { %7053 = vmatpush1.bf16.msra.mxu0 %v20110_v31  ;;  %v20158_v31 = vld [vmem:[#allocation15 + $0xaa0] ss:$48 sps:$4 sm:$0xff]  }
 0x539   :  { %7139 = vmatpush1.bf16.msra.mxu1 %v20113_v57  ;;  %7054 = vmatprep.subr.bf16.mxu0 %v20118_v20  ;;  %v20161_v57 = vld [vmem:[#allocation15 + $0xaa8] ss:$48 sps:$4 sm:$0xff]   ;;  %v20166_v20 = vld [vmem:[#allocation15 + $0xb04] ss:$48 sps:$4 sm:$0xff]  }
 0x53a   :  { %v6734_v29 = vpop.f32.mrb[32].mxu0  ;;  %v6820_v63 = vpop.f32.mrb[32].mxu1  ;;  %7140 = vmatprep.subr.bf16.mxu1 %v20121_v21  ;;  %v20169_v21 = vld [vmem:[#allocation15 + $0xb0c] ss:$48 sps:$4 sm:$0xff]  }
 0x53b   :  { %v6736_v34 = vpop.f32.mrb[33].mxu0  ;;  %v6822_v16 = vpop.f32.mrb[33].mxu1  ;;  %v22242_v17 = vadd.f32 %v6734_v29, %v4680_v24  ;;  %v22244_v3 = vadd.f32 %v6820_v63, %v4688_v25  ;;  %v20173_v29 = vld [vmem:[#allocation15 + $0xb68] ss:$48 sps:$4 sm:$0xff]   ;;  %v20178_v63 = vld [vmem:[#allocation15 + $0xbc4] ss:$48 sps:$4 sm:$0xff]  }
 0x53c   :  { %7055 = vmatpush1.bf16.msra.mxu0 %v20116_v23  ;;  %v6738_v37 = vpop.f32.mrb[34].mxu0  ;;  %v6824_v40 = vpop.f32.mrb[34].mxu1  ;;  %v22250_v19 = vadd.f32 %v6736_v34, %v4684_v61  ;;  %v22252_v48 = vadd.f32 %v6822_v16, %v4692_v30  ;;  %v20167_v23 = vld [vmem:[#allocation15 + $0xb08] ss:$48 sps:$4 sm:$0xff]   ;;  %v21660_v34 = vmov 0.0   ;;  %v22275_v16 = vsub.s32 4, %v22090_v39 }
 0x53d   :  { %7141 = vmatpush1.bf16.msra.mxu1 %v20119_v62  ;;  %v22246_v53 = vadd.f32 %v6738_v37, %v4680_v24  ;;  %v22248_v54 = vadd.f32 %v6824_v40, %v4688_v25  ;;  %v6740_v41 = vpop.f32.mrb[35].mxu0  ;;  %v6826_v42 = vpop.f32.mrb[35].mxu1  ;;  %7056 = vmatprep.subr.bf16.mxu0 %v20124_v28  ;;  %v20164_v24 = vld [vmem:[#allocation15 + $0xb00] ss:$48 sps:$4 sm:$0xff]   ;;  %v20172_v25 = vld [vmem:[#allocation15 + $0xb64] ss:$48 sps:$4 sm:$0xff]  }
 0x53e   :  { %v22254_v49 = vadd.f32 %v6740_v41, %v4684_v61  ;;  %v22256_v10 = vadd.f32 %v6826_v42, %v4692_v30  ;;  %7142 = vmatprep.subr.bf16.mxu1 %v20127_v6  ;;  %v20175_v62 = vld [vmem:[#allocation15 + $0xb6c] ss:$48 sps:$4 sm:$0xff]   ;;  %v20170_v28 = vld [vmem:[#allocation15 + $0xb60] ss:$48 sps:$4 sm:$0xff]   ;;  %v20179_v6 = vld [vmem:[#allocation15 + $0xbc8] ss:$48 sps:$4 sm:$0xff]  }
 0x53f   :  { %v7173_v33 = vpack.c.bf16 %v22246_v53, %v22242_v17  ;;  %v7416_v52 = vpack.c.bf16 %v22248_v54, %v22244_v3  ;;  %v20181_v61 = vld [vmem:[#allocation15 + $0xbcc] ss:$48 sps:$4 sm:$0xff]   ;;  %v20176_v30 = vld [vmem:[#allocation15 + $0xbc0] ss:$48 sps:$4 sm:$0xff]   ;;  %v22278_v37 = vsub.s32 6, %v22090_v39  ;;  %v22281_v40 = vsub.s32 5, %v22090_v39 }
 0x540   :  { %v7296_v56 = vpack.c.bf16 %v22254_v49, %v22250_v19  ;;  %v7536_v51 = vpack.c.bf16 %v22256_v10, %v22252_v48  ;;  %7057 = vmatpush1.bf16.msra.mxu0 %v20122_v0  ;;  %v22284_v0 = vsub.s32 7, %v22090_v39 }
 0x541   :  { %7143 = vmatpush1.bf16.msra.mxu1 %v20125_v44  ;;  %7058 = vmatprep.subr.bf16.mxu0 %v20130_v45  ;;  %v4704_v42 = vrot.slane %v22232_v58, %v22278_v37  ;;  %v4700_v44 = vrot.slane %v22232_v58, %v22281_v40 }
 0x542   :  { %7144 = vmatprep.subr.bf16.mxu1 %v20133_v50 }
 0x544   :  { %7059 = vmatpush1.bf16.msra.mxu0 %v20128_v35  ;;  %v4708_v35 = vrot.slane %v22232_v58, %v22284_v0 }
 0x545   :  { %7145 = vmatpush1.bf16.msra.mxu1 %v20131_v22  ;;  %7060 = vmatprep.subr.bf16.mxu0 %v20136_v59 }
 0x546   :  { %7146 = vmatprep.subr.bf16.mxu1 %v20139_v60 }
 0x548   :  { %7061 = vmatpush1.bf16.msra.mxu0 %v20134_v26 }
 0x549   :  { %7147 = vmatpush1.bf16.msra.mxu1 %v20137_v27  ;;  %7062 = vmatprep.subr.bf16.mxu0 %v20142_v1 }
 0x54a   :  { %7148 = vmatprep.subr.bf16.mxu1 %v20145_v2 }
 0x54c   :  { %7063 = vmatpush1.bf16.msra.mxu0 %v20140_v4 }
 0x54d   :  { %7149 = vmatpush1.bf16.msra.mxu1 %v20143_v5  ;;  %7064 = vmatprep.subr.bf16.mxu0 %v20148_v8 }
 0x54e   :  { %7150 = vmatprep.subr.bf16.mxu1 %v20151_v47 }
 0x550   :  { %7065 = vmatpush1.bf16.msra.mxu0 %v20146_v9 }
 0x551   :  { %7151 = vmatpush1.bf16.msra.mxu1 %v20149_v11  ;;  %7066 = vmatprep.subr.bf16.mxu0 %v20154_v12 }
 0x552   :  { %7152 = vmatprep.subr.bf16.mxu1 %v20157_v36 }
 0x554   :  { %7067 = vmatpush1.bf16.msra.mxu0 %v20152_v13 }
 0x555   :  { %7153 = vmatpush1.bf16.msra.mxu1 %v20155_v14  ;;  %7068 = vmatprep.subr.bf16.mxu0 %v20160_v15 }
 0x556   :  { %7154 = vmatprep.subr.bf16.mxu1 %v20163_v18 }
 0x558   :  { %7069 = vmatpush1.bf16.msra.mxu0 %v20158_v31 }
 0x559   :  { %7155 = vmatpush1.bf16.msra.mxu1 %v20161_v57  ;;  %7070 = vmatprep.subr.bf16.mxu0 %v20166_v20 }
 0x55a   :  { %7156 = vmatprep.subr.bf16.mxu1 %v20169_v21 }
 0x55c   :  { %7071 = vmatpush1.bf16.msra.mxu0 %v20164_v24 }
 0x55d   :  { %7157 = vmatpush1.bf16.msra.mxu1 %v20167_v23  ;;  %7072 = vmatprep.subr.bf16.mxu0 %v20172_v25 }
 0x55e   :  { %7158 = vmatprep.subr.bf16.mxu1 %v20175_v62 }
 0x560   :  { %7073 = vmatpush1.bf16.msra.mxu0 %v20170_v28 }
 0x561   :  { %7159 = vmatpush1.bf16.msra.mxu1 %v20173_v29  ;;  %7074 = vmatprep.subr.bf16.mxu0 %v20178_v63 }
 0x562   :  { %7160 = vmatprep.subr.bf16.mxu1 %v20181_v61 }
 0x564   :  { %7075 = vmatpush1.bf16.msra.mxu0 %v20176_v30 }
 0x565   :  { %7161 = vmatpush1.bf16.msra.mxu1 %v20179_v6  ;;  %18617 = vmatprep.subr.bf16.mxu0 %v21660_v34 }
 0x566   :  { %18623 = vmatprep.subr.bf16.mxu1 %v21660_v34 }
 0x567   :  { %7077 = vmatmul.mubr.bf16.vlgmr.msra.gmra.mrb[40].mxu0 %v22212_v7 }
 0x568   :  { %7163 = vmatmul.mubr.bf16.vlgmr.msra.gmra.mrb[40].mxu1 %v22212_v7  ;;  %18619 = vmatprep.mubr.msk.bf16.mxu0 %vm21661_vm0, %v21660_v34  ;;  %v4696_v7 = vrot.slane %v22232_v58, %v22275_v16  ;;  %v4674_v58 = vld [vmem:[#allocation17 + $0x8] sm:$0xf] }
 0x569   :  { %18625 = vmatprep.mubr.msk.bf16.mxu1 %vm21661_vm0, %v21660_v34  ;;  %v4712_v17 = vrot.slane %v4674_v58, %v22093_v43  ;;  %v4720_v19 = vrot.slane %v4674_v58, %v22151_v32  ;;  %v4716_v49 = vrot.slane %v4674_v58, %v22096_v46  ;;  %v4724_v3 = vrot.slane %v4674_v58, %v22154_v55 }
 0x5ba   :  { %v6906_v41 = vpop.f32.mrb[36].mxu0 }
 0x5bb   :  { %v6992_v45 = vpop.f32.mrb[36].mxu1  ;;  %v6908_v50 = vpop.f32.mrb[37].mxu0  ;;  %v18673_v60 = vadd.f32 %v6906_v41, %v4696_v7  ;;  %v4264_v41 = vadd.s32 8, %v22090_v39 }
 0x5bc   :  { %v6994_v22 = vpop.f32.mrb[37].mxu1  ;;  %v6910_v59 = vpop.f32.mrb[38].mxu0  ;;  %v18677_v2 = vadd.f32 %v6992_v45, %v4704_v42  ;;  %v18674_v4 = vadd.f32 %v6908_v50, %v4700_v44 }
 0x5bd   :  { %v18675_v26 = vadd.f32 %v6910_v59, %v4696_v7  ;;  %v6996_v27 = vpop.f32.mrb[38].mxu1  ;;  %v6912_v1 = vpop.f32.mrb[39].mxu0  ;;  %v18678_v9 = vadd.f32 %v6994_v22, %v4708_v35  ;;  %v4268_v7 = vand.u32 127, %v562_v38  ;;  %v4266_v45 = vcvt.s32.f32 %v4264_v41 }
 0x5be   :  { %v18679_v5 = vadd.f32 %v6996_v27, %v4704_v42  ;;  %v18676_v8 = vadd.f32 %v6912_v1, %v4700_v44  ;;  %v6998_v47 = vpop.f32.mrb[39].mxu1  ;;  %v4265_v42 = vcvt.s32.f32 %v22090_v39 }
 0x5bf   :  { %v7174_v11 = vpack.c.bf16 %v18675_v26, %v18673_v60  ;;  %v18680_v12 = vadd.f32 %v6998_v47, %v4708_v35  ;;  %v4269_v44 = vcvt.s32.f32 %v4268_v7  ;;  %v4272_v22 = vmul.f32 0.5, %v4266_v45 }
 0x5c0   :  { %v7417_v36 = vpack.c.bf16 %v18679_v5, %v18677_v2  ;;  %v7297_v13 = vpack.c.bf16 %v18676_v8, %v18674_v4  ;;  %v4271_v50 = vmul.f32 0.5, %v4265_v42 }
 0x5c1   :  { %v7537_v14 = vpack.c.bf16 %v18680_v12, %v18678_v9  ;;  %18618 = vmatpush3.bf16.xpose.msra.mxu0 %v7174_v11  ;;  %v4279_v35 = vmul.f32 0.5, %v4269_v44  ;;  %v4274_v26 = vfloor.f32 %v4272_v22 }
 0x5c2   :  { %18629 = vmatprep.subr.bf16.mxu0 %v21660_v34  ;;  %v4273_v59 = vfloor.f32 %v4271_v50 }
 0x5c3   :  { %v4280_v60 = vfloor.f32 %v4279_v35  ;;  %v4276_v2 = vmul.f32 2.0, %v4274_v26 }
 0x5c4   :  { %v4275_v27 = vmul.f32 2.0, %v4273_v59 }
 0x5c5   :  { %v4281_v1 = vmul.f32 2.0, %v4280_v60  ;;  %v4278_v8 = vsub.f32 %v4266_v45, %v4276_v2 }
 0x5c6   :  { %v4277_v4 = vsub.f32 %v4265_v42, %v4275_v27 }
 0x5c7   :  { %v4282_v5 = vsub.f32 %v4269_v44, %v4281_v1 }
 0x5c8   :  { %18620 = vmatmul.mubr.bf16.vlgmr.msra.gmra.mrb[44].mxu0 %v7173_v33 }
 0x5c9   :  { %18630 = vmatpush3.bf16.xpose.msra.mxu0 %v7297_v13  ;;  %18631 = vmatprep.mubr.msk.bf16.mxu0 %vm21661_vm0, %v21660_v34  ;;  %vm4283_vm2 = vcmp.eq.f32.partialorder %v4277_v4, %v4282_v5  ;;  %vm4284_vm4 = vcmp.eq.f32.partialorder %v4278_v8, %v4282_v5 }
 0x5ca   :  { %18641 = vmatprep.subr.bf16.mxu0 %v21660_v34 }
 0x5d0   :  { %18632 = vmatmul.mubr.bf16.vlgmr.msra.gmra.mrb[48].mxu0 %v7296_v56 }
 0x5d1   :  { %18642 = vmatpush3.bf16.xpose.msra.mxu0 %v7417_v36  ;;  %18643 = vmatprep.mubr.msk.bf16.mxu0 %vm21661_vm0, %v21660_v34 }
 0x5d2   :  { %18653 = vmatprep.subr.bf16.mxu0 %v21660_v34 }
 0x5d8   :  { %18644 = vmatmul.mubr.bf16.vlgmr.msra.gmra.mrb[52].mxu0 %v7416_v52 }
 0x5d9   :  { %18654 = vmatpush3.bf16.xpose.msra.mxu0 %v7537_v14  ;;  %18655 = vmatprep.mubr.msk.bf16.mxu0 %vm21661_vm0, %v21660_v34 }
 0x5e0   :  { %18656 = vmatmul.mubr.bf16.vlgmr.msra.gmra.mrb[56].mxu0 %v7536_v51 }
 0x63a   :  { %v7078_v53 = vpop.f32.mrb[40].mxu0 }
 0x63b   :  { %v7164_v33 = vpop.f32.mrb[40].mxu1  ;;  %v7080_v56 = vpop.f32.mrb[41].mxu0  ;;  %v18681_v15 = vadd.f32 %v7078_v53, %v4712_v17 }
 0x63c   :  { %v7166_v54 = vpop.f32.mrb[41].mxu1  ;;  %v7082_v52 = vpop.f32.mrb[42].mxu0  ;;  %v18685_v48 = vadd.f32 %v7164_v33, %v4720_v19  ;;  %v18682_v10 = vadd.f32 %v7080_v56, %v4716_v49 }
 0x63d   :  { %v18683_v18 = vadd.f32 %v7082_v52, %v4712_v17  ;;  %v7168_v31 = vpop.f32.mrb[42].mxu1  ;;  %v7084_v57 = vpop.f32.mrb[43].mxu0  ;;  %v18686_v24 = vadd.f32 %v7166_v54, %v4724_v3 }
 0x63e   :  { %v18687_v51 = vadd.f32 %v7168_v31, %v4720_v19  ;;  %v18684_v20 = vadd.f32 %v7084_v57, %v4716_v49  ;;  %v7170_v21 = vpop.f32.mrb[43].mxu1 }
 0x63f   :  { %v7175_v23 = vpack.c.bf16 %v18683_v18, %v18681_v15  ;;  %v18688_v25 = vadd.f32 %v7170_v21, %v4724_v3 }
 0x640   :  { %v7418_v62 = vpack.c.bf16 %v18687_v51, %v18685_v48  ;;  %v7298_v28 = vpack.c.bf16 %v18684_v20, %v18682_v10 }
 0x641   :  { %v7538_v29 = vpack.c.bf16 %v18688_v25, %v18686_v24  ;;  %v7251_v63 = vsel %vm7249_vm1, %v7175_v23, 0 }
 0x642   :  { %18624 = vmatpush3.bf16.msra.mxu1 %v7251_v63  ;;  %v22321_v61 = vsel %vm7249_vm1, %v7298_v28, 0  ;;  %v22324_v30 = vsel %vm7249_vm1, %v7418_v62, 0 }
 0x643   :  { %18635 = vmatprep.subr.bf16.mxu1 %v21660_v34  ;;  %v22328_v6 = vsel %vm7249_vm1, %v7538_v29, 0 }
 0x69b   :  { %v7210_v47 = vpop.f32.mrb[44].mxu0 }
 0x69c   :  { %v7217_v38 = vmul.f32 0.088388346, %v7210_v47  ;;  %v18621_v9 = vpop.f32.mrb[45].mxu0 }
 0x69d   :  { %v7213_v11 = vpop.f32.mrb[46].mxu0 }
 0x69e   :  { %v7218_v12 = vmul.f32 0.088388346, %v7213_v11  ;;  %v18622_v36 = vpop.f32.mrb[47].mxu0  ;;  %v7219_v13 = vsel %vm4283_vm2, %v7217_v38, -1e+30 }
 0x69f   :  { %v7222_v14 = vsel %vm7221_vm3, %v7219_v13, -inf }
 0x6a0   :  { %7223 = vmax.xlane.f32.xlu0 %v7222_v14  ;;  %v7220_v58 = vsel %vm4284_vm4, %v7218_v12, -1e+30 }
 0x6a1   :  { %v7226_v53 = vsel %vm7225_vm5, %v7220_v58, -inf }
 0x6a3   :  { %v7333_v17 = vpop.f32.mrb[48].mxu0 }
 0x6a4   :  { %v7340_v19 = vmul.f32 0.088388346, %v7333_v17  ;;  %7227 = vmax.xlane.f32.xlu0 %v7226_v53  ;;  %v18633_v49 = vpop.f32.mrb[49].mxu0 }
 0x6a5   :  { %v7336_v33 = vpop.f32.mrb[50].mxu0 }
 0x6a6   :  { %v7341_v56 = vmul.f32 0.088388346, %v7336_v33  ;;  %v18634_v3 = vpop.f32.mrb[51].mxu0  ;;  %v7342_v54 = vsel %vm4283_vm2, %v7340_v19, -1e+30 }
 0x6a7   :  { %v7344_v52 = vsel %vm7221_vm3, %v7342_v54, -inf }
 0x6a8   :  { %7345 = vmax.xlane.f32.xlu1 %v7344_v52  ;;  %v7343_v15 = vsel %vm4284_vm4, %v7341_v56, -1e+30 }
 0x6a9   :  { %v7347_v31 = vsel %vm7225_vm5, %v7343_v15, -inf }
 0x6ab   :  { %v7453_v18 = vpop.f32.mrb[52].mxu0 }
 0x6ac   :  { %v7460_v57 = vmul.f32 0.088388346, %v7453_v18  ;;  %7348 = vmax.xlane.f32.xlu1 %v7347_v31  ;;  %v18645_v48 = vpop.f32.mrb[53].mxu0 }
 0x6ad   :  { %v7456_v10 = vpop.f32.mrb[54].mxu0 }
 0x6ae   :  { %v7461_v51 = vmul.f32 0.088388346, %v7456_v10  ;;  %v18646_v20 = vpop.f32.mrb[55].mxu0  ;;  %v7462_v21 = vsel %vm4283_vm2, %v7460_v57, -1e+30 }
 0x6af   :  { %v7464_v24 = vsel %vm7221_vm3, %v7462_v21, -inf }
 0x6b0   :  { %7465 = vmax.xlane.f32.xlu0 %v7464_v24  ;;  %v7463_v23 = vsel %vm4284_vm4, %v7461_v51, -1e+30 }
 0x6b1   :  { %v7467_v25 = vsel %vm7225_vm5, %v7463_v23, -inf }
 0x6b2   :  { %7468 = vmax.xlane.f32.xlu1 %v7467_v25  ;;  %v20182_v25 = vld [vmem:[#allocation18] ss:$16 sps:$4 sm:$0xff]  }
 0x6b3   :  { %v7573_v62 = vpop.f32.mrb[56].mxu0 }
 0x6b4   :  { %v7580_v28 = vmul.f32 0.088388346, %v7573_v62  ;;  %v18657_v29 = vpop.f32.mrb[57].mxu0  ;;  %v20184_v62 = vld [vmem:[#allocation18 + $0x4] ss:$16 sps:$4 sm:$0xff]  }
 0x6b5   :  { %v7576_v63 = vpop.f32.mrb[58].mxu0  ;;  %8458 = vmatprep.subr.bf16.mxu0 %v20184_v62  ;;  %v20188_v29 = vld [vmem:[#allocation18 + $0x20] ss:$16 sps:$4 sm:$0xff]  }
 0x6b6   :  { %v7581_v7 = vmul.f32 0.088388346, %v7576_v63  ;;  %v18658_v41 = vpop.f32.mrb[59].mxu0  ;;  %v7582_v42 = vsel %vm4283_vm2, %v7580_v28, -1e+30  ;;  %8459 = vmatpush1.bf16.msra.mxu0 %v20182_v25 }
 0x6b7   :  { %v7584_v44 = vsel %vm7221_vm3, %v7582_v42, -inf  ;;  %v20190_v28 = vld [vmem:[#allocation18 + $0x24] ss:$16 sps:$4 sm:$0xff]   ;;  %v20185_v25 = vld [vmem:[#allocation18 + $0x8] ss:$16 sps:$4 sm:$0xff]  }
 0x6b8   :  { %7585 = vmax.xlane.f32.xlu0 %v7584_v44  ;;  %v7583_v45 = vsel %vm4284_vm4, %v7581_v7, -1e+30  ;;  %8460 = vmatprep.subr.bf16.mxu0 %v20190_v28  ;;  %v20196_v63 = vld [vmem:[#allocation18 + $0x44] ss:$16 sps:$4 sm:$0xff]   ;;  %v20194_v7 = vld [vmem:[#allocation18 + $0x40] ss:$16 sps:$4 sm:$0xff]  }
 0x6b9   :  { %v7587_v50 = vsel %vm7225_vm5, %v7583_v45, -inf  ;;  %v20202_v41 = vld [vmem:[#allocation18 + $0x64] ss:$16 sps:$4 sm:$0xff]   ;;  %v20193_v28 = vld [vmem:[#allocation18 + $0x2c] ss:$16 sps:$4 sm:$0xff]  }
 0x6ba   :  { %7588 = vmax.xlane.f32.xlu1 %v7587_v50  ;;  %8461 = vmatpush1.bf16.msra.mxu0 %v20188_v29  ;;  %v20208_v44 = vld [vmem:[#allocation18 + $0x84] ss:$16 sps:$4 sm:$0xff]   ;;  %v20199_v29 = vld [vmem:[#allocation18 + $0x4c] ss:$16 sps:$4 sm:$0xff]  }
 0x6bb   :  { %8462 = vmatprep.subr.bf16.mxu0 %v20196_v63  ;;  %v20214_v50 = vld [vmem:[#allocation18 + $0xa4] ss:$16 sps:$4 sm:$0xff]   ;;  %v20197_v63 = vld [vmem:[#allocation18 + $0x48] ss:$16 sps:$4 sm:$0xff]  }
 0x6be   :  { %8463 = vmatpush1.bf16.msra.mxu0 %v20194_v7  ;;  %v20209_v7 = vld [vmem:[#allocation18 + $0x88] ss:$16 sps:$4 sm:$0xff]  }
 0x6bf   :  { %8464 = vmatprep.subr.bf16.mxu0 %v20202_v41  ;;  %v20215_v41 = vld [vmem:[#allocation18 + $0xa8] ss:$16 sps:$4 sm:$0xff]  }
 0x72d   :  { %v7224_v35 = vpop.xlane.xlu0 %7223 }
 0x72e   :  { %v7229_v22 = vsub.f32 %v7219_v13, %v7224_v35  ;;  %v20212_v35 = vld [vmem:[#allocation18 + $0xa0] ss:$16 sps:$4 sm:$0xff]  }
 0x730   :  { %v7231_v59 = vmul.f32 1.442695, %v7229_v22  ;;  %v20220_v22 = vld [vmem:[#allocation18 + $0xc4] ss:$16 sps:$4 sm:$0xff]  }
 0x731   :  { %v7228_v60 = vpop.xlane.xlu0 %7227 }
 0x732   :  { %21142 = vpow2.f32 %v7231_v59  ;;  %v7230_v26 = vsub.f32 %v7220_v58, %v7228_v60  ;;  %v20218_v59 = vld [vmem:[#allocation18 + $0xc0] ss:$16 sps:$4 sm:$0xff]   ;;  %v20226_v60 = vld [vmem:[#allocation18 + $0xe4] ss:$16 sps:$4 sm:$0xff]  }
 0x734   :  { %v7233_v27 = vmul.f32 1.442695, %v7230_v26  ;;  %v20224_v26 = vld [vmem:[#allocation18 + $0xe0] ss:$16 sps:$4 sm:$0xff]  }
 0x735   :  { %v7346_v1 = vpop.xlane.xlu1 %7345 }
 0x736   :  { %21144 = vpow2.f32 %v7233_v27  ;;  %v7350_v2 = vsub.f32 %v7342_v54, %v7346_v1  ;;  %v20232_v27 = vld [vmem:[#allocation18 + $0x104] ss:$16 sps:$4 sm:$0xff]   ;;  %v20230_v1 = vld [vmem:[#allocation18 + $0x100] ss:$16 sps:$4 sm:$0xff]  }
 0x738   :  { %v7352_v4 = vmul.f32 1.442695, %v7350_v2  ;;  %v20238_v2 = vld [vmem:[#allocation18 + $0x124] ss:$16 sps:$4 sm:$0xff]  }
 0x739   :  { %v7349_v47 = vpop.xlane.xlu1 %7348 }
 0x73a   :  { %21146 = vpow2.f32 %v7352_v4  ;;  %v7351_v38 = vsub.f32 %v7343_v15, %v7349_v47  ;;  %v20236_v4 = vld [vmem:[#allocation18 + $0x120] ss:$16 sps:$4 sm:$0xff]   ;;  %v20244_v47 = vld [vmem:[#allocation18 + $0x144] ss:$16 sps:$4 sm:$0xff]  }
 0x73c   :  { %v22349_v9 = vpop.eup %21142  ;;  %v7354_v5 = vmul.f32 1.442695, %v7351_v38  ;;  %v20242_v38 = vld [vmem:[#allocation18 + $0x140] ss:$16 sps:$4 sm:$0xff]  }
 0x73d   :  { %v7466_v8 = vpop.xlane.xlu0 %7465  ;;  %v7235_v11 = vsel %vm7221_vm3, %v22349_v9, 0.0 }
 0x73e   :  { %21148 = vpow2.f32 %v7354_v5  ;;  %v7470_v12 = vsub.f32 %v7462_v21, %v7466_v8  ;;  %7236 = vadd.xlane.f32.xlu0 %v7235_v11 }
 0x73f   :  { %v7469_v36 = vpop.xlane.xlu1 %7468 }
 0x740   :  { %v22353_v13 = vpop.eup %21144  ;;  %v7472_v14 = vmul.f32 1.442695, %v7470_v12  ;;  %v7471_v58 = vsub.f32 %v7463_v23, %v7469_v36 }
 0x741   :  { %v7238_v17 = vsel %vm7225_vm5, %v22353_v13, 0.0 }
 0x742   :  { %21150 = vpow2.f32 %v7472_v14  ;;  %v7474_v53 = vmul.f32 1.442695, %v7471_v58  ;;  %7239 = vadd.xlane.f32.xlu1 %v7238_v17 }
 0x744   :  { %v22357_v19 = vpop.eup %21146  ;;  %21152 = vpow2.f32 %v7474_v53 }
 0x745   :  { %v7586_v49 = vpop.xlane.xlu0 %7585  ;;  %v7356_v33 = vsel %vm7221_vm3, %v22357_v19, 0.0 }
 0x746   :  { %v7590_v56 = vsub.f32 %v7582_v42, %v7586_v49  ;;  %7357 = vadd.xlane.f32.xlu0 %v7356_v33  ;;  %v20200_v42 = vld [vmem:[#allocation18 + $0x60] ss:$16 sps:$4 sm:$0xff]  }
 0x747   :  { %v7589_v3 = vpop.xlane.xlu1 %7588  ;;  %8465 = vmatpush1.bf16.msra.mxu0 %v20200_v42  ;;  %v20223_v42 = vld [vmem:[#allocation18 + $0xcc] ss:$16 sps:$4 sm:$0xff]  }
 0x748   :  { %v22361_v54 = vpop.eup %21148  ;;  %v7592_v52 = vmul.f32 1.442695, %v7590_v56  ;;  %v7591_v15 = vsub.f32 %v7583_v45, %v7589_v3  ;;  %v20206_v45 = vld [vmem:[#allocation18 + $0x80] ss:$16 sps:$4 sm:$0xff]   ;;  %8466 = vmatprep.subr.bf16.mxu0 %v20208_v44  ;;  %v20221_v44 = vld [vmem:[#allocation18 + $0xc8] ss:$16 sps:$4 sm:$0xff]  }
 0x749   :  { %v7359_v18 = vsel %vm7225_vm5, %v22361_v54, 0.0 }
 0x74a   :  { %21154 = vpow2.f32 %v7592_v52  ;;  %v7594_v31 = vmul.f32 1.442695, %v7591_v15  ;;  %7360 = vadd.xlane.f32.xlu1 %v7359_v18 }
 0x74b   :  { %8467 = vmatpush1.bf16.msra.mxu0 %v20206_v45  ;;  %v20229_v45 = vld [vmem:[#allocation18 + $0xec] ss:$16 sps:$4 sm:$0xff]  }
 0x74c   :  { %v22365_v57 = vpop.eup %21150  ;;  %21156 = vpow2.f32 %v7594_v31  ;;  %8468 = vmatprep.subr.bf16.mxu0 %v20214_v50  ;;  %v20227_v50 = vld [vmem:[#allocation18 + $0xe8] ss:$16 sps:$4 sm:$0xff]  }
 0x74d   :  { %v7476_v48 = vsel %vm7221_vm3, %v22365_v57, 0.0 }
 0x74e   :  { %v22369_v10 = vpop.eup %21152  ;;  %7477 = vadd.xlane.f32.xlu0 %v7476_v48 }
 0x74f   :  { %v7479_v51 = vsel %vm7225_vm5, %v22369_v10, 0.0  ;;  %8469 = vmatpush1.bf16.msra.mxu0 %v20212_v35  ;;  %v20235_v35 = vld [vmem:[#allocation18 + $0x10c] ss:$16 sps:$4 sm:$0xff]  }
 0x750   :  { %7480 = vadd.xlane.f32.xlu1 %v7479_v51  ;;  %8470 = vmatprep.subr.bf16.mxu0 %v20220_v22  ;;  %v20187_v51 = vld [vmem:[#allocation18 + $0xc] ss:$16 sps:$4 sm:$0xff]   ;;  %v20233_v22 = vld [vmem:[#allocation18 + $0x108] ss:$16 sps:$4 sm:$0xff]  }
 0x753   :  { %8471 = vmatpush1.bf16.msra.mxu0 %v20218_v59  ;;  %v20241_v59 = vld [vmem:[#allocation18 + $0x12c] ss:$16 sps:$4 sm:$0xff]  }
 0x754   :  { %v22373_v20 = vpop.eup %21154  ;;  %8472 = vmatprep.subr.bf16.mxu0 %v20226_v60  ;;  %v20239_v60 = vld [vmem:[#allocation18 + $0x128] ss:$16 sps:$4 sm:$0xff]  }
 0x755   :  { %v7596_v21 = vsel %vm7221_vm3, %v22373_v20, 0.0 }
 0x756   :  { %v22377_v24 = vpop.eup %21156  ;;  %7597 = vadd.xlane.f32.xlu0 %v7596_v21 }
 0x757   :  { %v7599_v23 = vsel %vm7225_vm5, %v22377_v24, 0.0  ;;  %8473 = vmatpush1.bf16.msra.mxu0 %v20224_v26  ;;  %v20247_v26 = vld [vmem:[#allocation18 + $0x14c] ss:$16 sps:$4 sm:$0xff]  }
 0x758   :  { %7600 = vadd.xlane.f32.xlu1 %v7599_v23  ;;  %8474 = vmatprep.subr.bf16.mxu0 %v20232_v27  ;;  %v20245_v27 = vld [vmem:[#allocation18 + $0x148] ss:$16 sps:$4 sm:$0xff]  }
 0x75b   :  { %8475 = vmatpush1.bf16.msra.mxu0 %v20230_v1  ;;  %v20248_v1 = vld [vmem:[#allocation18 + $0x160] ss:$16 sps:$4 sm:$0xff]  }
 0x75c   :  { %8476 = vmatprep.subr.bf16.mxu0 %v20238_v2  ;;  %v20250_v2 = vld [vmem:[#allocation18 + $0x164] ss:$16 sps:$4 sm:$0xff]  }
 0x75f   :  { %8477 = vmatpush1.bf16.msra.mxu0 %v20236_v4  ;;  %v20251_v4 = vld [vmem:[#allocation18 + $0x168] ss:$16 sps:$4 sm:$0xff]  }
 0x760   :  { %8478 = vmatprep.subr.bf16.mxu0 %v20244_v47  ;;  %v20253_v47 = vld [vmem:[#allocation18 + $0x16c] ss:$16 sps:$4 sm:$0xff]  }
 0x763   :  { %8479 = vmatpush1.bf16.msra.mxu0 %v20242_v38  ;;  %v20256_v38 = vld [vmem:[#allocation18 + $0x184] ss:$16 sps:$4 sm:$0xff]  }
 0x764   :  { %8480 = vmatprep.subr.bf16.mxu0 %v20250_v2  ;;  %v20304_v2 = vld [vmem:[#allocation18 + $0x284] ss:$16 sps:$4 sm:$0xff]  }
 0x767   :  { %8481 = vmatpush1.bf16.msra.mxu0 %v20248_v1  ;;  %v20299_v1 = vld [vmem:[#allocation18 + $0x268] ss:$16 sps:$4 sm:$0xff]  }
 0x768   :  { %8482 = vmatprep.subr.bf16.mxu0 %v20256_v38  ;;  %v20302_v38 = vld [vmem:[#allocation18 + $0x280] ss:$16 sps:$4 sm:$0xff]  }
 0x7cb   :  { %v7237_v5 = vpop.xlane.xlu0 %7236 }
 0x7cc   :  { %21158 = vrcp.f32 %v7237_v5  ;;  %v20254_v5 = vld [vmem:[#allocation18 + $0x180] ss:$16 sps:$4 sm:$0xff]  }
 0x7cd   :  { %8483 = vmatpush1.bf16.msra.mxu0 %v20254_v5 }
 0x7cf   :  { %v7240_v8 = vpop.xlane.xlu1 %7239 }
 0x7d0   :  { %21160 = vrcp.f32 %v7240_v8  ;;  %v20259_v8 = vld [vmem:[#allocation18 + $0x18c] ss:$16 sps:$4 sm:$0xff]  }
 0x7d3   :  { %v7358_v11 = vpop.xlane.xlu0 %7357 }
 0x7d4   :  { %21162 = vrcp.f32 %v7358_v11  ;;  %v20257_v11 = vld [vmem:[#allocation18 + $0x188] ss:$16 sps:$4 sm:$0xff]  }
 0x7d6   :  { %v21159_v36 = vpop.eup %21158 }
 0x7d7   :  { %v7361_v12 = vpop.xlane.xlu1 %7360  ;;  %v7243_v58 = vmul.f32 %v21159_v36, %v22349_v9  ;;  %v20262_v36 = vld [vmem:[#allocation18 + $0x1a4] ss:$16 sps:$4 sm:$0xff]  }
 0x7d8   :  { %21164 = vrcp.f32 %v7361_v12  ;;  %v20260_v12 = vld [vmem:[#allocation18 + $0x1a0] ss:$16 sps:$4 sm:$0xff]   ;;  %8484 = vmatprep.subr.bf16.mxu0 %v20262_v36 }
 0x7d9   :  { %8485 = vmatpush1.bf16.msra.mxu0 %v20260_v12  ;;  %v20313_v12 = vld [vmem:[#allocation18 + $0x2ac] ss:$16 sps:$4 sm:$0xff]   ;;  %v20308_v36 = vld [vmem:[#allocation18 + $0x2a0] ss:$16 sps:$4 sm:$0xff]  }
 0x7da   :  { %v21161_v14 = vpop.eup %21160 }
 0x7db   :  { %v7244_v17 = vmul.f32 %v21161_v14, %v22353_v13  ;;  %v7478_v53 = vpop.xlane.xlu0 %7477  ;;  %v20263_v14 = vld [vmem:[#allocation18 + $0x1a8] ss:$16 sps:$4 sm:$0xff]  }
 0x7dc   :  { %21166 = vrcp.f32 %v7478_v53  ;;  %v20266_v53 = vld [vmem:[#allocation18 + $0x1c0] ss:$16 sps:$4 sm:$0xff]  }
 0x7dd   :  { %v7481_v49 = vpop.xlane.xlu1 %7480  ;;  %v7245_v33 = vpack.c.bf16 %v7244_v17, %v7243_v58  ;;  %v20265_v58 = vld [vmem:[#allocation18 + $0x1ac] ss:$16 sps:$4 sm:$0xff]   ;;  %v20268_v17 = vld [vmem:[#allocation18 + $0x1c4] ss:$16 sps:$4 sm:$0xff]  }
 0x7de   :  { %21168 = vrcp.f32 %v7481_v49  ;;  %v21163_v56 = vpop.eup %21162  ;;  %v20271_v49 = vld [vmem:[#allocation18 + $0x1cc] ss:$16 sps:$4 sm:$0xff]   ;;  %8486 = vmatprep.subr.bf16.mxu0 %v20268_v17 }
 0x7df   :  { %18626 = vmatmul.mubr.msk.bf16.vlgmr.msra.gmra.mrb[44].mxu1 %vm7221_vm3, %v7245_v33  ;;  %v7364_v9 = vmul.f32 %v21163_v56, %v22357_v19  ;;  %v20269_v33 = vld [vmem:[#allocation18 + $0x1c8] ss:$16 sps:$4 sm:$0xff]   ;;  %8487 = vmatpush1.bf16.msra.mxu0 %v20266_v53  ;;  %v20272_v56 = vld [vmem:[#allocation18 + $0x1e0] ss:$16 sps:$4 sm:$0xff]   ;;  %v20319_v17 = vld [vmem:[#allocation18 + $0x2cc] ss:$16 sps:$4 sm:$0xff]  }
 0x7e0   :  { %18636 = vmatpush3.bf16.msra.mxu1 %v22321_v61  ;;  %18637 = vmatprep.mubr.msk.bf16.mxu1 %vm21661_vm0, %v21660_v34  ;;  %v20314_v53 = vld [vmem:[#allocation18 + $0x2c0] ss:$16 sps:$4 sm:$0xff]  }
 0x7e1   :  { %18647 = vmatprep.subr.bf16.mxu1 %v21660_v34 }
 0x7e2   :  { %v21165_v3 = vpop.eup %21164 }
 0x7e3   :  { %v7365_v13 = vmul.f32 %v21165_v3, %v22361_v54  ;;  %v7598_v52 = vpop.xlane.xlu0 %7597  ;;  %v20274_v3 = vld [vmem:[#allocation18 + $0x1e4] ss:$16 sps:$4 sm:$0xff]  }
 0x7e4   :  { %21170 = vrcp.f32 %v7598_v52  ;;  %8488 = vmatprep.subr.bf16.mxu0 %v20274_v3  ;;  %v20280_v52 = vld [vmem:[#allocation18 + $0x204] ss:$16 sps:$4 sm:$0xff]   ;;  %v20320_v3 = vld [vmem:[#allocation18 + $0x2e0] ss:$16 sps:$4 sm:$0xff]  }
 0x7e5   :  { %v7601_v15 = vpop.xlane.xlu1 %7600  ;;  %v7366_v18 = vpack.c.bf16 %v7365_v13, %v7364_v9  ;;  %v20275_v9 = vld [vmem:[#allocation18 + $0x1e8] ss:$16 sps:$4 sm:$0xff]   ;;  %v20277_v13 = vld [vmem:[#allocation18 + $0x1ec] ss:$16 sps:$4 sm:$0xff]   ;;  %8489 = vmatpush1.bf16.msra.mxu0 %v20272_v56 }
 0x7e6   :  { %21172 = vrcp.f32 %v7601_v15  ;;  %v21167_v31 = vpop.eup %21166  ;;  %v20283_v15 = vld [vmem:[#allocation18 + $0x20c] ss:$16 sps:$4 sm:$0xff]   ;;  %8501 = vmatprep.subr.bf16.mxu0 %v20280_v52 }
 0x7e7   :  { %18638 = vmatmul.mubr.msk.bf16.vlgmr.msra.gmra.mrb[48].mxu1 %vm7221_vm3, %v7366_v18  ;;  %v7484_v19 = vmul.f32 %v21167_v31, %v22365_v57  ;;  %v20191_v57 = vld [vmem:[#allocation18 + $0x28] ss:$16 sps:$4 sm:$0xff]   ;;  %v20325_v56 = vld [vmem:[#allocation18 + $0x2ec] ss:$16 sps:$4 sm:$0xff]  }
 0x7e8   :  { %v21169_v48 = vpop.eup %21168  ;;  %18648 = vmatpush3.bf16.msra.mxu1 %v22324_v30  ;;  %18649 = vmatprep.mubr.msk.bf16.mxu1 %vm21661_vm0, %v21660_v34  ;;  %v20331_v52 = vld [vmem:[#allocation18 + $0x30c] ss:$16 sps:$4 sm:$0xff]  }
 0x7e9   :  { %v7485_v61 = vmul.f32 %v21169_v48, %v22369_v10  ;;  %18659 = vmatprep.subr.bf16.mxu1 %v21660_v34 }
 0x7eb   :  { %v7486_v54 = vpack.c.bf16 %v7485_v61, %v7484_v19 }
 0x7ee   :  { %v21171_v21 = vpop.eup %21170 }
 0x7ef   :  { %18650 = vmatmul.mubr.msk.bf16.vlgmr.msra.gmra.mrb[52].mxu1 %vm7221_vm3, %v7486_v54  ;;  %v7604_v10 = vmul.f32 %v21171_v21, %v22373_v20  ;;  %v20217_v20 = vld [vmem:[#allocation18 + $0xac] ss:$16 sps:$4 sm:$0xff]  }
 0x7f0   :  { %v21173_v23 = vpop.eup %21172  ;;  %18660 = vmatpush3.bf16.msra.mxu1 %v22328_v6  ;;  %18661 = vmatprep.mubr.msk.bf16.mxu1 %vm21661_vm0, %v21660_v34  ;;  %v20205_v6 = vld [vmem:[#allocation18 + $0x6c] ss:$16 sps:$4 sm:$0xff]   ;;  %v20203_v34 = vld [vmem:[#allocation18 + $0x68] ss:$16 sps:$4 sm:$0xff]  }
 0x7f1   :  { %v7605_v30 = vmul.f32 %v21173_v23, %v22377_v24  ;;  %8544 = vmatprep.subr.bf16.mxu1 %v20187_v51  ;;  %v20211_v24 = vld [vmem:[#allocation18 + $0x8c] ss:$16 sps:$4 sm:$0xff]  }
 0x7f3   :  { %v7606_v62 = vpack.c.bf16 %v7605_v30, %v7604_v10 }
 0x7f7   :  { %18662 = vmatmul.mubr.msk.bf16.vlgmr.msra.gmra.mrb[56].mxu1 %vm7221_vm3, %v7606_v62 }
 0x7f8   :  { %8545 = vmatpush1.bf16.msra.mxu1 %v20185_v25 }
 0x7f9   :  { %8546 = vmatprep.subr.bf16.mxu1 %v20193_v28 }
 0x7fc   :  { %8547 = vmatpush1.bf16.msra.mxu1 %v20191_v57 }
 0x7fd   :  { %8548 = vmatprep.subr.bf16.mxu1 %v20199_v29  ;;  %v20278_v29 = vld [vmem:[#allocation18 + $0x200] ss:$16 sps:$4 sm:$0xff]  }
 0x800   :  { %8549 = vmatpush1.bf16.msra.mxu1 %v20197_v63  ;;  %v20281_v63 = vld [vmem:[#allocation18 + $0x208] ss:$16 sps:$4 sm:$0xff]  }
 0x801   :  { %8550 = vmatprep.subr.bf16.mxu1 %v20205_v6 }
 0x804   :  { %8551 = vmatpush1.bf16.msra.mxu1 %v20203_v34  ;;  %v20286_v34 = vld [vmem:[#allocation18 + $0x224] ss:$16 sps:$4 sm:$0xff]  }
 0x805   :  { %8552 = vmatprep.subr.bf16.mxu1 %v20211_v24  ;;  %v20289_v24 = vld [vmem:[#allocation18 + $0x22c] ss:$16 sps:$4 sm:$0xff]  }
 0x808   :  { %8553 = vmatpush1.bf16.msra.mxu1 %v20209_v7  ;;  %v20284_v7 = vld [vmem:[#allocation18 + $0x220] ss:$16 sps:$4 sm:$0xff]  }
 0x809   :  { %8554 = vmatprep.subr.bf16.mxu1 %v20217_v20  ;;  %v20287_v20 = vld [vmem:[#allocation18 + $0x228] ss:$16 sps:$4 sm:$0xff]  }
 0x80c   :  { %8555 = vmatpush1.bf16.msra.mxu1 %v20215_v41 }
 0x80d   :  { %8556 = vmatprep.subr.bf16.mxu1 %v20223_v42  ;;  %v20292_v42 = vld [vmem:[#allocation18 + $0x244] ss:$16 sps:$4 sm:$0xff]  }
 0x810   :  { %8557 = vmatpush1.bf16.msra.mxu1 %v20221_v44  ;;  %v20295_v44 = vld [vmem:[#allocation18 + $0x24c] ss:$16 sps:$4 sm:$0xff]  }
 0x811   :  { %8558 = vmatprep.subr.bf16.mxu1 %v20229_v45 }
 0x814   :  { %8559 = vmatpush1.bf16.msra.mxu1 %v20227_v50 }
 0x815   :  { %8560 = vmatprep.subr.bf16.mxu1 %v20235_v35 }
 0x818   :  { %8561 = vmatpush1.bf16.msra.mxu1 %v20233_v22  ;;  %v20290_v22 = vld [vmem:[#allocation18 + $0x240] ss:$16 sps:$4 sm:$0xff]  }
 0x819   :  { %8562 = vmatprep.subr.bf16.mxu1 %v20241_v59  ;;  %v20293_v59 = vld [vmem:[#allocation18 + $0x248] ss:$16 sps:$4 sm:$0xff]  }
 0x81c   :  { %8563 = vmatpush1.bf16.msra.mxu1 %v20239_v60  ;;  %v20298_v60 = vld [vmem:[#allocation18 + $0x264] ss:$16 sps:$4 sm:$0xff]  }
 0x81d   :  { %8564 = vmatprep.subr.bf16.mxu1 %v20247_v26  ;;  %v20301_v26 = vld [vmem:[#allocation18 + $0x26c] ss:$16 sps:$4 sm:$0xff]  }
 0x820   :  { %8565 = vmatpush1.bf16.msra.mxu1 %v20245_v27  ;;  %v20296_v27 = vld [vmem:[#allocation18 + $0x260] ss:$16 sps:$4 sm:$0xff]  }
 0x821   :  { %8566 = vmatprep.subr.bf16.mxu1 %v20253_v47 }
 0x824   :  { %8567 = vmatpush1.bf16.msra.mxu1 %v20251_v4  ;;  %v20307_v4 = vld [vmem:[#allocation18 + $0x28c] ss:$16 sps:$4 sm:$0xff]  }
 0x825   :  { %8568 = vmatprep.subr.bf16.mxu1 %v20259_v8  ;;  %v20305_v8 = vld [vmem:[#allocation18 + $0x288] ss:$16 sps:$4 sm:$0xff]  }
 0x828   :  { %8569 = vmatpush1.bf16.msra.mxu1 %v20257_v11  ;;  %v20310_v11 = vld [vmem:[#allocation18 + $0x2a4] ss:$16 sps:$4 sm:$0xff]  }
 0x829   :  { %8570 = vmatprep.subr.bf16.mxu1 %v20265_v58  ;;  %v20316_v58 = vld [vmem:[#allocation18 + $0x2c4] ss:$16 sps:$4 sm:$0xff]  }
 0x82c   :  { %8571 = vmatpush1.bf16.msra.mxu1 %v20263_v14  ;;  %v20311_v14 = vld [vmem:[#allocation18 + $0x2a8] ss:$16 sps:$4 sm:$0xff]  }
 0x82d   :  { %8572 = vmatprep.subr.bf16.mxu1 %v20271_v49  ;;  %v20317_v49 = vld [vmem:[#allocation18 + $0x2c8] ss:$16 sps:$4 sm:$0xff]  }
 0x830   :  { %8573 = vmatpush1.bf16.msra.mxu1 %v20269_v33  ;;  %v20322_v33 = vld [vmem:[#allocation18 + $0x2e4] ss:$16 sps:$4 sm:$0xff]  }
 0x831   :  { %8574 = vmatprep.subr.bf16.mxu1 %v20277_v13  ;;  %v20328_v13 = vld [vmem:[#allocation18 + $0x304] ss:$16 sps:$4 sm:$0xff]  }
 0x834   :  { %8575 = vmatpush1.bf16.msra.mxu1 %v20275_v9  ;;  %v20323_v9 = vld [vmem:[#allocation18 + $0x2e8] ss:$16 sps:$4 sm:$0xff]  }
 0x835   :  { %8587 = vmatprep.subr.bf16.mxu1 %v20283_v15  ;;  %v20326_v15 = vld [vmem:[#allocation18 + $0x300] ss:$16 sps:$4 sm:$0xff]  }
 0x8b2   :  { %v7287_v18 = vpop.f32.mrb[44].mxu1 }
 0x8b3   :  { %v18627_v31 = vpop.f32.mrb[45].mxu1 }
 0x8b4   :  { %v7290_v48 = vpop.f32.mrb[46].mxu1  ;;  %v20334_v31 = vld [vmem:[#allocation18 + $0x324] ss:$16 sps:$4 sm:$0xff]  }
 0x8b5   :  { %7295 = vst [vmem:[#allocation3 + $0x20] sm:$0x3f] %v7290_v48  ;;  %v18628_v61 = vpop.f32.mrb[47].mxu1  ;;  %v20337_v48 = vld [vmem:[#allocation18 + $0x32c] ss:$16 sps:$4 sm:$0xff]  }
 0x8b6   :  { %v20332_v61 = vld [vmem:[#allocation18 + $0x320] ss:$16 sps:$4 sm:$0xff]  }
 0x8ba   :  { %v7407_v19 = vpop.f32.mrb[48].mxu1 }
 0x8bb   :  { %v18639_v54 = vpop.f32.mrb[49].mxu1 }
 0x8bc   :  { %v7410_v51 = vpop.f32.mrb[50].mxu1  ;;  %v7660_v10 = vld [vmem:[#allocation3 + $0x20] sm:$0x3f]  ;;  %v20340_v54 = vld [vmem:[#allocation18 + $0x344] ss:$16 sps:$4 sm:$0xff]  }
 0x8bd   :  { %7415 = vst [vmem:[#allocation3 + $0x28] sm:$0x3f] %v7410_v51  ;;  %v18640_v21 = vpop.f32.mrb[51].mxu1  ;;  %v7664_v6 = vpack.c.bf16 %v7660_v10, %v7287_v18  ;;  %v20329_v18 = vld [vmem:[#allocation18 + $0x308] ss:$16 sps:$4 sm:$0xff]  }
 0x8be   :  { %v20343_v51 = vld [vmem:[#allocation18 + $0x34c] ss:$16 sps:$4 sm:$0xff]   ;;  %v20338_v21 = vld [vmem:[#allocation18 + $0x340] ss:$16 sps:$4 sm:$0xff]   ;;  %v20346_v10 = vld [vmem:[#allocation18 + $0x364] ss:$16 sps:$4 sm:$0xff]  }
 0x8c2   :  { %v22404_v23 = vpop.f32.mrb[52].mxu1 }
 0x8c3   :  { %v18651_v30 = vpop.f32.mrb[53].mxu1 }
 0x8c4   :  { %v7530_v25 = vpop.f32.mrb[54].mxu1  ;;  %v7661_v62 = vld [vmem:[#allocation3 + $0x28] sm:$0x3f] }
 0x8c5   :  { %7535 = vst [vmem:[#allocation3 + $0x30] sm:$0x3f] %v7530_v25  ;;  %v18652_v28 = vpop.f32.mrb[55].mxu1  ;;  %v7665_v57 = vpack.c.bf16 %v7661_v62, %v7407_v19  ;;  %v20335_v19 = vld [vmem:[#allocation18 + $0x328] ss:$16 sps:$4 sm:$0xff]  }
 0x8c6   :  { %v20341_v30 = vld [vmem:[#allocation18 + $0x348] ss:$16 sps:$4 sm:$0xff]   ;;  %v20349_v25 = vld [vmem:[#allocation18 + $0x36c] ss:$16 sps:$4 sm:$0xff]   ;;  %v20344_v62 = vld [vmem:[#allocation18 + $0x360] ss:$16 sps:$4 sm:$0xff]  }
 0x8c7   :  { %8490 = vmatprep.mubr.bf16.mxu0 %v7665_v57  ;;  %8576 = vmatprep.mubr.bf16.mxu1 %v7665_v57  ;;  %v20347_v28 = vld [vmem:[#allocation18 + $0x368] ss:$16 sps:$4 sm:$0xff]   ;;  %v20352_v57 = vld [vmem:[#allocation18 + $0x384] ss:$16 sps:$4 sm:$0xff]  }
 0x8c8   :  { %8491 = vmatmul.mubr.bf16.vlgmr.msra.gmra.mrb[60].mxu0 %v7664_v6  ;;  %8577 = vmatmul.mubr.bf16.vlgmr.msra.gmra.mrb[60].mxu1 %v7664_v6  ;;  %v20353_v6 = vld [vmem:[#allocation18 + $0x388] ss:$16 sps:$4 sm:$0xff]  }
 0x8c9   :  { %8502 = vmatpush1.bf16.msra.mxu0 %v20278_v29  ;;  %8588 = vmatpush1.bf16.msra.mxu1 %v20281_v63  ;;  %v20355_v29 = vld [vmem:[#allocation18 + $0x38c] ss:$16 sps:$4 sm:$0xff]   ;;  %v20350_v63 = vld [vmem:[#allocation18 + $0x380] ss:$16 sps:$4 sm:$0xff]  }
 0x8ca   :  { %v7647_v41 = vpop.f32.mrb[56].mxu1  ;;  %8503 = vmatprep.subr.bf16.mxu0 %v20286_v34  ;;  %8589 = vmatprep.subr.bf16.mxu1 %v20289_v24  ;;  %v20358_v34 = vld [vmem:[#allocation18 + $0x3a4] ss:$16 sps:$4 sm:$0xff]   ;;  %v20361_v24 = vld [vmem:[#allocation18 + $0x3ac] ss:$16 sps:$4 sm:$0xff]  }
 0x8cb   :  { %v18663_v45 = vpop.f32.mrb[57].mxu1 }
 0x8cc   :  { %v7650_v50 = vpop.f32.mrb[58].mxu1  ;;  %v20365_v45 = vld [vmem:[#allocation18 + $0x3c8] ss:$16 sps:$4 sm:$0xff]  }
 0x8cd   :  { %7655 = vst [vmem:[#allocation3 + $0x38] sm:$0x3f] %v7650_v50  ;;  %8504 = vmatpush1.bf16.msra.mxu0 %v20284_v7  ;;  %8590 = vmatpush1.bf16.msra.mxu1 %v20287_v20  ;;  %v18664_v35 = vpop.f32.mrb[59].mxu1  ;;  %v20356_v7 = vld [vmem:[#allocation18 + $0x3a0] ss:$16 sps:$4 sm:$0xff]  }
 0x8ce   :  { %8505 = vmatprep.subr.bf16.mxu0 %v20292_v42  ;;  %8591 = vmatprep.subr.bf16.mxu1 %v20295_v44  ;;  %v20359_v20 = vld [vmem:[#allocation18 + $0x3a8] ss:$16 sps:$4 sm:$0xff]   ;;  %v20367_v42 = vld [vmem:[#allocation18 + $0x3cc] ss:$16 sps:$4 sm:$0xff]   ;;  %v20362_v44 = vld [vmem:[#allocation18 + $0x3c0] ss:$16 sps:$4 sm:$0xff]  }
 0x8cf   :  { %v20370_v50 = vld [vmem:[#allocation18 + $0x3e4] ss:$16 sps:$4 sm:$0xff]   ;;  %v20373_v35 = vld [vmem:[#allocation18 + $0x3ec] ss:$16 sps:$4 sm:$0xff]  }
 0x8d1   :  { %8506 = vmatpush1.bf16.msra.mxu0 %v20290_v22  ;;  %8592 = vmatpush1.bf16.msra.mxu1 %v20293_v59  ;;  %v20368_v22 = vld [vmem:[#allocation18 + $0x3e0] ss:$16 sps:$4 sm:$0xff]   ;;  %v20371_v59 = vld [vmem:[#allocation18 + $0x3e8] ss:$16 sps:$4 sm:$0xff]  }
 0x8d2   :  { %8507 = vmatprep.subr.bf16.mxu0 %v20298_v60  ;;  %8593 = vmatprep.subr.bf16.mxu1 %v20301_v26  ;;  %v7662_v60 = vld [vmem:[#allocation3 + $0x30] sm:$0x3f] }
 0x8d3   :  { %v7666_v26 = vpack.c.bf16 %v7662_v60, %v22404_v23  ;;  %v8780_v60 = vld [vmem:[#allocation24 + $0x80] sm:$0xff] }
 0x8d4   :  { %v7663_v47 = vld [vmem:[#allocation3 + $0x38] sm:$0x3f] }
 0x8d5   :  { %8508 = vmatpush1.bf16.msra.mxu0 %v20296_v27  ;;  %8594 = vmatpush1.bf16.msra.mxu1 %v20299_v1  ;;  %v7667_v5 = vpack.c.bf16 %v7663_v47, %v7647_v41  ;;  %v20364_v41 = vld [vmem:[#allocation18 + $0x3c4] ss:$16 sps:$4 sm:$0xff]   ;;  %v7796_v27 = vld [vmem:[#allocation20] sm:$0xf] }
 0x8d6   :  { %8509 = vmatprep.subr.bf16.mxu0 %v20304_v2  ;;  %8595 = vmatprep.subr.bf16.mxu1 %v20307_v4  ;;  %v7801_v1 = vrot.slane %v7796_v27, %v22093_v43  ;;  %v7809_v2 = vrot.slane %v7796_v27, %v22151_v32  ;;  %v7805_v4 = vrot.slane %v7796_v27, %v22096_v46 }
 0x8d7   :  { %8533 = vmatprep.mubr.bf16.mxu0 %v7667_v5  ;;  %8619 = vmatprep.mubr.bf16.mxu1 %v7667_v5  ;;  %v7813_v5 = vrot.slane %v7796_v27, %v22154_v55 }
 0x8d9   :  { %8510 = vmatpush1.bf16.msra.mxu0 %v20302_v38  ;;  %8596 = vmatpush1.bf16.msra.mxu1 %v20305_v8 }
 0x8da   :  { %8511 = vmatprep.subr.bf16.mxu0 %v20310_v11  ;;  %8597 = vmatprep.subr.bf16.mxu1 %v20313_v12 }
 0x8dd   :  { %8512 = vmatpush1.bf16.msra.mxu0 %v20308_v36  ;;  %8598 = vmatpush1.bf16.msra.mxu1 %v20311_v14 }
 0x8de   :  { %8513 = vmatprep.subr.bf16.mxu0 %v20316_v58  ;;  %8599 = vmatprep.subr.bf16.mxu1 %v20319_v17  ;;  %v21187_v17 = vld [vmem:[#allocation2] sm:$0xff] }
 0x8e1   :  { %8514 = vmatpush1.bf16.msra.mxu0 %v20314_v53  ;;  %8600 = vmatpush1.bf16.msra.mxu1 %v20317_v49 }
 0x8e2   :  { %8515 = vmatprep.subr.bf16.mxu0 %v20322_v33  ;;  %8601 = vmatprep.subr.bf16.mxu1 %v20325_v56 }
 0x8e5   :  { %8516 = vmatpush1.bf16.msra.mxu0 %v20320_v3  ;;  %8602 = vmatpush1.bf16.msra.mxu1 %v20323_v9  ;;  %v21188_v9 = vld [vmem:[#allocation2 + $0x8] sm:$0xff] }
 0x8e6   :  { %8517 = vmatprep.subr.bf16.mxu0 %v20328_v13  ;;  %8603 = vmatprep.subr.bf16.mxu1 %v20331_v52 }
 0x8e9   :  { %8518 = vmatpush1.bf16.msra.mxu0 %v20326_v15  ;;  %8604 = vmatpush1.bf16.msra.mxu1 %v20329_v18 }
 0x8ea   :  { %8519 = vmatprep.subr.bf16.mxu0 %v20334_v31  ;;  %8605 = vmatprep.subr.bf16.mxu1 %v20337_v48  ;;  %v21189_v31 = vld [vmem:[#allocation2 + $0x20] sm:$0x3f] }
 0x8ed   :  { %8520 = vmatpush1.bf16.msra.mxu0 %v20332_v61  ;;  %8606 = vmatpush1.bf16.msra.mxu1 %v20335_v19  ;;  %v21190_v61 = vld [vmem:[#allocation2 + $0x10] sm:$0xff] }
 0x8ee   :  { %8521 = vmatprep.subr.bf16.mxu0 %v20340_v54  ;;  %8607 = vmatprep.subr.bf16.mxu1 %v20343_v51  ;;  %v21191_v51 = vld [vmem:[#allocation2 + $0x30] sm:$0x3f] }
 0x8f1   :  { %8522 = vmatpush1.bf16.msra.mxu0 %v20338_v21  ;;  %8608 = vmatpush1.bf16.msra.mxu1 %v20341_v30  ;;  %v21192_v30 = vld [vmem:[#allocation2 + $0x28] sm:$0x3f] }
 0x8f2   :  { %8523 = vmatprep.subr.bf16.mxu0 %v20346_v10  ;;  %8609 = vmatprep.subr.bf16.mxu1 %v20349_v25 }
 0x8f5   :  { %8524 = vmatpush1.bf16.msra.mxu0 %v20344_v62  ;;  %8610 = vmatpush1.bf16.msra.mxu1 %v20347_v28  ;;  %v21193_v62 = vld [vmem:[#allocation2 + $0x18] sm:$0xff] }
 0x8f6   :  { %8525 = vmatprep.subr.bf16.mxu0 %v20352_v57  ;;  %8611 = vmatprep.subr.bf16.mxu1 %v20355_v29  ;;  %v21194_v29 = vld [vmem:[#allocation2 + $0x38] sm:$0x3f] }
 0x8f9   :  { %8526 = vmatpush1.bf16.msra.mxu0 %v20350_v63  ;;  %8612 = vmatpush1.bf16.msra.mxu1 %v20353_v6 }
 0x8fa   :  { %8527 = vmatprep.subr.bf16.mxu0 %v20358_v34  ;;  %8613 = vmatprep.subr.bf16.mxu1 %v20361_v24 }
 0x8fd   :  { %8528 = vmatpush1.bf16.msra.mxu0 %v20356_v7  ;;  %8614 = vmatpush1.bf16.msra.mxu1 %v20359_v20 }
 0x8fe   :  { %8529 = vmatprep.subr.bf16.mxu0 %v20364_v41  ;;  %8615 = vmatprep.subr.bf16.mxu1 %v20367_v42 }
 0x901   :  { %8530 = vmatpush1.bf16.msra.mxu0 %v20362_v44  ;;  %8616 = vmatpush1.bf16.msra.mxu1 %v20365_v45  ;;  %v8764_v44 = vld [vmem:[#allocation24] sm:$0xff] }
 0x902   :  { %8531 = vmatprep.subr.bf16.mxu0 %v20370_v50  ;;  %8617 = vmatprep.subr.bf16.mxu1 %v20373_v35  ;;  %v8772_v45 = vld [vmem:[#allocation24 + $0x40] sm:$0xff]  ;;  %v8765_v50 = vld [vmem:[#allocation24 + $0x8] sm:$0xff] }
 0x903   :  { %v17577_v35 = vcombine.low %v8764_v44, %v8772_v45 }
 0x905   :  { %8532 = vmatpush1.bf16.msra.mxu0 %v20368_v22  ;;  %8618 = vmatpush1.bf16.msra.mxu1 %v20371_v59  ;;  %v17578_v22 = vcombine.high %v8764_v44, %v8772_v45  ;;  %v8773_v59 = vld [vmem:[#allocation24 + $0x48] sm:$0xff]  ;;  %v8868_v44 = vld [vmem:[#allocation24 + $0x340] sm:$0xff] }
 0x906   :  { %v17579_v27 = vcombine.low %v8765_v50, %v8773_v59  ;;  %v8861_v45 = vld [vmem:[#allocation24 + $0x308] sm:$0xff] }
 0x907   :  { %11920 = vmatprep.subr.bf16.mxu0 %v17578_v22 }
 0x908   :  { %8534 = vmatmul.mubr.bf16.vlgmr.msra.gmra.mrb[60].mxu0 %v7666_v26  ;;  %8620 = vmatmul.mubr.bf16.vlgmr.msra.gmra.mrb[60].mxu1 %v7666_v26  ;;  %v8788_v26 = vld [vmem:[#allocation24 + $0xc0] sm:$0xff] }
 0x909   :  { %11921 = vmatpush1.bf16.msra.mxu0 %v17577_v35 }
 0x9db   :  { %v8535_v47 = vpop.f32.mrb[60].mxu0  ;;  %v8621_v38 = vpop.f32.mrb[60].mxu1 }
 0x9dc   :  { %v18689_v8 = vadd.f32 %v8535_v47, %v7801_v1  ;;  %v8537_v11 = vpop.f32.mrb[61].mxu0  ;;  %v8623_v12 = vpop.f32.mrb[61].mxu1  ;;  %v18693_v36 = vadd.f32 %v8621_v38, %v7809_v2  ;;  %v8789_v47 = vld [vmem:[#allocation24 + $0xc8] sm:$0xff]  ;;  %v8796_v38 = vld [vmem:[#allocation24 + $0x100] sm:$0xff] }
 0x9dd   :  { %v18690_v14 = vadd.f32 %v8537_v11, %v7805_v4  ;;  %v8539_v58 = vpop.f32.mrb[62].mxu0  ;;  %v8625_v23 = vpop.f32.mrb[62].mxu1  ;;  %v18694_v52 = vadd.f32 %v8623_v12, %v7813_v5  ;;  %v8797_v11 = vld [vmem:[#allocation24 + $0x108] sm:$0xff] }
 0x9de   :  { %v22411_v53 = vadd.f32 %v21187_v17, %v18689_v8  ;;  %v18691_v49 = vadd.f32 %v8539_v58, %v7801_v1  ;;  %v18695_v33 = vadd.f32 %v8625_v23, %v7809_v2  ;;  %v8541_v56 = vpop.f32.mrb[63].mxu0  ;;  %v8627_v3 = vpop.f32.mrb[63].mxu1  ;;  %v22417_v19 = vadd.f32 %v21190_v61, %v18693_v36  ;;  %v8804_v8 = vld [vmem:[#allocation24 + $0x140] sm:$0xff]  ;;  %v8805_v12 = vld [vmem:[#allocation24 + $0x148] sm:$0xff] }
 0x9df   :  { %v22413_v13 = vadd.f32 %v21188_v9, %v18690_v14  ;;  %v18692_v15 = vadd.f32 %v8541_v56, %v7805_v4  ;;  %v18696_v18 = vadd.f32 %v8627_v3, %v7813_v5  ;;  %v22427_v28 = vadd.f32 %v21193_v62, %v18694_v52  ;;  %v8781_v4 = vld [vmem:[#allocation24 + $0x88] sm:$0xff]  ;;  %v8812_v17 = vld [vmem:[#allocation24 + $0x180] sm:$0xff] }
 0x9e0   :  { %v22415_v48 = vadd.f32 %v21189_v31, %v18691_v49  ;;  %v22421_v21 = vadd.f32 %v21191_v51, %v18695_v33  ;;  %v17580_v1 = vcombine.high %v8765_v50, %v8773_v59  ;;  %v17594_v2 = vcombine.high %v8780_v60, %v8788_v26  ;;  %v8820_v49 = vld [vmem:[#allocation24 + $0x1c0] sm:$0xff]  ;;  %v8813_v33 = vld [vmem:[#allocation24 + $0x188] sm:$0xff] }
 0x9e1   :  { %v8640_v54 = vadd.f32 %v22413_v13, %v22411_v53  ;;  %v22423_v10 = vadd.f32 %v21192_v30, %v18692_v15  ;;  %v22431_v63 = vadd.f32 %v21194_v29, %v18696_v18  ;;  %v17596_v5 = vcombine.high %v8781_v4, %v8789_v47  ;;  %v8821_v56 = vld [vmem:[#allocation24 + $0x1c8] sm:$0xff]  ;;  %v8828_v18 = vld [vmem:[#allocation24 + $0x200] sm:$0xff] }
 0x9e2   :  { %v8646_v25 = vsel %vm8645_vm6, %v22415_v48, 0.0  ;;  %v8649_v7 = vsel %vm8645_vm6, %v22421_v21, 0.0  ;;  %12006 = vmatprep.subr.bf16.mxu1 %v17580_v1  ;;  %v17593_v36 = vcombine.low %v8780_v60, %v8788_v26  ;;  %11922 = vmatprep.subr.bf16.mxu0 %v17594_v2  ;;  %v17595_v14 = vcombine.low %v8781_v4, %v8789_v47  ;;  %v8836_v31 = vld [vmem:[#allocation24 + $0x240] sm:$0xff]  ;;  %v8829_v61 = vld [vmem:[#allocation24 + $0x208] sm:$0xff] }
 0x9e3   :  { %v8647_v57 = vsel %vm8645_vm6, %v22423_v10, 0.0  ;;  %v8641_v6 = vadd.f32 %v8640_v54, %v22417_v19  ;;  %v8651_v41 = vsel %vm8645_vm6, %v22431_v63, 0.0  ;;  %12007 = vmatpush1.bf16.msra.mxu1 %v17579_v27  ;;  %v17610_v58 = vcombine.high %v8796_v38, %v8804_v8  ;;  %v8837_v54 = vld [vmem:[#allocation24 + $0x248] sm:$0xff]  ;;  %v8852_v29 = vld [vmem:[#allocation24 + $0x2c0] sm:$0xff] }
 0x9e4   :  { %v8648_v34 = vadd.f32 %v8647_v57, %v8646_v25  ;;  %12008 = vmatprep.subr.bf16.mxu1 %v17596_v5  ;;  %v17612_v23 = vcombine.high %v8797_v11, %v8805_v12  ;;  %11923 = vmatpush1.bf16.msra.mxu0 %v17593_v36  ;;  %v17609_v3 = vcombine.low %v8796_v38, %v8804_v8  ;;  %v8844_v57 = vld [vmem:[#allocation24 + $0x280] sm:$0xff]  ;;  %v8869_v50 = vld [vmem:[#allocation24 + $0x348] sm:$0xff] }
 0x9e5   :  { %v8642_v24 = vadd.f32 %v8641_v6, %v22427_v28  ;;  %11924 = vmatprep.subr.bf16.mxu0 %v17610_v58  ;;  %v17611_v9 = vcombine.low %v8797_v11, %v8805_v12  ;;  %v17626_v52 = vcombine.high %v8812_v17, %v8820_v49  ;;  %v17628_v15 = vcombine.high %v8813_v33, %v8821_v56  ;;  %v8845_v6 = vld [vmem:[#allocation24 + $0x288] sm:$0xff]  ;;  %v8876_v26 = vld [vmem:[#allocation24 + $0x380] sm:$0xff] }
 0x9e6   :  { %v8650_v20 = vadd.f32 %v8649_v7, %v8648_v34  ;;  %v17625_v51 = vcombine.low %v8812_v17, %v8820_v49  ;;  %v17627_v30 = vcombine.low %v8813_v33, %v8821_v56  ;;  %v17642_v25 = vcombine.high %v8828_v18, %v8836_v31  ;;  %v8853_v34 = vld [vmem:[#allocation24 + $0x2c8] sm:$0xff]  ;;  %v8884_v27 = vld [vmem:[#allocation24 + $0x3c0] sm:$0xff] }
 0x9e7   :  { %8643 = vadd.xlane.f32.xlu1 %v8642_v24  ;;  %12009 = vmatpush1.bf16.msra.mxu1 %v17595_v14  ;;  %v17644_v62 = vcombine.high %v8829_v61, %v8837_v54  ;;  %v17641_v24 = vcombine.low %v8828_v18, %v8836_v31  ;;  %v17643_v7 = vcombine.low %v8829_v61, %v8837_v54  ;;  %v8877_v1 = vld [vmem:[#allocation24 + $0x388] sm:$0xff]  ;;  %v8892_v8 = vld [vmem:[#allocation24 + $0x400] sm:$0xff] }
 0x9e8   :  { %v8652_v42 = vadd.f32 %v8651_v41, %v8650_v20  ;;  %12010 = vmatprep.subr.bf16.mxu1 %v17612_v23  ;;  %11925 = vmatpush1.bf16.msra.mxu0 %v17609_v3  ;;  %v17658_v20 = vcombine.high %v8844_v57, %v8852_v29  ;;  %v17660_v41 = vcombine.high %v8845_v6, %v8853_v34  ;;  %v8885_v2 = vld [vmem:[#allocation24 + $0x3c8] sm:$0xff]  ;;  %v8900_v11 = vld [vmem:[#allocation24 + $0x440] sm:$0xff] }
 0x9e9   :  { %11926 = vmatprep.subr.bf16.mxu0 %v17626_v52  ;;  %v17657_v35 = vcombine.low %v8844_v57, %v8852_v29  ;;  %v17659_v22 = vcombine.low %v8845_v6, %v8853_v34  ;;  %v17676_v60 = vcombine.high %v8861_v45, %v8869_v50  ;;  %v17675_v47 = vcombine.low %v8861_v45, %v8869_v50  ;;  %v8893_v12 = vld [vmem:[#allocation24 + $0x408] sm:$0xff]  ;;  %v8908_v49 = vld [vmem:[#allocation24 + $0x480] sm:$0xff] }
 0x9ea   :  { %8653 = vadd.xlane.f32.xlu0 %v8652_v42  ;;  %v8860_v42 = vld [vmem:[#allocation24 + $0x300] sm:$0xff]  ;;  %v17690_v38 = vcombine.high %v8876_v26, %v8884_v27  ;;  %v17692_v5 = vcombine.high %v8877_v1, %v8885_v2  ;;  %v8901_v36 = vld [vmem:[#allocation24 + $0x448] sm:$0xff]  ;;  %v17689_v14 = vcombine.low %v8876_v26, %v8884_v27  ;;  %v17691_v58 = vcombine.low %v8877_v1, %v8885_v2 }
 0x9eb   :  { %12011 = vmatpush1.bf16.msra.mxu1 %v17611_v9  ;;  %v17674_v59 = vcombine.high %v8860_v42, %v8868_v44  ;;  %v17673_v4 = vcombine.low %v8860_v42, %v8868_v44  ;;  %v17706_v23 = vcombine.high %v8892_v8, %v8900_v11  ;;  %v17708_v17 = vcombine.high %v8893_v12, %v8901_v36  ;;  %v8916_v33 = vld [vmem:[#allocation24 + $0x4c0] sm:$0xff]  ;;  %v8909_v56 = vld [vmem:[#allocation24 + $0x488] sm:$0xff] }
 0x9ec   :  { %12012 = vmatprep.subr.bf16.mxu1 %v17628_v15  ;;  %11927 = vmatpush1.bf16.msra.mxu0 %v17625_v51  ;;  %v8917_v3 = vld [vmem:[#allocation24 + $0x4c8] sm:$0xff]  ;;  %v17705_v9 = vcombine.low %v8892_v8, %v8900_v11  ;;  %v17707_v52 = vcombine.low %v8893_v12, %v8901_v36  ;;  %v17722_v15 = vcombine.high %v8908_v49, %v8916_v33  ;;  %v8924_v27 = vld [vmem:[#allocation24 + $0x500] sm:$0xff] }
 0x9ed   :  { %11928 = vmatprep.subr.bf16.mxu0 %v17642_v25  ;;  %v17724_v18 = vcombine.high %v8909_v56, %v8917_v3  ;;  %v17721_v31 = vcombine.low %v8908_v49, %v8916_v33  ;;  %v17723_v61 = vcombine.low %v8909_v56, %v8917_v3  ;;  %v8932_v1 = vld [vmem:[#allocation24 + $0x540] sm:$0xff]  ;;  %v8925_v2 = vld [vmem:[#allocation24 + $0x508] sm:$0xff] }
 0x9ee   :  { %v8940_v11 = vld [vmem:[#allocation24 + $0x580] sm:$0xff]  ;;  %v8941_v36 = vld [vmem:[#allocation24 + $0x588] sm:$0xff] }
 0x9ef   :  { %12013 = vmatpush1.bf16.msra.mxu1 %v17627_v30  ;;  %v8948_v12 = vld [vmem:[#allocation24 + $0x5c0] sm:$0xff]  ;;  %v8957_v3 = vld [vmem:[#allocation24 + $0x608] sm:$0xff] }
 0x9f0   :  { %12014 = vmatprep.subr.bf16.mxu1 %v17644_v62  ;;  %11929 = vmatpush1.bf16.msra.mxu0 %v17641_v24  ;;  %v8956_v33 = vld [vmem:[#allocation24 + $0x600] sm:$0xff] }
 0x9f1   :  { %11930 = vmatprep.subr.bf16.mxu0 %v17658_v20  ;;  %v8964_v56 = vld [vmem:[#allocation24 + $0x640] sm:$0xff] }
 0x9f3   :  { %12015 = vmatpush1.bf16.msra.mxu1 %v17643_v7 }
 0x9f4   :  { %12016 = vmatprep.subr.bf16.mxu1 %v17660_v41  ;;  %11931 = vmatpush1.bf16.msra.mxu0 %v17657_v35 }
 0x9f5   :  { %11932 = vmatprep.subr.bf16.mxu0 %v17674_v59 }
 0x9f7   :  { %12017 = vmatpush1.bf16.msra.mxu1 %v17659_v22 }
 0x9f8   :  { %12018 = vmatprep.subr.bf16.mxu1 %v17676_v60  ;;  %11933 = vmatpush1.bf16.msra.mxu0 %v17673_v4  ;;  %v17738_v4 = vcombine.high %v8924_v27, %v8932_v1 }
 0x9f9   :  { %11934 = vmatprep.subr.bf16.mxu0 %v17690_v38  ;;  %v17737_v38 = vcombine.low %v8924_v27, %v8932_v1  ;;  %v22483_v1 = vld [vmem:[#allocation24 + $0x800] sm:$0xff] }
 0x9fb   :  { %12019 = vmatpush1.bf16.msra.mxu1 %v17675_v47  ;;  %v8933_v47 = vld [vmem:[#allocation24 + $0x548] sm:$0xff] }
 0x9fc   :  { %12020 = vmatprep.subr.bf16.mxu1 %v17692_v5  ;;  %11935 = vmatpush1.bf16.msra.mxu0 %v17689_v14  ;;  %v17739_v5 = vcombine.low %v8925_v2, %v8933_v47  ;;  %v17740_v8 = vcombine.high %v8925_v2, %v8933_v47  ;;  %v17754_v14 = vcombine.high %v8940_v11, %v8948_v12  ;;  %v22485_v2 = vld [vmem:[#allocation24 + $0x840] sm:$0xff] }
 0x9fd   :  { %11936 = vmatprep.subr.bf16.mxu0 %v17706_v23  ;;  %v17753_v23 = vcombine.low %v8940_v11, %v8948_v12  ;;  %v17834_v47 = vcombine.high %v22483_v1, %v22485_v2 }
 0x9ff   :  { %12021 = vmatpush1.bf16.msra.mxu1 %v17691_v58  ;;  %v8949_v58 = vld [vmem:[#allocation24 + $0x5c8] sm:$0xff] }
 0xa00   :  { %12022 = vmatprep.subr.bf16.mxu1 %v17708_v17  ;;  %11937 = vmatpush1.bf16.msra.mxu0 %v17705_v9  ;;  %v17755_v17 = vcombine.low %v8941_v36, %v8949_v58  ;;  %v17756_v49 = vcombine.high %v8941_v36, %v8949_v58  ;;  %v17769_v9 = vcombine.low %v8956_v33, %v8964_v56 }
 0xa01   :  { %11938 = vmatprep.subr.bf16.mxu0 %v17722_v15  ;;  %v8965_v15 = vld [vmem:[#allocation24 + $0x648] sm:$0xff] }
 0xa03   :  { %12023 = vmatpush1.bf16.msra.mxu1 %v17707_v52  ;;  %v17770_v52 = vcombine.high %v8956_v33, %v8964_v56  ;;  %v8639_v33 = vld [vmem:[#allocation23] sm:$0xf] }
 0xa04   :  { %12024 = vmatprep.subr.bf16.mxu1 %v17724_v18  ;;  %11939 = vmatpush1.bf16.msra.mxu0 %v17721_v31  ;;  %v8972_v18 = vld [vmem:[#allocation24 + $0x680] sm:$0xff] }
 0xa05   :  { %11940 = vmatprep.subr.bf16.mxu0 %v17738_v4  ;;  %v8980_v31 = vld [vmem:[#allocation24 + $0x6c0] sm:$0xff]  ;;  %v22487_v4 = vld [vmem:[#allocation24 + $0x808] sm:$0xff] }
 0xa07   :  { %12025 = vmatpush1.bf16.msra.mxu1 %v17723_v61  ;;  %v17771_v61 = vcombine.low %v8957_v3, %v8965_v15 }
 0xa08   :  { %12026 = vmatprep.subr.bf16.mxu1 %v17740_v8  ;;  %11941 = vmatpush1.bf16.msra.mxu0 %v17737_v38  ;;  %v22491_v38 = vld [vmem:[#allocation24 + $0x848] sm:$0xff] }
 0xa09   :  { %11942 = vmatprep.subr.bf16.mxu0 %v17754_v14  ;;  %v17835_v8 = vcombine.low %v22487_v4, %v22491_v38  ;;  %v17836_v11 = vcombine.high %v22487_v4, %v22491_v38 }
 0xa0b   :  { %12027 = vmatpush1.bf16.msra.mxu1 %v17739_v5  ;;  %v17833_v5 = vcombine.low %v22483_v1, %v22485_v2 }
 0xa0c   :  { %12028 = vmatprep.subr.bf16.mxu1 %v17756_v49  ;;  %11943 = vmatpush1.bf16.msra.mxu0 %v17753_v23  ;;  %v8638_v49 = vld [vmem:[#allocation21] sm:$0xf] }
 0xa0d   :  { %11944 = vmatprep.subr.bf16.mxu0 %v17770_v52  ;;  %v8714_v56 = vrot.slane %v8638_v49, %v22151_v32 }
 0xa0f   :  { %12029 = vmatpush1.bf16.msra.mxu1 %v17755_v17 }
 0xa10   :  { %11945 = vmatpush1.bf16.msra.mxu0 %v17769_v9  ;;  %v8710_v9 = vrot.slane %v8638_v49, %v22096_v46 }
 0xa74   :  { %v8644_v54 = vpop.xlane.xlu1 %8643 }
 0xa75   :  { %v8656_v51 = vmul.f32 0.001953125, %v8644_v54  ;;  %v17772_v54 = vcombine.high %v8957_v3, %v8965_v15 }
 0xa77   :  { %v22440_v30 = vsub.f32 %v22411_v53, %v8656_v51  ;;  %v22443_v25 = vsub.f32 %v22413_v13, %v8656_v51  ;;  %v8654_v62 = vpop.xlane.xlu0 %8653  ;;  %v22446_v57 = vsub.f32 %v22417_v19, %v8656_v51  ;;  %v22449_v6 = vsub.f32 %v22427_v28, %v8656_v51  ;;  %12030 = vmatprep.subr.bf16.mxu1 %v17772_v54 }
 0xa78   :  { %v8657_v29 = vmul.f32 0.001953125, %v8654_v62  ;;  %v17786_v51 = vcombine.high %v8972_v18, %v8980_v31  ;;  %v8973_v62 = vld [vmem:[#allocation24 + $0x688] sm:$0xff]  ;;  %12031 = vmatpush1.bf16.msra.mxu1 %v17771_v61  ;;  %v8743_v61 = vrot.slane %v8639_v33, %v22151_v32 }
 0xa79   :  { %v8666_v34 = vmul.f32 %v22440_v30, %v22440_v30  ;;  %v8667_v24 = vmul.f32 %v22443_v25, %v22443_v25  ;;  %v8668_v28 = vmul.f32 %v22446_v57, %v22446_v57 }
 0xa7a   :  { %v22456_v53 = vsub.f32 %v22415_v48, %v8657_v29  ;;  %v22459_v13 = vsub.f32 %v22423_v10, %v8657_v29  ;;  %v22462_v7 = vsub.f32 %v22421_v21, %v8657_v29  ;;  %v22465_v19 = vsub.f32 %v22431_v63, %v8657_v29  ;;  %v8981_v29 = vld [vmem:[#allocation24 + $0x6c8] sm:$0xff]  ;;  %11946 = vmatprep.subr.bf16.mxu0 %v17786_v51 }
 0xa7b   :  { %v8674_v20 = vadd.f32 %v8667_v24, %v8666_v34  ;;  %v8669_v21 = vmul.f32 %v22449_v6, %v22449_v6  ;;  %v17788_v34 = vcombine.high %v8973_v62, %v8981_v29  ;;  %v8988_v24 = vld [vmem:[#allocation24 + $0x700] sm:$0xff] }
 0xa7c   :  { %v8670_v41 = vmul.f32 %v22456_v53, %v22456_v53  ;;  %v8671_v48 = vmul.f32 %v22459_v13, %v22459_v13  ;;  %v8672_v10 = vmul.f32 %v22462_v7, %v22462_v7  ;;  %v8673_v63 = vmul.f32 %v22465_v19, %v22465_v19 }
 0xa7d   :  { %v8675_v42 = vadd.f32 %v8674_v20, %v8668_v28  ;;  %v8996_v28 = vld [vmem:[#allocation24 + $0x740] sm:$0xff]  ;;  %v8989_v20 = vld [vmem:[#allocation24 + $0x708] sm:$0xff]  ;;  %12032 = vmatprep.subr.bf16.mxu1 %v17788_v34 }
 0xa7e   :  { %v8679_v44 = vsel %vm8645_vm6, %v8670_v41, 0.0  ;;  %v8680_v45 = vsel %vm8645_vm6, %v8671_v48, 0.0  ;;  %v8682_v22 = vsel %vm8645_vm6, %v8672_v10, 0.0  ;;  %v8684_v60 = vsel %vm8645_vm6, %v8673_v63, 0.0  ;;  %v8997_v41 = vld [vmem:[#allocation24 + $0x748] sm:$0xff]  ;;  %v9004_v63 = vld [vmem:[#allocation24 + $0x780] sm:$0xff] }
 0xa7f   :  { %v8676_v50 = vadd.f32 %v8675_v42, %v8669_v21  ;;  %v8681_v35 = vadd.f32 %v8680_v45, %v8679_v44  ;;  %v17785_v48 = vcombine.low %v8972_v18, %v8980_v31  ;;  %v17787_v10 = vcombine.low %v8973_v62, %v8981_v29  ;;  %v9012_v44 = vld [vmem:[#allocation24 + $0x7c0] sm:$0xff]  ;;  %v9005_v45 = vld [vmem:[#allocation24 + $0x788] sm:$0xff] }
 0xa80   :  { %v17802_v21 = vcombine.high %v8988_v24, %v8996_v28  ;;  %v17804_v42 = vcombine.high %v8989_v20, %v8997_v41  ;;  %v8706_v18 = vrot.slane %v8638_v49, %v22093_v43  ;;  %v8739_v62 = vrot.slane %v8639_v33, %v22096_v46 }
 0xa81   :  { %8677 = vadd.xlane.f32.xlu0 %v8676_v50  ;;  %v8683_v59 = vadd.f32 %v8682_v22, %v8681_v35  ;;  %v9013_v50 = vld [vmem:[#allocation24 + $0x7c8] sm:$0xff]  ;;  %11947 = vmatpush1.bf16.msra.mxu0 %v17785_v48  ;;  %v17801_v35 = vcombine.low %v8988_v24, %v8996_v28  ;;  %v17803_v22 = vcombine.low %v8989_v20, %v8997_v41 }
 0xa82   :  { %12033 = vmatpush1.bf16.msra.mxu1 %v17787_v10  ;;  %11948 = vmatprep.subr.bf16.mxu0 %v17802_v21  ;;  %v17819_v27 = vcombine.low %v9005_v45, %v9013_v50  ;;  %v8735_v29 = vrot.slane %v8639_v33, %v22093_v43  ;;  %v8718_v24 = vrot.slane %v8638_v49, %v22154_v55 }
 0xa83   :  { %v8685_v26 = vadd.f32 %v8684_v60, %v8683_v59  ;;  %v17818_v59 = vcombine.high %v9004_v63, %v9012_v44  ;;  %12034 = vmatprep.subr.bf16.mxu1 %v17804_v42  ;;  %v17820_v60 = vcombine.high %v9005_v45, %v9013_v50 }
 0xa85   :  { %8686 = vadd.xlane.f32.xlu1 %v8685_v26  ;;  %11949 = vmatpush1.bf16.msra.mxu0 %v17801_v35  ;;  %v17817_v26 = vcombine.low %v9004_v63, %v9012_v44 }
 0xa86   :  { %12035 = vmatpush1.bf16.msra.mxu1 %v17803_v22  ;;  %11950 = vmatprep.subr.bf16.mxu0 %v17818_v59  ;;  %v9045_v59 = vld [vmem:[#allocation24 + $0x8c8] sm:$0xff] }
 0xa87   :  { %12036 = vmatprep.subr.bf16.mxu1 %v17820_v60 }
 0xa89   :  { %11951 = vmatpush1.bf16.msra.mxu0 %v17817_v26 }
 0xa8a   :  { %12037 = vmatpush1.bf16.msra.mxu1 %v17819_v27  ;;  %11963 = vmatprep.subr.bf16.mxu0 %v17834_v47 }
 0xa8b   :  { %12049 = vmatprep.subr.bf16.mxu1 %v17836_v11  ;;  %v9052_v11 = vld [vmem:[#allocation24 + $0x900] sm:$0xff] }
 0xb0e   :  { %v8678_v12 = vpop.xlane.xlu0 %8677 }
 0xb0f   :  { %v8688_v36 = vmul.f32 0.001953125, %v8678_v12 }
 0xb11   :  { %v8690_v14 = vadd.f32 1e-05, %v8688_v36 }
 0xb12   :  { %v8687_v58 = vpop.xlane.xlu1 %8686 }
 0xb13   :  { %21174 = vrsqrt.f32 %v8690_v14  ;;  %v8689_v23 = vmul.f32 0.001953125, %v8687_v58  ;;  %v9060_v14 = vld [vmem:[#allocation24 + $0x940] sm:$0xff]  ;;  %v9053_v58 = vld [vmem:[#allocation24 + $0x908] sm:$0xff] }
 0xb14   :  { %v17865_v1 = vcombine.low %v9052_v11, %v9060_v14 }
 0xb15   :  { %v8691_v17 = vadd.f32 1e-05, %v8689_v23  ;;  %v9061_v23 = vld [vmem:[#allocation24 + $0x948] sm:$0xff] }
 0xb16   :  { %v17867_v2 = vcombine.low %v9053_v58, %v9061_v23 }
 0xb17   :  { %21176 = vrsqrt.f32 %v8691_v17 }
 0xb1d   :  { %v21175_v3 = vpop.eup %21174 }
 0xb1e   :  { %v8695_v52 = vmul.f32 %v21175_v3, %v22443_v25  ;;  %v8694_v15 = vmul.f32 %v21175_v3, %v22440_v30  ;;  %v8696_v31 = vmul.f32 %v21175_v3, %v22446_v57  ;;  %v8697_v34 = vmul.f32 %v21175_v3, %v22449_v6 }
 0xb1f   :  { %v8747_v6 = vrot.slane %v8639_v33, %v22154_v55  ;;  %v17868_v3 = vcombine.high %v9053_v58, %v9061_v23  ;;  %v9156_v58 = vld [vmem:[#allocation24 + $0xc40] sm:$0xff]  ;;  %v9149_v23 = vld [vmem:[#allocation24 + $0xc08] sm:$0xff] }
 0xb20   :  { %v8725_v54 = vmul.f32 %v8714_v56, %v8696_v31  ;;  %v8724_v28 = vmul.f32 %v8710_v9, %v8695_v52  ;;  %v8723_v20 = vmul.f32 %v8706_v18, %v8694_v15  ;;  %v8726_v42 = vmul.f32 %v8718_v24, %v8697_v34  ;;  %v9076_v52 = vld [vmem:[#allocation24 + $0x9c0] sm:$0xff]  ;;  %v9069_v15 = vld [vmem:[#allocation24 + $0x988] sm:$0xff] }
 0xb21   :  { %v21177_v51 = vpop.eup %21176  ;;  %v9085_v31 = vld [vmem:[#allocation24 + $0xa08] sm:$0xff]  ;;  %v9100_v34 = vld [vmem:[#allocation24 + $0xa80] sm:$0xff] }
 0xb22   :  { %v8699_v25 = vmul.f32 %v21177_v51, %v22459_v13  ;;  %v8698_v30 = vmul.f32 %v21177_v51, %v22456_v53  ;;  %v8701_v57 = vmul.f32 %v21177_v51, %v22465_v19  ;;  %v8700_v41 = vmul.f32 %v21177_v51, %v22462_v7  ;;  %v9036_v53 = vld [vmem:[#allocation24 + $0x880] sm:$0xff]  ;;  %v9037_v7 = vld [vmem:[#allocation24 + $0x888] sm:$0xff] }
 0xb23   :  { %v22514_v48 = vadd.f32 %v8743_v61, %v8725_v54  ;;  %v8753_v45 = vadd.f32 %v8739_v62, %v8724_v28  ;;  %v8752_v13 = vadd.f32 %v8735_v29, %v8723_v20  ;;  %v9044_v19 = vld [vmem:[#allocation24 + $0x8c0] sm:$0xff]  ;;  %v8755_v47 = vadd.f32 %v8747_v6, %v8726_v42  ;;  %v9109_v28 = vld [vmem:[#allocation24 + $0xac8] sm:$0xff] }
 0xb24   :  { %v8728_v10 = vmul.f32 %v8710_v9, %v8699_v25  ;;  %v8727_v21 = vmul.f32 %v8706_v18, %v8698_v30  ;;  %v8730_v63 = vmul.f32 %v8718_v24, %v8701_v57  ;;  %v8729_v44 = vmul.f32 %v8714_v56, %v8700_v41  ;;  %v9068_v9 = vld [vmem:[#allocation24 + $0x980] sm:$0xff]  ;;  %v9077_v18 = vld [vmem:[#allocation24 + $0x9c8] sm:$0xff] }
 0xb25   :  { %v17850_v12 = vcombine.high %v9036_v53, %v9044_v19  ;;  %v17852_v36 = vcombine.high %v9037_v7, %v9045_v59  ;;  %v17849_v49 = vcombine.low %v9036_v53, %v9044_v19  ;;  %v17851_v33 = vcombine.low %v9037_v7, %v9045_v59  ;;  %v9108_v24 = vld [vmem:[#allocation24 + $0xac0] sm:$0xff]  ;;  %v9101_v25 = vld [vmem:[#allocation24 + $0xa88] sm:$0xff] }
 0xb26   :  { %v22517_v50 = vadd.f32 %v8739_v62, %v8728_v10  ;;  %v22519_v35 = vadd.f32 %v8735_v29, %v8727_v21  ;;  %v22521_v22 = vadd.f32 %v8747_v6, %v8730_v63  ;;  %v22523_v60 = vadd.f32 %v8743_v61, %v8729_v44  ;;  %v9093_v61 = vld [vmem:[#allocation24 + $0xa48] sm:$0xff]  ;;  %v9116_v10 = vld [vmem:[#allocation24 + $0xb00] sm:$0xff] }
 0xb27   :  { %v17866_v56 = vcombine.high %v9052_v11, %v9060_v14  ;;  %v17882_v4 = vcombine.high %v9068_v9, %v9076_v52  ;;  %v17884_v38 = vcombine.high %v9069_v15, %v9077_v18  ;;  %v17881_v54 = vcombine.low %v9068_v9, %v9076_v52  ;;  %v9124_v21 = vld [vmem:[#allocation24 + $0xb40] sm:$0xff]  ;;  %v9117_v42 = vld [vmem:[#allocation24 + $0xb08] sm:$0xff] }
 0xb28   :  { %v22526_v26 = vpack.c.bf16 %v22517_v50, %v8753_v45  ;;  %v22529_v27 = vpack.c.bf16 %v22519_v35, %v8752_v13  ;;  %v22536_v17 = vpack.c.bf16 %v22521_v22, %v8755_v47  ;;  %v17883_v51 = vcombine.low %v9069_v15, %v9077_v18  ;;  %v9125_v63 = vld [vmem:[#allocation24 + $0xb48] sm:$0xff]  ;;  %v9132_v53 = vld [vmem:[#allocation24 + $0xb80] sm:$0xff] }
 0xb29   :  { %v17900_v29 = vcombine.high %v9085_v31, %v9093_v61  ;;  %v17899_v20 = vcombine.low %v9085_v31, %v9093_v61  ;;  %v17914_v57 = vcombine.high %v9100_v34, %v9108_v24  ;;  %v17916_v41 = vcombine.high %v9101_v25, %v9109_v28  ;;  %v9140_v19 = vld [vmem:[#allocation24 + $0xbc0] sm:$0xff]  ;;  %v9133_v7 = vld [vmem:[#allocation24 + $0xb88] sm:$0xff] }
 0xb2a   :  { %11952 = vmatprep.mubr.bf16.mxu0 %v22526_v26  ;;  %12038 = vmatprep.mubr.bf16.mxu1 %v22526_v26  ;;  %v17913_v6 = vcombine.low %v9100_v34, %v9108_v24  ;;  %v17915_v44 = vcombine.low %v9101_v25, %v9109_v28  ;;  %v17930_v45 = vcombine.high %v9116_v10, %v9124_v21  ;;  %v9141_v59 = vld [vmem:[#allocation24 + $0xbc8] sm:$0xff]  ;;  %v9148_v14 = vld [vmem:[#allocation24 + $0xc00] sm:$0xff] }
 0xb2b   :  { %11953 = vmatmul.mubr.bf16.vlgmr.msra.gmra.mrb[64].mxu0 %v22529_v27  ;;  %12039 = vmatmul.mubr.bf16.vlgmr.msra.gmra.mrb[64].mxu1 %v22529_v27  ;;  %v17932_v13 = vcombine.high %v9117_v42, %v9125_v63  ;;  %v17929_v47 = vcombine.low %v9116_v10, %v9124_v21  ;;  %v17931_v11 = vcombine.low %v9117_v42, %v9125_v63  ;;  %v9164_v52 = vld [vmem:[#allocation24 + $0xc80] sm:$0xff]  ;;  %v9165_v18 = vld [vmem:[#allocation24 + $0xc88] sm:$0xff] }
 0xb2c   :  { %11964 = vmatpush1.bf16.msra.mxu0 %v17833_v5  ;;  %12050 = vmatpush1.bf16.msra.mxu1 %v17835_v8  ;;  %v9084_v5 = vld [vmem:[#allocation24 + $0xa00] sm:$0xff]  ;;  %v9181_v61 = vld [vmem:[#allocation24 + $0xd08] sm:$0xff] }
 0xb2d   :  { %11995 = vmatprep.mubr.bf16.mxu0 %v22536_v17  ;;  %12081 = vmatprep.mubr.bf16.mxu1 %v22536_v17  ;;  %v9092_v8 = vld [vmem:[#allocation24 + $0xa40] sm:$0xff]  ;;  %v9197_v28 = vld [vmem:[#allocation24 + $0xd88] sm:$0xff] }
 0xb2e   :  { %11965 = vmatprep.subr.bf16.mxu0 %v17850_v12  ;;  %12051 = vmatprep.subr.bf16.mxu1 %v17852_v36  ;;  %v17898_v62 = vcombine.high %v9084_v5, %v9092_v8  ;;  %v17897_v30 = vcombine.low %v9084_v5, %v9092_v8  ;;  %v17946_v12 = vcombine.high %v9132_v53, %v9140_v19  ;;  %v9172_v15 = vld [vmem:[#allocation24 + $0xcc0] sm:$0xff]  ;;  %v9213_v63 = vld [vmem:[#allocation24 + $0xe08] sm:$0xff] }
 0xb2f   :  { %v17948_v36 = vcombine.high %v9133_v7, %v9141_v59  ;;  %v9180_v8 = vld [vmem:[#allocation24 + $0xd00] sm:$0xff] }
 0xb30   :  { %11966 = vmatpush1.bf16.msra.mxu0 %v17849_v49  ;;  %12052 = vmatpush1.bf16.msra.mxu1 %v17851_v33  ;;  %v9157_v49 = vld [vmem:[#allocation24 + $0xc48] sm:$0xff]  ;;  %v17945_v33 = vcombine.low %v9132_v53, %v9140_v19  ;;  %v9188_v31 = vld [vmem:[#allocation24 + $0xd40] sm:$0xff] }
 0xb31   :  { %11967 = vmatprep.subr.bf16.mxu0 %v17866_v56  ;;  %12053 = vmatprep.subr.bf16.mxu1 %v17868_v3  ;;  %v17947_v56 = vcombine.low %v9133_v7, %v9141_v59  ;;  %v17962_v3 = vcombine.high %v9148_v14, %v9156_v58  ;;  %v17964_v9 = vcombine.high %v9149_v23, %v9157_v49  ;;  %v9196_v24 = vld [vmem:[#allocation24 + $0xd80] sm:$0xff]  ;;  %v9229_v59 = vld [vmem:[#allocation24 + $0xe88] sm:$0xff] }
 0xb32   :  { %v9204_v25 = vld [vmem:[#allocation24 + $0xdc0] sm:$0xff] }
 0xb33   :  { %v9212_v21 = vld [vmem:[#allocation24 + $0xe00] sm:$0xff] }
 0xb34   :  { %11968 = vmatpush1.bf16.msra.mxu0 %v17865_v1  ;;  %12054 = vmatpush1.bf16.msra.mxu1 %v17867_v2  ;;  %v9173_v1 = vld [vmem:[#allocation24 + $0xcc8] sm:$0xff]  ;;  %v17961_v2 = vcombine.low %v9148_v14, %v9156_v58  ;;  %v9220_v42 = vld [vmem:[#allocation24 + $0xe40] sm:$0xff] }
 0xb35   :  { %11969 = vmatprep.subr.bf16.mxu0 %v17882_v4  ;;  %12055 = vmatprep.subr.bf16.mxu1 %v17884_v38  ;;  %v17963_v4 = vcombine.low %v9149_v23, %v9157_v49  ;;  %v17978_v38 = vcombine.high %v9164_v52, %v9172_v15  ;;  %v17980_v5 = vcombine.high %v9165_v18, %v9173_v1  ;;  %v9228_v19 = vld [vmem:[#allocation24 + $0xe80] sm:$0xff]  ;;  %v9245_v49 = vld [vmem:[#allocation24 + $0xf08] sm:$0xff] }
 0xb36   :  { %v9236_v7 = vld [vmem:[#allocation24 + $0xec0] sm:$0xff] }
 0xb37   :  { %v9244_v58 = vld [vmem:[#allocation24 + $0xf00] sm:$0xff] }
 0xb38   :  { %11970 = vmatpush1.bf16.msra.mxu0 %v17881_v54  ;;  %12056 = vmatpush1.bf16.msra.mxu1 %v17883_v51  ;;  %v9189_v54 = vld [vmem:[#allocation24 + $0xd48] sm:$0xff]  ;;  %v17977_v51 = vcombine.low %v9164_v52, %v9172_v15  ;;  %v9252_v23 = vld [vmem:[#allocation24 + $0xf40] sm:$0xff] }
 0xb39   :  { %11971 = vmatprep.subr.bf16.mxu0 %v17898_v62  ;;  %12057 = vmatprep.subr.bf16.mxu1 %v17900_v29  ;;  %v17979_v62 = vcombine.low %v9165_v18, %v9173_v1  ;;  %v17994_v29 = vcombine.high %v9180_v8, %v9188_v31  ;;  %v17996_v34 = vcombine.high %v9181_v61, %v9189_v54  ;;  %v9260_v15 = vld [vmem:[#allocation24 + $0xf80] sm:$0xff]  ;;  %v9261_v1 = vld [vmem:[#allocation24 + $0xf88] sm:$0xff] }
 0xb3a   :  { %v9268_v18 = vld [vmem:[#allocation24 + $0xfc0] sm:$0xff] }
 0xb3c   :  { %11972 = vmatpush1.bf16.msra.mxu0 %v17897_v30  ;;  %12058 = vmatpush1.bf16.msra.mxu1 %v17899_v20  ;;  %v9205_v30 = vld [vmem:[#allocation24 + $0xdc8] sm:$0xff]  ;;  %v17993_v20 = vcombine.low %v9180_v8, %v9188_v31  ;;  %v8766_v31 = vld [vmem:[#allocation24 + $0x10] sm:$0xff] }
 0xb3d   :  { %11973 = vmatprep.subr.bf16.mxu0 %v17914_v57  ;;  %12059 = vmatprep.subr.bf16.mxu1 %v17916_v41  ;;  %v17995_v57 = vcombine.low %v9181_v61, %v9189_v54  ;;  %v18010_v41 = vcombine.high %v9196_v24, %v9204_v25  ;;  %v18012_v10 = vcombine.high %v9197_v28, %v9205_v30  ;;  %v8774_v61 = vld [vmem:[#allocation24 + $0x50] sm:$0xff]  ;;  %v8767_v54 = vld [vmem:[#allocation24 + $0x18] sm:$0xff] }
 0xb40   :  { %11974 = vmatpush1.bf16.msra.mxu0 %v17913_v6  ;;  %12060 = vmatpush1.bf16.msra.mxu1 %v17915_v44  ;;  %v9221_v6 = vld [vmem:[#allocation24 + $0xe48] sm:$0xff]  ;;  %v18009_v44 = vcombine.low %v9196_v24, %v9204_v25  ;;  %v8782_v25 = vld [vmem:[#allocation24 + $0x90] sm:$0xff] }
 0xb41   :  { %11975 = vmatprep.subr.bf16.mxu0 %v17930_v45  ;;  %12061 = vmatprep.subr.bf16.mxu1 %v17932_v13  ;;  %v18011_v45 = vcombine.low %v9197_v28, %v9205_v30  ;;  %v18026_v13 = vcombine.high %v9212_v21, %v9220_v42  ;;  %v18028_v53 = vcombine.high %v9213_v63, %v9221_v6  ;;  %v8790_v28 = vld [vmem:[#allocation24 + $0xd0] sm:$0xff]  ;;  %v8783_v30 = vld [vmem:[#allocation24 + $0x98] sm:$0xff] }
 0xb44   :  { %11976 = vmatpush1.bf16.msra.mxu0 %v17929_v47  ;;  %12062 = vmatpush1.bf16.msra.mxu1 %v17931_v11  ;;  %v9237_v47 = vld [vmem:[#allocation24 + $0xec8] sm:$0xff]  ;;  %v18025_v11 = vcombine.low %v9212_v21, %v9220_v42  ;;  %v17598_v21 = vcombine.high %v8782_v25, %v8790_v28 }
 0xb45   :  { %11977 = vmatprep.subr.bf16.mxu0 %v17946_v12  ;;  %12063 = vmatprep.subr.bf16.mxu1 %v17948_v36  ;;  %v18027_v12 = vcombine.low %v9213_v63, %v9221_v6  ;;  %v18042_v36 = vcombine.high %v9228_v19, %v9236_v7  ;;  %v18044_v14 = vcombine.high %v9229_v59, %v9237_v47  ;;  %v8798_v63 = vld [vmem:[#allocation24 + $0x110] sm:$0xff] }
 0xb46   :  { %v8806_v6 = vld [vmem:[#allocation24 + $0x150] sm:$0xff] }
 0xb48   :  { %11978 = vmatpush1.bf16.msra.mxu0 %v17945_v33  ;;  %12064 = vmatpush1.bf16.msra.mxu1 %v17947_v56  ;;  %v9253_v33 = vld [vmem:[#allocation24 + $0xf48] sm:$0xff]  ;;  %v18041_v56 = vcombine.low %v9228_v19, %v9236_v7  ;;  %v8814_v7 = vld [vmem:[#allocation24 + $0x190] sm:$0xff] }
 0xb49   :  { %11979 = vmatprep.subr.bf16.mxu0 %v17962_v3  ;;  %12065 = vmatprep.subr.bf16.mxu1 %v17964_v9  ;;  %v18043_v3 = vcombine.low %v9229_v59, %v9237_v47  ;;  %v18058_v9 = vcombine.high %v9244_v58, %v9252_v23  ;;  %v18060_v52 = vcombine.high %v9245_v49, %v9253_v33  ;;  %v8822_v59 = vld [vmem:[#allocation24 + $0x1d0] sm:$0xff]  ;;  %v8815_v47 = vld [vmem:[#allocation24 + $0x198] sm:$0xff] }
 0xb4c   :  { %11980 = vmatpush1.bf16.msra.mxu0 %v17961_v2  ;;  %12066 = vmatpush1.bf16.msra.mxu1 %v17963_v4  ;;  %v9269_v2 = vld [vmem:[#allocation24 + $0xfc8] sm:$0xff]  ;;  %v18057_v4 = vcombine.low %v9244_v58, %v9252_v23  ;;  %v8830_v23 = vld [vmem:[#allocation24 + $0x210] sm:$0xff] }
 0xb4d   :  { %11981 = vmatprep.subr.bf16.mxu0 %v17978_v38  ;;  %12067 = vmatprep.subr.bf16.mxu1 %v17980_v5  ;;  %v18059_v38 = vcombine.low %v9245_v49, %v9253_v33  ;;  %v18074_v5 = vcombine.high %v9260_v15, %v9268_v18  ;;  %v18076_v8 = vcombine.high %v9261_v1, %v9269_v2  ;;  %v8838_v49 = vld [vmem:[#allocation24 + $0x250] sm:$0xff]  ;;  %v8831_v33 = vld [vmem:[#allocation24 + $0x218] sm:$0xff] }
 0xb50   :  { %11982 = vmatpush1.bf16.msra.mxu0 %v17977_v51  ;;  %12068 = vmatpush1.bf16.msra.mxu1 %v17979_v62  ;;  %v8775_v51 = vld [vmem:[#allocation24 + $0x58] sm:$0xff]  ;;  %v18073_v62 = vcombine.low %v9260_v15, %v9268_v18  ;;  %v8846_v18 = vld [vmem:[#allocation24 + $0x290] sm:$0xff] }
 0xb51   :  { %11983 = vmatprep.subr.bf16.mxu0 %v17994_v29  ;;  %12069 = vmatprep.subr.bf16.mxu1 %v17996_v34  ;;  %v18075_v29 = vcombine.low %v9261_v1, %v9269_v2  ;;  %v17582_v34 = vcombine.high %v8766_v31, %v8774_v61  ;;  %v17584_v24 = vcombine.high %v8767_v54, %v8775_v51  ;;  %v8854_v1 = vld [vmem:[#allocation24 + $0x2d0] sm:$0xff]  ;;  %v8847_v2 = vld [vmem:[#allocation24 + $0x298] sm:$0xff] }
 0xb54   :  { %11984 = vmatpush1.bf16.msra.mxu0 %v17993_v20  ;;  %12070 = vmatpush1.bf16.msra.mxu1 %v17995_v57  ;;  %v8791_v20 = vld [vmem:[#allocation24 + $0xd8] sm:$0xff]  ;;  %v17581_v57 = vcombine.low %v8766_v31, %v8774_v61  ;;  %v8862_v61 = vld [vmem:[#allocation24 + $0x310] sm:$0xff] }
 0xb55   :  { %11985 = vmatprep.subr.bf16.mxu0 %v18010_v41  ;;  %12071 = vmatprep.subr.bf16.mxu1 %v18012_v10  ;;  %v22548_v41 = vpack.c.bf16 %v22523_v60, %v22514_v48  ;;  %v17583_v10 = vcombine.low %v8767_v54, %v8775_v51  ;;  %v17600_v42 = vcombine.high %v8783_v30, %v8791_v20  ;;  %v8870_v54 = vld [vmem:[#allocation24 + $0x350] sm:$0xff]  ;;  %v8863_v51 = vld [vmem:[#allocation24 + $0x318] sm:$0xff] }
 0xb56   :  { %v17599_v48 = vcombine.low %v8783_v30, %v8791_v20  ;;  %v8886_v30 = vld [vmem:[#allocation24 + $0x3d0] sm:$0xff]  ;;  %v8879_v20 = vld [vmem:[#allocation24 + $0x398] sm:$0xff] }
 0xb58   :  { %11986 = vmatpush1.bf16.msra.mxu0 %v18009_v44  ;;  %12072 = vmatpush1.bf16.msra.mxu1 %v18011_v45  ;;  %v8799_v44 = vld [vmem:[#allocation24 + $0x118] sm:$0xff] }
 0xb59   :  { %11987 = vmatprep.subr.bf16.mxu0 %v18026_v13  ;;  %12073 = vmatprep.subr.bf16.mxu1 %v18028_v53  ;;  %v8807_v45 = vld [vmem:[#allocation24 + $0x158] sm:$0xff]  ;;  %v17597_v13 = vcombine.low %v8782_v25, %v8790_v28  ;;  %v17614_v53 = vcombine.high %v8798_v63, %v8806_v6  ;;  %v8878_v28 = vld [vmem:[#allocation24 + $0x390] sm:$0xff] }
 0xb5a   :  { %v17616_v19 = vcombine.high %v8799_v44, %v8807_v45 }
 0xb5c   :  { %11988 = vmatpush1.bf16.msra.mxu0 %v18025_v11  ;;  %12074 = vmatpush1.bf16.msra.mxu1 %v18027_v12  ;;  %v8823_v11 = vld [vmem:[#allocation24 + $0x1d8] sm:$0xff]  ;;  %v17613_v12 = vcombine.low %v8798_v63, %v8806_v6  ;;  %v8894_v6 = vld [vmem:[#allocation24 + $0x410] sm:$0xff] }
 0xb5d   :  { %11989 = vmatprep.subr.bf16.mxu0 %v18042_v36  ;;  %12075 = vmatprep.subr.bf16.mxu1 %v18044_v14  ;;  %v17615_v36 = vcombine.low %v8799_v44, %v8807_v45  ;;  %v17630_v14 = vcombine.high %v8814_v7, %v8822_v59  ;;  %v17632_v58 = vcombine.high %v8815_v47, %v8823_v11  ;;  %v8902_v44 = vld [vmem:[#allocation24 + $0x450] sm:$0xff]  ;;  %v8895_v45 = vld [vmem:[#allocation24 + $0x418] sm:$0xff] }
 0xb60   :  { %11990 = vmatpush1.bf16.msra.mxu0 %v18041_v56  ;;  %12076 = vmatpush1.bf16.msra.mxu1 %v18043_v3  ;;  %v8839_v56 = vld [vmem:[#allocation24 + $0x258] sm:$0xff]  ;;  %v17629_v3 = vcombine.low %v8814_v7, %v8822_v59  ;;  %v8910_v59 = vld [vmem:[#allocation24 + $0x490] sm:$0xff] }
 0xb61   :  { %11991 = vmatprep.subr.bf16.mxu0 %v18058_v9  ;;  %12077 = vmatprep.subr.bf16.mxu1 %v18060_v52  ;;  %v17631_v9 = vcombine.low %v8815_v47, %v8823_v11  ;;  %v17646_v52 = vcombine.high %v8830_v23, %v8838_v49  ;;  %v17648_v15 = vcombine.high %v8831_v33, %v8839_v56  ;;  %v8918_v47 = vld [vmem:[#allocation24 + $0x4d0] sm:$0xff]  ;;  %v8911_v11 = vld [vmem:[#allocation24 + $0x498] sm:$0xff] }
 0xb64   :  { %11992 = vmatpush1.bf16.msra.mxu0 %v18057_v4  ;;  %12078 = vmatpush1.bf16.msra.mxu1 %v18059_v38  ;;  %v8855_v4 = vld [vmem:[#allocation24 + $0x2d8] sm:$0xff]  ;;  %v17645_v38 = vcombine.low %v8830_v23, %v8838_v49  ;;  %v8926_v49 = vld [vmem:[#allocation24 + $0x510] sm:$0xff] }
 0xb65   :  { %11993 = vmatprep.subr.bf16.mxu0 %v18074_v5  ;;  %12079 = vmatprep.subr.bf16.mxu1 %v18076_v8  ;;  %v17647_v5 = vcombine.low %v8831_v33, %v8839_v56  ;;  %v17662_v8 = vcombine.high %v8846_v18, %v8854_v1  ;;  %v17664_v31 = vcombine.high %v8847_v2, %v8855_v4  ;;  %v8934_v33 = vld [vmem:[#allocation24 + $0x550] sm:$0xff]  ;;  %v8927_v56 = vld [vmem:[#allocation24 + $0x518] sm:$0xff] }
 0xb68   :  { %11994 = vmatpush1.bf16.msra.mxu0 %v18073_v62  ;;  %12080 = vmatpush1.bf16.msra.mxu1 %v18075_v29  ;;  %v8871_v62 = vld [vmem:[#allocation24 + $0x358] sm:$0xff]  ;;  %v17661_v29 = vcombine.low %v8846_v18, %v8854_v1  ;;  %v8942_v1 = vld [vmem:[#allocation24 + $0x590] sm:$0xff] }
 0xb69   :  { %12092 = vmatprep.subr.bf16.mxu0 %v17582_v34  ;;  %12178 = vmatprep.subr.bf16.mxu1 %v17584_v24  ;;  %v17663_v34 = vcombine.low %v8847_v2, %v8855_v4  ;;  %v17678_v24 = vcombine.high %v8862_v61, %v8870_v54  ;;  %v17680_v25 = vcombine.high %v8863_v51, %v8871_v62  ;;  %v8950_v2 = vld [vmem:[#allocation24 + $0x5d0] sm:$0xff]  ;;  %v8943_v4 = vld [vmem:[#allocation24 + $0x598] sm:$0xff] }
 0xb6b   :  { %11996 = vmatmul.mubr.bf16.vlgmr.msra.gmra.mrb[64].mxu0 %v22548_v41  ;;  %12082 = vmatmul.mubr.bf16.vlgmr.msra.gmra.mrb[64].mxu1 %v22548_v41 }
 0xb6c   :  { %12093 = vmatpush1.bf16.msra.mxu0 %v17581_v57  ;;  %12124 = vmatprep.mubr.bf16.mxu0 %v22526_v26  ;;  %v8887_v57 = vld [vmem:[#allocation24 + $0x3d8] sm:$0xff] }
 0xb6d   :  { %12179 = vmatpush1.bf16.msra.mxu1 %v17583_v10  ;;  %12210 = vmatprep.mubr.bf16.mxu1 %v22526_v26  ;;  %v17677_v10 = vcombine.low %v8862_v61, %v8870_v54  ;;  %v17696_v63 = vcombine.high %v8879_v20, %v8887_v57  ;;  %v8958_v54 = vld [vmem:[#allocation24 + $0x610] sm:$0xff] }
 0xb6e   :  { %12094 = vmatprep.subr.bf16.mxu0 %v17598_v21  ;;  %12180 = vmatprep.subr.bf16.mxu1 %v17600_v42  ;;  %v17679_v21 = vcombine.low %v8863_v51, %v8871_v62  ;;  %v17694_v42 = vcombine.high %v8878_v28, %v8886_v30  ;;  %v8966_v51 = vld [vmem:[#allocation24 + $0x650] sm:$0xff]  ;;  %v8959_v62 = vld [vmem:[#allocation24 + $0x618] sm:$0xff] }
 0xb70   :  { %12095 = vmatpush1.bf16.msra.mxu0 %v17597_v13  ;;  %v8903_v13 = vld [vmem:[#allocation24 + $0x458] sm:$0xff] }
 0xb71   :  { %12181 = vmatpush1.bf16.msra.mxu1 %v17599_v48  ;;  %12096 = vmatprep.subr.bf16.mxu0 %v17614_v53  ;;  %v17693_v48 = vcombine.low %v8878_v28, %v8886_v30  ;;  %v17695_v53 = vcombine.low %v8879_v20, %v8887_v57  ;;  %v17712_v7 = vcombine.high %v8895_v45, %v8903_v13  ;;  %v8974_v30 = vld [vmem:[#allocation24 + $0x690] sm:$0xff]  ;;  %v8975_v57 = vld [vmem:[#allocation24 + $0x698] sm:$0xff] }
 0xb72   :  { %12182 = vmatprep.subr.bf16.mxu1 %v17616_v19  ;;  %v17710_v19 = vcombine.high %v8894_v6, %v8902_v44  ;;  %v8982_v20 = vld [vmem:[#allocation24 + $0x6d0] sm:$0xff] }
 0xb74   :  { %12097 = vmatpush1.bf16.msra.mxu0 %v17613_v12  ;;  %v8919_v12 = vld [vmem:[#allocation24 + $0x4d8] sm:$0xff] }
 0xb75   :  { %12183 = vmatpush1.bf16.msra.mxu1 %v17615_v36  ;;  %12098 = vmatprep.subr.bf16.mxu0 %v17630_v14  ;;  %v17709_v36 = vcombine.low %v8894_v6, %v8902_v44  ;;  %v17711_v14 = vcombine.low %v8895_v45, %v8903_v13  ;;  %v17728_v23 = vcombine.high %v8911_v11, %v8919_v12  ;;  %v8990_v44 = vld [vmem:[#allocation24 + $0x710] sm:$0xff]  ;;  %v8991_v13 = vld [vmem:[#allocation24 + $0x718] sm:$0xff] }
 0xb76   :  { %12184 = vmatprep.subr.bf16.mxu1 %v17632_v58  ;;  %v17726_v58 = vcombine.high %v8910_v59, %v8918_v47  ;;  %v8998_v45 = vld [vmem:[#allocation24 + $0x750] sm:$0xff] }
 0xb78   :  { %12099 = vmatpush1.bf16.msra.mxu0 %v17629_v3  ;;  %v8935_v3 = vld [vmem:[#allocation24 + $0x558] sm:$0xff] }
 0xb79   :  { %12185 = vmatpush1.bf16.msra.mxu1 %v17631_v9  ;;  %12100 = vmatprep.subr.bf16.mxu0 %v17646_v52  ;;  %v17725_v9 = vcombine.low %v8910_v59, %v8918_v47  ;;  %v17727_v52 = vcombine.low %v8911_v11, %v8919_v12  ;;  %v17744_v18 = vcombine.high %v8927_v56, %v8935_v3  ;;  %v9006_v47 = vld [vmem:[#allocation24 + $0x790] sm:$0xff]  ;;  %v9007_v12 = vld [vmem:[#allocation24 + $0x798] sm:$0xff] }
 0xb7a   :  { %12186 = vmatprep.subr.bf16.mxu1 %v17648_v15  ;;  %v17742_v15 = vcombine.high %v8926_v49, %v8934_v33  ;;  %v9014_v11 = vld [vmem:[#allocation24 + $0x7d0] sm:$0xff] }
 0xb7c   :  { %12101 = vmatpush1.bf16.msra.mxu0 %v17645_v38  ;;  %v8951_v38 = vld [vmem:[#allocation24 + $0x5d8] sm:$0xff] }
 0xb7d   :  { %12187 = vmatpush1.bf16.msra.mxu1 %v17647_v5  ;;  %12102 = vmatprep.subr.bf16.mxu0 %v17662_v8  ;;  %v17741_v5 = vcombine.low %v8926_v49, %v8934_v33  ;;  %v17743_v8 = vcombine.low %v8927_v56, %v8935_v3  ;;  %v17760_v61 = vcombine.high %v8943_v4, %v8951_v38  ;;  %v9022_v33 = vld [vmem:[#allocation24 + $0x810] sm:$0xff]  ;;  %v9023_v3 = vld [vmem:[#allocation24 + $0x818] sm:$0xff] }
 0xb7e   :  { %12188 = vmatprep.subr.bf16.mxu1 %v17664_v31  ;;  %v17758_v31 = vcombine.high %v8942_v1, %v8950_v2  ;;  %v9030_v56 = vld [vmem:[#allocation24 + $0x850] sm:$0xff] }
 0xb80   :  { %12103 = vmatpush1.bf16.msra.mxu0 %v17661_v29  ;;  %v8967_v29 = vld [vmem:[#allocation24 + $0x658] sm:$0xff] }
 0xb81   :  { %12189 = vmatpush1.bf16.msra.mxu1 %v17663_v34  ;;  %12104 = vmatprep.subr.bf16.mxu0 %v17678_v24  ;;  %v17757_v34 = vcombine.low %v8942_v1, %v8950_v2  ;;  %v17759_v24 = vcombine.low %v8943_v4, %v8951_v38  ;;  %v17776_v28 = vcombine.high %v8959_v62, %v8967_v29  ;;  %v9038_v2 = vld [vmem:[#allocation24 + $0x890] sm:$0xff] }
 0xb82   :  { %12190 = vmatprep.subr.bf16.mxu1 %v17680_v25  ;;  %v17774_v25 = vcombine.high %v8958_v54, %v8966_v51  ;;  %v9046_v4 = vld [vmem:[#allocation24 + $0x8d0] sm:$0xff]  ;;  %v17837_v38 = vcombine.low %v9022_v33, %v9030_v56 }
 0xb84   :  { %12105 = vmatpush1.bf16.msra.mxu0 %v17677_v10  ;;  %v8983_v10 = vld [vmem:[#allocation24 + $0x6d8] sm:$0xff] }
 0xb85   :  { %12191 = vmatpush1.bf16.msra.mxu1 %v17679_v21  ;;  %12106 = vmatprep.subr.bf16.mxu0 %v17694_v42  ;;  %v17773_v21 = vcombine.low %v8958_v54, %v8966_v51  ;;  %v17775_v42 = vcombine.low %v8959_v62, %v8967_v29  ;;  %v17792_v6 = vcombine.high %v8975_v57, %v8983_v10  ;;  %v9054_v54 = vld [vmem:[#allocation24 + $0x910] sm:$0xff]  ;;  %v9055_v29 = vld [vmem:[#allocation24 + $0x918] sm:$0xff] }
 0xb86   :  { %12192 = vmatprep.subr.bf16.mxu1 %v17696_v63  ;;  %v17790_v63 = vcombine.high %v8974_v30, %v8982_v20  ;;  %v9062_v51 = vld [vmem:[#allocation24 + $0x950] sm:$0xff] }
 0xb88   :  { %12107 = vmatpush1.bf16.msra.mxu0 %v17693_v48  ;;  %v8999_v48 = vld [vmem:[#allocation24 + $0x758] sm:$0xff] }
 0xb89   :  { %12193 = vmatpush1.bf16.msra.mxu1 %v17695_v53  ;;  %12108 = vmatprep.subr.bf16.mxu0 %v17710_v19  ;;  %v17789_v53 = vcombine.low %v8974_v30, %v8982_v20  ;;  %v17791_v19 = vcombine.low %v8975_v57, %v8983_v10  ;;  %v17808_v59 = vcombine.high %v8991_v13, %v8999_v48  ;;  %v9070_v20 = vld [vmem:[#allocation24 + $0x990] sm:$0xff]  ;;  %v9071_v10 = vld [vmem:[#allocation24 + $0x998] sm:$0xff] }
 0xb8a   :  { %12194 = vmatprep.subr.bf16.mxu1 %v17712_v7  ;;  %v17806_v7 = vcombine.high %v8990_v44, %v8998_v45  ;;  %v9078_v57 = vld [vmem:[#allocation24 + $0x9d0] sm:$0xff] }
 0xb8c   :  { %12109 = vmatpush1.bf16.msra.mxu0 %v17709_v36  ;;  %v9015_v36 = vld [vmem:[#allocation24 + $0x7d8] sm:$0xff] }
 0xb8d   :  { %12195 = vmatpush1.bf16.msra.mxu1 %v17711_v14  ;;  %12110 = vmatprep.subr.bf16.mxu0 %v17726_v58  ;;  %v17805_v14 = vcombine.low %v8990_v44, %v8998_v45  ;;  %v17807_v58 = vcombine.low %v8991_v13, %v8999_v48  ;;  %v17824_v49 = vcombine.high %v9007_v12, %v9015_v36  ;;  %v9086_v45 = vld [vmem:[#allocation24 + $0xa10] sm:$0xff]  ;;  %v9087_v48 = vld [vmem:[#allocation24 + $0xa18] sm:$0xff] }
 0xb8e   :  { %12196 = vmatprep.subr.bf16.mxu1 %v17728_v23  ;;  %v17822_v23 = vcombine.high %v9006_v47, %v9014_v11  ;;  %v9094_v13 = vld [vmem:[#allocation24 + $0xa50] sm:$0xff] }
 0xb90   :  { %12111 = vmatpush1.bf16.msra.mxu0 %v17725_v9  ;;  %v9031_v9 = vld [vmem:[#allocation24 + $0x858] sm:$0xff] }
 0xb91   :  { %12197 = vmatpush1.bf16.msra.mxu1 %v17727_v52  ;;  %12112 = vmatprep.subr.bf16.mxu0 %v17742_v15  ;;  %v17821_v52 = vcombine.low %v9006_v47, %v9014_v11  ;;  %v17823_v15 = vcombine.low %v9007_v12, %v9015_v36  ;;  %v17840_v1 = vcombine.high %v9023_v3, %v9031_v9  ;;  %v9102_v11 = vld [vmem:[#allocation24 + $0xa90] sm:$0xff]  ;;  %v9103_v36 = vld [vmem:[#allocation24 + $0xa98] sm:$0xff] }
 0xb92   :  { %12198 = vmatprep.subr.bf16.mxu1 %v17744_v18  ;;  %v17838_v18 = vcombine.high %v9022_v33, %v9030_v56  ;;  %v9110_v12 = vld [vmem:[#allocation24 + $0xad0] sm:$0xff] }
 0xb93   :  { %v9118_v56 = vld [vmem:[#allocation24 + $0xb10] sm:$0xff] }
 0xb94   :  { %12113 = vmatpush1.bf16.msra.mxu0 %v17741_v5  ;;  %v9039_v5 = vld [vmem:[#allocation24 + $0x898] sm:$0xff] }
 0xb95   :  { %12199 = vmatpush1.bf16.msra.mxu1 %v17743_v8  ;;  %12114 = vmatprep.subr.bf16.mxu0 %v17758_v31  ;;  %v9047_v8 = vld [vmem:[#allocation24 + $0x8d8] sm:$0xff]  ;;  %v17839_v31 = vcombine.low %v9023_v3, %v9031_v9  ;;  %v9126_v3 = vld [vmem:[#allocation24 + $0xb50] sm:$0xff] }
 0xb96   :  { %12200 = vmatprep.subr.bf16.mxu1 %v17760_v61  ;;  %v17854_v61 = vcombine.high %v9038_v2, %v9046_v4  ;;  %v17856_v62 = vcombine.high %v9039_v5, %v9047_v8  ;;  %v9119_v9 = vld [vmem:[#allocation24 + $0xb18] sm:$0xff] }
 0xb98   :  { %12115 = vmatpush1.bf16.msra.mxu0 %v17757_v34  ;;  %v9063_v34 = vld [vmem:[#allocation24 + $0x958] sm:$0xff] }
 0xb99   :  { %12201 = vmatpush1.bf16.msra.mxu1 %v17759_v24  ;;  %12116 = vmatprep.subr.bf16.mxu0 %v17774_v25  ;;  %v17853_v24 = vcombine.low %v9038_v2, %v9046_v4  ;;  %v17855_v25 = vcombine.low %v9039_v5, %v9047_v8  ;;  %v17872_v30 = vcombine.high %v9055_v29, %v9063_v34  ;;  %v9134_v4 = vld [vmem:[#allocation24 + $0xb90] sm:$0xff]  ;;  %v9135_v5 = vld [vmem:[#allocation24 + $0xb98] sm:$0xff] }
 0xb9a   :  { %12202 = vmatprep.subr.bf16.mxu1 %v17776_v28  ;;  %v17870_v28 = vcombine.high %v9054_v54, %v9062_v51  ;;  %v9143_v8 = vld [vmem:[#allocation24 + $0xbd8] sm:$0xff] }
 0xb9c   :  { %12117 = vmatpush1.bf16.msra.mxu0 %v17773_v21  ;;  %v9079_v21 = vld [vmem:[#allocation24 + $0x9d8] sm:$0xff] }
 0xb9d   :  { %12203 = vmatpush1.bf16.msra.mxu1 %v17775_v42  ;;  %12118 = vmatprep.subr.bf16.mxu0 %v17790_v63  ;;  %v17869_v42 = vcombine.low %v9054_v54, %v9062_v51  ;;  %v17871_v63 = vcombine.low %v9055_v29, %v9063_v34  ;;  %v17888_v44 = vcombine.high %v9071_v10, %v9079_v21  ;;  %v9158_v29 = vld [vmem:[#allocation24 + $0xc50] sm:$0xff]  ;;  %v9151_v34 = vld [vmem:[#allocation24 + $0xc18] sm:$0xff] }
 0xb9e   :  { %12204 = vmatprep.subr.bf16.mxu1 %v17792_v6  ;;  %v17886_v6 = vcombine.high %v9070_v20, %v9078_v57  ;;  %v17952_v51 = vcombine.high %v9135_v5, %v9143_v8 }
 0xba0   :  { %12119 = vmatpush1.bf16.msra.mxu0 %v17789_v53  ;;  %v9095_v53 = vld [vmem:[#allocation24 + $0xa58] sm:$0xff] }
 0xba1   :  { %12205 = vmatpush1.bf16.msra.mxu1 %v17791_v19  ;;  %12120 = vmatprep.subr.bf16.mxu0 %v17806_v7  ;;  %v17885_v19 = vcombine.low %v9070_v20, %v9078_v57  ;;  %v17887_v7 = vcombine.low %v9071_v10, %v9079_v21  ;;  %v17904_v47 = vcombine.high %v9087_v48, %v9095_v53  ;;  %v9166_v57 = vld [vmem:[#allocation24 + $0xc90] sm:$0xff]  ;;  %v9167_v21 = vld [vmem:[#allocation24 + $0xc98] sm:$0xff] }
 0xba2   :  { %12206 = vmatprep.subr.bf16.mxu1 %v17808_v59  ;;  %v17902_v59 = vcombine.high %v9086_v45, %v9094_v13  ;;  %v9174_v10 = vld [vmem:[#allocation24 + $0xcd0] sm:$0xff] }
 0xba4   :  { %12121 = vmatpush1.bf16.msra.mxu0 %v17805_v14  ;;  %v9111_v14 = vld [vmem:[#allocation24 + $0xad8] sm:$0xff] }
 0xba5   :  { %12207 = vmatpush1.bf16.msra.mxu1 %v17807_v58  ;;  %12122 = vmatprep.subr.bf16.mxu0 %v17822_v23  ;;  %v17901_v58 = vcombine.low %v9086_v45, %v9094_v13  ;;  %v17903_v23 = vcombine.low %v9087_v48, %v9095_v53  ;;  %v17920_v33 = vcombine.high %v9103_v36, %v9111_v14  ;;  %v9182_v13 = vld [vmem:[#allocation24 + $0xd10] sm:$0xff]  ;;  %v9183_v53 = vld [vmem:[#allocation24 + $0xd18] sm:$0xff] }
 0xba6   :  { %12208 = vmatprep.subr.bf16.mxu1 %v17824_v49  ;;  %v17918_v49 = vcombine.high %v9102_v11, %v9110_v12  ;;  %v9190_v48 = vld [vmem:[#allocation24 + $0xd50] sm:$0xff] }
 0xba8   :  { %12123 = vmatpush1.bf16.msra.mxu0 %v17821_v52  ;;  %v9127_v52 = vld [vmem:[#allocation24 + $0xb58] sm:$0xff] }
 0xba9   :  { %12209 = vmatpush1.bf16.msra.mxu1 %v17823_v15  ;;  %12135 = vmatprep.subr.bf16.mxu0 %v17838_v18  ;;  %v17917_v15 = vcombine.low %v9102_v11, %v9110_v12  ;;  %v17919_v18 = vcombine.low %v9103_v36, %v9111_v14  ;;  %v17936_v2 = vcombine.high %v9119_v9, %v9127_v52  ;;  %v9198_v12 = vld [vmem:[#allocation24 + $0xd90] sm:$0xff]  ;;  %v9199_v14 = vld [vmem:[#allocation24 + $0xd98] sm:$0xff] }
 0xbaa   :  { %12221 = vmatprep.subr.bf16.mxu1 %v17840_v1  ;;  %v17934_v1 = vcombine.high %v9118_v56, %v9126_v3  ;;  %v9206_v36 = vld [vmem:[#allocation24 + $0xdd0] sm:$0xff] }
 0xbab   :  { %12125 = vmatmul.mubr.bf16.vlgmr.msra.gmra.mrb[68].mxu0 %v22529_v27 }
 0xbac   :  { %12211 = vmatmul.mubr.bf16.vlgmr.msra.gmra.mrb[68].mxu1 %v22529_v27  ;;  %12136 = vmatpush1.bf16.msra.mxu0 %v17837_v38  ;;  %v9142_v38 = vld [vmem:[#allocation24 + $0xbd0] sm:$0xff] }
 0xbad   :  { %12167 = vmatprep.mubr.bf16.mxu0 %v22536_v17  ;;  %12222 = vmatpush1.bf16.msra.mxu1 %v17839_v31  ;;  %v17933_v31 = vcombine.low %v9118_v56, %v9126_v3  ;;  %v17950_v54 = vcombine.high %v9134_v4, %v9142_v38  ;;  %v9214_v3 = vld [vmem:[#allocation24 + $0xe10] sm:$0xff] }
 0xbae   :  { %12253 = vmatprep.mubr.bf16.mxu1 %v22536_v17  ;;  %12137 = vmatprep.subr.bf16.mxu0 %v17854_v61  ;;  %v17935_v61 = vcombine.low %v9119_v9, %v9127_v52  ;;  %v9222_v9 = vld [vmem:[#allocation24 + $0xe50] sm:$0xff]  ;;  %v9215_v52 = vld [vmem:[#allocation24 + $0xe18] sm:$0xff] }
 0xbaf   :  { %12223 = vmatprep.subr.bf16.mxu1 %v17856_v62  ;;  %v9150_v62 = vld [vmem:[#allocation24 + $0xc10] sm:$0xff] }
 0xbb0   :  { %12138 = vmatpush1.bf16.msra.mxu0 %v17853_v24  ;;  %v9159_v24 = vld [vmem:[#allocation24 + $0xc58] sm:$0xff] }
 0xbb1   :  { %12224 = vmatpush1.bf16.msra.mxu1 %v17855_v25  ;;  %12139 = vmatprep.subr.bf16.mxu0 %v17870_v28  ;;  %v17949_v25 = vcombine.low %v9134_v4, %v9142_v38  ;;  %v17951_v28 = vcombine.low %v9135_v5, %v9143_v8  ;;  %v17968_v20 = vcombine.high %v9151_v34, %v9159_v24  ;;  %v9230_v38 = vld [vmem:[#allocation24 + $0xe90] sm:$0xff]  ;;  %v9231_v8 = vld [vmem:[#allocation24 + $0xe98] sm:$0xff] }
 0xbb2   :  { %12225 = vmatprep.subr.bf16.mxu1 %v17872_v30  ;;  %v17966_v30 = vcombine.high %v9150_v62, %v9158_v29  ;;  %v9238_v5 = vld [vmem:[#allocation24 + $0xed0] sm:$0xff] }
 0xbb4   :  { %12140 = vmatpush1.bf16.msra.mxu0 %v17869_v42  ;;  %v9175_v42 = vld [vmem:[#allocation24 + $0xcd8] sm:$0xff] }
 0xbb5   :  { %12226 = vmatpush1.bf16.msra.mxu1 %v17871_v63  ;;  %12141 = vmatprep.subr.bf16.mxu0 %v17886_v6  ;;  %v17965_v63 = vcombine.low %v9150_v62, %v9158_v29  ;;  %v17967_v6 = vcombine.low %v9151_v34, %v9159_v24  ;;  %v17984_v45 = vcombine.high %v9167_v21, %v9175_v42  ;;  %v9246_v29 = vld [vmem:[#allocation24 + $0xf10] sm:$0xff]  ;;  %v9247_v24 = vld [vmem:[#allocation24 + $0xf18] sm:$0xff] }
 0xbb6   :  { %12227 = vmatprep.subr.bf16.mxu1 %v17888_v44  ;;  %v17982_v44 = vcombine.high %v9166_v57, %v9174_v10  ;;  %v9254_v34 = vld [vmem:[#allocation24 + $0xf50] sm:$0xff] }
 0xbb8   :  { %12142 = vmatpush1.bf16.msra.mxu0 %v17885_v19  ;;  %v9191_v19 = vld [vmem:[#allocation24 + $0xd58] sm:$0xff] }
 0xbb9   :  { %12228 = vmatpush1.bf16.msra.mxu1 %v17887_v7  ;;  %12143 = vmatprep.subr.bf16.mxu0 %v17902_v59  ;;  %v17981_v7 = vcombine.low %v9166_v57, %v9174_v10  ;;  %v17983_v59 = vcombine.low %v9167_v21, %v9175_v42  ;;  %v18000_v11 = vcombine.high %v9183_v53, %v9191_v19  ;;  %v9262_v10 = vld [vmem:[#allocation24 + $0xf90] sm:$0xff]  ;;  %v9263_v42 = vld [vmem:[#allocation24 + $0xf98] sm:$0xff] }
 0xbba   :  { %12229 = vmatprep.subr.bf16.mxu1 %v17904_v47  ;;  %v17998_v47 = vcombine.high %v9182_v13, %v9190_v48  ;;  %v9270_v21 = vld [vmem:[#allocation24 + $0xfd0] sm:$0xff] }
 0xbbc   :  { %12144 = vmatpush1.bf16.msra.mxu0 %v17901_v58  ;;  %v9207_v58 = vld [vmem:[#allocation24 + $0xdd8] sm:$0xff] }
 0xbbd   :  { %12230 = vmatpush1.bf16.msra.mxu1 %v17903_v23  ;;  %12145 = vmatprep.subr.bf16.mxu0 %v17918_v49  ;;  %v17997_v23 = vcombine.low %v9182_v13, %v9190_v48  ;;  %v17999_v49 = vcombine.low %v9183_v53, %v9191_v19  ;;  %v18016_v56 = vcombine.high %v9199_v14, %v9207_v58  ;;  %v8768_v48 = vld [vmem:[#allocation24 + $0x20] sm:$0xff]  ;;  %v8769_v19 = vld [vmem:[#allocation24 + $0x28] sm:$0xff] }
 0xbbe   :  { %12231 = vmatprep.subr.bf16.mxu1 %v17920_v33  ;;  %v18014_v33 = vcombine.high %v9198_v12, %v9206_v36  ;;  %v8776_v53 = vld [vmem:[#allocation24 + $0x60] sm:$0xff] }
 0xbc0   :  { %12146 = vmatpush1.bf16.msra.mxu0 %v17917_v15  ;;  %v9223_v15 = vld [vmem:[#allocation24 + $0xe58] sm:$0xff] }
 0xbc1   :  { %12232 = vmatpush1.bf16.msra.mxu1 %v17919_v18  ;;  %12147 = vmatprep.subr.bf16.mxu0 %v17934_v1  ;;  %v18013_v18 = vcombine.low %v9198_v12, %v9206_v36  ;;  %v18015_v1 = vcombine.low %v9199_v14, %v9207_v58  ;;  %v18032_v4 = vcombine.high %v9215_v52, %v9223_v15  ;;  %v8784_v36 = vld [vmem:[#allocation24 + $0xa0] sm:$0xff] }
 0xbc2   :  { %12233 = vmatprep.subr.bf16.mxu1 %v17936_v2  ;;  %v18030_v2 = vcombine.high %v9214_v3, %v9222_v9  ;;  %v8792_v14 = vld [vmem:[#allocation24 + $0xe0] sm:$0xff]  ;;  %v17585_v58 = vcombine.low %v8768_v48, %v8776_v53 }
 0xbc4   :  { %12148 = vmatpush1.bf16.msra.mxu0 %v17933_v31  ;;  %v9239_v31 = vld [vmem:[#allocation24 + $0xed8] sm:$0xff] }
 0xbc5   :  { %12234 = vmatpush1.bf16.msra.mxu1 %v17935_v61  ;;  %12149 = vmatprep.subr.bf16.mxu0 %v17950_v54  ;;  %v18029_v61 = vcombine.low %v9214_v3, %v9222_v9  ;;  %v18031_v54 = vcombine.low %v9215_v52, %v9223_v15  ;;  %v18048_v62 = vcombine.high %v9231_v8, %v9239_v31  ;;  %v8800_v3 = vld [vmem:[#allocation24 + $0x120] sm:$0xff]  ;;  %v8801_v15 = vld [vmem:[#allocation24 + $0x128] sm:$0xff] }
 0xbc6   :  { %12235 = vmatprep.subr.bf16.mxu1 %v17952_v51  ;;  %v18046_v51 = vcombine.high %v9230_v38, %v9238_v5  ;;  %v8808_v9 = vld [vmem:[#allocation24 + $0x160] sm:$0xff] }
 0xbc8   :  { %12150 = vmatpush1.bf16.msra.mxu0 %v17949_v25  ;;  %v9255_v25 = vld [vmem:[#allocation24 + $0xf58] sm:$0xff] }
 0xbc9   :  { %12236 = vmatpush1.bf16.msra.mxu1 %v17951_v28  ;;  %12151 = vmatprep.subr.bf16.mxu0 %v17966_v30  ;;  %v18045_v28 = vcombine.low %v9230_v38, %v9238_v5  ;;  %v18047_v30 = vcombine.low %v9231_v8, %v9239_v31  ;;  %v18064_v57 = vcombine.high %v9247_v24, %v9255_v25  ;;  %v8816_v5 = vld [vmem:[#allocation24 + $0x1a0] sm:$0xff]  ;;  %v8817_v31 = vld [vmem:[#allocation24 + $0x1a8] sm:$0xff] }
 0xbca   :  { %12237 = vmatprep.subr.bf16.mxu1 %v17968_v20  ;;  %v18062_v20 = vcombine.high %v9246_v29, %v9254_v34  ;;  %v8824_v8 = vld [vmem:[#allocation24 + $0x1e0] sm:$0xff] }
 0xbcc   :  { %12152 = vmatpush1.bf16.msra.mxu0 %v17965_v63  ;;  %v9271_v63 = vld [vmem:[#allocation24 + $0xfd8] sm:$0xff] }
 0xbcd   :  { %12238 = vmatpush1.bf16.msra.mxu1 %v17967_v6  ;;  %12153 = vmatprep.subr.bf16.mxu0 %v17982_v44  ;;  %v18061_v6 = vcombine.low %v9246_v29, %v9254_v34  ;;  %v18063_v44 = vcombine.low %v9247_v24, %v9255_v25  ;;  %v18080_v13 = vcombine.high %v9263_v42, %v9271_v63  ;;  %v8832_v34 = vld [vmem:[#allocation24 + $0x220] sm:$0xff]  ;;  %v8833_v25 = vld [vmem:[#allocation24 + $0x228] sm:$0xff] }
 0xbce   :  { %12239 = vmatprep.subr.bf16.mxu1 %v17984_v45  ;;  %v18078_v45 = vcombine.high %v9262_v10, %v9270_v21  ;;  %v8840_v24 = vld [vmem:[#allocation24 + $0x260] sm:$0xff] }
 0xbd0   :  { %12154 = vmatpush1.bf16.msra.mxu0 %v17981_v7  ;;  %v8777_v7 = vld [vmem:[#allocation24 + $0x68] sm:$0xff] }
 0xbd1   :  { %12240 = vmatpush1.bf16.msra.mxu1 %v17983_v59  ;;  %12155 = vmatprep.subr.bf16.mxu0 %v17998_v47  ;;  %v18077_v59 = vcombine.low %v9262_v10, %v9270_v21  ;;  %v18079_v47 = vcombine.low %v9263_v42, %v9271_v63  ;;  %v17588_v12 = vcombine.high %v8769_v19, %v8777_v7  ;;  %v8848_v21 = vld [vmem:[#allocation24 + $0x2a0] sm:$0xff]  ;;  %v8849_v63 = vld [vmem:[#allocation24 + $0x2a8] sm:$0xff] }
 0xbd2   :  { %12241 = vmatprep.subr.bf16.mxu1 %v18000_v11  ;;  %v17586_v11 = vcombine.high %v8768_v48, %v8776_v53  ;;  %v8856_v42 = vld [vmem:[#allocation24 + $0x2e0] sm:$0xff] }
 0xbd3   :  { %v8864_v53 = vld [vmem:[#allocation24 + $0x320] sm:$0xff] }
 0xbd4   :  { %12156 = vmatpush1.bf16.msra.mxu0 %v17997_v23  ;;  %v8785_v23 = vld [vmem:[#allocation24 + $0xa8] sm:$0xff] }
 0xbd5   :  { %12242 = vmatpush1.bf16.msra.mxu1 %v17999_v49  ;;  %12157 = vmatprep.subr.bf16.mxu0 %v18014_v33  ;;  %v8793_v49 = vld [vmem:[#allocation24 + $0xe8] sm:$0xff]  ;;  %v17587_v33 = vcombine.low %v8769_v19, %v8777_v7  ;;  %v8872_v19 = vld [vmem:[#allocation24 + $0x360] sm:$0xff] }
 0xbd6   :  { %12243 = vmatprep.subr.bf16.mxu1 %v18016_v56  ;;  %v17602_v56 = vcombine.high %v8784_v36, %v8792_v14  ;;  %v17604_v52 = vcombine.high %v8785_v23, %v8793_v49  ;;  %v8865_v7 = vld [vmem:[#allocation24 + $0x328] sm:$0xff] }
 0xbd8   :  { %12158 = vmatpush1.bf16.msra.mxu0 %v18013_v18  ;;  %v8809_v18 = vld [vmem:[#allocation24 + $0x168] sm:$0xff] }
 0xbd9   :  { %12244 = vmatpush1.bf16.msra.mxu1 %v18015_v1  ;;  %12159 = vmatprep.subr.bf16.mxu0 %v18030_v2  ;;  %v17601_v1 = vcombine.low %v8784_v36, %v8792_v14  ;;  %v17603_v2 = vcombine.low %v8785_v23, %v8793_v49  ;;  %v17620_v38 = vcombine.high %v8801_v15, %v8809_v18  ;;  %v8880_v14 = vld [vmem:[#allocation24 + $0x3a0] sm:$0xff]  ;;  %v8881_v23 = vld [vmem:[#allocation24 + $0x3a8] sm:$0xff] }
 0xbda   :  { %12245 = vmatprep.subr.bf16.mxu1 %v18032_v4  ;;  %v17618_v4 = vcombine.high %v8800_v3, %v8808_v9  ;;  %v8889_v49 = vld [vmem:[#allocation24 + $0x3e8] sm:$0xff] }
 0xbdc   :  { %12160 = vmatpush1.bf16.msra.mxu0 %v18029_v61  ;;  %v8825_v61 = vld [vmem:[#allocation24 + $0x1e8] sm:$0xff] }
 0xbdd   :  { %12246 = vmatpush1.bf16.msra.mxu1 %v18031_v54  ;;  %12161 = vmatprep.subr.bf16.mxu0 %v18046_v51  ;;  %v17617_v54 = vcombine.low %v8800_v3, %v8808_v9  ;;  %v17619_v51 = vcombine.low %v8801_v15, %v8809_v18  ;;  %v17636_v29 = vcombine.high %v8817_v31, %v8825_v61  ;;  %v8904_v15 = vld [vmem:[#allocation24 + $0x460] sm:$0xff]  ;;  %v8897_v18 = vld [vmem:[#allocation24 + $0x428] sm:$0xff] }
 0xbde   :  { %12247 = vmatprep.subr.bf16.mxu1 %v18048_v62  ;;  %v17634_v62 = vcombine.high %v8816_v5, %v8824_v8  ;;  %v17700_v9 = vcombine.high %v8881_v23, %v8889_v49 }
 0xbe0   :  { %12162 = vmatpush1.bf16.msra.mxu0 %v18045_v28  ;;  %v8841_v28 = vld [vmem:[#allocation24 + $0x268] sm:$0xff] }
 0xbe1   :  { %12248 = vmatpush1.bf16.msra.mxu1 %v18047_v30  ;;  %12163 = vmatprep.subr.bf16.mxu0 %v18062_v20  ;;  %v17633_v30 = vcombine.low %v8816_v5, %v8824_v8  ;;  %v17635_v20 = vcombine.low %v8817_v31, %v8825_v61  ;;  %v17652_v10 = vcombine.high %v8833_v25, %v8841_v28  ;;  %v8912_v8 = vld [vmem:[#allocation24 + $0x4a0] sm:$0xff]  ;;  %v8913_v61 = vld [vmem:[#allocation24 + $0x4a8] sm:$0xff] }
 0xbe2   :  { %12249 = vmatprep.subr.bf16.mxu1 %v18064_v57  ;;  %v17650_v57 = vcombine.high %v8832_v34, %v8840_v24  ;;  %v8920_v31 = vld [vmem:[#allocation24 + $0x4e0] sm:$0xff] }
 0xbe4   :  { %12164 = vmatpush1.bf16.msra.mxu0 %v18061_v6  ;;  %v8857_v6 = vld [vmem:[#allocation24 + $0x2e8] sm:$0xff] }
 0xbe5   :  { %12250 = vmatpush1.bf16.msra.mxu1 %v18063_v44  ;;  %12165 = vmatprep.subr.bf16.mxu0 %v18078_v45  ;;  %v17649_v44 = vcombine.low %v8832_v34, %v8840_v24  ;;  %v17651_v45 = vcombine.low %v8833_v25, %v8841_v28  ;;  %v17668_v48 = vcombine.high %v8849_v63, %v8857_v6  ;;  %v8928_v24 = vld [vmem:[#allocation24 + $0x520] sm:$0xff]  ;;  %v8929_v28 = vld [vmem:[#allocation24 + $0x528] sm:$0xff] }
 0xbe6   :  { %12251 = vmatprep.subr.bf16.mxu1 %v18080_v13  ;;  %v17666_v13 = vcombine.high %v8848_v21, %v8856_v42  ;;  %v8936_v25 = vld [vmem:[#allocation24 + $0x560] sm:$0xff] }
 0xbe8   :  { %12166 = vmatpush1.bf16.msra.mxu0 %v18077_v59  ;;  %v8873_v59 = vld [vmem:[#allocation24 + $0x368] sm:$0xff] }
 0xbe9   :  { %12252 = vmatpush1.bf16.msra.mxu1 %v18079_v47  ;;  %12264 = vmatprep.subr.bf16.mxu0 %v17586_v11  ;;  %v17665_v47 = vcombine.low %v8848_v21, %v8856_v42  ;;  %v17667_v11 = vcombine.low %v8849_v63, %v8857_v6  ;;  %v17684_v36 = vcombine.high %v8865_v7, %v8873_v59  ;;  %v8944_v42 = vld [vmem:[#allocation24 + $0x5a0] sm:$0xff]  ;;  %v8945_v6 = vld [vmem:[#allocation24 + $0x5a8] sm:$0xff] }
 0xbea   :  { %12350 = vmatprep.subr.bf16.mxu1 %v17588_v12  ;;  %v17682_v12 = vcombine.high %v8864_v53, %v8872_v19  ;;  %v8952_v63 = vld [vmem:[#allocation24 + $0x5e0] sm:$0xff] }
 0xbeb   :  { %12168 = vmatmul.mubr.bf16.vlgmr.msra.gmra.mrb[68].mxu0 %v22548_v41 }
 0xbec   :  { %12254 = vmatmul.mubr.bf16.vlgmr.msra.gmra.mrb[68].mxu1 %v22548_v41  ;;  %12265 = vmatpush1.bf16.msra.mxu0 %v17585_v58  ;;  %v8888_v58 = vld [vmem:[#allocation24 + $0x3e0] sm:$0xff] }
 0xbed   :  { %12296 = vmatprep.mubr.bf16.mxu0 %v22526_v26  ;;  %12351 = vmatpush1.bf16.msra.mxu1 %v17587_v33  ;;  %v17681_v33 = vcombine.low %v8864_v53, %v8872_v19  ;;  %v17698_v3 = vcombine.high %v8880_v14, %v8888_v58  ;;  %v8960_v19 = vld [vmem:[#allocation24 + $0x620] sm:$0xff] }
 0xbee   :  { %12382 = vmatprep.mubr.bf16.mxu1 %v22526_v26  ;;  %12266 = vmatprep.subr.bf16.mxu0 %v17602_v56  ;;  %v17683_v56 = vcombine.low %v8865_v7, %v8873_v59  ;;  %v8968_v7 = vld [vmem:[#allocation24 + $0x660] sm:$0xff]  ;;  %v8961_v59 = vld [vmem:[#allocation24 + $0x628] sm:$0xff] }
 0xbef   :  { %12352 = vmatprep.subr.bf16.mxu1 %v17604_v52  ;;  %v8896_v52 = vld [vmem:[#allocation24 + $0x420] sm:$0xff] }
 0xbf0   :  { %12267 = vmatpush1.bf16.msra.mxu0 %v17601_v1  ;;  %v8905_v1 = vld [vmem:[#allocation24 + $0x468] sm:$0xff] }
 0xbf1   :  { %12353 = vmatpush1.bf16.msra.mxu1 %v17603_v2  ;;  %12268 = vmatprep.subr.bf16.mxu0 %v17618_v4  ;;  %v17697_v2 = vcombine.low %v8880_v14, %v8888_v58  ;;  %v17699_v4 = vcombine.low %v8881_v23, %v8889_v49  ;;  %v17716_v5 = vcombine.high %v8897_v18, %v8905_v1  ;;  %v8976_v58 = vld [vmem:[#allocation24 + $0x6a0] sm:$0xff]  ;;  %v8977_v49 = vld [vmem:[#allocation24 + $0x6a8] sm:$0xff] }
 0xbf2   :  { %12354 = vmatprep.subr.bf16.mxu1 %v17620_v38  ;;  %v17714_v38 = vcombine.high %v8896_v52, %v8904_v15  ;;  %v8984_v23 = vld [vmem:[#allocation24 + $0x6e0] sm:$0xff] }
 0xbf4   :  { %12269 = vmatpush1.bf16.msra.mxu0 %v17617_v54  ;;  %v8921_v54 = vld [vmem:[#allocation24 + $0x4e8] sm:$0xff] }
 0xbf5   :  { %12355 = vmatpush1.bf16.msra.mxu1 %v17619_v51  ;;  %12270 = vmatprep.subr.bf16.mxu0 %v17634_v62  ;;  %v17713_v51 = vcombine.low %v8896_v52, %v8904_v15  ;;  %v17715_v62 = vcombine.low %v8897_v18, %v8905_v1  ;;  %v17732_v34 = vcombine.high %v8913_v61, %v8921_v54  ;;  %v8992_v15 = vld [vmem:[#allocation24 + $0x720] sm:$0xff]  ;;  %v8993_v1 = vld [vmem:[#allocation24 + $0x728] sm:$0xff] }
 0xbf6   :  { %12356 = vmatprep.subr.bf16.mxu1 %v17636_v29  ;;  %v17730_v29 = vcombine.high %v8912_v8, %v8920_v31  ;;  %v9000_v18 = vld [vmem:[#allocation24 + $0x760] sm:$0xff] }
 0xbf8   :  { %12271 = vmatpush1.bf16.msra.mxu0 %v17633_v30  ;;  %v8937_v30 = vld [vmem:[#allocation24 + $0x568] sm:$0xff] }
 0xbf9   :  { %12357 = vmatpush1.bf16.msra.mxu1 %v17635_v20  ;;  %12272 = vmatprep.subr.bf16.mxu0 %v17650_v57  ;;  %v17729_v20 = vcombine.low %v8912_v8, %v8920_v31  ;;  %v17731_v57 = vcombine.low %v8913_v61, %v8921_v54  ;;  %v17748_v21 = vcombine.high %v8929_v28, %v8937_v30  ;;  %v9008_v31 = vld [vmem:[#allocation24 + $0x7a0] sm:$0xff]  ;;  %v9009_v54 = vld [vmem:[#allocation24 + $0x7a8] sm:$0xff] }
 0xbfa   :  { %12358 = vmatprep.subr.bf16.mxu1 %v17652_v10  ;;  %v17746_v10 = vcombine.high %v8928_v24, %v8936_v25  ;;  %v9016_v61 = vld [vmem:[#allocation24 + $0x7e0] sm:$0xff] }
 0xbfc   :  { %12273 = vmatpush1.bf16.msra.mxu0 %v17649_v44  ;;  %v8953_v44 = vld [vmem:[#allocation24 + $0x5e8] sm:$0xff] }
 0xbfd   :  { %12359 = vmatpush1.bf16.msra.mxu1 %v17651_v45  ;;  %12274 = vmatprep.subr.bf16.mxu0 %v17666_v13  ;;  %v17745_v45 = vcombine.low %v8928_v24, %v8936_v25  ;;  %v17747_v13 = vcombine.low %v8929_v28, %v8937_v30  ;;  %v17764_v53 = vcombine.high %v8945_v6, %v8953_v44  ;;  %v9024_v25 = vld [vmem:[#allocation24 + $0x820] sm:$0xff]  ;;  %v9025_v30 = vld [vmem:[#allocation24 + $0x828] sm:$0xff] }
 0xbfe   :  { %12360 = vmatprep.subr.bf16.mxu1 %v17668_v48  ;;  %v17762_v48 = vcombine.high %v8944_v42, %v8952_v63  ;;  %v9032_v28 = vld [vmem:[#allocation24 + $0x860] sm:$0xff] }
 0xc00   :  { %12275 = vmatpush1.bf16.msra.mxu0 %v17665_v47  ;;  %v8969_v47 = vld [vmem:[#allocation24 + $0x668] sm:$0xff] }
 0xc01   :  { %12361 = vmatpush1.bf16.msra.mxu1 %v17667_v11  ;;  %12276 = vmatprep.subr.bf16.mxu0 %v17682_v12  ;;  %v17761_v11 = vcombine.low %v8944_v42, %v8952_v63  ;;  %v17763_v12 = vcombine.low %v8945_v6, %v8953_v44  ;;  %v17780_v14 = vcombine.high %v8961_v59, %v8969_v47  ;;  %v9040_v63 = vld [vmem:[#allocation24 + $0x8a0] sm:$0xff] }
 0xc02   :  { %12362 = vmatprep.subr.bf16.mxu1 %v17684_v36  ;;  %v17778_v36 = vcombine.high %v8960_v19, %v8968_v7  ;;  %v9048_v6 = vld [vmem:[#allocation24 + $0x8e0] sm:$0xff]  ;;  %v17841_v44 = vcombine.low %v9024_v25, %v9032_v28 }
 0xc04   :  { %12277 = vmatpush1.bf16.msra.mxu0 %v17681_v33  ;;  %v8985_v33 = vld [vmem:[#allocation24 + $0x6e8] sm:$0xff] }
 0xc05   :  { %12363 = vmatpush1.bf16.msra.mxu1 %v17683_v56  ;;  %12278 = vmatprep.subr.bf16.mxu0 %v17698_v3  ;;  %v17777_v56 = vcombine.low %v8960_v19, %v8968_v7  ;;  %v17779_v3 = vcombine.low %v8961_v59, %v8969_v47  ;;  %v17796_v52 = vcombine.high %v8977_v49, %v8985_v33  ;;  %v9056_v19 = vld [vmem:[#allocation24 + $0x920] sm:$0xff]  ;;  %v9057_v47 = vld [vmem:[#allocation24 + $0x928] sm:$0xff] }
 0xc06   :  { %12364 = vmatprep.subr.bf16.mxu1 %v17700_v9  ;;  %v17794_v9 = vcombine.high %v8976_v58, %v8984_v23  ;;  %v9064_v7 = vld [vmem:[#allocation24 + $0x960] sm:$0xff] }
 0xc08   :  { %12279 = vmatpush1.bf16.msra.mxu0 %v17697_v2  ;;  %v9001_v2 = vld [vmem:[#allocation24 + $0x768] sm:$0xff] }
 0xc09   :  { %12365 = vmatpush1.bf16.msra.mxu1 %v17699_v4  ;;  %12280 = vmatprep.subr.bf16.mxu0 %v17714_v38  ;;  %v17793_v4 = vcombine.low %v8976_v58, %v8984_v23  ;;  %v17795_v38 = vcombine.low %v8977_v49, %v8985_v33  ;;  %v17812_v8 = vcombine.high %v8993_v1, %v9001_v2  ;;  %v9072_v23 = vld [vmem:[#allocation24 + $0x9a0] sm:$0xff]  ;;  %v9073_v33 = vld [vmem:[#allocation24 + $0x9a8] sm:$0xff] }
 0xc0a   :  { %12366 = vmatprep.subr.bf16.mxu1 %v17716_v5  ;;  %v17810_v5 = vcombine.high %v8992_v15, %v9000_v18  ;;  %v9080_v49 = vld [vmem:[#allocation24 + $0x9e0] sm:$0xff] }
 0xc0c   :  { %12281 = vmatpush1.bf16.msra.mxu0 %v17713_v51  ;;  %v9017_v51 = vld [vmem:[#allocation24 + $0x7e8] sm:$0xff] }
 0xc0d   :  { %12367 = vmatpush1.bf16.msra.mxu1 %v17715_v62  ;;  %12282 = vmatprep.subr.bf16.mxu0 %v17730_v29  ;;  %v17809_v62 = vcombine.low %v8992_v15, %v9000_v18  ;;  %v17811_v29 = vcombine.low %v8993_v1, %v9001_v2  ;;  %v17828_v24 = vcombine.high %v9009_v54, %v9017_v51  ;;  %v9088_v18 = vld [vmem:[#allocation24 + $0xa20] sm:$0xff]  ;;  %v9089_v2 = vld [vmem:[#allocation24 + $0xa28] sm:$0xff] }
 0xc0e   :  { %12368 = vmatprep.subr.bf16.mxu1 %v17732_v34  ;;  %v17826_v34 = vcombine.high %v9008_v31, %v9016_v61  ;;  %v9096_v1 = vld [vmem:[#allocation24 + $0xa60] sm:$0xff] }
 0xc10   :  { %12283 = vmatpush1.bf16.msra.mxu0 %v17729_v20  ;;  %v9033_v20 = vld [vmem:[#allocation24 + $0x868] sm:$0xff] }
 0xc11   :  { %12369 = vmatpush1.bf16.msra.mxu1 %v17731_v57  ;;  %12284 = vmatprep.subr.bf16.mxu0 %v17746_v10  ;;  %v17825_v57 = vcombine.low %v9008_v31, %v9016_v61  ;;  %v17827_v10 = vcombine.low %v9009_v54, %v9017_v51  ;;  %v17844_v42 = vcombine.high %v9025_v30, %v9033_v20  ;;  %v9104_v61 = vld [vmem:[#allocation24 + $0xaa0] sm:$0xff]  ;;  %v9105_v51 = vld [vmem:[#allocation24 + $0xaa8] sm:$0xff] }
 0xc12   :  { %12370 = vmatprep.subr.bf16.mxu1 %v17748_v21  ;;  %v17842_v21 = vcombine.high %v9024_v25, %v9032_v28  ;;  %v9112_v54 = vld [vmem:[#allocation24 + $0xae0] sm:$0xff] }
 0xc13   :  { %v17922_v25 = vcombine.high %v9104_v61, %v9112_v54 }
 0xc14   :  { %12285 = vmatpush1.bf16.msra.mxu0 %v17745_v45  ;;  %v9041_v45 = vld [vmem:[#allocation24 + $0x8a8] sm:$0xff] }
 0xc15   :  { %12371 = vmatpush1.bf16.msra.mxu1 %v17747_v13  ;;  %12286 = vmatprep.subr.bf16.mxu0 %v17762_v48  ;;  %v9049_v13 = vld [vmem:[#allocation24 + $0x8e8] sm:$0xff]  ;;  %v17843_v48 = vcombine.low %v9025_v30, %v9033_v20  ;;  %v9120_v30 = vld [vmem:[#allocation24 + $0xb20] sm:$0xff] }
 0xc16   :  { %12372 = vmatprep.subr.bf16.mxu1 %v17764_v53  ;;  %v17858_v53 = vcombine.high %v9040_v63, %v9048_v6  ;;  %v17860_v59 = vcombine.high %v9041_v45, %v9049_v13  ;;  %v9128_v20 = vld [vmem:[#allocation24 + $0xb60] sm:$0xff] }
 0xc18   :  { %12287 = vmatpush1.bf16.msra.mxu0 %v17761_v11  ;;  %v9065_v11 = vld [vmem:[#allocation24 + $0x968] sm:$0xff] }
 0xc19   :  { %12373 = vmatpush1.bf16.msra.mxu1 %v17763_v12  ;;  %12288 = vmatprep.subr.bf16.mxu0 %v17778_v36  ;;  %v17857_v12 = vcombine.low %v9040_v63, %v9048_v6  ;;  %v17859_v36 = vcombine.low %v9041_v45, %v9049_v13  ;;  %v17876_v58 = vcombine.high %v9057_v47, %v9065_v11 }
 0xc1a   :  { %12374 = vmatprep.subr.bf16.mxu1 %v17780_v14  ;;  %v17874_v14 = vcombine.high %v9056_v19, %v9064_v7  ;;  %v17938_v13 = vcombine.high %v9120_v30, %v9128_v20 }
 0xc1c   :  { %12289 = vmatpush1.bf16.msra.mxu0 %v17777_v56  ;;  %v9081_v56 = vld [vmem:[#allocation24 + $0x9e8] sm:$0xff] }
 0xc1d   :  { %12375 = vmatpush1.bf16.msra.mxu1 %v17779_v3  ;;  %12290 = vmatprep.subr.bf16.mxu0 %v17794_v9  ;;  %v17873_v3 = vcombine.low %v9056_v19, %v9064_v7  ;;  %v17875_v9 = vcombine.low %v9057_v47, %v9065_v11  ;;  %v17892_v15 = vcombine.high %v9073_v33, %v9081_v56 }
 0xc1e   :  { %12376 = vmatprep.subr.bf16.mxu1 %v17796_v52  ;;  %v17890_v52 = vcombine.high %v9072_v23, %v9080_v49 }
 0xc20   :  { %12291 = vmatpush1.bf16.msra.mxu0 %v17793_v4  ;;  %v9097_v4 = vld [vmem:[#allocation24 + $0xa68] sm:$0xff] }
 0xc21   :  { %12377 = vmatpush1.bf16.msra.mxu1 %v17795_v38  ;;  %12292 = vmatprep.subr.bf16.mxu0 %v17810_v5  ;;  %v17889_v38 = vcombine.low %v9072_v23, %v9080_v49  ;;  %v17891_v5 = vcombine.low %v9073_v33, %v9081_v56  ;;  %v17908_v31 = vcombine.high %v9089_v2, %v9097_v4  ;;  %v9145_v23 = vld [vmem:[#allocation24 + $0xbe8] sm:$0xff] }
 0xc22   :  { %12378 = vmatprep.subr.bf16.mxu1 %v17812_v8  ;;  %v17906_v8 = vcombine.high %v9088_v18, %v9096_v1 }
 0xc24   :  { %12293 = vmatpush1.bf16.msra.mxu0 %v17809_v62  ;;  %v9113_v62 = vld [vmem:[#allocation24 + $0xae8] sm:$0xff] }
 0xc25   :  { %12379 = vmatpush1.bf16.msra.mxu1 %v17811_v29  ;;  %12294 = vmatprep.subr.bf16.mxu0 %v17826_v34  ;;  %v17905_v29 = vcombine.low %v9088_v18, %v9096_v1  ;;  %v22566_v34 = vld [vmem:[#allocation26] sm:$0xff]  ;;  %v17924_v28 = vcombine.high %v9105_v51, %v9113_v62  ;;  %v17923_v45 = vcombine.low %v9105_v51, %v9113_v62 }
 0xc26   :  { %12380 = vmatprep.subr.bf16.mxu1 %v17828_v24  ;;  %v17907_v24 = vcombine.low %v9089_v2, %v9097_v4  ;;  %v9287_v63 = vrot.slane %v22566_v34, %v22096_v46  ;;  %v9295_v6 = vrot.slane %v22566_v34, %v22154_v55 }
 0xc28   :  { %12295 = vmatpush1.bf16.msra.mxu0 %v17825_v57  ;;  %v9283_v57 = vrot.slane %v22566_v34, %v22093_v43 }
 0xc29   :  { %12381 = vmatpush1.bf16.msra.mxu1 %v17827_v10  ;;  %12307 = vmatprep.subr.bf16.mxu0 %v17842_v21  ;;  %v9291_v10 = vrot.slane %v22566_v34, %v22151_v32  ;;  %v9121_v21 = vld [vmem:[#allocation24 + $0xb28] sm:$0xff] }
 0xc2a   :  { %12393 = vmatprep.subr.bf16.mxu1 %v17844_v42  ;;  %v9129_v42 = vld [vmem:[#allocation24 + $0xb68] sm:$0xff] }
 0xc2b   :  { %12297 = vmatmul.mubr.bf16.vlgmr.msra.gmra.mrb[72].mxu0 %v22529_v27 }
 0xc2c   :  { %12383 = vmatmul.mubr.bf16.vlgmr.msra.gmra.mrb[72].mxu1 %v22529_v27  ;;  %12308 = vmatpush1.bf16.msra.mxu0 %v17841_v44  ;;  %v17921_v44 = vcombine.low %v9104_v61, %v9112_v54  ;;  %v9152_v61 = vld [vmem:[#allocation24 + $0xc20] sm:$0xff] }
 0xc2d   :  { %12339 = vmatprep.mubr.bf16.mxu0 %v22536_v17  ;;  %12394 = vmatpush1.bf16.msra.mxu1 %v17843_v48  ;;  %v9136_v48 = vld [vmem:[#allocation24 + $0xba0] sm:$0xff] }
 0xc2e   :  { %12425 = vmatprep.mubr.bf16.mxu1 %v22536_v17  ;;  %12309 = vmatprep.subr.bf16.mxu0 %v17858_v53  ;;  %v9144_v53 = vld [vmem:[#allocation24 + $0xbe0] sm:$0xff] }
 0xc2f   :  { %12395 = vmatprep.subr.bf16.mxu1 %v17860_v59  ;;  %v17940_v59 = vcombine.high %v9121_v21, %v9129_v42  ;;  %v17954_v4 = vcombine.high %v9136_v48, %v9144_v53  ;;  %v9160_v54 = vld [vmem:[#allocation24 + $0xc60] sm:$0xff] }
 0xc30   :  { %12310 = vmatpush1.bf16.msra.mxu0 %v17857_v12 }
 0xc31   :  { %12396 = vmatpush1.bf16.msra.mxu1 %v17859_v36  ;;  %12311 = vmatprep.subr.bf16.mxu0 %v17874_v14  ;;  %v17937_v14 = vcombine.low %v9120_v30, %v9128_v20 }
 0xc32   :  { %12397 = vmatprep.subr.bf16.mxu1 %v17876_v58  ;;  %v9137_v58 = vld [vmem:[#allocation24 + $0xba8] sm:$0xff] }
 0xc34   :  { %12312 = vmatpush1.bf16.msra.mxu0 %v17873_v3 }
 0xc35   :  { %12398 = vmatpush1.bf16.msra.mxu1 %v17875_v9  ;;  %12313 = vmatprep.subr.bf16.mxu0 %v17890_v52  ;;  %v17939_v9 = vcombine.low %v9121_v21, %v9129_v42  ;;  %v17953_v52 = vcombine.low %v9136_v48, %v9144_v53  ;;  %v9176_v48 = vld [vmem:[#allocation24 + $0xce0] sm:$0xff]  ;;  %v9169_v53 = vld [vmem:[#allocation24 + $0xca8] sm:$0xff] }
 0xc36   :  { %12399 = vmatprep.subr.bf16.mxu1 %v17892_v15 }
 0xc38   :  { %12314 = vmatpush1.bf16.msra.mxu0 %v17889_v38 }
 0xc39   :  { %12400 = vmatpush1.bf16.msra.mxu1 %v17891_v5  ;;  %12315 = vmatprep.subr.bf16.mxu0 %v17906_v8  ;;  %v17955_v8 = vcombine.low %v9137_v58, %v9145_v23 }
 0xc3a   :  { %12401 = vmatprep.subr.bf16.mxu1 %v17908_v31  ;;  %v17956_v31 = vcombine.high %v9137_v58, %v9145_v23  ;;  %v9193_v58 = vld [vmem:[#allocation24 + $0xd68] sm:$0xff] }
 0xc3c   :  { %12316 = vmatpush1.bf16.msra.mxu0 %v17905_v29 }
 0xc3d   :  { %12402 = vmatpush1.bf16.msra.mxu1 %v17907_v24  ;;  %12317 = vmatprep.subr.bf16.mxu0 %v17922_v25  ;;  %v9153_v25 = vld [vmem:[#allocation24 + $0xc28] sm:$0xff] }
 0xc3e   :  { %v11997_v19 = vpop.f32.mrb[64].mxu0  ;;  %v12083_v7 = vpop.f32.mrb[64].mxu1  ;;  %12403 = vmatprep.subr.bf16.mxu1 %v17924_v28  ;;  %v9161_v28 = vld [vmem:[#allocation24 + $0xc68] sm:$0xff] }
 0xc3f   :  { %v18697_v47 = vadd.f32 %v11997_v19, %v9283_v57  ;;  %v18701_v11 = vadd.f32 %v12083_v7, %v9291_v10  ;;  %v11999_v12 = vpop.f32.mrb[65].mxu0  ;;  %v12085_v36 = vpop.f32.mrb[65].mxu1  ;;  %v9177_v19 = vld [vmem:[#allocation24 + $0xce8] sm:$0xff]  ;;  %v17969_v7 = vcombine.low %v9152_v61, %v9160_v54 }
 0xc40   :  { %v18698_v49 = vadd.f32 %v11999_v12, %v9287_v63  ;;  %v18702_v33 = vadd.f32 %v12085_v36, %v9295_v6  ;;  %v12001_v56 = vpop.f32.mrb[66].mxu0  ;;  %v12087_v3 = vpop.f32.mrb[66].mxu1  ;;  %12318 = vmatpush1.bf16.msra.mxu0 %v17921_v44  ;;  %v9184_v12 = vld [vmem:[#allocation24 + $0xd20] sm:$0xff] }
 0xc41   :  { %v18699_v15 = vadd.f32 %v12001_v56, %v9283_v57  ;;  %v18703_v18 = vadd.f32 %v12087_v3, %v9291_v10  ;;  %12404 = vmatpush1.bf16.msra.mxu1 %v17923_v45  ;;  %v12003_v1 = vpop.f32.mrb[67].mxu0  ;;  %v12089_v2 = vpop.f32.mrb[67].mxu1  ;;  %12319 = vmatprep.subr.bf16.mxu0 %v17938_v13  ;;  %v12608_v51 = vmax.f32 %v18697_v47, 0.0  ;;  %v12610_v62 = vmax.f32 %v18701_v11, 0.0  ;;  %v9168_v13 = vld [vmem:[#allocation24 + $0xca0] sm:$0xff] }
 0xc42   :  { %v18700_v38 = vadd.f32 %v12003_v1, %v9287_v63  ;;  %v18704_v5 = vadd.f32 %v12089_v2, %v9295_v6  ;;  %12405 = vmatprep.subr.bf16.mxu1 %v17940_v59  ;;  %v12609_v30 = vmax.f32 %v18698_v49, 0.0  ;;  %v12611_v20 = vmax.f32 %v18702_v33, 0.0  ;;  %v9192_v36 = vld [vmem:[#allocation24 + $0xd60] sm:$0xff] }
 0xc43   :  { %v12624_v29 = vmax.f32 %v18699_v15, 0.0  ;;  %v12626_v24 = vmax.f32 %v18703_v18, 0.0  ;;  %v17970_v63 = vcombine.high %v9152_v61, %v9160_v54  ;;  %v17972_v45 = vcombine.high %v9153_v25, %v9161_v28  ;;  %v9200_v3 = vld [vmem:[#allocation24 + $0xda0] sm:$0xff]  ;;  %v9209_v15 = vld [vmem:[#allocation24 + $0xde8] sm:$0xff] }
 0xc44   :  { %v12625_v57 = vmax.f32 %v18700_v38, 0.0  ;;  %v12627_v10 = vmax.f32 %v18704_v5, 0.0  ;;  %12320 = vmatpush1.bf16.msra.mxu0 %v17937_v14  ;;  %v17971_v59 = vcombine.low %v9153_v25, %v9161_v28  ;;  %v17986_v47 = vcombine.high %v9168_v13, %v9176_v48  ;;  %v9185_v14 = vld [vmem:[#allocation24 + $0xd28] sm:$0xff]  ;;  %v9216_v38 = vld [vmem:[#allocation24 + $0xe20] sm:$0xff] }
 0xc45   :  { %v22576_v21 = vpack.c.bf16 %v12624_v29, %v12608_v51  ;;  %v22578_v42 = vpack.c.bf16 %v12626_v24, %v12610_v62  ;;  %12406 = vmatpush1.bf16.msra.mxu1 %v17939_v9  ;;  %12321 = vmatprep.subr.bf16.mxu0 %v17954_v4  ;;  %v17988_v11 = vcombine.high %v9169_v53, %v9177_v19  ;;  %v9208_v9 = vld [vmem:[#allocation24 + $0xde0] sm:$0xff]  ;;  %v9233_v25 = vld [vmem:[#allocation24 + $0xea8] sm:$0xff] }
 0xc46   :  { %v22580_v6 = vpack.c.bf16 %v12625_v57, %v12609_v30  ;;  %v22582_v44 = vpack.c.bf16 %v12627_v10, %v12611_v20  ;;  %12407 = vmatprep.subr.bf16.mxu1 %v17956_v31  ;;  %v17985_v23 = vcombine.low %v9168_v13, %v9176_v48  ;;  %v17987_v49 = vcombine.low %v9169_v53, %v9177_v19  ;;  %v9224_v5 = vld [vmem:[#allocation24 + $0xe60] sm:$0xff]  ;;  %v9225_v31 = vld [vmem:[#allocation24 + $0xe68] sm:$0xff] }
 0xc47   :  { %v18002_v33 = vcombine.high %v9184_v12, %v9192_v36  ;;  %v18004_v56 = vcombine.high %v9185_v14, %v9193_v58  ;;  %v18001_v18 = vcombine.low %v9184_v12, %v9192_v36  ;;  %v18003_v1 = vcombine.low %v9185_v14, %v9193_v58  ;;  %v9232_v29 = vld [vmem:[#allocation24 + $0xea0] sm:$0xff]  ;;  %v9241_v28 = vld [vmem:[#allocation24 + $0xee8] sm:$0xff] }
 0xc48   :  { %12322 = vmatpush1.bf16.msra.mxu0 %v17953_v52  ;;  %v9201_v52 = vld [vmem:[#allocation24 + $0xda8] sm:$0xff]  ;;  %v18018_v2 = vcombine.high %v9200_v3, %v9208_v9  ;;  %v18017_v61 = vcombine.low %v9200_v3, %v9208_v9  ;;  %v18034_v51 = vcombine.high %v9216_v38, %v9224_v5  ;;  %v9240_v24 = vld [vmem:[#allocation24 + $0xee0] sm:$0xff]  ;;  %v18033_v30 = vcombine.low %v9216_v38, %v9224_v5  ;;  %v8771_v3 = vld [vmem:[#allocation24 + $0x38] sm:$0xff] }
 0xc49   :  { %12408 = vmatpush1.bf16.msra.mxu1 %v17955_v8  ;;  %12323 = vmatprep.subr.bf16.mxu0 %v17970_v63  ;;  %v18020_v4 = vcombine.high %v9201_v52, %v9209_v15  ;;  %v9217_v8 = vld [vmem:[#allocation24 + $0xe28] sm:$0xff]  ;;  %v18019_v54 = vcombine.low %v9201_v52, %v9209_v15  ;;  %v18050_v57 = vcombine.high %v9232_v29, %v9240_v24  ;;  %v9248_v63 = vld [vmem:[#allocation24 + $0xf20] sm:$0xff]  ;;  %v8779_v9 = vld [vmem:[#allocation24 + $0x78] sm:$0xff] }
 0xc4a   :  { %12409 = vmatprep.subr.bf16.mxu1 %v17972_v45  ;;  %v18036_v62 = vcombine.high %v9217_v8, %v9225_v31  ;;  %v18035_v20 = vcombine.low %v9217_v8, %v9225_v31  ;;  %v18052_v10 = vcombine.high %v9233_v25, %v9241_v28  ;;  %v9256_v45 = vld [vmem:[#allocation24 + $0xf60] sm:$0xff]  ;;  %v9249_v13 = vld [vmem:[#allocation24 + $0xf28] sm:$0xff]  ;;  %v18049_v53 = vcombine.low %v9232_v29, %v9240_v24  ;;  %v8787_v5 = vld [vmem:[#allocation24 + $0xb8] sm:$0xff] }
 0xc4b   :  { %v9257_v48 = vld [vmem:[#allocation24 + $0xf68] sm:$0xff]  ;;  %v18051_v19 = vcombine.low %v9233_v25, %v9241_v28  ;;  %v18065_v14 = vcombine.low %v9248_v63, %v9256_v45  ;;  %v8795_v8 = vld [vmem:[#allocation24 + $0xf8] sm:$0xff]  ;;  %v17591_v31 = vcombine.low %v8771_v3, %v8779_v9 }
 0xc4c   :  { %12324 = vmatpush1.bf16.msra.mxu0 %v17969_v7  ;;  %v18066_v7 = vcombine.high %v9248_v63, %v9256_v45  ;;  %v9265_v12 = vld [vmem:[#allocation24 + $0xfa8] sm:$0xff]  ;;  %v18067_v58 = vcombine.low %v9249_v13, %v9257_v48  ;;  %v8803_v29 = vld [vmem:[#allocation24 + $0x138] sm:$0xff]  ;;  %v17607_v28 = vcombine.low %v8787_v5, %v8795_v8 }
 0xc4d   :  { %12410 = vmatpush1.bf16.msra.mxu1 %v17971_v59  ;;  %12325 = vmatprep.subr.bf16.mxu0 %v17986_v47  ;;  %v18068_v59 = vcombine.high %v9249_v13, %v9257_v48  ;;  %v9264_v47 = vld [vmem:[#allocation24 + $0xfa0] sm:$0xff]  ;;  %v9273_v36 = vld [vmem:[#allocation24 + $0xfe8] sm:$0xff]  ;;  %v8811_v24 = vld [vmem:[#allocation24 + $0x178] sm:$0xff] }
 0xc4e   :  { %12411 = vmatprep.subr.bf16.mxu1 %v17988_v11  ;;  %v9272_v11 = vld [vmem:[#allocation24 + $0xfe0] sm:$0xff]  ;;  %v18083_v15 = vcombine.low %v9265_v12, %v9273_v36  ;;  %v8819_v63 = vld [vmem:[#allocation24 + $0x1b8] sm:$0xff]  ;;  %v17623_v48 = vcombine.low %v8803_v29, %v8811_v24 }
 0xc4f   :  { %v18081_v52 = vcombine.low %v9264_v47, %v9272_v11  ;;  %v8827_v45 = vld [vmem:[#allocation24 + $0x1f8] sm:$0xff] }
 0xc50   :  { %12326 = vmatpush1.bf16.msra.mxu0 %v17985_v23  ;;  %v18082_v23 = vcombine.high %v9264_v47, %v9272_v11  ;;  %v8835_v47 = vld [vmem:[#allocation24 + $0x238] sm:$0xff] }
 0xc51   :  { %12412 = vmatpush1.bf16.msra.mxu1 %v17987_v49  ;;  %12327 = vmatprep.subr.bf16.mxu0 %v18002_v33  ;;  %v18084_v49 = vcombine.high %v9265_v12, %v9273_v36  ;;  %v8770_v33 = vld [vmem:[#allocation24 + $0x30] sm:$0xff]  ;;  %v8843_v11 = vld [vmem:[#allocation24 + $0x278] sm:$0xff]  ;;  %v17639_v12 = vcombine.low %v8819_v63, %v8827_v45 }
 0xc52   :  { %12413 = vmatprep.subr.bf16.mxu1 %v18004_v56  ;;  %v8778_v56 = vld [vmem:[#allocation24 + $0x70] sm:$0xff] }
 0xc53   :  { %v17589_v38 = vcombine.low %v8770_v33, %v8778_v56 }
 0xc54   :  { %12328 = vmatpush1.bf16.msra.mxu0 %v18001_v18  ;;  %v17590_v18 = vcombine.high %v8770_v33, %v8778_v56  ;;  %v8859_v33 = vld [vmem:[#allocation24 + $0x2f8] sm:$0xff] }
 0xc55   :  { %12414 = vmatpush1.bf16.msra.mxu1 %v18003_v1  ;;  %12329 = vmatprep.subr.bf16.mxu0 %v18018_v2  ;;  %v17592_v1 = vcombine.high %v8771_v3, %v8779_v9  ;;  %v8786_v2 = vld [vmem:[#allocation24 + $0xb0] sm:$0xff]  ;;  %v17655_v3 = vcombine.low %v8835_v47, %v8843_v11 }
 0xc56   :  { %12415 = vmatprep.subr.bf16.mxu1 %v18020_v4  ;;  %v8794_v4 = vld [vmem:[#allocation24 + $0xf0] sm:$0xff] }
 0xc57   :  { %v17605_v25 = vcombine.low %v8786_v2, %v8794_v4 }
 0xc58   :  { %12330 = vmatpush1.bf16.msra.mxu0 %v18017_v61  ;;  %v17606_v61 = vcombine.high %v8786_v2, %v8794_v4  ;;  %v8875_v2 = vld [vmem:[#allocation24 + $0x378] sm:$0xff] }
 0xc59   :  { %12416 = vmatpush1.bf16.msra.mxu1 %v18019_v54  ;;  %12331 = vmatprep.subr.bf16.mxu0 %v18034_v51  ;;  %v8802_v54 = vld [vmem:[#allocation24 + $0x130] sm:$0xff] }
 0xc5a   :  { %12417 = vmatprep.subr.bf16.mxu1 %v18036_v62  ;;  %v8810_v51 = vld [vmem:[#allocation24 + $0x170] sm:$0xff]  ;;  %v17608_v62 = vcombine.high %v8787_v5, %v8795_v8 }
 0xc5b   :  { %v17621_v13 = vcombine.low %v8802_v54, %v8810_v51 }
 0xc5c   :  { %12332 = vmatpush1.bf16.msra.mxu0 %v18033_v30  ;;  %v17622_v30 = vcombine.high %v8802_v54, %v8810_v51  ;;  %v8883_v54 = vld [vmem:[#allocation24 + $0x3b8] sm:$0xff] }
 0xc5d   :  { %12418 = vmatpush1.bf16.msra.mxu1 %v18035_v20  ;;  %12333 = vmatprep.subr.bf16.mxu0 %v18050_v57  ;;  %v17624_v20 = vcombine.high %v8803_v29, %v8811_v24  ;;  %v8818_v57 = vld [vmem:[#allocation24 + $0x1b0] sm:$0xff]  ;;  %v8891_v51 = vld [vmem:[#allocation24 + $0x3f8] sm:$0xff] }
 0xc5e   :  { %12419 = vmatprep.subr.bf16.mxu1 %v18052_v10  ;;  %v8826_v10 = vld [vmem:[#allocation24 + $0x1f0] sm:$0xff] }
 0xc60   :  { %12334 = vmatpush1.bf16.msra.mxu0 %v18049_v53  ;;  %v17638_v53 = vcombine.high %v8818_v57, %v8826_v10 }
 0xc61   :  { %12420 = vmatpush1.bf16.msra.mxu1 %v18051_v19  ;;  %12335 = vmatprep.subr.bf16.mxu0 %v18066_v7  ;;  %v17640_v19 = vcombine.high %v8819_v63, %v8827_v45  ;;  %v8834_v7 = vld [vmem:[#allocation24 + $0x230] sm:$0xff]  ;;  %v17703_v63 = vcombine.low %v8883_v54, %v8891_v51 }
 0xc62   :  { %12421 = vmatprep.subr.bf16.mxu1 %v18068_v59  ;;  %v8842_v59 = vld [vmem:[#allocation24 + $0x270] sm:$0xff] }
 0xc63   :  { %v17654_v36 = vcombine.high %v8834_v7, %v8842_v59  ;;  %v17653_v56 = vcombine.low %v8834_v7, %v8842_v59  ;;  %v8923_v7 = vld [vmem:[#allocation24 + $0x4f8] sm:$0xff] }
 0xc64   :  { %12336 = vmatpush1.bf16.msra.mxu0 %v18065_v14  ;;  %v17656_v14 = vcombine.high %v8835_v47, %v8843_v11 }
 0xc65   :  { %12422 = vmatpush1.bf16.msra.mxu1 %v18067_v58  ;;  %12337 = vmatprep.subr.bf16.mxu0 %v18082_v23  ;;  %v8850_v58 = vld [vmem:[#allocation24 + $0x2b0] sm:$0xff] }
 0xc66   :  { %12423 = vmatprep.subr.bf16.mxu1 %v18084_v49  ;;  %v8858_v23 = vld [vmem:[#allocation24 + $0x2f0] sm:$0xff]  ;;  %v8851_v49 = vld [vmem:[#allocation24 + $0x2b8] sm:$0xff] }
 0xc67   :  { %v17670_v9 = vcombine.high %v8850_v58, %v8858_v23  ;;  %v17669_v4 = vcombine.low %v8850_v58, %v8858_v23  ;;  %v8939_v58 = vld [vmem:[#allocation24 + $0x578] sm:$0xff] }
 0xc68   :  { %12338 = vmatpush1.bf16.msra.mxu0 %v18081_v52  ;;  %v17672_v52 = vcombine.high %v8851_v49, %v8859_v33 }
 0xc69   :  { %12424 = vmatpush1.bf16.msra.mxu1 %v18083_v15  ;;  %12436 = vmatprep.subr.bf16.mxu0 %v17590_v18  ;;  %v8866_v15 = vld [vmem:[#allocation24 + $0x330] sm:$0xff] }
 0xc6a   :  { %12522 = vmatprep.subr.bf16.mxu1 %v17592_v1  ;;  %v8874_v18 = vld [vmem:[#allocation24 + $0x370] sm:$0xff]  ;;  %v8867_v1 = vld [vmem:[#allocation24 + $0x338] sm:$0xff] }
 0xc6b   :  { %12340 = vmatmul.mubr.bf16.vlgmr.msra.gmra.mrb[72].mxu0 %v22548_v41  ;;  %v17686_v5 = vcombine.high %v8866_v15, %v8874_v18  ;;  %v17688_v8 = vcombine.high %v8867_v1, %v8875_v2  ;;  %v17687_v29 = vcombine.low %v8867_v1, %v8875_v2 }
 0xc6c   :  { %12426 = vmatmul.mubr.bf16.vlgmr.msra.gmra.mrb[72].mxu1 %v22548_v41  ;;  %12437 = vmatpush1.bf16.msra.mxu0 %v17589_v38  ;;  %v17671_v38 = vcombine.low %v8851_v49, %v8859_v33 }
 0xc6d   :  { %12468 = vmatprep.mubr.bf16.mxu0 %v22526_v26  ;;  %12523 = vmatpush1.bf16.msra.mxu1 %v17591_v31  ;;  %v8882_v31 = vld [vmem:[#allocation24 + $0x3b0] sm:$0xff] }
 0xc6e   :  { %12554 = vmatprep.mubr.bf16.mxu1 %v22526_v26  ;;  %12438 = vmatprep.subr.bf16.mxu0 %v17606_v61  ;;  %v17637_v26 = vcombine.low %v8818_v57, %v8826_v10  ;;  %v8890_v61 = vld [vmem:[#allocation24 + $0x3f0] sm:$0xff]  ;;  %v8907_v57 = vld [vmem:[#allocation24 + $0x478] sm:$0xff] }
 0xc6f   :  { %12524 = vmatprep.subr.bf16.mxu1 %v17608_v62  ;;  %v17685_v62 = vcombine.low %v8866_v15, %v8874_v18  ;;  %v17702_v24 = vcombine.high %v8882_v31, %v8890_v61  ;;  %v17701_v10 = vcombine.low %v8882_v31, %v8890_v61  ;;  %v8955_v15 = vld [vmem:[#allocation24 + $0x5f8] sm:$0xff] }
 0xc70   :  { %12439 = vmatpush1.bf16.msra.mxu0 %v17605_v25  ;;  %v17704_v25 = vcombine.high %v8883_v54, %v8891_v51  ;;  %v8971_v31 = vld [vmem:[#allocation24 + $0x678] sm:$0xff] }
 0xc71   :  { %12525 = vmatpush1.bf16.msra.mxu1 %v17607_v28  ;;  %12440 = vmatprep.subr.bf16.mxu0 %v17622_v30  ;;  %v8898_v28 = vld [vmem:[#allocation24 + $0x430] sm:$0xff] }
 0xc72   :  { %12526 = vmatprep.subr.bf16.mxu1 %v17624_v20  ;;  %v8906_v30 = vld [vmem:[#allocation24 + $0x470] sm:$0xff]  ;;  %v8899_v20 = vld [vmem:[#allocation24 + $0x438] sm:$0xff] }
 0xc73   :  { %v17718_v45 = vcombine.high %v8898_v28, %v8906_v30  ;;  %v17717_v59 = vcombine.low %v8898_v28, %v8906_v30  ;;  %v17719_v47 = vcombine.low %v8899_v20, %v8907_v57  ;;  %v8987_v28 = vld [vmem:[#allocation24 + $0x6f8] sm:$0xff] }
 0xc74   :  { %12441 = vmatpush1.bf16.msra.mxu0 %v17621_v13  ;;  %v17720_v13 = vcombine.high %v8899_v20, %v8907_v57 }
 0xc75   :  { %12527 = vmatpush1.bf16.msra.mxu1 %v17623_v48  ;;  %12442 = vmatprep.subr.bf16.mxu0 %v17638_v53  ;;  %v8914_v48 = vld [vmem:[#allocation24 + $0x4b0] sm:$0xff] }
 0xc76   :  { %12528 = vmatprep.subr.bf16.mxu1 %v17640_v19  ;;  %v8922_v53 = vld [vmem:[#allocation24 + $0x4f0] sm:$0xff]  ;;  %v8915_v19 = vld [vmem:[#allocation24 + $0x4b8] sm:$0xff] }
 0xc77   :  { %v17734_v11 = vcombine.high %v8914_v48, %v8922_v53  ;;  %v17733_v23 = vcombine.low %v8914_v48, %v8922_v53  ;;  %v17735_v49 = vcombine.low %v8915_v19, %v8923_v7  ;;  %v9003_v48 = vld [vmem:[#allocation24 + $0x778] sm:$0xff] }
 0xc78   :  { %12443 = vmatpush1.bf16.msra.mxu0 %v17637_v26  ;;  %v17736_v26 = vcombine.high %v8915_v19, %v8923_v7 }
 0xc79   :  { %12529 = vmatpush1.bf16.msra.mxu1 %v17639_v12  ;;  %12444 = vmatprep.subr.bf16.mxu0 %v17654_v36  ;;  %v8930_v12 = vld [vmem:[#allocation24 + $0x530] sm:$0xff] }
 0xc7a   :  { %12530 = vmatprep.subr.bf16.mxu1 %v17656_v14  ;;  %v8938_v36 = vld [vmem:[#allocation24 + $0x570] sm:$0xff]  ;;  %v8931_v14 = vld [vmem:[#allocation24 + $0x538] sm:$0xff] }
 0xc7b   :  { %v17750_v33 = vcombine.high %v8930_v12, %v8938_v36  ;;  %v17749_v18 = vcombine.low %v8930_v12, %v8938_v36  ;;  %v17751_v1 = vcombine.low %v8931_v14, %v8939_v58  ;;  %v9019_v12 = vld [vmem:[#allocation24 + $0x7f8] sm:$0xff] }
 0xc7c   :  { %12445 = vmatpush1.bf16.msra.mxu0 %v17653_v56  ;;  %v17752_v56 = vcombine.high %v8931_v14, %v8939_v58 }
 0xc7d   :  { %12531 = vmatpush1.bf16.msra.mxu1 %v17655_v3  ;;  %12446 = vmatprep.subr.bf16.mxu0 %v17670_v9  ;;  %v8946_v3 = vld [vmem:[#allocation24 + $0x5b0] sm:$0xff] }
 0xc7e   :  { %12532 = vmatprep.subr.bf16.mxu1 %v17672_v52  ;;  %v8954_v9 = vld [vmem:[#allocation24 + $0x5f0] sm:$0xff]  ;;  %v8947_v52 = vld [vmem:[#allocation24 + $0x5b8] sm:$0xff] }
 0xc7f   :  { %v17766_v2 = vcombine.high %v8946_v3, %v8954_v9  ;;  %v17765_v61 = vcombine.low %v8946_v3, %v8954_v9  ;;  %v17767_v54 = vcombine.low %v8947_v52, %v8955_v15  ;;  %v9035_v3 = vld [vmem:[#allocation24 + $0x878] sm:$0xff] }
 0xc80   :  { %12447 = vmatpush1.bf16.msra.mxu0 %v17669_v4  ;;  %v17768_v4 = vcombine.high %v8947_v52, %v8955_v15 }
 0xc81   :  { %12533 = vmatpush1.bf16.msra.mxu1 %v17671_v38  ;;  %12448 = vmatprep.subr.bf16.mxu0 %v17686_v5  ;;  %v8962_v38 = vld [vmem:[#allocation24 + $0x630] sm:$0xff] }
 0xc82   :  { %12534 = vmatprep.subr.bf16.mxu1 %v17688_v8  ;;  %v8970_v5 = vld [vmem:[#allocation24 + $0x670] sm:$0xff]  ;;  %v8963_v8 = vld [vmem:[#allocation24 + $0x638] sm:$0xff] }
 0xc83   :  { %v17782_v51 = vcombine.high %v8962_v38, %v8970_v5  ;;  %v17781_v30 = vcombine.low %v8962_v38, %v8970_v5  ;;  %v17783_v20 = vcombine.low %v8963_v8, %v8971_v31  ;;  %v9043_v38 = vld [vmem:[#allocation24 + $0x8b8] sm:$0xff] }
 0xc84   :  { %12449 = vmatpush1.bf16.msra.mxu0 %v17685_v62  ;;  %v17784_v62 = vcombine.high %v8963_v8, %v8971_v31  ;;  %v9051_v5 = vld [vmem:[#allocation24 + $0x8f8] sm:$0xff] }
 0xc85   :  { %12535 = vmatpush1.bf16.msra.mxu1 %v17687_v29  ;;  %12450 = vmatprep.subr.bf16.mxu0 %v17702_v24  ;;  %v8978_v29 = vld [vmem:[#allocation24 + $0x6b0] sm:$0xff] }
 0xc86   :  { %12536 = vmatprep.subr.bf16.mxu1 %v17704_v25  ;;  %v8986_v24 = vld [vmem:[#allocation24 + $0x6f0] sm:$0xff]  ;;  %v8979_v25 = vld [vmem:[#allocation24 + $0x6b8] sm:$0xff] }
 0xc87   :  { %v17798_v57 = vcombine.high %v8978_v29, %v8986_v24  ;;  %v17797_v53 = vcombine.low %v8978_v29, %v8986_v24  ;;  %v17799_v19 = vcombine.low %v8979_v25, %v8987_v28  ;;  %v9067_v29 = vld [vmem:[#allocation24 + $0x978] sm:$0xff] }
 0xc88   :  { %12451 = vmatpush1.bf16.msra.mxu0 %v17701_v10  ;;  %v17800_v10 = vcombine.high %v8979_v25, %v8987_v28  ;;  %v17863_v25 = vcombine.low %v9043_v38, %v9051_v5 }
 0xc89   :  { %12537 = vmatpush1.bf16.msra.mxu1 %v17703_v63  ;;  %12452 = vmatprep.subr.bf16.mxu0 %v17718_v45  ;;  %v8994_v63 = vld [vmem:[#allocation24 + $0x730] sm:$0xff] }
 0xc8a   :  { %12538 = vmatprep.subr.bf16.mxu1 %v17720_v13  ;;  %v9002_v45 = vld [vmem:[#allocation24 + $0x770] sm:$0xff]  ;;  %v8995_v13 = vld [vmem:[#allocation24 + $0x738] sm:$0xff] }
 0xc8b   :  { %v17814_v7 = vcombine.high %v8994_v63, %v9002_v45  ;;  %v17813_v36 = vcombine.low %v8994_v63, %v9002_v45  ;;  %v17815_v14 = vcombine.low %v8995_v13, %v9003_v48  ;;  %v9083_v63 = vld [vmem:[#allocation24 + $0x9f8] sm:$0xff] }
 0xc8c   :  { %12453 = vmatpush1.bf16.msra.mxu0 %v17717_v59  ;;  %v17816_v59 = vcombine.high %v8995_v13, %v9003_v48 }
 0xc8d   :  { %12539 = vmatpush1.bf16.msra.mxu1 %v17719_v47  ;;  %12454 = vmatprep.subr.bf16.mxu0 %v17734_v11  ;;  %v9010_v47 = vld [vmem:[#allocation24 + $0x7b0] sm:$0xff] }
 0xc8e   :  { %12540 = vmatprep.subr.bf16.mxu1 %v17736_v26  ;;  %v9018_v11 = vld [vmem:[#allocation24 + $0x7f0] sm:$0xff]  ;;  %v9011_v26 = vld [vmem:[#allocation24 + $0x7b8] sm:$0xff] }
 0xc8f   :  { %v17830_v58 = vcombine.high %v9010_v47, %v9018_v11  ;;  %v17829_v9 = vcombine.low %v9010_v47, %v9018_v11  ;;  %v17831_v52 = vcombine.low %v9011_v26, %v9019_v12 }
 0xc90   :  { %12455 = vmatpush1.bf16.msra.mxu0 %v17733_v23  ;;  %v17832_v23 = vcombine.high %v9011_v26, %v9019_v12  ;;  %v9106_v12 = vld [vmem:[#allocation24 + $0xab0] sm:$0xff] }
 0xc91   :  { %12541 = vmatpush1.bf16.msra.mxu1 %v17735_v49  ;;  %12456 = vmatprep.subr.bf16.mxu0 %v17750_v33  ;;  %v9026_v49 = vld [vmem:[#allocation24 + $0x830] sm:$0xff] }
 0xc92   :  { %12542 = vmatprep.subr.bf16.mxu1 %v17752_v56  ;;  %v9034_v33 = vld [vmem:[#allocation24 + $0x870] sm:$0xff]  ;;  %v9027_v56 = vld [vmem:[#allocation24 + $0x838] sm:$0xff] }
 0xc93   :  { %v17846_v15 = vcombine.high %v9026_v49, %v9034_v33  ;;  %v17847_v8 = vcombine.low %v9027_v56, %v9035_v3 }
 0xc94   :  { %12457 = vmatpush1.bf16.msra.mxu0 %v17749_v18  ;;  %v17848_v18 = vcombine.high %v9027_v56, %v9035_v3  ;;  %v9122_v3 = vld [vmem:[#allocation24 + $0xb30] sm:$0xff] }
 0xc95   :  { %12543 = vmatpush1.bf16.msra.mxu1 %v17751_v1  ;;  %12458 = vmatprep.subr.bf16.mxu0 %v17766_v2  ;;  %v9042_v1 = vld [vmem:[#allocation24 + $0x8b0] sm:$0xff] }
 0xc96   :  { %12544 = vmatprep.subr.bf16.mxu1 %v17768_v4  ;;  %v9050_v2 = vld [vmem:[#allocation24 + $0x8f0] sm:$0xff]  ;;  %v17845_v4 = vcombine.low %v9026_v49, %v9034_v33 }
 0xc97   :  { %v17862_v31 = vcombine.high %v9042_v1, %v9050_v2  ;;  %v17861_v24 = vcombine.low %v9042_v1, %v9050_v2  ;;  %v9307_v1 = vrot.slane %v22566_v34, %v22278_v37  ;;  %v9303_v2 = vrot.slane %v22566_v34, %v22281_v40 }
 0xc98   :  { %12459 = vmatpush1.bf16.msra.mxu0 %v17765_v61  ;;  %v9058_v61 = vld [vmem:[#allocation24 + $0x930] sm:$0xff] }
 0xc99   :  { %12545 = vmatpush1.bf16.msra.mxu1 %v17767_v54  ;;  %12460 = vmatprep.subr.bf16.mxu0 %v17782_v51  ;;  %v9066_v54 = vld [vmem:[#allocation24 + $0x970] sm:$0xff]  ;;  %v17864_v51 = vcombine.high %v9043_v38, %v9051_v5  ;;  %v9311_v38 = vrot.slane %v22566_v34, %v22284_v0 }
 0xc9a   :  { %12546 = vmatprep.subr.bf16.mxu1 %v17784_v62  ;;  %v9059_v62 = vld [vmem:[#allocation24 + $0x938] sm:$0xff]  ;;  %v17878_v28 = vcombine.high %v9058_v61, %v9066_v54  ;;  %v17877_v45 = vcombine.low %v9058_v61, %v9066_v54  ;;  %v9138_v54 = vld [vmem:[#allocation24 + $0xbb0] sm:$0xff] }
 0xc9c   :  { %12461 = vmatpush1.bf16.msra.mxu0 %v17781_v30  ;;  %v17880_v30 = vcombine.high %v9059_v62, %v9067_v29 }
 0xc9d   :  { %12547 = vmatpush1.bf16.msra.mxu1 %v17783_v20  ;;  %12462 = vmatprep.subr.bf16.mxu0 %v17798_v57  ;;  %v9074_v20 = vld [vmem:[#allocation24 + $0x9b0] sm:$0xff] }
 0xc9e   :  { %12548 = vmatprep.subr.bf16.mxu1 %v17800_v10  ;;  %v9082_v57 = vld [vmem:[#allocation24 + $0x9f0] sm:$0xff]  ;;  %v9075_v10 = vld [vmem:[#allocation24 + $0x9b8] sm:$0xff] }
 0xc9f   :  { %v17894_v13 = vcombine.high %v9074_v20, %v9082_v57  ;;  %v17896_v48 = vcombine.high %v9075_v10, %v9083_v63  ;;  %v17895_v47 = vcombine.low %v9075_v10, %v9083_v63 }
 0xca0   :  { %12463 = vmatpush1.bf16.msra.mxu0 %v17797_v53  ;;  %v9090_v53 = vld [vmem:[#allocation24 + $0xa30] sm:$0xff] }
 0xca1   :  { %12549 = vmatpush1.bf16.msra.mxu1 %v17799_v19  ;;  %12464 = vmatprep.subr.bf16.mxu0 %v17814_v7  ;;  %v9098_v19 = vld [vmem:[#allocation24 + $0xa70] sm:$0xff]  ;;  %v9091_v7 = vld [vmem:[#allocation24 + $0xa38] sm:$0xff] }
 0xca2   :  { %12550 = vmatprep.subr.bf16.mxu1 %v17816_v59  ;;  %v9099_v59 = vld [vmem:[#allocation24 + $0xa78] sm:$0xff]  ;;  %v17910_v11 = vcombine.high %v9090_v53, %v9098_v19 }
 0xca3   :  { %v17912_v26 = vcombine.high %v9091_v7, %v9099_v59  ;;  %v17911_v49 = vcombine.low %v9091_v7, %v9099_v59 }
 0xca4   :  { %12465 = vmatpush1.bf16.msra.mxu0 %v17813_v36  ;;  %v9114_v36 = vld [vmem:[#allocation24 + $0xaf0] sm:$0xff] }
 0xca5   :  { %12551 = vmatpush1.bf16.msra.mxu1 %v17815_v14  ;;  %12466 = vmatprep.subr.bf16.mxu0 %v17830_v58  ;;  %v9107_v14 = vld [vmem:[#allocation24 + $0xab8] sm:$0xff]  ;;  %v17926_v33 = vcombine.high %v9106_v12, %v9114_v36 }
 0xca6   :  { %12552 = vmatprep.subr.bf16.mxu1 %v17832_v23  ;;  %v9115_v58 = vld [vmem:[#allocation24 + $0xaf8] sm:$0xff]  ;;  %v17909_v23 = vcombine.low %v9090_v53, %v9098_v19 }
 0xca7   :  { %v17928_v56 = vcombine.high %v9107_v14, %v9115_v58  ;;  %v17927_v5 = vcombine.low %v9107_v14, %v9115_v58 }
 0xca8   :  { %12467 = vmatpush1.bf16.msra.mxu0 %v17829_v9  ;;  %v9130_v9 = vld [vmem:[#allocation24 + $0xb70] sm:$0xff] }
 0xca9   :  { %12553 = vmatpush1.bf16.msra.mxu1 %v17831_v52  ;;  %12479 = vmatprep.subr.bf16.mxu0 %v17846_v15  ;;  %v9299_v52 = vrot.slane %v22566_v34, %v22275_v16  ;;  %v9123_v15 = vld [vmem:[#allocation24 + $0xb38] sm:$0xff]  ;;  %v17941_v63 = vcombine.low %v9122_v3, %v9130_v9 }
 0xcaa   :  { %12565 = vmatprep.subr.bf16.mxu1 %v17848_v18  ;;  %v9131_v18 = vld [vmem:[#allocation24 + $0xb78] sm:$0xff] }
 0xcab   :  { %12469 = vmatmul.mubr.bf16.vlgmr.msra.gmra.mrb[76].mxu0 %v22529_v27  ;;  %v17944_v61 = vcombine.high %v9123_v15, %v9131_v18  ;;  %v17943_v34 = vcombine.low %v9123_v15, %v9131_v18 }
 0xcac   :  { %12555 = vmatmul.mubr.bf16.vlgmr.msra.gmra.mrb[76].mxu1 %v22529_v27  ;;  %12480 = vmatpush1.bf16.msra.mxu0 %v17845_v4  ;;  %v17879_v27 = vcombine.low %v9059_v62, %v9067_v29  ;;  %v17925_v4 = vcombine.low %v9106_v12, %v9114_v36 }
 0xcad   :  { %12511 = vmatprep.mubr.bf16.mxu0 %v22536_v17  ;;  %12566 = vmatpush1.bf16.msra.mxu1 %v17847_v8  ;;  %v17942_v8 = vcombine.high %v9122_v3, %v9130_v9 }
 0xcae   :  { %12597 = vmatprep.mubr.bf16.mxu1 %v22536_v17  ;;  %12481 = vmatprep.subr.bf16.mxu0 %v17862_v31  ;;  %v17893_v17 = vcombine.low %v9074_v20, %v9082_v57 }
 0xcaf   :  { %12567 = vmatprep.subr.bf16.mxu1 %v17864_v51  ;;  %v9146_v51 = vld [vmem:[#allocation24 + $0xbf0] sm:$0xff] }
 0xcb0   :  { %12482 = vmatpush1.bf16.msra.mxu0 %v17861_v24  ;;  %v17958_v53 = vcombine.high %v9138_v54, %v9146_v51 }
 0xcb1   :  { %12568 = vmatpush1.bf16.msra.mxu1 %v17863_v25  ;;  %12483 = vmatprep.subr.bf16.mxu0 %v17878_v28  ;;  %v9139_v25 = vld [vmem:[#allocation24 + $0xbb8] sm:$0xff] }
 0xcb2   :  { %12569 = vmatprep.subr.bf16.mxu1 %v17880_v30  ;;  %v9147_v28 = vld [vmem:[#allocation24 + $0xbf8] sm:$0xff] }
 0xcb3   :  { %v17959_v58 = vcombine.low %v9139_v25, %v9147_v28 }
 0xcb4   :  { %12484 = vmatpush1.bf16.msra.mxu0 %v17877_v45 }
 0xcb5   :  { %12570 = vmatpush1.bf16.msra.mxu1 %v17879_v27  ;;  %12485 = vmatprep.subr.bf16.mxu0 %v17894_v13 }
 0xcb6   :  { %12571 = vmatprep.subr.bf16.mxu1 %v17896_v48 }
 0xcb8   :  { %12486 = vmatpush1.bf16.msra.mxu0 %v17893_v17  ;;  %v17957_v17 = vcombine.low %v9138_v54, %v9146_v51  ;;  %v9179_v54 = vld [vmem:[#allocation24 + $0xcf8] sm:$0xff] }
 0xcb9   :  { %12572 = vmatpush1.bf16.msra.mxu1 %v17895_v47  ;;  %12487 = vmatprep.subr.bf16.mxu0 %v17910_v11  ;;  %v17960_v47 = vcombine.high %v9139_v25, %v9147_v28  ;;  %v9154_v11 = vld [vmem:[#allocation24 + $0xc30] sm:$0xff] }
 0xcba   :  { %12573 = vmatprep.subr.bf16.mxu1 %v17912_v26  ;;  %v9162_v26 = vld [vmem:[#allocation24 + $0xc70] sm:$0xff] }
 0xcbb   :  { %v17973_v51 = vcombine.low %v9154_v11, %v9162_v26  ;;  %v9186_v25 = vld [vmem:[#allocation24 + $0xd30] sm:$0xff] }
 0xcbc   :  { %12488 = vmatpush1.bf16.msra.mxu0 %v17909_v23  ;;  %v9155_v23 = vld [vmem:[#allocation24 + $0xc38] sm:$0xff]  ;;  %v9194_v28 = vld [vmem:[#allocation24 + $0xd70] sm:$0xff] }
 0xcbd   :  { %12574 = vmatpush1.bf16.msra.mxu1 %v17911_v49  ;;  %12489 = vmatprep.subr.bf16.mxu0 %v17926_v33  ;;  %v9163_v49 = vld [vmem:[#allocation24 + $0xc78] sm:$0xff] }
 0xcbe   :  { %v12169_v31 = vpop.f32.mrb[68].mxu0  ;;  %12575 = vmatprep.subr.bf16.mxu1 %v17928_v56 }
 0xcbf   :  { %v18705_v62 = vadd.f32 %v12169_v31, %v9299_v52  ;;  %v12255_v29 = vpop.f32.mrb[68].mxu1  ;;  %v12171_v24 = vpop.f32.mrb[69].mxu0 }
 0xcc0   :  { %v18709_v30 = vadd.f32 %v12255_v29, %v9307_v1  ;;  %v18706_v20 = vadd.f32 %v12171_v24, %v9303_v2  ;;  %v12257_v57 = vpop.f32.mrb[69].mxu1  ;;  %v12173_v10 = vpop.f32.mrb[70].mxu0  ;;  %12490 = vmatpush1.bf16.msra.mxu0 %v17925_v4 }
 0xcc1   :  { %v18710_v45 = vadd.f32 %v12257_v57, %v9311_v38  ;;  %v18707_v27 = vadd.f32 %v12173_v10, %v9299_v52  ;;  %v12259_v13 = vpop.f32.mrb[70].mxu1  ;;  %12576 = vmatpush1.bf16.msra.mxu1 %v17927_v5  ;;  %v12175_v48 = vpop.f32.mrb[71].mxu0  ;;  %12491 = vmatprep.subr.bf16.mxu0 %v17942_v8  ;;  %v12612_v12 = vmax.f32 %v18705_v62, 0.0  ;;  %v9170_v5 = vld [vmem:[#allocation24 + $0xcb0] sm:$0xff]  ;;  %v17975_v62 = vcombine.low %v9155_v23, %v9163_v49 }
 0xcc2   :  { %v18711_v19 = vadd.f32 %v12259_v13, %v9307_v1  ;;  %v18708_v7 = vadd.f32 %v12175_v48, %v9303_v2  ;;  %v12261_v59 = vpop.f32.mrb[71].mxu1  ;;  %12577 = vmatprep.subr.bf16.mxu1 %v17944_v61  ;;  %v12614_v33 = vmax.f32 %v18709_v30, 0.0  ;;  %v12613_v56 = vmax.f32 %v18706_v20, 0.0  ;;  %v9178_v8 = vld [vmem:[#allocation24 + $0xcf0] sm:$0xff]  ;;  %v9171_v61 = vld [vmem:[#allocation24 + $0xcb8] sm:$0xff] }
 0xcc3   :  { %v12628_v36 = vmax.f32 %v18707_v27, 0.0  ;;  %v18712_v14 = vadd.f32 %v12261_v59, %v9311_v38  ;;  %v12615_v52 = vmax.f32 %v18710_v45, 0.0  ;;  %v17974_v1 = vcombine.high %v9154_v11, %v9162_v26  ;;  %v9187_v30 = vld [vmem:[#allocation24 + $0xd38] sm:$0xff]  ;;  %v9202_v45 = vld [vmem:[#allocation24 + $0xdb0] sm:$0xff] }
 0xcc4   :  { %v12630_v3 = vmax.f32 %v18711_v19, 0.0  ;;  %v12629_v9 = vmax.f32 %v18708_v7, 0.0  ;;  %12492 = vmatpush1.bf16.msra.mxu0 %v17941_v63  ;;  %v17976_v38 = vcombine.high %v9155_v23, %v9163_v49  ;;  %v17990_v29 = vcombine.high %v9170_v5, %v9178_v8  ;;  %v9195_v20 = vld [vmem:[#allocation24 + $0xd78] sm:$0xff]  ;;  %v9210_v27 = vld [vmem:[#allocation24 + $0xdf0] sm:$0xff] }
 0xcc5   :  { %v22600_v15 = vpack.c.bf16 %v12628_v36, %v12612_v12  ;;  %v12631_v18 = vmax.f32 %v18712_v14, 0.0  ;;  %12578 = vmatpush1.bf16.msra.mxu1 %v17943_v34  ;;  %12493 = vmatprep.subr.bf16.mxu0 %v17958_v53  ;;  %v17992_v24 = vcombine.high %v9171_v61, %v9179_v54  ;;  %v17989_v57 = vcombine.low %v9170_v5, %v9178_v8  ;;  %v9203_v13 = vld [vmem:[#allocation24 + $0xdb8] sm:$0xff]  ;;  %v9234_v23 = vld [vmem:[#allocation24 + $0xeb0] sm:$0xff] }
 0xcc6   :  { %v22602_v2 = vpack.c.bf16 %v12630_v3, %v12614_v33  ;;  %v22604_v4 = vpack.c.bf16 %v12629_v9, %v12613_v56  ;;  %12579 = vmatprep.subr.bf16.mxu1 %v17960_v47  ;;  %v17991_v10 = vcombine.low %v9171_v61, %v9179_v54  ;;  %v18006_v63 = vcombine.high %v9186_v25, %v9194_v28  ;;  %v9211_v48 = vld [vmem:[#allocation24 + $0xdf8] sm:$0xff]  ;;  %v9226_v47 = vld [vmem:[#allocation24 + $0xe70] sm:$0xff] }
 0xcc7   :  { %v22606_v31 = vpack.c.bf16 %v12631_v18, %v12615_v52  ;;  %v18008_v34 = vcombine.high %v9187_v30, %v9195_v20  ;;  %v18005_v53 = vcombine.low %v9186_v25, %v9194_v28  ;;  %v18007_v19 = vcombine.low %v9187_v30, %v9195_v20  ;;  %v9219_v11 = vld [vmem:[#allocation24 + $0xe38] sm:$0xff]  ;;  %v9242_v49 = vld [vmem:[#allocation24 + $0xef0] sm:$0xff] }
 0xcc8   :  { %12494 = vmatpush1.bf16.msra.mxu0 %v17957_v17  ;;  %v18022_v7 = vcombine.high %v9202_v45, %v9210_v27  ;;  %v18024_v59 = vcombine.high %v9203_v13, %v9211_v48  ;;  %v9218_v17 = vld [vmem:[#allocation24 + $0xe30] sm:$0xff]  ;;  %v9227_v26 = vld [vmem:[#allocation24 + $0xe78] sm:$0xff]  ;;  %v18021_v12 = vcombine.low %v9202_v45, %v9210_v27  ;;  %v18023_v36 = vcombine.low %v9203_v13, %v9211_v48 }
 0xcc9   :  { %12580 = vmatpush1.bf16.msra.mxu1 %v17959_v58  ;;  %12495 = vmatprep.subr.bf16.mxu0 %v17974_v1  ;;  %v18038_v14 = vcombine.high %v9218_v17, %v9226_v47  ;;  %v18040_v58 = vcombine.high %v9219_v11, %v9227_v26  ;;  %v9235_v33 = vld [vmem:[#allocation24 + $0xeb8] sm:$0xff]  ;;  %v18037_v3 = vcombine.low %v9218_v17, %v9226_v47  ;;  %v9250_v1 = vld [vmem:[#allocation24 + $0xf30] sm:$0xff] }
 0xcca   :  { %12581 = vmatprep.subr.bf16.mxu1 %v17976_v38  ;;  %v9243_v56 = vld [vmem:[#allocation24 + $0xef8] sm:$0xff]  ;;  %v18039_v9 = vcombine.low %v9219_v11, %v9227_v26  ;;  %v18054_v52 = vcombine.high %v9234_v23, %v9242_v49  ;;  %v9258_v38 = vld [vmem:[#allocation24 + $0xf70] sm:$0xff]  ;;  %v18053_v61 = vcombine.low %v9234_v23, %v9242_v49 }
 0xccb   :  { %v18056_v18 = vcombine.high %v9235_v33, %v9243_v56  ;;  %v9251_v5 = vld [vmem:[#allocation24 + $0xf38] sm:$0xff]  ;;  %v18055_v54 = vcombine.low %v9235_v33, %v9243_v56  ;;  %v18069_v30 = vcombine.low %v9250_v1, %v9258_v38  ;;  %v20376_v45 = vld [vmem:[#allocation27 + $0x4] ss:$16 sps:$4 sm:$0xff]   ;;  %v20374_v13 = vld [vmem:[#allocation27] ss:$16 sps:$4 sm:$0xff]  }
 0xccc   :  { %12496 = vmatpush1.bf16.msra.mxu0 %v17973_v51  ;;  %v9259_v8 = vld [vmem:[#allocation24 + $0xf78] sm:$0xff]  ;;  %v18070_v51 = vcombine.high %v9250_v1, %v9258_v38  ;;  %v20379_v27 = vld [vmem:[#allocation27 + $0x204] ss:$16 sps:$4 sm:$0xff]   ;;  %v20377_v48 = vld [vmem:[#allocation27 + $0x200] ss:$16 sps:$4 sm:$0xff]  }
 0xccd   :  { %12582 = vmatpush1.bf16.msra.mxu1 %v17975_v62  ;;  %12497 = vmatprep.subr.bf16.mxu0 %v17990_v29  ;;  %v18072_v62 = vcombine.high %v9251_v5, %v9259_v8  ;;  %v9266_v29 = vld [vmem:[#allocation24 + $0xfb0] sm:$0xff]  ;;  %v9267_v25 = vld [vmem:[#allocation24 + $0xfb8] sm:$0xff]  ;;  %v18071_v20 = vcombine.low %v9251_v5, %v9259_v8 }
 0xcce   :  { %12583 = vmatprep.subr.bf16.mxu1 %v17992_v24  ;;  %v9274_v24 = vld [vmem:[#allocation24 + $0xff0] sm:$0xff]  ;;  %v9275_v28 = vld [vmem:[#allocation24 + $0xff8] sm:$0xff] }
 0xccf   :  { %v20388_v17 = vld [vmem:[#allocation27 + $0x44] ss:$16 sps:$4 sm:$0xff]   ;;  %v20386_v11 = vld [vmem:[#allocation27 + $0x40] ss:$16 sps:$4 sm:$0xff]  }
 0xcd0   :  { %12498 = vmatpush1.bf16.msra.mxu0 %v17989_v57  ;;  %v18086_v57 = vcombine.high %v9266_v29, %v9274_v24  ;;  %v20391_v47 = vld [vmem:[#allocation27 + $0x244] ss:$16 sps:$4 sm:$0xff]   ;;  %v20389_v26 = vld [vmem:[#allocation27 + $0x240] ss:$16 sps:$4 sm:$0xff]  }
 0xcd1   :  { %12584 = vmatpush1.bf16.msra.mxu1 %v17991_v10  ;;  %12499 = vmatprep.subr.bf16.mxu0 %v18006_v63  ;;  %v18088_v10 = vcombine.high %v9267_v25, %v9275_v28  ;;  %v18085_v63 = vcombine.low %v9266_v29, %v9274_v24  ;;  %v20403_v23 = vld [vmem:[#allocation27 + $0x284] ss:$16 sps:$4 sm:$0xff]   ;;  %v20398_v49 = vld [vmem:[#allocation27 + $0x80] ss:$16 sps:$4 sm:$0xff]  }
 0xcd2   :  { %12585 = vmatprep.subr.bf16.mxu1 %v18008_v34  ;;  %v18087_v34 = vcombine.low %v9267_v25, %v9275_v28  ;;  %v20401_v33 = vld [vmem:[#allocation27 + $0x280] ss:$16 sps:$4 sm:$0xff]   ;;  %v20406_v56 = vld [vmem:[#allocation27 + $0xa4] ss:$16 sps:$4 sm:$0xff]  }
 0xcd3   :  { %v20415_v1 = vld [vmem:[#allocation27 + $0x2c4] ss:$16 sps:$4 sm:$0xff]   ;;  %v20410_v38 = vld [vmem:[#allocation27 + $0xc0] ss:$16 sps:$4 sm:$0xff]  }
 0xcd4   :  { %12500 = vmatpush1.bf16.msra.mxu0 %v18005_v53  ;;  %v20382_v53 = vld [vmem:[#allocation27 + $0x24] ss:$16 sps:$4 sm:$0xff]   ;;  %v20413_v5 = vld [vmem:[#allocation27 + $0x2c0] ss:$16 sps:$4 sm:$0xff]  }
 0xcd5   :  { %12586 = vmatpush1.bf16.msra.mxu1 %v18007_v19  ;;  %12501 = vmatprep.subr.bf16.mxu0 %v18022_v7  ;;  %v20385_v19 = vld [vmem:[#allocation27 + $0x224] ss:$16 sps:$4 sm:$0xff]   ;;  %v20380_v7 = vld [vmem:[#allocation27 + $0x20] ss:$16 sps:$4 sm:$0xff]  }
 0xcd6   :  { %12587 = vmatprep.subr.bf16.mxu1 %v18024_v59  ;;  %v20383_v59 = vld [vmem:[#allocation27 + $0x220] ss:$16 sps:$4 sm:$0xff]   ;;  %v20418_v8 = vld [vmem:[#allocation27 + $0xe4] ss:$16 sps:$4 sm:$0xff]  }
 0xcd7   :  { %v20427_v29 = vld [vmem:[#allocation27 + $0x304] ss:$16 sps:$4 sm:$0xff]   ;;  %v20422_v24 = vld [vmem:[#allocation27 + $0x100] ss:$16 sps:$4 sm:$0xff]  }
 0xcd8   :  { %12502 = vmatpush1.bf16.msra.mxu0 %v18021_v12  ;;  %v20394_v12 = vld [vmem:[#allocation27 + $0x64] ss:$16 sps:$4 sm:$0xff]   ;;  %v20425_v25 = vld [vmem:[#allocation27 + $0x300] ss:$16 sps:$4 sm:$0xff]  }
 0xcd9   :  { %12588 = vmatpush1.bf16.msra.mxu1 %v18023_v36  ;;  %12503 = vmatprep.subr.bf16.mxu0 %v18038_v14  ;;  %v20392_v36 = vld [vmem:[#allocation27 + $0x60] ss:$16 sps:$4 sm:$0xff]   ;;  %v20430_v28 = vld [vmem:[#allocation27 + $0x124] ss:$16 sps:$4 sm:$0xff]  }
 0xcda   :  { %12589 = vmatprep.subr.bf16.mxu1 %v18040_v58  ;;  %v20395_v14 = vld [vmem:[#allocation27 + $0x260] ss:$16 sps:$4 sm:$0xff]   ;;  %v20400_v58 = vld [vmem:[#allocation27 + $0x84] ss:$16 sps:$4 sm:$0xff]  }
 0xcdc   :  { %12504 = vmatpush1.bf16.msra.mxu0 %v18037_v3  ;;  %v20409_v3 = vld [vmem:[#allocation27 + $0x2a4] ss:$16 sps:$4 sm:$0xff]  }
 0xcdd   :  { %12590 = vmatpush1.bf16.msra.mxu1 %v18039_v9  ;;  %12505 = vmatprep.subr.bf16.mxu0 %v18054_v52  ;;  %v20404_v9 = vld [vmem:[#allocation27 + $0xa0] ss:$16 sps:$4 sm:$0xff]  }
 0xcde   :  { %12591 = vmatprep.subr.bf16.mxu1 %v18056_v18  ;;  %v20407_v52 = vld [vmem:[#allocation27 + $0x2a0] ss:$16 sps:$4 sm:$0xff]   ;;  %v20412_v18 = vld [vmem:[#allocation27 + $0xc4] ss:$16 sps:$4 sm:$0xff]  }
 0xce0   :  { %12506 = vmatpush1.bf16.msra.mxu0 %v18053_v61  ;;  %v20421_v61 = vld [vmem:[#allocation27 + $0x2e4] ss:$16 sps:$4 sm:$0xff]  }
 0xce1   :  { %12592 = vmatpush1.bf16.msra.mxu1 %v18055_v54  ;;  %12507 = vmatprep.subr.bf16.mxu0 %v18070_v51  ;;  %v20416_v54 = vld [vmem:[#allocation27 + $0xe0] ss:$16 sps:$4 sm:$0xff]  }
 0xce2   :  { %12593 = vmatprep.subr.bf16.mxu1 %v18072_v62  ;;  %v20419_v51 = vld [vmem:[#allocation27 + $0x2e0] ss:$16 sps:$4 sm:$0xff]   ;;  %v20424_v62 = vld [vmem:[#allocation27 + $0x104] ss:$16 sps:$4 sm:$0xff]  }
 0xce4   :  { %12508 = vmatpush1.bf16.msra.mxu0 %v18069_v30  ;;  %v20433_v30 = vld [vmem:[#allocation27 + $0x324] ss:$16 sps:$4 sm:$0xff]  }
 0xce5   :  { %12594 = vmatpush1.bf16.msra.mxu1 %v18071_v20  ;;  %12509 = vmatprep.subr.bf16.mxu0 %v18086_v57  ;;  %v20428_v20 = vld [vmem:[#allocation27 + $0x120] ss:$16 sps:$4 sm:$0xff]  }
 0xce6   :  { %12595 = vmatprep.subr.bf16.mxu1 %v18088_v10  ;;  %v20431_v57 = vld [vmem:[#allocation27 + $0x320] ss:$16 sps:$4 sm:$0xff]   ;;  %v20436_v10 = vld [vmem:[#allocation27 + $0x144] ss:$16 sps:$4 sm:$0xff]  }
 0xce8   :  { %12510 = vmatpush1.bf16.msra.mxu0 %v18085_v63  ;;  %v20439_v63 = vld [vmem:[#allocation27 + $0x344] ss:$16 sps:$4 sm:$0xff]  }
 0xce9   :  { %12596 = vmatpush1.bf16.msra.mxu1 %v18087_v34  ;;  %15750 = vmatprep.subr.bf16.mxu0 %v20376_v45  ;;  %v20434_v34 = vld [vmem:[#allocation27 + $0x140] ss:$16 sps:$4 sm:$0xff]  }
 0xcea   :  { %15791 = vmatprep.subr.bf16.mxu1 %v20379_v27  ;;  %v20437_v45 = vld [vmem:[#allocation27 + $0x340] ss:$16 sps:$4 sm:$0xff]   ;;  %v20442_v27 = vld [vmem:[#allocation27 + $0x164] ss:$16 sps:$4 sm:$0xff]  }
 0xceb   :  { %12512 = vmatmul.mubr.bf16.vlgmr.msra.gmra.mrb[76].mxu0 %v22548_v41 }
 0xcec   :  { %12598 = vmatmul.mubr.bf16.vlgmr.msra.gmra.mrb[76].mxu1 %v22548_v41  ;;  %15751 = vmatpush1.bf16.msra.mxu0 %v20374_v13  ;;  %v20397_v41 = vld [vmem:[#allocation27 + $0x264] ss:$16 sps:$4 sm:$0xff]  }
 0xced   :  { %15782 = vmatprep.mubr.bf16.mxu0 %v22580_v6  ;;  %15792 = vmatpush1.bf16.msra.mxu1 %v20377_v48  ;;  %v20445_v13 = vld [vmem:[#allocation27 + $0x364] ss:$16 sps:$4 sm:$0xff]   ;;  %v20440_v48 = vld [vmem:[#allocation27 + $0x160] ss:$16 sps:$4 sm:$0xff]  }
 0xcee   :  { %15823 = vmatprep.mubr.bf16.mxu1 %v22582_v44  ;;  %15752 = vmatprep.subr.bf16.mxu0 %v20382_v53  ;;  %v20443_v53 = vld [vmem:[#allocation27 + $0x360] ss:$16 sps:$4 sm:$0xff]  }
 0xcef   :  { %15793 = vmatprep.subr.bf16.mxu1 %v20385_v19  ;;  %v20448_v19 = vld [vmem:[#allocation27 + $0x184] ss:$16 sps:$4 sm:$0xff]  }
 0xcf0   :  { %15753 = vmatpush1.bf16.msra.mxu0 %v20380_v7  ;;  %v20451_v7 = vld [vmem:[#allocation27 + $0x384] ss:$16 sps:$4 sm:$0xff]  }
 0xcf1   :  { %15794 = vmatpush1.bf16.msra.mxu1 %v20383_v59  ;;  %15754 = vmatprep.subr.bf16.mxu0 %v20388_v17  ;;  %v20446_v59 = vld [vmem:[#allocation27 + $0x180] ss:$16 sps:$4 sm:$0xff]  }
 0xcf2   :  { %15795 = vmatprep.subr.bf16.mxu1 %v20391_v47  ;;  %v20449_v17 = vld [vmem:[#allocation27 + $0x380] ss:$16 sps:$4 sm:$0xff]   ;;  %v20454_v47 = vld [vmem:[#allocation27 + $0x1a4] ss:$16 sps:$4 sm:$0xff]  }
 0xcf4   :  { %15755 = vmatpush1.bf16.msra.mxu0 %v20386_v11  ;;  %v20457_v11 = vld [vmem:[#allocation27 + $0x3a4] ss:$16 sps:$4 sm:$0xff]  }
 0xcf5   :  { %15796 = vmatpush1.bf16.msra.mxu1 %v20389_v26  ;;  %15756 = vmatprep.subr.bf16.mxu0 %v20394_v12  ;;  %v20452_v26 = vld [vmem:[#allocation27 + $0x1a0] ss:$16 sps:$4 sm:$0xff]  }
 0xcf6   :  { %15797 = vmatprep.subr.bf16.mxu1 %v20397_v41  ;;  %v20455_v12 = vld [vmem:[#allocation27 + $0x3a0] ss:$16 sps:$4 sm:$0xff]   ;;  %v20460_v41 = vld [vmem:[#allocation27 + $0x1c4] ss:$16 sps:$4 sm:$0xff]  }
 0xcf8   :  { %15757 = vmatpush1.bf16.msra.mxu0 %v20392_v36  ;;  %v20463_v36 = vld [vmem:[#allocation27 + $0x3c4] ss:$16 sps:$4 sm:$0xff]  }
 0xcf9   :  { %15798 = vmatpush1.bf16.msra.mxu1 %v20395_v14  ;;  %15758 = vmatprep.subr.bf16.mxu0 %v20400_v58  ;;  %v20458_v14 = vld [vmem:[#allocation27 + $0x1c0] ss:$16 sps:$4 sm:$0xff]  }
 0xcfa   :  { %15799 = vmatprep.subr.bf16.mxu1 %v20403_v23  ;;  %v20461_v58 = vld [vmem:[#allocation27 + $0x3c0] ss:$16 sps:$4 sm:$0xff]   ;;  %v20466_v23 = vld [vmem:[#allocation27 + $0x1e4] ss:$16 sps:$4 sm:$0xff]  }
 0xcfc   :  { %15759 = vmatpush1.bf16.msra.mxu0 %v20398_v49  ;;  %v20469_v49 = vld [vmem:[#allocation27 + $0x3e4] ss:$16 sps:$4 sm:$0xff]  }
 0xcfd   :  { %15800 = vmatpush1.bf16.msra.mxu1 %v20401_v33  ;;  %15760 = vmatprep.subr.bf16.mxu0 %v20406_v56  ;;  %v20464_v33 = vld [vmem:[#allocation27 + $0x1e0] ss:$16 sps:$4 sm:$0xff]  }
 0xcfe   :  { %15801 = vmatprep.subr.bf16.mxu1 %v20409_v3  ;;  %v20467_v56 = vld [vmem:[#allocation27 + $0x3e0] ss:$16 sps:$4 sm:$0xff]   ;;  %v20472_v3 = vld [vmem:[#allocation27 + $0x404] ss:$16 sps:$4 sm:$0xff]  }
 0xd00   :  { %15761 = vmatpush1.bf16.msra.mxu0 %v20404_v9  ;;  %v20475_v9 = vld [vmem:[#allocation27 + $0x604] ss:$16 sps:$4 sm:$0xff]  }
 0xd01   :  { %15802 = vmatpush1.bf16.msra.mxu1 %v20407_v52  ;;  %15762 = vmatprep.subr.bf16.mxu0 %v20412_v18  ;;  %v20470_v52 = vld [vmem:[#allocation27 + $0x400] ss:$16 sps:$4 sm:$0xff]  }
 0xd02   :  { %15803 = vmatprep.subr.bf16.mxu1 %v20415_v1  ;;  %v20473_v18 = vld [vmem:[#allocation27 + $0x600] ss:$16 sps:$4 sm:$0xff]   ;;  %v20478_v1 = vld [vmem:[#allocation27 + $0x424] ss:$16 sps:$4 sm:$0xff]  }
 0xd04   :  { %15763 = vmatpush1.bf16.msra.mxu0 %v20410_v38  ;;  %v20481_v38 = vld [vmem:[#allocation27 + $0x624] ss:$16 sps:$4 sm:$0xff]  }
 0xd05   :  { %15804 = vmatpush1.bf16.msra.mxu1 %v20413_v5  ;;  %15764 = vmatprep.subr.bf16.mxu0 %v20418_v8  ;;  %v20476_v5 = vld [vmem:[#allocation27 + $0x420] ss:$16 sps:$4 sm:$0xff]  }
 0xd06   :  { %15805 = vmatprep.subr.bf16.mxu1 %v20421_v61  ;;  %v20479_v8 = vld [vmem:[#allocation27 + $0x620] ss:$16 sps:$4 sm:$0xff]   ;;  %v20484_v61 = vld [vmem:[#allocation27 + $0x444] ss:$16 sps:$4 sm:$0xff]  }
 0xd08   :  { %15765 = vmatpush1.bf16.msra.mxu0 %v20416_v54  ;;  %v20487_v54 = vld [vmem:[#allocation27 + $0x644] ss:$16 sps:$4 sm:$0xff]  }
 0xd09   :  { %15806 = vmatpush1.bf16.msra.mxu1 %v20419_v51  ;;  %15766 = vmatprep.subr.bf16.mxu0 %v20424_v62  ;;  %v20482_v51 = vld [vmem:[#allocation27 + $0x440] ss:$16 sps:$4 sm:$0xff]  }
 0xd0a   :  { %15807 = vmatprep.subr.bf16.mxu1 %v20427_v29  ;;  %v20485_v62 = vld [vmem:[#allocation27 + $0x640] ss:$16 sps:$4 sm:$0xff]   ;;  %v20490_v29 = vld [vmem:[#allocation27 + $0x464] ss:$16 sps:$4 sm:$0xff]  }
 0xd0c   :  { %15767 = vmatpush1.bf16.msra.mxu0 %v20422_v24  ;;  %v20493_v24 = vld [vmem:[#allocation27 + $0x664] ss:$16 sps:$4 sm:$0xff]  }
 0xd0d   :  { %15808 = vmatpush1.bf16.msra.mxu1 %v20425_v25  ;;  %15768 = vmatprep.subr.bf16.mxu0 %v20430_v28  ;;  %v20488_v25 = vld [vmem:[#allocation27 + $0x460] ss:$16 sps:$4 sm:$0xff]  }
 0xd0e   :  { %15809 = vmatprep.subr.bf16.mxu1 %v20433_v30  ;;  %v20491_v28 = vld [vmem:[#allocation27 + $0x660] ss:$16 sps:$4 sm:$0xff]   ;;  %v20496_v30 = vld [vmem:[#allocation27 + $0x484] ss:$16 sps:$4 sm:$0xff]  }
 0xd10   :  { %15769 = vmatpush1.bf16.msra.mxu0 %v20428_v20  ;;  %v20499_v20 = vld [vmem:[#allocation27 + $0x684] ss:$16 sps:$4 sm:$0xff]  }
 0xd11   :  { %15810 = vmatpush1.bf16.msra.mxu1 %v20431_v57  ;;  %15770 = vmatprep.subr.bf16.mxu0 %v20436_v10  ;;  %v20494_v57 = vld [vmem:[#allocation27 + $0x480] ss:$16 sps:$4 sm:$0xff]   ;;  %v22616_v10 = vld [vmem:[#allocation26 + $0x8] sm:$0xff] }
 0xd12   :  { %15811 = vmatprep.subr.bf16.mxu1 %v20439_v63  ;;  %v20497_v63 = vld [vmem:[#allocation27 + $0x680] ss:$16 sps:$4 sm:$0xff]  }
 0xd14   :  { %15771 = vmatpush1.bf16.msra.mxu0 %v20434_v34  ;;  %v20502_v34 = vld [vmem:[#allocation27 + $0x4a4] ss:$16 sps:$4 sm:$0xff]  }
 0xd15   :  { %15812 = vmatpush1.bf16.msra.mxu1 %v20437_v45  ;;  %15772 = vmatprep.subr.bf16.mxu0 %v20442_v27  ;;  %v20505_v45 = vld [vmem:[#allocation27 + $0x6a4] ss:$16 sps:$4 sm:$0xff]   ;;  %v9315_v27 = vrot.slane %v22616_v10, %v22093_v43 }
 0xd16   :  { %15813 = vmatprep.subr.bf16.mxu1 %v20445_v13  ;;  %v9323_v13 = vrot.slane %v22616_v10, %v22151_v32 }
 0xd18   :  { %15773 = vmatpush1.bf16.msra.mxu0 %v20440_v48  ;;  %v9319_v48 = vrot.slane %v22616_v10, %v22096_v46 }
 0xd19   :  { %15814 = vmatpush1.bf16.msra.mxu1 %v20443_v53  ;;  %15774 = vmatprep.subr.bf16.mxu0 %v20448_v19  ;;  %v20500_v53 = vld [vmem:[#allocation27 + $0x4a0] ss:$16 sps:$4 sm:$0xff]   ;;  %v9327_v19 = vrot.slane %v22616_v10, %v22154_v55 }
 0xd1a   :  { %15815 = vmatprep.subr.bf16.mxu1 %v20451_v7  ;;  %v20503_v7 = vld [vmem:[#allocation27 + $0x6a0] ss:$16 sps:$4 sm:$0xff]  }
 0xd1c   :  { %15775 = vmatpush1.bf16.msra.mxu0 %v20446_v59  ;;  %v20508_v59 = vld [vmem:[#allocation27 + $0x4c4] ss:$16 sps:$4 sm:$0xff]  }
 0xd1d   :  { %15816 = vmatpush1.bf16.msra.mxu1 %v20449_v17  ;;  %15776 = vmatprep.subr.bf16.mxu0 %v20454_v47  ;;  %v20511_v47 = vld [vmem:[#allocation27 + $0x6c4] ss:$16 sps:$4 sm:$0xff]  }
 0xd1e   :  { %15817 = vmatprep.subr.bf16.mxu1 %v20457_v11 }
 0xd20   :  { %15777 = vmatpush1.bf16.msra.mxu0 %v20452_v26 }
 0xd21   :  { %15818 = vmatpush1.bf16.msra.mxu1 %v20455_v12  ;;  %15778 = vmatprep.subr.bf16.mxu0 %v20460_v41 }
 0xd22   :  { %15819 = vmatprep.subr.bf16.mxu1 %v20463_v36 }
 0xd24   :  { %15779 = vmatpush1.bf16.msra.mxu0 %v20458_v14 }
 0xd25   :  { %15820 = vmatpush1.bf16.msra.mxu1 %v20461_v58  ;;  %15780 = vmatprep.subr.bf16.mxu0 %v20466_v23  ;;  %v20506_v23 = vld [vmem:[#allocation27 + $0x4c0] ss:$16 sps:$4 sm:$0xff]  }
 0xd26   :  { %15821 = vmatprep.subr.bf16.mxu1 %v20469_v49 }
 0xd28   :  { %15781 = vmatpush1.bf16.msra.mxu0 %v20464_v33 }
 0xd29   :  { %15822 = vmatpush1.bf16.msra.mxu1 %v20467_v56  ;;  %15832 = vmatprep.subr.bf16.mxu0 %v20472_v3 }
 0xd2a   :  { %15873 = vmatprep.subr.bf16.mxu1 %v20475_v9  ;;  %v20509_v9 = vld [vmem:[#allocation27 + $0x6c0] ss:$16 sps:$4 sm:$0xff]  }
 0xd2b   :  { %15783 = vmatmul.mubr.bf16.vlgmr.msra.gmra.mrb[80].mxu0 %v22576_v21 }
 0xd2c   :  { %15824 = vmatmul.mubr.bf16.vlgmr.msra.gmra.mrb[80].mxu1 %v22578_v42  ;;  %15833 = vmatpush1.bf16.msra.mxu0 %v20470_v52  ;;  %v20514_v52 = vld [vmem:[#allocation27 + $0x4e4] ss:$16 sps:$4 sm:$0xff]  }
 0xd2d   :  { %15864 = vmatprep.mubr.bf16.mxu0 %v22604_v4  ;;  %15874 = vmatpush1.bf16.msra.mxu1 %v20473_v18 }
 0xd2e   :  { %15905 = vmatprep.mubr.bf16.mxu1 %v22606_v31  ;;  %15834 = vmatprep.subr.bf16.mxu0 %v20478_v1 }
 0xd2f   :  { %15875 = vmatprep.subr.bf16.mxu1 %v20481_v38 }
 0xd30   :  { %15835 = vmatpush1.bf16.msra.mxu0 %v20476_v5  ;;  %v20517_v5 = vld [vmem:[#allocation27 + $0x6e4] ss:$16 sps:$4 sm:$0xff]  }
 0xd31   :  { %15876 = vmatpush1.bf16.msra.mxu1 %v20479_v8  ;;  %15836 = vmatprep.subr.bf16.mxu0 %v20484_v61 }
 0xd32   :  { %15877 = vmatprep.subr.bf16.mxu1 %v20487_v54 }
 0xd34   :  { %15837 = vmatpush1.bf16.msra.mxu0 %v20482_v51 }
 0xd35   :  { %15878 = vmatpush1.bf16.msra.mxu1 %v20485_v62  ;;  %15838 = vmatprep.subr.bf16.mxu0 %v20490_v29 }
 0xd36   :  { %15879 = vmatprep.subr.bf16.mxu1 %v20493_v24 }
 0xd38   :  { %15839 = vmatpush1.bf16.msra.mxu0 %v20488_v25  ;;  %v20512_v25 = vld [vmem:[#allocation27 + $0x4e0] ss:$16 sps:$4 sm:$0xff]  }
 0xd39   :  { %15880 = vmatpush1.bf16.msra.mxu1 %v20491_v28  ;;  %15840 = vmatprep.subr.bf16.mxu0 %v20496_v30 }
 0xd3a   :  { %15881 = vmatprep.subr.bf16.mxu1 %v20499_v20 }
 0xd3c   :  { %15841 = vmatpush1.bf16.msra.mxu0 %v20494_v57  ;;  %v20515_v57 = vld [vmem:[#allocation27 + $0x6e0] ss:$16 sps:$4 sm:$0xff]  }
 0xd3d   :  { %15882 = vmatpush1.bf16.msra.mxu1 %v20497_v63  ;;  %15842 = vmatprep.subr.bf16.mxu0 %v20502_v34  ;;  %v20520_v63 = vld [vmem:[#allocation27 + $0x504] ss:$16 sps:$4 sm:$0xff]  }
 0xd3e   :  { %v12341_v17 = vpop.f32.mrb[72].mxu0  ;;  %15883 = vmatprep.subr.bf16.mxu1 %v20505_v45 }
 0xd3f   :  { %v18713_v11 = vadd.f32 %v12341_v17, %v9315_v27  ;;  %v12427_v26 = vpop.f32.mrb[72].mxu1  ;;  %v12343_v12 = vpop.f32.mrb[73].mxu0  ;;  %v20527_v17 = vld [vmem:[#allocation27 + $0x720] ss:$16 sps:$4 sm:$0xff]  }
 0xd40   :  { %v18717_v41 = vadd.f32 %v12427_v26, %v9323_v13  ;;  %v18714_v36 = vadd.f32 %v12343_v12, %v9319_v48  ;;  %v12429_v14 = vpop.f32.mrb[73].mxu1  ;;  %v12345_v58 = vpop.f32.mrb[74].mxu0  ;;  %15843 = vmatpush1.bf16.msra.mxu0 %v20500_v53  ;;  %v20521_v53 = vld [vmem:[#allocation27 + $0x700] ss:$16 sps:$4 sm:$0xff]  }
 0xd41   :  { %v18718_v49 = vadd.f32 %v12429_v14, %v9327_v19  ;;  %v18715_v33 = vadd.f32 %v12345_v58, %v9315_v27  ;;  %v12431_v56 = vpop.f32.mrb[74].mxu1  ;;  %15884 = vmatpush1.bf16.msra.mxu1 %v20503_v7  ;;  %v12347_v3 = vpop.f32.mrb[75].mxu0  ;;  %15844 = vmatprep.subr.bf16.mxu0 %v20508_v59  ;;  %v12616_v8 = vmax.f32 %v18713_v11, 0.0  ;;  %v20523_v27 = vld [vmem:[#allocation27 + $0x704] ss:$16 sps:$4 sm:$0xff]  }
 0xd42   :  { %v18719_v18 = vadd.f32 %v12431_v56, %v9323_v13  ;;  %v18716_v1 = vadd.f32 %v12347_v3, %v9319_v48  ;;  %v12433_v38 = vpop.f32.mrb[75].mxu1  ;;  %15885 = vmatprep.subr.bf16.mxu1 %v20511_v47  ;;  %v12618_v51 = vmax.f32 %v18717_v41, 0.0  ;;  %v12617_v62 = vmax.f32 %v18714_v36, 0.0  ;;  %v20518_v48 = vld [vmem:[#allocation27 + $0x500] ss:$16 sps:$4 sm:$0xff]  }
 0xd43   :  { %v12632_v61 = vmax.f32 %v18715_v33, 0.0  ;;  %v18720_v54 = vadd.f32 %v12433_v38, %v9327_v19  ;;  %v12619_v28 = vmax.f32 %v18718_v49, 0.0  ;;  %v20526_v19 = vld [vmem:[#allocation27 + $0x524] ss:$16 sps:$4 sm:$0xff]   ;;  %v20524_v59 = vld [vmem:[#allocation27 + $0x520] ss:$16 sps:$4 sm:$0xff]  }
 0xd44   :  { %v12634_v29 = vmax.f32 %v18719_v18, 0.0  ;;  %v12633_v24 = vmax.f32 %v18716_v1, 0.0  ;;  %15845 = vmatpush1.bf16.msra.mxu0 %v20506_v23  ;;  %v20529_v7 = vld [vmem:[#allocation27 + $0x724] ss:$16 sps:$4 sm:$0xff]   ;;  %v20530_v26 = vld [vmem:[#allocation27 + $0x540] ss:$16 sps:$4 sm:$0xff]  }
 0xd45   :  { %v22626_v30 = vpack.c.bf16 %v12632_v61, %v12616_v8  ;;  %v12635_v20 = vmax.f32 %v18720_v54, 0.0  ;;  %15886 = vmatpush1.bf16.msra.mxu1 %v20509_v9  ;;  %15846 = vmatprep.subr.bf16.mxu0 %v20514_v52  ;;  %v20532_v47 = vld [vmem:[#allocation27 + $0x544] ss:$16 sps:$4 sm:$0xff]   ;;  %v20533_v12 = vld [vmem:[#allocation27 + $0x740] ss:$16 sps:$4 sm:$0xff]  }
 0xd46   :  { %v22628_v34 = vpack.c.bf16 %v12634_v29, %v12618_v51  ;;  %v22630_v45 = vpack.c.bf16 %v12633_v24, %v12617_v62  ;;  %15887 = vmatprep.subr.bf16.mxu1 %v20517_v5  ;;  %v20535_v11 = vld [vmem:[#allocation27 + $0x744] ss:$16 sps:$4 sm:$0xff]   ;;  %v20536_v14 = vld [vmem:[#allocation27 + $0x560] ss:$16 sps:$4 sm:$0xff]  }
 0xd47   :  { %v22632_v13 = vpack.c.bf16 %v12635_v20, %v12619_v28  ;;  %v20538_v41 = vld [vmem:[#allocation27 + $0x564] ss:$16 sps:$4 sm:$0xff]   ;;  %v20539_v58 = vld [vmem:[#allocation27 + $0x760] ss:$16 sps:$4 sm:$0xff]  }
 0xd48   :  { %15847 = vmatpush1.bf16.msra.mxu0 %v20512_v25  ;;  %v20541_v36 = vld [vmem:[#allocation27 + $0x764] ss:$16 sps:$4 sm:$0xff]   ;;  %v20542_v33 = vld [vmem:[#allocation27 + $0x580] ss:$16 sps:$4 sm:$0xff]  }
 0xd49   :  { %15888 = vmatpush1.bf16.msra.mxu1 %v20515_v57  ;;  %15848 = vmatprep.subr.bf16.mxu0 %v20520_v63  ;;  %v20544_v23 = vld [vmem:[#allocation27 + $0x584] ss:$16 sps:$4 sm:$0xff]   ;;  %v20545_v56 = vld [vmem:[#allocation27 + $0x780] ss:$16 sps:$4 sm:$0xff]  }
 0xd4a   :  { %15889 = vmatprep.subr.bf16.mxu1 %v20523_v27  ;;  %v20547_v49 = vld [vmem:[#allocation27 + $0x784] ss:$16 sps:$4 sm:$0xff]   ;;  %v20548_v52 = vld [vmem:[#allocation27 + $0x5a0] ss:$16 sps:$4 sm:$0xff]  }
 0xd4b   :  { %v20550_v3 = vld [vmem:[#allocation27 + $0x5a4] ss:$16 sps:$4 sm:$0xff]   ;;  %v20551_v18 = vld [vmem:[#allocation27 + $0x7a0] ss:$16 sps:$4 sm:$0xff]  }
 0xd4c   :  { %15849 = vmatpush1.bf16.msra.mxu0 %v20518_v48  ;;  %v20553_v9 = vld [vmem:[#allocation27 + $0x7a4] ss:$16 sps:$4 sm:$0xff]   ;;  %v20554_v5 = vld [vmem:[#allocation27 + $0x5c0] ss:$16 sps:$4 sm:$0xff]  }
 0xd4d   :  { %15890 = vmatpush1.bf16.msra.mxu1 %v20521_v53  ;;  %15850 = vmatprep.subr.bf16.mxu0 %v20526_v19  ;;  %v20556_v1 = vld [vmem:[#allocation27 + $0x5c4] ss:$16 sps:$4 sm:$0xff]   ;;  %v20557_v8 = vld [vmem:[#allocation27 + $0x7c0] ss:$16 sps:$4 sm:$0xff]  }
 0xd4e   :  { %15891 = vmatprep.subr.bf16.mxu1 %v20529_v7  ;;  %v20559_v38 = vld [vmem:[#allocation27 + $0x7c4] ss:$16 sps:$4 sm:$0xff]   ;;  %v20560_v51 = vld [vmem:[#allocation27 + $0x5e0] ss:$16 sps:$4 sm:$0xff]  }
 0xd4f   :  { %v20562_v61 = vld [vmem:[#allocation27 + $0x5e4] ss:$16 sps:$4 sm:$0xff]   ;;  %v20563_v62 = vld [vmem:[#allocation27 + $0x7e0] ss:$16 sps:$4 sm:$0xff]  }
 0xd50   :  { %15851 = vmatpush1.bf16.msra.mxu0 %v20524_v59  ;;  %v20565_v54 = vld [vmem:[#allocation27 + $0x7e4] ss:$16 sps:$4 sm:$0xff]   ;;  %v20566_v25 = vld [vmem:[#allocation27 + $0x800] ss:$16 sps:$4 sm:$0xff]  }
 0xd51   :  { %15892 = vmatpush1.bf16.msra.mxu1 %v20527_v17  ;;  %15852 = vmatprep.subr.bf16.mxu0 %v20532_v47  ;;  %v20568_v29 = vld [vmem:[#allocation27 + $0x804] ss:$16 sps:$4 sm:$0xff]   ;;  %v20569_v28 = vld [vmem:[#allocation27 + $0xa00] ss:$16 sps:$4 sm:$0xff]  }
 0xd52   :  { %15893 = vmatprep.subr.bf16.mxu1 %v20535_v11  ;;  %v20571_v24 = vld [vmem:[#allocation27 + $0xa04] ss:$16 sps:$4 sm:$0xff]   ;;  %v20572_v63 = vld [vmem:[#allocation27 + $0x820] ss:$16 sps:$4 sm:$0xff]  }
 0xd53   :  { %v20574_v20 = vld [vmem:[#allocation27 + $0x824] ss:$16 sps:$4 sm:$0xff]   ;;  %v20575_v27 = vld [vmem:[#allocation27 + $0xa20] ss:$16 sps:$4 sm:$0xff]  }
 0xd54   :  { %15853 = vmatpush1.bf16.msra.mxu0 %v20530_v26  ;;  %v20577_v57 = vld [vmem:[#allocation27 + $0xa24] ss:$16 sps:$4 sm:$0xff]   ;;  %v20578_v19 = vld [vmem:[#allocation27 + $0x840] ss:$16 sps:$4 sm:$0xff]  }
 0xd55   :  { %15894 = vmatpush1.bf16.msra.mxu1 %v20533_v12  ;;  %15854 = vmatprep.subr.bf16.mxu0 %v20538_v41  ;;  %v20580_v48 = vld [vmem:[#allocation27 + $0x844] ss:$16 sps:$4 sm:$0xff]   ;;  %v20581_v7 = vld [vmem:[#allocation27 + $0xa40] ss:$16 sps:$4 sm:$0xff]  }
 0xd56   :  { %15895 = vmatprep.subr.bf16.mxu1 %v20541_v36  ;;  %v20583_v53 = vld [vmem:[#allocation27 + $0xa44] ss:$16 sps:$4 sm:$0xff]   ;;  %v20584_v47 = vld [vmem:[#allocation27 + $0x860] ss:$16 sps:$4 sm:$0xff]  }
 0xd57   :  { %v20586_v59 = vld [vmem:[#allocation27 + $0x864] ss:$16 sps:$4 sm:$0xff]   ;;  %v20587_v11 = vld [vmem:[#allocation27 + $0xa60] ss:$16 sps:$4 sm:$0xff]  }
 0xd58   :  { %15855 = vmatpush1.bf16.msra.mxu0 %v20536_v14  ;;  %v20589_v17 = vld [vmem:[#allocation27 + $0xa64] ss:$16 sps:$4 sm:$0xff]   ;;  %v20590_v41 = vld [vmem:[#allocation27 + $0x880] ss:$16 sps:$4 sm:$0xff]  }
 0xd59   :  { %15896 = vmatpush1.bf16.msra.mxu1 %v20539_v58  ;;  %15856 = vmatprep.subr.bf16.mxu0 %v20544_v23  ;;  %v20592_v26 = vld [vmem:[#allocation27 + $0x884] ss:$16 sps:$4 sm:$0xff]   ;;  %v20593_v36 = vld [vmem:[#allocation27 + $0xa80] ss:$16 sps:$4 sm:$0xff]  }
 0xd5a   :  { %15897 = vmatprep.subr.bf16.mxu1 %v20547_v49  ;;  %v20595_v12 = vld [vmem:[#allocation27 + $0xa84] ss:$16 sps:$4 sm:$0xff]   ;;  %v20596_v23 = vld [vmem:[#allocation27 + $0x8a0] ss:$16 sps:$4 sm:$0xff]  }
 0xd5b   :  { %v20598_v14 = vld [vmem:[#allocation27 + $0x8a4] ss:$16 sps:$4 sm:$0xff]   ;;  %v20599_v49 = vld [vmem:[#allocation27 + $0xaa0] ss:$16 sps:$4 sm:$0xff]  }
 0xd5c   :  { %15857 = vmatpush1.bf16.msra.mxu0 %v20542_v33  ;;  %v20601_v58 = vld [vmem:[#allocation27 + $0xaa4] ss:$16 sps:$4 sm:$0xff]  }
 0xd5d   :  { %15898 = vmatpush1.bf16.msra.mxu1 %v20545_v56  ;;  %15858 = vmatprep.subr.bf16.mxu0 %v20550_v3  ;;  %v20604_v33 = vld [vmem:[#allocation27 + $0x8c4] ss:$16 sps:$4 sm:$0xff]   ;;  %v20602_v3 = vld [vmem:[#allocation27 + $0x8c0] ss:$16 sps:$4 sm:$0xff]  }
 0xd5e   :  { %15899 = vmatprep.subr.bf16.mxu1 %v20553_v9  ;;  %v20607_v56 = vld [vmem:[#allocation27 + $0xac4] ss:$16 sps:$4 sm:$0xff]   ;;  %v20605_v9 = vld [vmem:[#allocation27 + $0xac0] ss:$16 sps:$4 sm:$0xff]  }
 0xd60   :  { %15859 = vmatpush1.bf16.msra.mxu0 %v20548_v52  ;;  %v20610_v52 = vld [vmem:[#allocation27 + $0x8e4] ss:$16 sps:$4 sm:$0xff]  }
 0xd61   :  { %15900 = vmatpush1.bf16.msra.mxu1 %v20551_v18  ;;  %15860 = vmatprep.subr.bf16.mxu0 %v20556_v1  ;;  %v20613_v18 = vld [vmem:[#allocation27 + $0xae4] ss:$16 sps:$4 sm:$0xff]   ;;  %v20608_v1 = vld [vmem:[#allocation27 + $0x8e0] ss:$16 sps:$4 sm:$0xff]  }
 0xd62   :  { %15901 = vmatprep.subr.bf16.mxu1 %v20559_v38  ;;  %v20611_v38 = vld [vmem:[#allocation27 + $0xae0] ss:$16 sps:$4 sm:$0xff]  }
 0xd64   :  { %15861 = vmatpush1.bf16.msra.mxu0 %v20554_v5  ;;  %v20616_v5 = vld [vmem:[#allocation27 + $0x904] ss:$16 sps:$4 sm:$0xff]  }
 0xd65   :  { %15902 = vmatpush1.bf16.msra.mxu1 %v20557_v8  ;;  %15862 = vmatprep.subr.bf16.mxu0 %v20562_v61  ;;  %v20619_v8 = vld [vmem:[#allocation27 + $0xb04] ss:$16 sps:$4 sm:$0xff]   ;;  %v20614_v61 = vld [vmem:[#allocation27 + $0x900] ss:$16 sps:$4 sm:$0xff]  }
 0xd66   :  { %15903 = vmatprep.subr.bf16.mxu1 %v20565_v54  ;;  %v20617_v54 = vld [vmem:[#allocation27 + $0xb00] ss:$16 sps:$4 sm:$0xff]  }
 0xd68   :  { %15863 = vmatpush1.bf16.msra.mxu0 %v20560_v51  ;;  %v20622_v51 = vld [vmem:[#allocation27 + $0x924] ss:$16 sps:$4 sm:$0xff]  }
 0xd69   :  { %15904 = vmatpush1.bf16.msra.mxu1 %v20563_v62  ;;  %15914 = vmatprep.subr.bf16.mxu0 %v20568_v29  ;;  %v20625_v62 = vld [vmem:[#allocation27 + $0xb24] ss:$16 sps:$4 sm:$0xff]   ;;  %v20620_v29 = vld [vmem:[#allocation27 + $0x920] ss:$16 sps:$4 sm:$0xff]  }
 0xd6a   :  { %15955 = vmatprep.subr.bf16.mxu1 %v20571_v24  ;;  %v20623_v24 = vld [vmem:[#allocation27 + $0xb20] ss:$16 sps:$4 sm:$0xff]  }
 0xd6b   :  { %15865 = vmatmul.mubr.bf16.vlgmr.msra.gmra.mrb[84].mxu0 %v22600_v15 }
 0xd6c   :  { %15906 = vmatmul.mubr.bf16.vlgmr.msra.gmra.mrb[84].mxu1 %v22602_v2  ;;  %15915 = vmatpush1.bf16.msra.mxu0 %v20566_v25  ;;  %v20628_v25 = vld [vmem:[#allocation27 + $0x944] ss:$16 sps:$4 sm:$0xff]  }
 0xd6d   :  { %15946 = vmatprep.mubr.bf16.mxu0 %v22630_v45  ;;  %15956 = vmatpush1.bf16.msra.mxu1 %v20569_v28  ;;  %v20631_v28 = vld [vmem:[#allocation27 + $0xb44] ss:$16 sps:$4 sm:$0xff]  }
 0xd6e   :  { %15987 = vmatprep.mubr.bf16.mxu1 %v22632_v13  ;;  %15916 = vmatprep.subr.bf16.mxu0 %v20574_v20  ;;  %v20626_v20 = vld [vmem:[#allocation27 + $0x940] ss:$16 sps:$4 sm:$0xff]  }
 0xd6f   :  { %15957 = vmatprep.subr.bf16.mxu1 %v20577_v57  ;;  %v20629_v57 = vld [vmem:[#allocation27 + $0xb40] ss:$16 sps:$4 sm:$0xff]  }
 0xd70   :  { %15917 = vmatpush1.bf16.msra.mxu0 %v20572_v63  ;;  %v20634_v63 = vld [vmem:[#allocation27 + $0x964] ss:$16 sps:$4 sm:$0xff]  }
 0xd71   :  { %15958 = vmatpush1.bf16.msra.mxu1 %v20575_v27  ;;  %15918 = vmatprep.subr.bf16.mxu0 %v20580_v48  ;;  %v20637_v27 = vld [vmem:[#allocation27 + $0xb64] ss:$16 sps:$4 sm:$0xff]   ;;  %v20632_v48 = vld [vmem:[#allocation27 + $0x960] ss:$16 sps:$4 sm:$0xff]  }
 0xd72   :  { %15959 = vmatprep.subr.bf16.mxu1 %v20583_v53  ;;  %v20635_v53 = vld [vmem:[#allocation27 + $0xb60] ss:$16 sps:$4 sm:$0xff]  }
 0xd74   :  { %15919 = vmatpush1.bf16.msra.mxu0 %v20578_v19  ;;  %v20640_v19 = vld [vmem:[#allocation27 + $0x984] ss:$16 sps:$4 sm:$0xff]  }
 0xd75   :  { %15960 = vmatpush1.bf16.msra.mxu1 %v20581_v7  ;;  %15920 = vmatprep.subr.bf16.mxu0 %v20586_v59  ;;  %v20643_v7 = vld [vmem:[#allocation27 + $0xb84] ss:$16 sps:$4 sm:$0xff]   ;;  %v20638_v59 = vld [vmem:[#allocation27 + $0x980] ss:$16 sps:$4 sm:$0xff]  }
 0xd76   :  { %15961 = vmatprep.subr.bf16.mxu1 %v20589_v17  ;;  %v20641_v17 = vld [vmem:[#allocation27 + $0xb80] ss:$16 sps:$4 sm:$0xff]  }
 0xd78   :  { %15921 = vmatpush1.bf16.msra.mxu0 %v20584_v47  ;;  %v20646_v47 = vld [vmem:[#allocation27 + $0x9a4] ss:$16 sps:$4 sm:$0xff]  }
 0xd79   :  { %15962 = vmatpush1.bf16.msra.mxu1 %v20587_v11  ;;  %15922 = vmatprep.subr.bf16.mxu0 %v20592_v26  ;;  %v20649_v11 = vld [vmem:[#allocation27 + $0xba4] ss:$16 sps:$4 sm:$0xff]   ;;  %v20644_v26 = vld [vmem:[#allocation27 + $0x9a0] ss:$16 sps:$4 sm:$0xff]  }
 0xd7a   :  { %15963 = vmatprep.subr.bf16.mxu1 %v20595_v12  ;;  %v20647_v12 = vld [vmem:[#allocation27 + $0xba0] ss:$16 sps:$4 sm:$0xff]  }
 0xd7c   :  { %15923 = vmatpush1.bf16.msra.mxu0 %v20590_v41  ;;  %v20652_v41 = vld [vmem:[#allocation27 + $0x9c4] ss:$16 sps:$4 sm:$0xff]  }
 0xd7d   :  { %15964 = vmatpush1.bf16.msra.mxu1 %v20593_v36  ;;  %15924 = vmatprep.subr.bf16.mxu0 %v20598_v14  ;;  %v20655_v36 = vld [vmem:[#allocation27 + $0xbc4] ss:$16 sps:$4 sm:$0xff]   ;;  %v20650_v14 = vld [vmem:[#allocation27 + $0x9c0] ss:$16 sps:$4 sm:$0xff]  }
 0xd7e   :  { %15965 = vmatprep.subr.bf16.mxu1 %v20601_v58  ;;  %v20653_v58 = vld [vmem:[#allocation27 + $0xbc0] ss:$16 sps:$4 sm:$0xff]  }
 0xd80   :  { %15925 = vmatpush1.bf16.msra.mxu0 %v20596_v23  ;;  %v20658_v23 = vld [vmem:[#allocation27 + $0x9e4] ss:$16 sps:$4 sm:$0xff]  }
 0xd81   :  { %15966 = vmatpush1.bf16.msra.mxu1 %v20599_v49  ;;  %15926 = vmatprep.subr.bf16.mxu0 %v20604_v33  ;;  %v20661_v49 = vld [vmem:[#allocation27 + $0xbe4] ss:$16 sps:$4 sm:$0xff]   ;;  %v20656_v33 = vld [vmem:[#allocation27 + $0x9e0] ss:$16 sps:$4 sm:$0xff]  }
 0xd82   :  { %15967 = vmatprep.subr.bf16.mxu1 %v20607_v56  ;;  %v20659_v56 = vld [vmem:[#allocation27 + $0xbe0] ss:$16 sps:$4 sm:$0xff]  }
 0xd84   :  { %15927 = vmatpush1.bf16.msra.mxu0 %v20602_v3  ;;  %v20664_v3 = vld [vmem:[#allocation27 + $0xc04] ss:$16 sps:$4 sm:$0xff]  }
 0xd85   :  { %15968 = vmatpush1.bf16.msra.mxu1 %v20605_v9  ;;  %15928 = vmatprep.subr.bf16.mxu0 %v20610_v52  ;;  %v20667_v9 = vld [vmem:[#allocation27 + $0xe04] ss:$16 sps:$4 sm:$0xff]   ;;  %v20662_v52 = vld [vmem:[#allocation27 + $0xc00] ss:$16 sps:$4 sm:$0xff]  }
 0xd86   :  { %15969 = vmatprep.subr.bf16.mxu1 %v20613_v18  ;;  %v20665_v18 = vld [vmem:[#allocation27 + $0xe00] ss:$16 sps:$4 sm:$0xff]  }
 0xd88   :  { %15929 = vmatpush1.bf16.msra.mxu0 %v20608_v1  ;;  %v20670_v1 = vld [vmem:[#allocation27 + $0xc24] ss:$16 sps:$4 sm:$0xff]  }
 0xd89   :  { %15970 = vmatpush1.bf16.msra.mxu1 %v20611_v38  ;;  %15930 = vmatprep.subr.bf16.mxu0 %v20616_v5  ;;  %v20673_v38 = vld [vmem:[#allocation27 + $0xe24] ss:$16 sps:$4 sm:$0xff]   ;;  %v20668_v5 = vld [vmem:[#allocation27 + $0xc20] ss:$16 sps:$4 sm:$0xff]  }
 0xd8a   :  { %15971 = vmatprep.subr.bf16.mxu1 %v20619_v8  ;;  %v20671_v8 = vld [vmem:[#allocation27 + $0xe20] ss:$16 sps:$4 sm:$0xff]  }
 0xd8c   :  { %15931 = vmatpush1.bf16.msra.mxu0 %v20614_v61  ;;  %v20676_v61 = vld [vmem:[#allocation27 + $0xc44] ss:$16 sps:$4 sm:$0xff]  }
 0xd8d   :  { %15972 = vmatpush1.bf16.msra.mxu1 %v20617_v54  ;;  %15932 = vmatprep.subr.bf16.mxu0 %v20622_v51  ;;  %v20679_v54 = vld [vmem:[#allocation27 + $0xe44] ss:$16 sps:$4 sm:$0xff]   ;;  %v20674_v51 = vld [vmem:[#allocation27 + $0xc40] ss:$16 sps:$4 sm:$0xff]  }
 0xd8e   :  { %15973 = vmatprep.subr.bf16.mxu1 %v20625_v62  ;;  %v20677_v62 = vld [vmem:[#allocation27 + $0xe40] ss:$16 sps:$4 sm:$0xff]  }
 0xd90   :  { %15933 = vmatpush1.bf16.msra.mxu0 %v20620_v29  ;;  %v20682_v29 = vld [vmem:[#allocation27 + $0xc64] ss:$16 sps:$4 sm:$0xff]  }
 0xd91   :  { %15974 = vmatpush1.bf16.msra.mxu1 %v20623_v24  ;;  %15934 = vmatprep.subr.bf16.mxu0 %v20628_v25  ;;  %v20685_v24 = vld [vmem:[#allocation27 + $0xe64] ss:$16 sps:$4 sm:$0xff]   ;;  %v20680_v25 = vld [vmem:[#allocation27 + $0xc60] ss:$16 sps:$4 sm:$0xff]  }
 0xd92   :  { %15975 = vmatprep.subr.bf16.mxu1 %v20631_v28  ;;  %v20683_v28 = vld [vmem:[#allocation27 + $0xe60] ss:$16 sps:$4 sm:$0xff]  }
 0xd94   :  { %15935 = vmatpush1.bf16.msra.mxu0 %v20626_v20  ;;  %v20688_v20 = vld [vmem:[#allocation27 + $0xc84] ss:$16 sps:$4 sm:$0xff]  }
 0xd95   :  { %15976 = vmatpush1.bf16.msra.mxu1 %v20629_v57  ;;  %15936 = vmatprep.subr.bf16.mxu0 %v20634_v63  ;;  %v20691_v57 = vld [vmem:[#allocation27 + $0xe84] ss:$16 sps:$4 sm:$0xff]   ;;  %v20686_v63 = vld [vmem:[#allocation27 + $0xc80] ss:$16 sps:$4 sm:$0xff]  }
 0xd96   :  { %15977 = vmatprep.subr.bf16.mxu1 %v20637_v27  ;;  %v20689_v27 = vld [vmem:[#allocation27 + $0xe80] ss:$16 sps:$4 sm:$0xff]  }
 0xd98   :  { %15937 = vmatpush1.bf16.msra.mxu0 %v20632_v48  ;;  %v20694_v48 = vld [vmem:[#allocation27 + $0xca4] ss:$16 sps:$4 sm:$0xff]  }
 0xd99   :  { %15978 = vmatpush1.bf16.msra.mxu1 %v20635_v53  ;;  %15938 = vmatprep.subr.bf16.mxu0 %v20640_v19  ;;  %v20697_v53 = vld [vmem:[#allocation27 + $0xea4] ss:$16 sps:$4 sm:$0xff]   ;;  %v9331_v19 = vrot.slane %v22616_v10, %v22275_v16 }
 0xd9a   :  { %15979 = vmatprep.subr.bf16.mxu1 %v20643_v7  ;;  %v9339_v7 = vrot.slane %v22616_v10, %v22278_v37 }
 0xd9c   :  { %15939 = vmatpush1.bf16.msra.mxu0 %v20638_v59  ;;  %v9335_v59 = vrot.slane %v22616_v10, %v22281_v40  ;;  %v20698_v40 = vld [vmem:[#allocation27 + $0xcc0] ss:$16 sps:$4 sm:$0xff]  }
 0xd9d   :  { %15980 = vmatpush1.bf16.msra.mxu1 %v20641_v17  ;;  %15940 = vmatprep.subr.bf16.mxu0 %v20646_v47  ;;  %v20692_v17 = vld [vmem:[#allocation27 + $0xca0] ss:$16 sps:$4 sm:$0xff]   ;;  %v9343_v47 = vrot.slane %v22616_v10, %v22284_v0 }
 0xd9e   :  { %15981 = vmatprep.subr.bf16.mxu1 %v20649_v11  ;;  %v20695_v11 = vld [vmem:[#allocation27 + $0xea0] ss:$16 sps:$4 sm:$0xff]  }
 0xd9f   :  { %v20701_v10 = vld [vmem:[#allocation27 + $0xec0] ss:$16 sps:$4 sm:$0xff]  }
 0xda0   :  { %15941 = vmatpush1.bf16.msra.mxu0 %v20644_v26  ;;  %v20700_v26 = vld [vmem:[#allocation27 + $0xcc4] ss:$16 sps:$4 sm:$0xff]  }
 0xda1   :  { %15982 = vmatpush1.bf16.msra.mxu1 %v20647_v12  ;;  %15942 = vmatprep.subr.bf16.mxu0 %v20652_v41  ;;  %v20703_v41 = vld [vmem:[#allocation27 + $0xec4] ss:$16 sps:$4 sm:$0xff]  }
 0xda2   :  { %15983 = vmatprep.subr.bf16.mxu1 %v20655_v36 }
 0xda4   :  { %15943 = vmatpush1.bf16.msra.mxu0 %v20650_v14 }
 0xda5   :  { %15984 = vmatpush1.bf16.msra.mxu1 %v20653_v58  ;;  %15944 = vmatprep.subr.bf16.mxu0 %v20658_v23 }
 0xda6   :  { %15985 = vmatprep.subr.bf16.mxu1 %v20661_v49 }
 0xda8   :  { %15945 = vmatpush1.bf16.msra.mxu0 %v20656_v33 }
 0xda9   :  { %15986 = vmatpush1.bf16.msra.mxu1 %v20659_v56  ;;  %15996 = vmatprep.subr.bf16.mxu0 %v20664_v3 }
 0xdaa   :  { %16037 = vmatprep.subr.bf16.mxu1 %v20667_v9  ;;  %v20706_v9 = vld [vmem:[#allocation27 + $0xce4] ss:$16 sps:$4 sm:$0xff]  }
 0xdab   :  { %15947 = vmatmul.mubr.bf16.vlgmr.msra.gmra.mrb[88].mxu0 %v22626_v30 }
 0xdac   :  { %15988 = vmatmul.mubr.bf16.vlgmr.msra.gmra.mrb[88].mxu1 %v22628_v34  ;;  %15997 = vmatpush1.bf16.msra.mxu0 %v20662_v52 }
 0xdad   :  { %16038 = vmatpush1.bf16.msra.mxu1 %v20665_v18  ;;  %15998 = vmatprep.subr.bf16.mxu0 %v20670_v1 }
 0xdae   :  { %16039 = vmatprep.subr.bf16.mxu1 %v20673_v38  ;;  %v20709_v38 = vld [vmem:[#allocation27 + $0xee4] ss:$16 sps:$4 sm:$0xff]  }
 0xdb0   :  { %15999 = vmatpush1.bf16.msra.mxu0 %v20668_v5 }
 0xdb1   :  { %16040 = vmatpush1.bf16.msra.mxu1 %v20671_v8  ;;  %16000 = vmatprep.subr.bf16.mxu0 %v20676_v61 }
 0xdb2   :  { %16041 = vmatprep.subr.bf16.mxu1 %v20679_v54 }
 0xdb4   :  { %16001 = vmatpush1.bf16.msra.mxu0 %v20674_v51 }
 0xdb5   :  { %16042 = vmatpush1.bf16.msra.mxu1 %v20677_v62  ;;  %16002 = vmatprep.subr.bf16.mxu0 %v20682_v29 }
 0xdb6   :  { %16043 = vmatprep.subr.bf16.mxu1 %v20685_v24  ;;  %v20704_v24 = vld [vmem:[#allocation27 + $0xce0] ss:$16 sps:$4 sm:$0xff]  }
 0xdb8   :  { %16003 = vmatpush1.bf16.msra.mxu0 %v20680_v25 }
 0xdb9   :  { %16044 = vmatpush1.bf16.msra.mxu1 %v20683_v28  ;;  %16004 = vmatprep.subr.bf16.mxu0 %v20688_v20 }
 0xdba   :  { %16045 = vmatprep.subr.bf16.mxu1 %v20691_v57  ;;  %v20707_v57 = vld [vmem:[#allocation27 + $0xee0] ss:$16 sps:$4 sm:$0xff]  }
 0xdbc   :  { %16005 = vmatpush1.bf16.msra.mxu0 %v20686_v63 }
 0xdbd   :  { %16046 = vmatpush1.bf16.msra.mxu1 %v20689_v27  ;;  %16006 = vmatprep.subr.bf16.mxu0 %v20694_v48  ;;  %v20712_v48 = vld [vmem:[#allocation27 + $0xd04] ss:$16 sps:$4 sm:$0xff]  }
 0xdbe   :  { %v12513_v12 = vpop.f32.mrb[76].mxu0  ;;  %16047 = vmatprep.subr.bf16.mxu1 %v20697_v53  ;;  %v20715_v53 = vld [vmem:[#allocation27 + $0xf04] ss:$16 sps:$4 sm:$0xff]  }
 0xdbf   :  { %v18721_v36 = vadd.f32 %v12513_v12, %v9331_v19  ;;  %v12599_v16 = vpop.f32.mrb[76].mxu1  ;;  %v12515_v14 = vpop.f32.mrb[77].mxu0  ;;  %v20724_v12 = vld [vmem:[#allocation27 + $0xd44] ss:$16 sps:$4 sm:$0xff]  }
 0xdc0   :  { %v18725_v58 = vadd.f32 %v12599_v16, %v9339_v7  ;;  %v18722_v23 = vadd.f32 %v12515_v14, %v9335_v59  ;;  %v12601_v37 = vpop.f32.mrb[77].mxu1  ;;  %v12517_v49 = vpop.f32.mrb[78].mxu0  ;;  %16007 = vmatpush1.bf16.msra.mxu0 %v20692_v17  ;;  %v20718_v17 = vld [vmem:[#allocation27 + $0xd24] ss:$16 sps:$4 sm:$0xff]   ;;  %v20725_v16 = vld [vmem:[#allocation27 + $0xf40] ss:$16 sps:$4 sm:$0xff]  }
 0xdc1   :  { %v18726_v33 = vadd.f32 %v12601_v37, %v9343_v47  ;;  %v18723_v56 = vadd.f32 %v12517_v49, %v9331_v19  ;;  %v12603_v3 = vpop.f32.mrb[78].mxu1  ;;  %16048 = vmatpush1.bf16.msra.mxu1 %v20695_v11  ;;  %v12519_v0 = vpop.f32.mrb[79].mxu0  ;;  %16008 = vmatprep.subr.bf16.mxu0 %v20700_v26  ;;  %v12620_v5 = vmax.f32 %v18721_v36, 0.0  ;;  %v20716_v11 = vld [vmem:[#allocation27 + $0xd20] ss:$16 sps:$4 sm:$0xff]  }
 0xdc2   :  { %v18727_v52 = vadd.f32 %v12603_v3, %v9339_v7  ;;  %v18724_v18 = vadd.f32 %v12519_v0, %v9335_v59  ;;  %v12605_v1 = vpop.f32.mrb[79].mxu1  ;;  %16049 = vmatprep.subr.bf16.mxu1 %v20703_v41  ;;  %v12622_v54 = vmax.f32 %v18725_v58, 0.0  ;;  %v12621_v51 = vmax.f32 %v18722_v23, 0.0  ;;  %v20710_v7 = vld [vmem:[#allocation27 + $0xd00] ss:$16 sps:$4 sm:$0xff]  }
 0xdc3   :  { %v12636_v8 = vmax.f32 %v18723_v56, 0.0  ;;  %v18728_v61 = vadd.f32 %v12605_v1, %v9343_v47  ;;  %v12623_v25 = vmax.f32 %v18726_v33, 0.0  ;;  %v20713_v59 = vld [vmem:[#allocation27 + $0xf00] ss:$16 sps:$4 sm:$0xff]   ;;  %v20721_v47 = vld [vmem:[#allocation27 + $0xf24] ss:$16 sps:$4 sm:$0xff]  }
 0xdc4   :  { %v12638_v62 = vmax.f32 %v18727_v52, 0.0  ;;  %v12637_v29 = vmax.f32 %v18724_v18, 0.0  ;;  %16009 = vmatpush1.bf16.msra.mxu0 %v20698_v40  ;;  %v20719_v26 = vld [vmem:[#allocation27 + $0xf20] ss:$16 sps:$4 sm:$0xff]   ;;  %v20727_v41 = vld [vmem:[#allocation27 + $0xf44] ss:$16 sps:$4 sm:$0xff]  }
 0xdc5   :  { %v22648_v28 = vpack.c.bf16 %v12636_v8, %v12620_v5  ;;  %v12639_v20 = vmax.f32 %v18728_v61, 0.0  ;;  %16050 = vmatpush1.bf16.msra.mxu1 %v20701_v10  ;;  %16010 = vmatprep.subr.bf16.mxu0 %v20706_v9  ;;  %v20722_v36 = vld [vmem:[#allocation27 + $0xd40] ss:$16 sps:$4 sm:$0xff]   ;;  %v20730_v14 = vld [vmem:[#allocation27 + $0xd64] ss:$16 sps:$4 sm:$0xff]  }
 0xdc6   :  { %v22650_v63 = vpack.c.bf16 %v12638_v62, %v12622_v54  ;;  %v22652_v27 = vpack.c.bf16 %v12637_v29, %v12621_v51  ;;  %16051 = vmatprep.subr.bf16.mxu1 %v20709_v38  ;;  %v20733_v58 = vld [vmem:[#allocation27 + $0xf64] ss:$16 sps:$4 sm:$0xff]   ;;  %v20728_v23 = vld [vmem:[#allocation27 + $0xd60] ss:$16 sps:$4 sm:$0xff]   ;;  %v20760_v51 = vld [vmem:[#allocation27 + $0xc] ss:$16 sps:$4 sm:$0xff]  }
 0xdc7   :  { %v22654_v19 = vpack.c.bf16 %v12639_v20, %v12623_v25  ;;  %v20731_v37 = vld [vmem:[#allocation27 + $0xf60] ss:$16 sps:$4 sm:$0xff]   ;;  %v20736_v49 = vld [vmem:[#allocation27 + $0xd84] ss:$16 sps:$4 sm:$0xff]   ;;  %v20763_v62 = vld [vmem:[#allocation27 + $0x20c] ss:$16 sps:$4 sm:$0xff]  }
 0xdc8   :  { %16011 = vmatpush1.bf16.msra.mxu0 %v20704_v24  ;;  %16028 = vmatprep.mubr.bf16.mxu0 %v22652_v27  ;;  %v20739_v40 = vld [vmem:[#allocation27 + $0xf84] ss:$16 sps:$4 sm:$0xff]   ;;  %v20734_v33 = vld [vmem:[#allocation27 + $0xd80] ss:$16 sps:$4 sm:$0xff]   ;;  %v20758_v29 = vld [vmem:[#allocation27 + $0x8] ss:$16 sps:$4 sm:$0xff]  }
 0xdc9   :  { %16052 = vmatpush1.bf16.msra.mxu1 %v20707_v57  ;;  %16069 = vmatprep.mubr.bf16.mxu1 %v22654_v19  ;;  %v20737_v56 = vld [vmem:[#allocation27 + $0xf80] ss:$16 sps:$4 sm:$0xff]   ;;  %v20742_v3 = vld [vmem:[#allocation27 + $0xda4] ss:$16 sps:$4 sm:$0xff]   ;;  %v20761_v24 = vld [vmem:[#allocation27 + $0x208] ss:$16 sps:$4 sm:$0xff]  }
 0xdca   :  { %16012 = vmatprep.subr.bf16.mxu0 %v20712_v48  ;;  %16053 = vmatprep.subr.bf16.mxu1 %v20715_v53  ;;  %v20745_v0 = vld [vmem:[#allocation27 + $0xfa4] ss:$16 sps:$4 sm:$0xff]   ;;  %v20740_v10 = vld [vmem:[#allocation27 + $0xda0] ss:$16 sps:$4 sm:$0xff]   ;;  %v20766_v25 = vld [vmem:[#allocation27 + $0x2c] ss:$16 sps:$4 sm:$0xff]  }
 0xdcb   :  { %v20743_v9 = vld [vmem:[#allocation27 + $0xfa0] ss:$16 sps:$4 sm:$0xff]   ;;  %v20748_v52 = vld [vmem:[#allocation27 + $0xdc4] ss:$16 sps:$4 sm:$0xff]   ;;  %v20769_v20 = vld [vmem:[#allocation27 + $0x22c] ss:$16 sps:$4 sm:$0xff]  }
 0xdcc   :  { %16013 = vmatpush1.bf16.msra.mxu0 %v20710_v7  ;;  %v20751_v18 = vld [vmem:[#allocation27 + $0xfc4] ss:$16 sps:$4 sm:$0xff]   ;;  %v20746_v1 = vld [vmem:[#allocation27 + $0xdc0] ss:$16 sps:$4 sm:$0xff]   ;;  %v20764_v57 = vld [vmem:[#allocation27 + $0x28] ss:$16 sps:$4 sm:$0xff]  }
 0xdcd   :  { %16054 = vmatpush1.bf16.msra.mxu1 %v20713_v59  ;;  %16014 = vmatprep.subr.bf16.mxu0 %v20718_v17  ;;  %v20749_v38 = vld [vmem:[#allocation27 + $0xfc0] ss:$16 sps:$4 sm:$0xff]   ;;  %v20754_v5 = vld [vmem:[#allocation27 + $0xde4] ss:$16 sps:$4 sm:$0xff]   ;;  %v20767_v48 = vld [vmem:[#allocation27 + $0x228] ss:$16 sps:$4 sm:$0xff]  }
 0xdce   :  { %16055 = vmatprep.subr.bf16.mxu1 %v20721_v47  ;;  %v20757_v8 = vld [vmem:[#allocation27 + $0xfe4] ss:$16 sps:$4 sm:$0xff]   ;;  %v20752_v61 = vld [vmem:[#allocation27 + $0xde0] ss:$16 sps:$4 sm:$0xff]   ;;  %v20772_v53 = vld [vmem:[#allocation27 + $0x4c] ss:$16 sps:$4 sm:$0xff]  }
 0xdcf   :  { %v20755_v54 = vld [vmem:[#allocation27 + $0xfe0] ss:$16 sps:$4 sm:$0xff]   ;;  %v20775_v7 = vld [vmem:[#allocation27 + $0x24c] ss:$16 sps:$4 sm:$0xff]   ;;  %v20770_v59 = vld [vmem:[#allocation27 + $0x48] ss:$16 sps:$4 sm:$0xff]  }
 0xdd0   :  { %16015 = vmatpush1.bf16.msra.mxu0 %v20716_v11  ;;  %v20773_v17 = vld [vmem:[#allocation27 + $0x248] ss:$16 sps:$4 sm:$0xff]   ;;  %v20778_v47 = vld [vmem:[#allocation27 + $0x6c] ss:$16 sps:$4 sm:$0xff]  }
 0xdd1   :  { %16056 = vmatpush1.bf16.msra.mxu1 %v20719_v26  ;;  %16016 = vmatprep.subr.bf16.mxu0 %v20724_v12  ;;  %v20781_v11 = vld [vmem:[#allocation27 + $0x26c] ss:$16 sps:$4 sm:$0xff]   ;;  %v20776_v26 = vld [vmem:[#allocation27 + $0x68] ss:$16 sps:$4 sm:$0xff]  }
 0xdd2   :  { %16057 = vmatprep.subr.bf16.mxu1 %v20727_v41  ;;  %v20784_v12 = vld [vmem:[#allocation27 + $0x8c] ss:$16 sps:$4 sm:$0xff]  }
 0xdd3   :  { %v20787_v41 = vld [vmem:[#allocation27 + $0x28c] ss:$16 sps:$4 sm:$0xff]  }
 0xdd4   :  { %16017 = vmatpush1.bf16.msra.mxu0 %v20722_v36  ;;  %v20785_v36 = vld [vmem:[#allocation27 + $0x288] ss:$16 sps:$4 sm:$0xff]  }
 0xdd5   :  { %16058 = vmatpush1.bf16.msra.mxu1 %v20725_v16  ;;  %16018 = vmatprep.subr.bf16.mxu0 %v20730_v14  ;;  %v20790_v16 = vld [vmem:[#allocation27 + $0xac] ss:$16 sps:$4 sm:$0xff]  }
 0xdd6   :  { %16059 = vmatprep.subr.bf16.mxu1 %v20733_v58  ;;  %v20793_v14 = vld [vmem:[#allocation27 + $0x2ac] ss:$16 sps:$4 sm:$0xff]   ;;  %v13168_v58 = vld [vmem:[#allocation29] sm:$0xf] }
 0xdd8   :  { %16019 = vmatpush1.bf16.msra.mxu0 %v20728_v23  ;;  %v20788_v23 = vld [vmem:[#allocation27 + $0xa8] ss:$16 sps:$4 sm:$0xff]  }
 0xdd9   :  { %16060 = vmatpush1.bf16.msra.mxu1 %v20731_v37  ;;  %16020 = vmatprep.subr.bf16.mxu0 %v20736_v49  ;;  %v20791_v37 = vld [vmem:[#allocation27 + $0x2a8] ss:$16 sps:$4 sm:$0xff]   ;;  %v13173_v49 = vrot.slane %v13168_v58, %v22093_v43 }
 0xdda   :  { %16061 = vmatprep.subr.bf16.mxu1 %v20739_v40  ;;  %v20796_v40 = vld [vmem:[#allocation27 + $0xcc] ss:$16 sps:$4 sm:$0xff]  }
 0xddc   :  { %16021 = vmatpush1.bf16.msra.mxu0 %v20734_v33 }
 0xddd   :  { %16062 = vmatpush1.bf16.msra.mxu1 %v20737_v56  ;;  %16022 = vmatprep.subr.bf16.mxu0 %v20742_v3  ;;  %v13177_v56 = vrot.slane %v13168_v58, %v22096_v46  ;;  %v20799_v3 = vld [vmem:[#allocation27 + $0x2cc] ss:$16 sps:$4 sm:$0xff]  }
 0xdde   :  { %16063 = vmatprep.subr.bf16.mxu1 %v20745_v0  ;;  %v20832_v58 = vld [vmem:[#allocation27 + $0x18c] ss:$16 sps:$4 sm:$0xff]  }
 0xde0   :  { %16023 = vmatpush1.bf16.msra.mxu0 %v20740_v10 }
 0xde1   :  { %16064 = vmatpush1.bf16.msra.mxu1 %v20743_v9  ;;  %16024 = vmatprep.subr.bf16.mxu0 %v20748_v52 }
 0xde2   :  { %16065 = vmatprep.subr.bf16.mxu1 %v20751_v18  ;;  %v20794_v18 = vld [vmem:[#allocation27 + $0xc8] ss:$16 sps:$4 sm:$0xff]  }
 0xde4   :  { %16025 = vmatpush1.bf16.msra.mxu0 %v20746_v1 }
 0xde5   :  { %16066 = vmatpush1.bf16.msra.mxu1 %v20749_v38  ;;  %16026 = vmatprep.subr.bf16.mxu0 %v20754_v5 }
 0xde6   :  { %16067 = vmatprep.subr.bf16.mxu1 %v20757_v8  ;;  %v20797_v8 = vld [vmem:[#allocation27 + $0x2c8] ss:$16 sps:$4 sm:$0xff]  }
 0xde8   :  { %16027 = vmatpush1.bf16.msra.mxu0 %v20752_v61  ;;  %v20802_v61 = vld [vmem:[#allocation27 + $0xec] ss:$16 sps:$4 sm:$0xff]  }
 0xde9   :  { %16068 = vmatpush1.bf16.msra.mxu1 %v20755_v54  ;;  %16078 = vmatprep.subr.bf16.mxu0 %v20760_v51 }
 0xdea   :  { %16119 = vmatprep.subr.bf16.mxu1 %v20763_v62  ;;  %v20805_v62 = vld [vmem:[#allocation27 + $0x2ec] ss:$16 sps:$4 sm:$0xff]  }
 0xdeb   :  { %16029 = vmatmul.mubr.bf16.vlgmr.msra.gmra.mrb[92].mxu0 %v22648_v28 }
 0xdec   :  { %16070 = vmatmul.mubr.bf16.vlgmr.msra.gmra.mrb[92].mxu1 %v22650_v63  ;;  %16079 = vmatpush1.bf16.msra.mxu0 %v20758_v29 }
 0xded   :  { %16110 = vmatprep.mubr.bf16.mxu0 %v22580_v6  ;;  %16120 = vmatpush1.bf16.msra.mxu1 %v20761_v24  ;;  %v20779_v6 = vld [vmem:[#allocation27 + $0x268] ss:$16 sps:$4 sm:$0xff]  }
 0xdee   :  { %16151 = vmatprep.mubr.bf16.mxu1 %v22582_v44  ;;  %16080 = vmatprep.subr.bf16.mxu0 %v20766_v25  ;;  %v20782_v44 = vld [vmem:[#allocation27 + $0x88] ss:$16 sps:$4 sm:$0xff]  }
 0xdef   :  { %16121 = vmatprep.subr.bf16.mxu1 %v20769_v20  ;;  %v20800_v25 = vld [vmem:[#allocation27 + $0xe8] ss:$16 sps:$4 sm:$0xff]  }
 0xdf0   :  { %16081 = vmatpush1.bf16.msra.mxu0 %v20764_v57  ;;  %v20803_v20 = vld [vmem:[#allocation27 + $0x2e8] ss:$16 sps:$4 sm:$0xff]   ;;  %v20808_v57 = vld [vmem:[#allocation27 + $0x10c] ss:$16 sps:$4 sm:$0xff]  }
 0xdf1   :  { %16122 = vmatpush1.bf16.msra.mxu1 %v20767_v48  ;;  %16082 = vmatprep.subr.bf16.mxu0 %v20772_v53  ;;  %v20811_v48 = vld [vmem:[#allocation27 + $0x30c] ss:$16 sps:$4 sm:$0xff]   ;;  %v20806_v53 = vld [vmem:[#allocation27 + $0x108] ss:$16 sps:$4 sm:$0xff]  }
 0xdf2   :  { %16123 = vmatprep.subr.bf16.mxu1 %v20775_v7  ;;  %v20809_v7 = vld [vmem:[#allocation27 + $0x308] ss:$16 sps:$4 sm:$0xff]  }
 0xdf4   :  { %16083 = vmatpush1.bf16.msra.mxu0 %v20770_v59  ;;  %v20814_v59 = vld [vmem:[#allocation27 + $0x12c] ss:$16 sps:$4 sm:$0xff]  }
 0xdf5   :  { %16124 = vmatpush1.bf16.msra.mxu1 %v20773_v17  ;;  %16084 = vmatprep.subr.bf16.mxu0 %v20778_v47  ;;  %v20817_v17 = vld [vmem:[#allocation27 + $0x32c] ss:$16 sps:$4 sm:$0xff]   ;;  %v20812_v47 = vld [vmem:[#allocation27 + $0x128] ss:$16 sps:$4 sm:$0xff]  }
 0xdf6   :  { %16125 = vmatprep.subr.bf16.mxu1 %v20781_v11  ;;  %v20815_v11 = vld [vmem:[#allocation27 + $0x328] ss:$16 sps:$4 sm:$0xff]  }
 0xdf8   :  { %16085 = vmatpush1.bf16.msra.mxu0 %v20776_v26  ;;  %v20820_v26 = vld [vmem:[#allocation27 + $0x14c] ss:$16 sps:$4 sm:$0xff]  }
 0xdf9   :  { %16126 = vmatpush1.bf16.msra.mxu1 %v20779_v6  ;;  %16086 = vmatprep.subr.bf16.mxu0 %v20784_v12  ;;  %v20823_v6 = vld [vmem:[#allocation27 + $0x34c] ss:$16 sps:$4 sm:$0xff]   ;;  %v20818_v12 = vld [vmem:[#allocation27 + $0x148] ss:$16 sps:$4 sm:$0xff]  }
 0xdfa   :  { %16127 = vmatprep.subr.bf16.mxu1 %v20787_v41  ;;  %v20821_v41 = vld [vmem:[#allocation27 + $0x348] ss:$16 sps:$4 sm:$0xff]  }
 0xdfc   :  { %16087 = vmatpush1.bf16.msra.mxu0 %v20782_v44  ;;  %v20826_v44 = vld [vmem:[#allocation27 + $0x16c] ss:$16 sps:$4 sm:$0xff]  }
 0xdfd   :  { %16128 = vmatpush1.bf16.msra.mxu1 %v20785_v36  ;;  %16088 = vmatprep.subr.bf16.mxu0 %v20790_v16  ;;  %v20829_v36 = vld [vmem:[#allocation27 + $0x36c] ss:$16 sps:$4 sm:$0xff]   ;;  %v20824_v16 = vld [vmem:[#allocation27 + $0x168] ss:$16 sps:$4 sm:$0xff]  }
 0xdfe   :  { %v15784_v33 = vpop.f32.mrb[80].mxu0  ;;  %16129 = vmatprep.subr.bf16.mxu1 %v20793_v14  ;;  %v20827_v14 = vld [vmem:[#allocation27 + $0x368] ss:$16 sps:$4 sm:$0xff]  }
 0xdff   :  { %v15825_v0 = vpop.f32.mrb[80].mxu1  ;;  %v15785_v10 = vpop.f32.mrb[81].mxu0  ;;  %v20841_v33 = vld [vmem:[#allocation27 + $0x3ac] ss:$16 sps:$4 sm:$0xff]  }
 0xe00   :  { %v15826_v9 = vpop.f32.mrb[81].mxu1  ;;  %v15786_v52 = vpop.f32.mrb[82].mxu0  ;;  %16089 = vmatpush1.bf16.msra.mxu0 %v20788_v23  ;;  %v20835_v23 = vld [vmem:[#allocation27 + $0x38c] ss:$16 sps:$4 sm:$0xff]  }
 0xe01   :  { %v15787_v1 = vadd.f32 %v15786_v52, %v13173_v49  ;;  %v15827_v38 = vpop.f32.mrb[82].mxu1  ;;  %16130 = vmatpush1.bf16.msra.mxu1 %v20791_v37  ;;  %v15788_v5 = vpop.f32.mrb[83].mxu0  ;;  %16090 = vmatprep.subr.bf16.mxu0 %v20796_v40  ;;  %v20830_v37 = vld [vmem:[#allocation27 + $0x188] ss:$16 sps:$4 sm:$0xff]   ;;  %v20838_v40 = vld [vmem:[#allocation27 + $0x1ac] ss:$16 sps:$4 sm:$0xff]  }
 0xe02   :  { %v15789_v54 = vadd.f32 %v15788_v5, %v13177_v56  ;;  %v15829_v51 = vpop.f32.mrb[83].mxu1  ;;  %16131 = vmatprep.subr.bf16.mxu1 %v20799_v3  ;;  %v20833_v49 = vld [vmem:[#allocation27 + $0x388] ss:$16 sps:$4 sm:$0xff]   ;;  %v20844_v0 = vld [vmem:[#allocation27 + $0x1cc] ss:$16 sps:$4 sm:$0xff]  }
 0xe03   :  { %v22664_v29 = vadd.f32 %v15827_v38, %v15787_v1  ;;  %v20836_v56 = vld [vmem:[#allocation27 + $0x1a8] ss:$16 sps:$4 sm:$0xff]   ;;  %v20847_v10 = vld [vmem:[#allocation27 + $0x3cc] ss:$16 sps:$4 sm:$0xff]  }
 0xe04   :  { %v22666_v24 = vadd.f32 %v15829_v51, %v15789_v54  ;;  %16091 = vmatpush1.bf16.msra.mxu0 %v20794_v18  ;;  %v20839_v3 = vld [vmem:[#allocation27 + $0x3a8] ss:$16 sps:$4 sm:$0xff]   ;;  %v20850_v18 = vld [vmem:[#allocation27 + $0x1ec] ss:$16 sps:$4 sm:$0xff]  }
 0xe05   :  { %16132 = vmatpush1.bf16.msra.mxu1 %v20797_v8  ;;  %16092 = vmatprep.subr.bf16.mxu0 %v20802_v61  ;;  %v20842_v9 = vld [vmem:[#allocation27 + $0x1c8] ss:$16 sps:$4 sm:$0xff]   ;;  %v20853_v1 = vld [vmem:[#allocation27 + $0x3ec] ss:$16 sps:$4 sm:$0xff]  }
 0xe06   :  { %16133 = vmatprep.subr.bf16.mxu1 %v20805_v62  ;;  %v20845_v52 = vld [vmem:[#allocation27 + $0x3c8] ss:$16 sps:$4 sm:$0xff]   ;;  %v20856_v8 = vld [vmem:[#allocation27 + $0x40c] ss:$16 sps:$4 sm:$0xff]  }
 0xe07   :  { %v20848_v38 = vld [vmem:[#allocation27 + $0x1e8] ss:$16 sps:$4 sm:$0xff]   ;;  %v20859_v61 = vld [vmem:[#allocation27 + $0x60c] ss:$16 sps:$4 sm:$0xff]  }
 0xe08   :  { %16093 = vmatpush1.bf16.msra.mxu0 %v20800_v25  ;;  %v20851_v5 = vld [vmem:[#allocation27 + $0x3e8] ss:$16 sps:$4 sm:$0xff]   ;;  %v20862_v62 = vld [vmem:[#allocation27 + $0x42c] ss:$16 sps:$4 sm:$0xff]  }
 0xe09   :  { %16134 = vmatpush1.bf16.msra.mxu1 %v20803_v20  ;;  %16094 = vmatprep.subr.bf16.mxu0 %v20808_v57  ;;  %v20854_v54 = vld [vmem:[#allocation27 + $0x408] ss:$16 sps:$4 sm:$0xff]   ;;  %v20865_v25 = vld [vmem:[#allocation27 + $0x62c] ss:$16 sps:$4 sm:$0xff]  }
 0xe0a   :  { %16135 = vmatprep.subr.bf16.mxu1 %v20811_v48  ;;  %v20857_v51 = vld [vmem:[#allocation27 + $0x608] ss:$16 sps:$4 sm:$0xff]   ;;  %v20868_v48 = vld [vmem:[#allocation27 + $0x44c] ss:$16 sps:$4 sm:$0xff]  }
 0xe0b   :  { %v20860_v20 = vld [vmem:[#allocation27 + $0x428] ss:$16 sps:$4 sm:$0xff]  }
 0xe0c   :  { %16095 = vmatpush1.bf16.msra.mxu0 %v20806_v53  ;;  %v20863_v57 = vld [vmem:[#allocation27 + $0x628] ss:$16 sps:$4 sm:$0xff]   ;;  %v20871_v53 = vld [vmem:[#allocation27 + $0x64c] ss:$16 sps:$4 sm:$0xff]  }
 0xe0d   :  { %16136 = vmatpush1.bf16.msra.mxu1 %v20809_v7  ;;  %16096 = vmatprep.subr.bf16.mxu0 %v20814_v59  ;;  %v20866_v7 = vld [vmem:[#allocation27 + $0x448] ss:$16 sps:$4 sm:$0xff]   ;;  %v20874_v59 = vld [vmem:[#allocation27 + $0x46c] ss:$16 sps:$4 sm:$0xff]  }
 0xe0e   :  { %16137 = vmatprep.subr.bf16.mxu1 %v20817_v17  ;;  %v20872_v17 = vld [vmem:[#allocation27 + $0x468] ss:$16 sps:$4 sm:$0xff]  }
 0xe10   :  { %16097 = vmatpush1.bf16.msra.mxu0 %v20812_v47  ;;  %v20880_v47 = vld [vmem:[#allocation27 + $0x48c] ss:$16 sps:$4 sm:$0xff]  }
 0xe11   :  { %16138 = vmatpush1.bf16.msra.mxu1 %v20815_v11  ;;  %16098 = vmatprep.subr.bf16.mxu0 %v20820_v26  ;;  %v20883_v11 = vld [vmem:[#allocation27 + $0x68c] ss:$16 sps:$4 sm:$0xff]   ;;  %v20881_v26 = vld [vmem:[#allocation27 + $0x688] ss:$16 sps:$4 sm:$0xff]  }
 0xe12   :  { %16139 = vmatprep.subr.bf16.mxu1 %v20823_v6  ;;  %v20886_v6 = vld [vmem:[#allocation27 + $0x4ac] ss:$16 sps:$4 sm:$0xff]  }
 0xe14   :  { %16099 = vmatpush1.bf16.msra.mxu0 %v20818_v12  ;;  %v20889_v12 = vld [vmem:[#allocation27 + $0x6ac] ss:$16 sps:$4 sm:$0xff]  }
 0xe15   :  { %16140 = vmatpush1.bf16.msra.mxu1 %v20821_v41  ;;  %16100 = vmatprep.subr.bf16.mxu0 %v20826_v44  ;;  %v20884_v41 = vld [vmem:[#allocation27 + $0x4a8] ss:$16 sps:$4 sm:$0xff]  }
 0xe16   :  { %16141 = vmatprep.subr.bf16.mxu1 %v20829_v36  ;;  %v20887_v44 = vld [vmem:[#allocation27 + $0x6a8] ss:$16 sps:$4 sm:$0xff]   ;;  %v20892_v36 = vld [vmem:[#allocation27 + $0x4cc] ss:$16 sps:$4 sm:$0xff]  }
 0xe18   :  { %16101 = vmatpush1.bf16.msra.mxu0 %v20824_v16 }
 0xe19   :  { %16142 = vmatpush1.bf16.msra.mxu1 %v20827_v14  ;;  %16102 = vmatprep.subr.bf16.mxu0 %v20832_v58  ;;  %v20895_v14 = vld [vmem:[#allocation27 + $0x6cc] ss:$16 sps:$4 sm:$0xff]  }
 0xe1a   :  { %16143 = vmatprep.subr.bf16.mxu1 %v20835_v23 }
 0xe1c   :  { %16103 = vmatpush1.bf16.msra.mxu0 %v20830_v37 }
 0xe1d   :  { %16144 = vmatpush1.bf16.msra.mxu1 %v20833_v49  ;;  %16104 = vmatprep.subr.bf16.mxu0 %v20838_v40  ;;  %v20890_v40 = vld [vmem:[#allocation27 + $0x4c8] ss:$16 sps:$4 sm:$0xff]  }
 0xe1e   :  { %16145 = vmatprep.subr.bf16.mxu1 %v20841_v33 }
 0xe20   :  { %16105 = vmatpush1.bf16.msra.mxu0 %v20836_v56 }
 0xe21   :  { %16146 = vmatpush1.bf16.msra.mxu1 %v20839_v3  ;;  %16106 = vmatprep.subr.bf16.mxu0 %v20844_v0  ;;  %v20893_v0 = vld [vmem:[#allocation27 + $0x6c8] ss:$16 sps:$4 sm:$0xff]  }
 0xe22   :  { %16147 = vmatprep.subr.bf16.mxu1 %v20847_v10  ;;  %v20898_v10 = vld [vmem:[#allocation27 + $0x4ec] ss:$16 sps:$4 sm:$0xff]  }
 0xe24   :  { %16107 = vmatpush1.bf16.msra.mxu0 %v20842_v9 }
 0xe25   :  { %16148 = vmatpush1.bf16.msra.mxu1 %v20845_v52  ;;  %16108 = vmatprep.subr.bf16.mxu0 %v20850_v18  ;;  %v20901_v18 = vld [vmem:[#allocation27 + $0x6ec] ss:$16 sps:$4 sm:$0xff]  }
 0xe26   :  { %16149 = vmatprep.subr.bf16.mxu1 %v20853_v1 }
 0xe28   :  { %16109 = vmatpush1.bf16.msra.mxu0 %v20848_v38 }
 0xe29   :  { %16150 = vmatpush1.bf16.msra.mxu1 %v20851_v5  ;;  %16160 = vmatprep.subr.bf16.mxu0 %v20856_v8  ;;  %v20896_v5 = vld [vmem:[#allocation27 + $0x4e8] ss:$16 sps:$4 sm:$0xff]   ;;  %v20904_v8 = vld [vmem:[#allocation27 + $0x50c] ss:$16 sps:$4 sm:$0xff]  }
 0xe2a   :  { %16201 = vmatprep.subr.bf16.mxu1 %v20859_v61  ;;  %v20907_v61 = vld [vmem:[#allocation27 + $0x70c] ss:$16 sps:$4 sm:$0xff]  }
 0xe2b   :  { %16111 = vmatmul.mubr.bf16.vlgmr.msra.gmra.mrb[96].mxu0 %v22576_v21  ;;  %v20869_v21 = vld [vmem:[#allocation27 + $0x648] ss:$16 sps:$4 sm:$0xff]  }
 0xe2c   :  { %16152 = vmatmul.mubr.bf16.vlgmr.msra.gmra.mrb[96].mxu1 %v22578_v42  ;;  %16161 = vmatpush1.bf16.msra.mxu0 %v20854_v54  ;;  %v20877_v42 = vld [vmem:[#allocation27 + $0x66c] ss:$16 sps:$4 sm:$0xff]   ;;  %v20902_v54 = vld [vmem:[#allocation27 + $0x508] ss:$16 sps:$4 sm:$0xff]  }
 0xe2d   :  { %16192 = vmatprep.mubr.bf16.mxu0 %v22604_v4  ;;  %16202 = vmatpush1.bf16.msra.mxu1 %v20857_v51  ;;  %v20875_v4 = vld [vmem:[#allocation27 + $0x668] ss:$16 sps:$4 sm:$0xff]   ;;  %v20910_v51 = vld [vmem:[#allocation27 + $0x52c] ss:$16 sps:$4 sm:$0xff]  }
 0xe2e   :  { %16233 = vmatprep.mubr.bf16.mxu1 %v22606_v31  ;;  %16162 = vmatprep.subr.bf16.mxu0 %v20862_v62  ;;  %v20878_v31 = vld [vmem:[#allocation27 + $0x488] ss:$16 sps:$4 sm:$0xff]   ;;  %v20913_v62 = vld [vmem:[#allocation27 + $0x72c] ss:$16 sps:$4 sm:$0xff]  }
 0xe2f   :  { %16203 = vmatprep.subr.bf16.mxu1 %v20865_v25  ;;  %v20908_v25 = vld [vmem:[#allocation27 + $0x528] ss:$16 sps:$4 sm:$0xff]  }
 0xe30   :  { %16163 = vmatpush1.bf16.msra.mxu0 %v20860_v20  ;;  %v20911_v20 = vld [vmem:[#allocation27 + $0x728] ss:$16 sps:$4 sm:$0xff]  }
 0xe31   :  { %16204 = vmatpush1.bf16.msra.mxu1 %v20863_v57  ;;  %16164 = vmatprep.subr.bf16.mxu0 %v20868_v48  ;;  %v20916_v57 = vld [vmem:[#allocation27 + $0x54c] ss:$16 sps:$4 sm:$0xff]  }
 0xe32   :  { %16205 = vmatprep.subr.bf16.mxu1 %v20871_v53  ;;  %v20919_v48 = vld [vmem:[#allocation27 + $0x74c] ss:$16 sps:$4 sm:$0xff]   ;;  %v20914_v53 = vld [vmem:[#allocation27 + $0x548] ss:$16 sps:$4 sm:$0xff]  }
 0xe34   :  { %16165 = vmatpush1.bf16.msra.mxu0 %v20866_v7  ;;  %v20917_v7 = vld [vmem:[#allocation27 + $0x748] ss:$16 sps:$4 sm:$0xff]  }
 0xe35   :  { %16206 = vmatpush1.bf16.msra.mxu1 %v20869_v21  ;;  %16166 = vmatprep.subr.bf16.mxu0 %v20874_v59  ;;  %v20922_v21 = vld [vmem:[#allocation27 + $0x56c] ss:$16 sps:$4 sm:$0xff]  }
 0xe36   :  { %16207 = vmatprep.subr.bf16.mxu1 %v20877_v42  ;;  %v20925_v59 = vld [vmem:[#allocation27 + $0x76c] ss:$16 sps:$4 sm:$0xff]   ;;  %v20920_v42 = vld [vmem:[#allocation27 + $0x568] ss:$16 sps:$4 sm:$0xff]  }
 0xe38   :  { %16167 = vmatpush1.bf16.msra.mxu0 %v20872_v17  ;;  %v20923_v17 = vld [vmem:[#allocation27 + $0x768] ss:$16 sps:$4 sm:$0xff]  }
 0xe39   :  { %16208 = vmatpush1.bf16.msra.mxu1 %v20875_v4  ;;  %16168 = vmatprep.subr.bf16.mxu0 %v20880_v47  ;;  %v20928_v4 = vld [vmem:[#allocation27 + $0x58c] ss:$16 sps:$4 sm:$0xff]  }
 0xe3a   :  { %16209 = vmatprep.subr.bf16.mxu1 %v20883_v11  ;;  %v20931_v47 = vld [vmem:[#allocation27 + $0x78c] ss:$16 sps:$4 sm:$0xff]   ;;  %v20926_v11 = vld [vmem:[#allocation27 + $0x588] ss:$16 sps:$4 sm:$0xff]  }
 0xe3c   :  { %16169 = vmatpush1.bf16.msra.mxu0 %v20878_v31  ;;  %v20929_v31 = vld [vmem:[#allocation27 + $0x788] ss:$16 sps:$4 sm:$0xff]  }
 0xe3d   :  { %16210 = vmatpush1.bf16.msra.mxu1 %v20881_v26  ;;  %16170 = vmatprep.subr.bf16.mxu0 %v20886_v6  ;;  %v20934_v26 = vld [vmem:[#allocation27 + $0x5ac] ss:$16 sps:$4 sm:$0xff]  }
 0xe3e   :  { %v15866_v16 = vpop.f32.mrb[84].mxu0  ;;  %16211 = vmatprep.subr.bf16.mxu1 %v20889_v12  ;;  %v20937_v6 = vld [vmem:[#allocation27 + $0x7ac] ss:$16 sps:$4 sm:$0xff]   ;;  %v20932_v12 = vld [vmem:[#allocation27 + $0x5a8] ss:$16 sps:$4 sm:$0xff]  }
 0xe3f   :  { %v15907_v58 = vpop.f32.mrb[84].mxu1  ;;  %v15867_v23 = vpop.f32.mrb[85].mxu0  ;;  %v20938_v16 = vld [vmem:[#allocation27 + $0x5c8] ss:$16 sps:$4 sm:$0xff]  }
 0xe40   :  { %v15908_v37 = vpop.f32.mrb[85].mxu1  ;;  %v15868_v49 = vpop.f32.mrb[86].mxu0  ;;  %16171 = vmatpush1.bf16.msra.mxu0 %v20884_v41  ;;  %v20935_v41 = vld [vmem:[#allocation27 + $0x7a8] ss:$16 sps:$4 sm:$0xff]   ;;  %v20946_v58 = vld [vmem:[#allocation27 + $0x5ec] ss:$16 sps:$4 sm:$0xff]  }
 0xe41   :  { %v15869_v33 = vadd.f32 %v15868_v49, %v22664_v29  ;;  %v15909_v56 = vpop.f32.mrb[86].mxu1  ;;  %16212 = vmatpush1.bf16.msra.mxu1 %v20887_v44  ;;  %v15870_v3 = vpop.f32.mrb[87].mxu0  ;;  %16172 = vmatprep.subr.bf16.mxu0 %v20892_v36  ;;  %v20899_v29 = vld [vmem:[#allocation27 + $0x6e8] ss:$16 sps:$4 sm:$0xff]   ;;  %v20940_v44 = vld [vmem:[#allocation27 + $0x5cc] ss:$16 sps:$4 sm:$0xff]  }
 0xe42   :  { %v15871_v9 = vadd.f32 %v15870_v3, %v22666_v24  ;;  %v15911_v52 = vpop.f32.mrb[87].mxu1  ;;  %16213 = vmatprep.subr.bf16.mxu1 %v20895_v14  ;;  %v20905_v24 = vld [vmem:[#allocation27 + $0x708] ss:$16 sps:$4 sm:$0xff]   ;;  %v20943_v36 = vld [vmem:[#allocation27 + $0x7cc] ss:$16 sps:$4 sm:$0xff]  }
 0xe43   :  { %v22674_v1 = vadd.f32 %v15909_v56, %v15869_v33  ;;  %v20941_v14 = vld [vmem:[#allocation27 + $0x7c8] ss:$16 sps:$4 sm:$0xff]   ;;  %v20949_v23 = vld [vmem:[#allocation27 + $0x7ec] ss:$16 sps:$4 sm:$0xff]  }
 0xe44   :  { %v22676_v38 = vadd.f32 %v15911_v52, %v15871_v9  ;;  %16173 = vmatpush1.bf16.msra.mxu0 %v20890_v40  ;;  %v20944_v37 = vld [vmem:[#allocation27 + $0x5e8] ss:$16 sps:$4 sm:$0xff]   ;;  %v20952_v40 = vld [vmem:[#allocation27 + $0x80c] ss:$16 sps:$4 sm:$0xff]  }
 0xe45   :  { %16214 = vmatpush1.bf16.msra.mxu1 %v20893_v0  ;;  %16174 = vmatprep.subr.bf16.mxu0 %v20898_v10  ;;  %v20947_v49 = vld [vmem:[#allocation27 + $0x7e8] ss:$16 sps:$4 sm:$0xff]   ;;  %v20955_v33 = vld [vmem:[#allocation27 + $0xa0c] ss:$16 sps:$4 sm:$0xff]  }
 0xe46   :  { %16215 = vmatprep.subr.bf16.mxu1 %v20901_v18  ;;  %v20950_v56 = vld [vmem:[#allocation27 + $0x808] ss:$16 sps:$4 sm:$0xff]   ;;  %v20958_v0 = vld [vmem:[#allocation27 + $0x82c] ss:$16 sps:$4 sm:$0xff]  }
 0xe47   :  { %v20953_v3 = vld [vmem:[#allocation27 + $0xa08] ss:$16 sps:$4 sm:$0xff]   ;;  %v20961_v10 = vld [vmem:[#allocation27 + $0xa2c] ss:$16 sps:$4 sm:$0xff]  }
 0xe48   :  { %16175 = vmatpush1.bf16.msra.mxu0 %v20896_v5  ;;  %v20956_v9 = vld [vmem:[#allocation27 + $0x828] ss:$16 sps:$4 sm:$0xff]   ;;  %v20964_v18 = vld [vmem:[#allocation27 + $0x84c] ss:$16 sps:$4 sm:$0xff]  }
 0xe49   :  { %16216 = vmatpush1.bf16.msra.mxu1 %v20899_v29  ;;  %16176 = vmatprep.subr.bf16.mxu0 %v20904_v8  ;;  %v20959_v52 = vld [vmem:[#allocation27 + $0xa28] ss:$16 sps:$4 sm:$0xff]   ;;  %v20967_v5 = vld [vmem:[#allocation27 + $0xa4c] ss:$16 sps:$4 sm:$0xff]  }
 0xe4a   :  { %16217 = vmatprep.subr.bf16.mxu1 %v20907_v61  ;;  %v20962_v29 = vld [vmem:[#allocation27 + $0x848] ss:$16 sps:$4 sm:$0xff]   ;;  %v20970_v8 = vld [vmem:[#allocation27 + $0x86c] ss:$16 sps:$4 sm:$0xff]  }
 0xe4b   :  { %v20968_v61 = vld [vmem:[#allocation27 + $0x868] ss:$16 sps:$4 sm:$0xff]  }
 0xe4c   :  { %16177 = vmatpush1.bf16.msra.mxu0 %v20902_v54  ;;  %v20976_v54 = vld [vmem:[#allocation27 + $0x88c] ss:$16 sps:$4 sm:$0xff]  }
 0xe4d   :  { %16218 = vmatpush1.bf16.msra.mxu1 %v20905_v24  ;;  %16178 = vmatprep.subr.bf16.mxu0 %v20910_v51  ;;  %v20979_v24 = vld [vmem:[#allocation27 + $0xa8c] ss:$16 sps:$4 sm:$0xff]   ;;  %v20977_v51 = vld [vmem:[#allocation27 + $0xa88] ss:$16 sps:$4 sm:$0xff]  }
 0xe4e   :  { %16219 = vmatprep.subr.bf16.mxu1 %v20913_v62  ;;  %v20982_v62 = vld [vmem:[#allocation27 + $0x8ac] ss:$16 sps:$4 sm:$0xff]  }
 0xe50   :  { %16179 = vmatpush1.bf16.msra.mxu0 %v20908_v25  ;;  %v20985_v25 = vld [vmem:[#allocation27 + $0xaac] ss:$16 sps:$4 sm:$0xff]  }
 0xe51   :  { %16220 = vmatpush1.bf16.msra.mxu1 %v20911_v20  ;;  %16180 = vmatprep.subr.bf16.mxu0 %v20916_v57  ;;  %v20980_v20 = vld [vmem:[#allocation27 + $0x8a8] ss:$16 sps:$4 sm:$0xff]  }
 0xe52   :  { %16221 = vmatprep.subr.bf16.mxu1 %v20919_v48  ;;  %v20983_v57 = vld [vmem:[#allocation27 + $0xaa8] ss:$16 sps:$4 sm:$0xff]   ;;  %v20988_v48 = vld [vmem:[#allocation27 + $0x8cc] ss:$16 sps:$4 sm:$0xff]  }
 0xe54   :  { %16181 = vmatpush1.bf16.msra.mxu0 %v20914_v53 }
 0xe55   :  { %16222 = vmatpush1.bf16.msra.mxu1 %v20917_v7  ;;  %16182 = vmatprep.subr.bf16.mxu0 %v20922_v21  ;;  %v20991_v7 = vld [vmem:[#allocation27 + $0xacc] ss:$16 sps:$4 sm:$0xff]  }
 0xe56   :  { %16223 = vmatprep.subr.bf16.mxu1 %v20925_v59 }
 0xe58   :  { %16183 = vmatpush1.bf16.msra.mxu0 %v20920_v42 }
 0xe59   :  { %16224 = vmatpush1.bf16.msra.mxu1 %v20923_v17  ;;  %16184 = vmatprep.subr.bf16.mxu0 %v20928_v4  ;;  %v20986_v4 = vld [vmem:[#allocation27 + $0x8c8] ss:$16 sps:$4 sm:$0xff]  }
 0xe5a   :  { %16225 = vmatprep.subr.bf16.mxu1 %v20931_v47 }
 0xe5c   :  { %16185 = vmatpush1.bf16.msra.mxu0 %v20926_v11 }
 0xe5d   :  { %16226 = vmatpush1.bf16.msra.mxu1 %v20929_v31  ;;  %16186 = vmatprep.subr.bf16.mxu0 %v20934_v26  ;;  %v20989_v26 = vld [vmem:[#allocation27 + $0xac8] ss:$16 sps:$4 sm:$0xff]  }
 0xe5e   :  { %16227 = vmatprep.subr.bf16.mxu1 %v20937_v6  ;;  %v20994_v6 = vld [vmem:[#allocation27 + $0x8ec] ss:$16 sps:$4 sm:$0xff]  }
 0xe60   :  { %16187 = vmatpush1.bf16.msra.mxu0 %v20932_v12 }
 0xe61   :  { %16228 = vmatpush1.bf16.msra.mxu1 %v20935_v41  ;;  %16188 = vmatprep.subr.bf16.mxu0 %v20940_v44  ;;  %v20997_v44 = vld [vmem:[#allocation27 + $0xaec] ss:$16 sps:$4 sm:$0xff]  }
 0xe62   :  { %16229 = vmatprep.subr.bf16.mxu1 %v20943_v36 }
 0xe64   :  { %16189 = vmatpush1.bf16.msra.mxu0 %v20938_v16 }
 0xe65   :  { %16230 = vmatpush1.bf16.msra.mxu1 %v20941_v14  ;;  %16190 = vmatprep.subr.bf16.mxu0 %v20946_v58  ;;  %v20992_v14 = vld [vmem:[#allocation27 + $0x8e8] ss:$16 sps:$4 sm:$0xff]   ;;  %v21000_v58 = vld [vmem:[#allocation27 + $0x90c] ss:$16 sps:$4 sm:$0xff]  }
 0xe66   :  { %16231 = vmatprep.subr.bf16.mxu1 %v20949_v23  ;;  %v21003_v23 = vld [vmem:[#allocation27 + $0xb0c] ss:$16 sps:$4 sm:$0xff]  }
 0xe68   :  { %16191 = vmatpush1.bf16.msra.mxu0 %v20944_v37  ;;  %v20998_v37 = vld [vmem:[#allocation27 + $0x908] ss:$16 sps:$4 sm:$0xff]  }
 0xe69   :  { %16232 = vmatpush1.bf16.msra.mxu1 %v20947_v49  ;;  %16242 = vmatprep.subr.bf16.mxu0 %v20952_v40  ;;  %v21006_v49 = vld [vmem:[#allocation27 + $0x92c] ss:$16 sps:$4 sm:$0xff]  }
 0xe6a   :  { %16283 = vmatprep.subr.bf16.mxu1 %v20955_v33  ;;  %v21009_v40 = vld [vmem:[#allocation27 + $0xb2c] ss:$16 sps:$4 sm:$0xff]   ;;  %v21004_v33 = vld [vmem:[#allocation27 + $0x928] ss:$16 sps:$4 sm:$0xff]  }
 0xe6b   :  { %16193 = vmatmul.mubr.bf16.vlgmr.msra.gmra.mrb[100].mxu0 %v22600_v15  ;;  %v20965_v15 = vld [vmem:[#allocation27 + $0xa48] ss:$16 sps:$4 sm:$0xff]  }
 0xe6c   :  { %16234 = vmatmul.mubr.bf16.vlgmr.msra.gmra.mrb[100].mxu1 %v22602_v2  ;;  %16243 = vmatpush1.bf16.msra.mxu0 %v20950_v56  ;;  %v20973_v2 = vld [vmem:[#allocation27 + $0xa6c] ss:$16 sps:$4 sm:$0xff]   ;;  %v21007_v56 = vld [vmem:[#allocation27 + $0xb28] ss:$16 sps:$4 sm:$0xff]  }
 0xe6d   :  { %16274 = vmatprep.mubr.bf16.mxu0 %v22630_v45  ;;  %16284 = vmatpush1.bf16.msra.mxu1 %v20953_v3  ;;  %v20971_v45 = vld [vmem:[#allocation27 + $0xa68] ss:$16 sps:$4 sm:$0xff]   ;;  %v21012_v3 = vld [vmem:[#allocation27 + $0x94c] ss:$16 sps:$4 sm:$0xff]  }
 0xe6e   :  { %16315 = vmatprep.mubr.bf16.mxu1 %v22632_v13  ;;  %16244 = vmatprep.subr.bf16.mxu0 %v20958_v0  ;;  %v20974_v13 = vld [vmem:[#allocation27 + $0x888] ss:$16 sps:$4 sm:$0xff]   ;;  %v21015_v0 = vld [vmem:[#allocation27 + $0xb4c] ss:$16 sps:$4 sm:$0xff]  }
 0xe6f   :  { %16285 = vmatprep.subr.bf16.mxu1 %v20961_v10  ;;  %v21010_v10 = vld [vmem:[#allocation27 + $0x948] ss:$16 sps:$4 sm:$0xff]  }
 0xe70   :  { %16245 = vmatpush1.bf16.msra.mxu0 %v20956_v9  ;;  %v21013_v9 = vld [vmem:[#allocation27 + $0xb48] ss:$16 sps:$4 sm:$0xff]  }
 0xe71   :  { %16286 = vmatpush1.bf16.msra.mxu1 %v20959_v52  ;;  %16246 = vmatprep.subr.bf16.mxu0 %v20964_v18  ;;  %v21018_v52 = vld [vmem:[#allocation27 + $0x96c] ss:$16 sps:$4 sm:$0xff]  }
 0xe72   :  { %16287 = vmatprep.subr.bf16.mxu1 %v20967_v5  ;;  %v21021_v18 = vld [vmem:[#allocation27 + $0xb6c] ss:$16 sps:$4 sm:$0xff]   ;;  %v21016_v5 = vld [vmem:[#allocation27 + $0x968] ss:$16 sps:$4 sm:$0xff]  }
 0xe74   :  { %16247 = vmatpush1.bf16.msra.mxu0 %v20962_v29  ;;  %v21019_v29 = vld [vmem:[#allocation27 + $0xb68] ss:$16 sps:$4 sm:$0xff]  }
 0xe75   :  { %16288 = vmatpush1.bf16.msra.mxu1 %v20965_v15  ;;  %16248 = vmatprep.subr.bf16.mxu0 %v20970_v8  ;;  %v21024_v15 = vld [vmem:[#allocation27 + $0x98c] ss:$16 sps:$4 sm:$0xff]  }
 0xe76   :  { %16289 = vmatprep.subr.bf16.mxu1 %v20973_v2  ;;  %v21027_v8 = vld [vmem:[#allocation27 + $0xb8c] ss:$16 sps:$4 sm:$0xff]   ;;  %v21022_v2 = vld [vmem:[#allocation27 + $0x988] ss:$16 sps:$4 sm:$0xff]  }
 0xe78   :  { %16249 = vmatpush1.bf16.msra.mxu0 %v20968_v61  ;;  %v21025_v61 = vld [vmem:[#allocation27 + $0xb88] ss:$16 sps:$4 sm:$0xff]  }
 0xe79   :  { %16290 = vmatpush1.bf16.msra.mxu1 %v20971_v45  ;;  %16250 = vmatprep.subr.bf16.mxu0 %v20976_v54  ;;  %v21030_v45 = vld [vmem:[#allocation27 + $0x9ac] ss:$16 sps:$4 sm:$0xff]  }
 0xe7a   :  { %16291 = vmatprep.subr.bf16.mxu1 %v20979_v24  ;;  %v21033_v54 = vld [vmem:[#allocation27 + $0xbac] ss:$16 sps:$4 sm:$0xff]   ;;  %v21028_v24 = vld [vmem:[#allocation27 + $0x9a8] ss:$16 sps:$4 sm:$0xff]  }
 0xe7c   :  { %16251 = vmatpush1.bf16.msra.mxu0 %v20974_v13  ;;  %v21031_v13 = vld [vmem:[#allocation27 + $0xba8] ss:$16 sps:$4 sm:$0xff]  }
 0xe7d   :  { %16292 = vmatpush1.bf16.msra.mxu1 %v20977_v51  ;;  %16252 = vmatprep.subr.bf16.mxu0 %v20982_v62  ;;  %v21036_v51 = vld [vmem:[#allocation27 + $0x9cc] ss:$16 sps:$4 sm:$0xff]  }
 0xe7e   :  { %v15948_v53 = vpop.f32.mrb[88].mxu0  ;;  %16293 = vmatprep.subr.bf16.mxu1 %v20985_v25  ;;  %v21039_v62 = vld [vmem:[#allocation27 + $0xbcc] ss:$16 sps:$4 sm:$0xff]   ;;  %v21034_v25 = vld [vmem:[#allocation27 + $0x9c8] ss:$16 sps:$4 sm:$0xff]  }
 0xe7f   :  { %v15989_v21 = vpop.f32.mrb[88].mxu1  ;;  %v15949_v59 = vpop.f32.mrb[89].mxu0  ;;  %v21040_v53 = vld [vmem:[#allocation27 + $0x9e8] ss:$16 sps:$4 sm:$0xff]  }
 0xe80   :  { %v15990_v42 = vpop.f32.mrb[89].mxu1  ;;  %v15950_v17 = vpop.f32.mrb[90].mxu0  ;;  %16253 = vmatpush1.bf16.msra.mxu0 %v20980_v20  ;;  %v21037_v20 = vld [vmem:[#allocation27 + $0xbc8] ss:$16 sps:$4 sm:$0xff]   ;;  %v21048_v21 = vld [vmem:[#allocation27 + $0xc0c] ss:$16 sps:$4 sm:$0xff]  }
 0xe81   :  { %v15951_v47 = vadd.f32 %v15950_v17, %v22674_v1  ;;  %v15991_v11 = vpop.f32.mrb[90].mxu1  ;;  %16294 = vmatpush1.bf16.msra.mxu1 %v20983_v57  ;;  %v15952_v31 = vpop.f32.mrb[91].mxu0  ;;  %16254 = vmatprep.subr.bf16.mxu0 %v20988_v48  ;;  %v20995_v1 = vld [vmem:[#allocation27 + $0xae8] ss:$16 sps:$4 sm:$0xff]   ;;  %v21042_v57 = vld [vmem:[#allocation27 + $0x9ec] ss:$16 sps:$4 sm:$0xff]  }
 0xe82   :  { %v15953_v12 = vadd.f32 %v15952_v31, %v22676_v38  ;;  %v15993_v41 = vpop.f32.mrb[91].mxu1  ;;  %16295 = vmatprep.subr.bf16.mxu1 %v20991_v7  ;;  %v21001_v38 = vld [vmem:[#allocation27 + $0xb08] ss:$16 sps:$4 sm:$0xff]   ;;  %v21045_v48 = vld [vmem:[#allocation27 + $0xbec] ss:$16 sps:$4 sm:$0xff]  }
 0xe83   :  { %v22684_v36 = vadd.f32 %v15991_v11, %v15951_v47  ;;  %v21043_v7 = vld [vmem:[#allocation27 + $0xbe8] ss:$16 sps:$4 sm:$0xff]   ;;  %v21051_v59 = vld [vmem:[#allocation27 + $0xe0c] ss:$16 sps:$4 sm:$0xff]  }
 0xe84   :  { %v22686_v16 = vadd.f32 %v15993_v41, %v15953_v12  ;;  %16255 = vmatpush1.bf16.msra.mxu0 %v20986_v4  ;;  %v21046_v42 = vld [vmem:[#allocation27 + $0xc08] ss:$16 sps:$4 sm:$0xff]   ;;  %v21054_v4 = vld [vmem:[#allocation27 + $0xc2c] ss:$16 sps:$4 sm:$0xff]  }
 0xe85   :  { %16296 = vmatpush1.bf16.msra.mxu1 %v20989_v26  ;;  %16256 = vmatprep.subr.bf16.mxu0 %v20994_v6  ;;  %v21049_v17 = vld [vmem:[#allocation27 + $0xe08] ss:$16 sps:$4 sm:$0xff]   ;;  %v21057_v47 = vld [vmem:[#allocation27 + $0xe2c] ss:$16 sps:$4 sm:$0xff]  }
 0xe86   :  { %16297 = vmatprep.subr.bf16.mxu1 %v20997_v44  ;;  %v21052_v11 = vld [vmem:[#allocation27 + $0xc28] ss:$16 sps:$4 sm:$0xff]   ;;  %v21060_v26 = vld [vmem:[#allocation27 + $0xc4c] ss:$16 sps:$4 sm:$0xff]  }
 0xe87   :  { %v21055_v31 = vld [vmem:[#allocation27 + $0xe28] ss:$16 sps:$4 sm:$0xff]   ;;  %v21063_v6 = vld [vmem:[#allocation27 + $0xe4c] ss:$16 sps:$4 sm:$0xff]  }
 0xe88   :  { %16257 = vmatpush1.bf16.msra.mxu0 %v20992_v14  ;;  %v21058_v12 = vld [vmem:[#allocation27 + $0xc48] ss:$16 sps:$4 sm:$0xff]   ;;  %v21066_v41 = vld [vmem:[#allocation27 + $0xc6c] ss:$16 sps:$4 sm:$0xff]  }
 0xe89   :  { %16298 = vmatpush1.bf16.msra.mxu1 %v20995_v1  ;;  %16258 = vmatprep.subr.bf16.mxu0 %v21000_v58  ;;  %v21064_v44 = vld [vmem:[#allocation27 + $0xc68] ss:$16 sps:$4 sm:$0xff]   ;;  %v21072_v14 = vld [vmem:[#allocation27 + $0xc8c] ss:$16 sps:$4 sm:$0xff]  }
 0xe8a   :  { %16299 = vmatprep.subr.bf16.mxu1 %v21003_v23  ;;  %v21075_v1 = vld [vmem:[#allocation27 + $0xe8c] ss:$16 sps:$4 sm:$0xff]   ;;  %v21073_v58 = vld [vmem:[#allocation27 + $0xe88] ss:$16 sps:$4 sm:$0xff]  }
 0xe8b   :  { %v21078_v23 = vld [vmem:[#allocation27 + $0xcac] ss:$16 sps:$4 sm:$0xff]  }
 0xe8c   :  { %16259 = vmatpush1.bf16.msra.mxu0 %v20998_v37  ;;  %v21081_v37 = vld [vmem:[#allocation27 + $0xeac] ss:$16 sps:$4 sm:$0xff]  }
 0xe8d   :  { %16300 = vmatpush1.bf16.msra.mxu1 %v21001_v38  ;;  %16260 = vmatprep.subr.bf16.mxu0 %v21006_v49  ;;  %v21076_v38 = vld [vmem:[#allocation27 + $0xca8] ss:$16 sps:$4 sm:$0xff]  }
 0xe8e   :  { %16301 = vmatprep.subr.bf16.mxu1 %v21009_v40  ;;  %v21079_v49 = vld [vmem:[#allocation27 + $0xea8] ss:$16 sps:$4 sm:$0xff]   ;;  %v21084_v40 = vld [vmem:[#allocation27 + $0xccc] ss:$16 sps:$4 sm:$0xff]  }
 0xe90   :  { %16261 = vmatpush1.bf16.msra.mxu0 %v21004_v33 }
 0xe91   :  { %16302 = vmatpush1.bf16.msra.mxu1 %v21007_v56  ;;  %16262 = vmatprep.subr.bf16.mxu0 %v21012_v3  ;;  %v21087_v56 = vld [vmem:[#allocation27 + $0xecc] ss:$16 sps:$4 sm:$0xff]  }
 0xe92   :  { %16303 = vmatprep.subr.bf16.mxu1 %v21015_v0 }
 0xe94   :  { %16263 = vmatpush1.bf16.msra.mxu0 %v21010_v10 }
 0xe95   :  { %16304 = vmatpush1.bf16.msra.mxu1 %v21013_v9  ;;  %16264 = vmatprep.subr.bf16.mxu0 %v21018_v52  ;;  %v21082_v52 = vld [vmem:[#allocation27 + $0xcc8] ss:$16 sps:$4 sm:$0xff]  }
 0xe96   :  { %16305 = vmatprep.subr.bf16.mxu1 %v21021_v18 }
 0xe98   :  { %16265 = vmatpush1.bf16.msra.mxu0 %v21016_v5 }
 0xe99   :  { %16306 = vmatpush1.bf16.msra.mxu1 %v21019_v29  ;;  %16266 = vmatprep.subr.bf16.mxu0 %v21024_v15  ;;  %v21085_v15 = vld [vmem:[#allocation27 + $0xec8] ss:$16 sps:$4 sm:$0xff]  }
 0xe9a   :  { %16307 = vmatprep.subr.bf16.mxu1 %v21027_v8  ;;  %v21090_v8 = vld [vmem:[#allocation27 + $0xcec] ss:$16 sps:$4 sm:$0xff]  }
 0xe9c   :  { %16267 = vmatpush1.bf16.msra.mxu0 %v21022_v2 }
 0xe9d   :  { %16308 = vmatpush1.bf16.msra.mxu1 %v21025_v61  ;;  %16268 = vmatprep.subr.bf16.mxu0 %v21030_v45  ;;  %v21093_v45 = vld [vmem:[#allocation27 + $0xeec] ss:$16 sps:$4 sm:$0xff]  }
 0xe9e   :  { %16309 = vmatprep.subr.bf16.mxu1 %v21033_v54 }
 0xea0   :  { %16269 = vmatpush1.bf16.msra.mxu0 %v21028_v24 }
 0xea1   :  { %16310 = vmatpush1.bf16.msra.mxu1 %v21031_v13  ;;  %16270 = vmatprep.subr.bf16.mxu0 %v21036_v51  ;;  %v21088_v13 = vld [vmem:[#allocation27 + $0xce8] ss:$16 sps:$4 sm:$0xff]   ;;  %v21096_v51 = vld [vmem:[#allocation27 + $0xd0c] ss:$16 sps:$4 sm:$0xff]  }
 0xea2   :  { %16311 = vmatprep.subr.bf16.mxu1 %v21039_v62  ;;  %v21099_v62 = vld [vmem:[#allocation27 + $0xf0c] ss:$16 sps:$4 sm:$0xff]  }
 0xea4   :  { %16271 = vmatpush1.bf16.msra.mxu0 %v21034_v25  ;;  %v21094_v25 = vld [vmem:[#allocation27 + $0xd08] ss:$16 sps:$4 sm:$0xff]  }
 0xea5   :  { %16312 = vmatpush1.bf16.msra.mxu1 %v21037_v20  ;;  %16272 = vmatprep.subr.bf16.mxu0 %v21042_v57  ;;  %v21102_v20 = vld [vmem:[#allocation27 + $0xd2c] ss:$16 sps:$4 sm:$0xff]  }
 0xea6   :  { %16313 = vmatprep.subr.bf16.mxu1 %v21045_v48  ;;  %v21105_v57 = vld [vmem:[#allocation27 + $0xf2c] ss:$16 sps:$4 sm:$0xff]   ;;  %v21100_v48 = vld [vmem:[#allocation27 + $0xd28] ss:$16 sps:$4 sm:$0xff]  }
 0xea8   :  { %16273 = vmatpush1.bf16.msra.mxu0 %v21040_v53  ;;  %v21103_v53 = vld [vmem:[#allocation27 + $0xf28] ss:$16 sps:$4 sm:$0xff]  }
 0xea9   :  { %16314 = vmatpush1.bf16.msra.mxu1 %v21043_v7  ;;  %16324 = vmatprep.subr.bf16.mxu0 %v21048_v21  ;;  %v21108_v7 = vld [vmem:[#allocation27 + $0xd4c] ss:$16 sps:$4 sm:$0xff]  }
 0xeaa   :  { %16365 = vmatprep.subr.bf16.mxu1 %v21051_v59  ;;  %v21111_v21 = vld [vmem:[#allocation27 + $0xf4c] ss:$16 sps:$4 sm:$0xff]   ;;  %v21106_v59 = vld [vmem:[#allocation27 + $0xd48] ss:$16 sps:$4 sm:$0xff]  }
 0xeab   :  { %16275 = vmatmul.mubr.bf16.vlgmr.msra.gmra.mrb[104].mxu0 %v22626_v30  ;;  %v21061_v30 = vld [vmem:[#allocation27 + $0xe48] ss:$16 sps:$4 sm:$0xff]  }
 0xeac   :  { %16316 = vmatmul.mubr.bf16.vlgmr.msra.gmra.mrb[104].mxu1 %v22628_v34  ;;  %16325 = vmatpush1.bf16.msra.mxu0 %v21046_v42  ;;  %v21069_v34 = vld [vmem:[#allocation27 + $0xe6c] ss:$16 sps:$4 sm:$0xff]   ;;  %v21109_v42 = vld [vmem:[#allocation27 + $0xf48] ss:$16 sps:$4 sm:$0xff]  }
 0xead   :  { %16356 = vmatprep.mubr.bf16.mxu0 %v22652_v27  ;;  %16366 = vmatpush1.bf16.msra.mxu1 %v21049_v17  ;;  %v21067_v27 = vld [vmem:[#allocation27 + $0xe68] ss:$16 sps:$4 sm:$0xff]   ;;  %v21114_v17 = vld [vmem:[#allocation27 + $0xd6c] ss:$16 sps:$4 sm:$0xff]  }
 0xeae   :  { %16397 = vmatprep.mubr.bf16.mxu1 %v22654_v19  ;;  %16326 = vmatprep.subr.bf16.mxu0 %v21054_v4  ;;  %v21070_v19 = vld [vmem:[#allocation27 + $0xc88] ss:$16 sps:$4 sm:$0xff]   ;;  %v21117_v4 = vld [vmem:[#allocation27 + $0xf6c] ss:$16 sps:$4 sm:$0xff]  }
 0xeaf   :  { %16367 = vmatprep.subr.bf16.mxu1 %v21057_v47  ;;  %v21112_v47 = vld [vmem:[#allocation27 + $0xd68] ss:$16 sps:$4 sm:$0xff]  }
 0xeb0   :  { %16327 = vmatpush1.bf16.msra.mxu0 %v21052_v11  ;;  %v21115_v11 = vld [vmem:[#allocation27 + $0xf68] ss:$16 sps:$4 sm:$0xff]  }
 0xeb1   :  { %16368 = vmatpush1.bf16.msra.mxu1 %v21055_v31  ;;  %16328 = vmatprep.subr.bf16.mxu0 %v21060_v26  ;;  %v21120_v31 = vld [vmem:[#allocation27 + $0xd8c] ss:$16 sps:$4 sm:$0xff]  }
 0xeb2   :  { %16369 = vmatprep.subr.bf16.mxu1 %v21063_v6  ;;  %v21123_v26 = vld [vmem:[#allocation27 + $0xf8c] ss:$16 sps:$4 sm:$0xff]   ;;  %v21118_v6 = vld [vmem:[#allocation27 + $0xd88] ss:$16 sps:$4 sm:$0xff]  }
 0xeb4   :  { %16329 = vmatpush1.bf16.msra.mxu0 %v21058_v12  ;;  %v21121_v12 = vld [vmem:[#allocation27 + $0xf88] ss:$16 sps:$4 sm:$0xff]  }
 0xeb5   :  { %16370 = vmatpush1.bf16.msra.mxu1 %v21061_v30  ;;  %16330 = vmatprep.subr.bf16.mxu0 %v21066_v41  ;;  %v21126_v30 = vld [vmem:[#allocation27 + $0xdac] ss:$16 sps:$4 sm:$0xff]  }
 0xeb6   :  { %16371 = vmatprep.subr.bf16.mxu1 %v21069_v34  ;;  %v21129_v41 = vld [vmem:[#allocation27 + $0xfac] ss:$16 sps:$4 sm:$0xff]   ;;  %v21124_v34 = vld [vmem:[#allocation27 + $0xda8] ss:$16 sps:$4 sm:$0xff]  }
 0xeb8   :  { %16331 = vmatpush1.bf16.msra.mxu0 %v21064_v44  ;;  %v21127_v44 = vld [vmem:[#allocation27 + $0xfa8] ss:$16 sps:$4 sm:$0xff]  }
 0xeb9   :  { %16372 = vmatpush1.bf16.msra.mxu1 %v21067_v27  ;;  %16332 = vmatprep.subr.bf16.mxu0 %v21072_v14  ;;  %v21132_v27 = vld [vmem:[#allocation27 + $0xdcc] ss:$16 sps:$4 sm:$0xff]  }
 0xeba   :  { %16373 = vmatprep.subr.bf16.mxu1 %v21075_v1  ;;  %v21135_v14 = vld [vmem:[#allocation27 + $0xfcc] ss:$16 sps:$4 sm:$0xff]   ;;  %v21130_v1 = vld [vmem:[#allocation27 + $0xdc8] ss:$16 sps:$4 sm:$0xff]  }
 0xebc   :  { %16333 = vmatpush1.bf16.msra.mxu0 %v21070_v19  ;;  %v21133_v19 = vld [vmem:[#allocation27 + $0xfc8] ss:$16 sps:$4 sm:$0xff]  }
 0xebd   :  { %16374 = vmatpush1.bf16.msra.mxu1 %v21073_v58  ;;  %16334 = vmatprep.subr.bf16.mxu0 %v21078_v23  ;;  %v21138_v58 = vld [vmem:[#allocation27 + $0xdec] ss:$16 sps:$4 sm:$0xff]  }
 0xebe   :  { %v16030_v33 = vpop.f32.mrb[92].mxu0  ;;  %16375 = vmatprep.subr.bf16.mxu1 %v21081_v37  ;;  %v21141_v23 = vld [vmem:[#allocation27 + $0xfec] ss:$16 sps:$4 sm:$0xff]   ;;  %v21136_v37 = vld [vmem:[#allocation27 + $0xde8] ss:$16 sps:$4 sm:$0xff]  }
 0xebf   :  { %v16071_v3 = vpop.f32.mrb[92].mxu1  ;;  %v16031_v0 = vpop.f32.mrb[93].mxu0 }
 0xec0   :  { %v16072_v10 = vpop.f32.mrb[93].mxu1  ;;  %v16032_v9 = vpop.f32.mrb[94].mxu0  ;;  %16335 = vmatpush1.bf16.msra.mxu0 %v21076_v38  ;;  %v21139_v38 = vld [vmem:[#allocation27 + $0xfe8] ss:$16 sps:$4 sm:$0xff]  }
 0xec1   :  { %v16033_v18 = vadd.f32 %v16032_v9, %v22684_v36  ;;  %v16073_v5 = vpop.f32.mrb[94].mxu1  ;;  %16376 = vmatpush1.bf16.msra.mxu1 %v21079_v49  ;;  %v16034_v29 = vpop.f32.mrb[95].mxu0  ;;  %16336 = vmatprep.subr.bf16.mxu0 %v21084_v40  ;;  %v21091_v36 = vld [vmem:[#allocation27 + $0xee8] ss:$16 sps:$4 sm:$0xff]   ;;  %v21195_v49 = vld [vmem:[#allocation29] sm:$0xf] }
 0xec2   :  { %v16035_v2 = vadd.f32 %v16034_v29, %v22686_v16  ;;  %v16075_v61 = vpop.f32.mrb[95].mxu1  ;;  %16377 = vmatprep.subr.bf16.mxu1 %v21087_v56  ;;  %v21097_v16 = vld [vmem:[#allocation27 + $0xf08] ss:$16 sps:$4 sm:$0xff]   ;;  %v13181_v40 = vrot.slane %v21195_v49, %v22151_v32  ;;  %v13185_v56 = vrot.slane %v21195_v49, %v22154_v55 }
 0xec3   :  { %v22694_v54 = vadd.f32 %v16073_v5, %v16033_v18 }
 0xec4   :  { %v22696_v24 = vadd.f32 %v16075_v61, %v16035_v2  ;;  %16337 = vmatpush1.bf16.msra.mxu0 %v21082_v52 }
 0xec5   :  { %16378 = vmatpush1.bf16.msra.mxu1 %v21085_v15  ;;  %16338 = vmatprep.subr.bf16.mxu0 %v21090_v8 }
 0xec6   :  { %16379 = vmatprep.subr.bf16.mxu1 %v21093_v45 }
 0xec8   :  { %16339 = vmatpush1.bf16.msra.mxu0 %v21088_v13 }
 0xec9   :  { %16380 = vmatpush1.bf16.msra.mxu1 %v21091_v36  ;;  %16340 = vmatprep.subr.bf16.mxu0 %v21096_v51 }
 0xeca   :  { %16381 = vmatprep.subr.bf16.mxu1 %v21099_v62 }
 0xecc   :  { %16341 = vmatpush1.bf16.msra.mxu0 %v21094_v25 }
 0xecd   :  { %16382 = vmatpush1.bf16.msra.mxu1 %v21097_v16  ;;  %16342 = vmatprep.subr.bf16.mxu0 %v21102_v20 }
 0xece   :  { %16383 = vmatprep.subr.bf16.mxu1 %v21105_v57 }
 0xed0   :  { %16343 = vmatpush1.bf16.msra.mxu0 %v21100_v48 }
 0xed1   :  { %16384 = vmatpush1.bf16.msra.mxu1 %v21103_v53  ;;  %16344 = vmatprep.subr.bf16.mxu0 %v21108_v7 }
 0xed2   :  { %16385 = vmatprep.subr.bf16.mxu1 %v21111_v21 }
 0xed4   :  { %16345 = vmatpush1.bf16.msra.mxu0 %v21106_v59 }
 0xed5   :  { %16386 = vmatpush1.bf16.msra.mxu1 %v21109_v42  ;;  %16346 = vmatprep.subr.bf16.mxu0 %v21114_v17 }
 0xed6   :  { %16387 = vmatprep.subr.bf16.mxu1 %v21117_v4 }
 0xed8   :  { %16347 = vmatpush1.bf16.msra.mxu0 %v21112_v47 }
 0xed9   :  { %16388 = vmatpush1.bf16.msra.mxu1 %v21115_v11  ;;  %16348 = vmatprep.subr.bf16.mxu0 %v21120_v31 }
 0xeda   :  { %16389 = vmatprep.subr.bf16.mxu1 %v21123_v26 }
 0xedc   :  { %16349 = vmatpush1.bf16.msra.mxu0 %v21118_v6 }
 0xedd   :  { %16390 = vmatpush1.bf16.msra.mxu1 %v21121_v12  ;;  %16350 = vmatprep.subr.bf16.mxu0 %v21126_v30  ;;  %v16406_v12 = vadd.f32 %v22694_v54, %v22519_v35  ;;  %v16407_v30 = vadd.f32 %v22696_v24, %v22517_v50 }
 0xede   :  { %16391 = vmatprep.subr.bf16.mxu1 %v21129_v41 }
 0xee0   :  { %16351 = vmatpush1.bf16.msra.mxu0 %v21124_v34 }
 0xee1   :  { %16392 = vmatpush1.bf16.msra.mxu1 %v21127_v44  ;;  %16352 = vmatprep.subr.bf16.mxu0 %v21132_v27 }
 0xee2   :  { %16393 = vmatprep.subr.bf16.mxu1 %v21135_v14 }
 0xee4   :  { %16353 = vmatpush1.bf16.msra.mxu0 %v21130_v1 }
 0xee5   :  { %16394 = vmatpush1.bf16.msra.mxu1 %v21133_v19  ;;  %16354 = vmatprep.subr.bf16.mxu0 %v21138_v58 }
 0xee6   :  { %16395 = vmatprep.subr.bf16.mxu1 %v21141_v23 }
 0xee8   :  { %16355 = vmatpush1.bf16.msra.mxu0 %v21136_v37  ;;  %v16412_v37 = vsel %vm8645_vm6, %v16406_v12, 0.0 }
 0xee9   :  { %16396 = vmatpush1.bf16.msra.mxu1 %v21139_v38  ;;  %v16413_v38 = vsel %vm8645_vm6, %v16407_v30, 0.0 }
 0xeea   :  { %v16414_v50 = vadd.f32 %v16413_v38, %v16412_v37 }
 0xeeb   :  { %16357 = vmatmul.mubr.bf16.vlgmr.msra.gmra.mrb[108].mxu0 %v22648_v28 }
 0xeec   :  { %16398 = vmatmul.mubr.bf16.vlgmr.msra.gmra.mrb[108].mxu1 %v22650_v63 }
 0xefe   :  { %v16112_v33 = vpop.f32.mrb[96].mxu0 }
 0xeff   :  { %v16153_v3 = vpop.f32.mrb[96].mxu1  ;;  %v16113_v0 = vpop.f32.mrb[97].mxu0 }
 0xf00   :  { %v16154_v10 = vpop.f32.mrb[97].mxu1  ;;  %v16114_v9 = vpop.f32.mrb[98].mxu0 }
 0xf01   :  { %v16115_v52 = vadd.f32 %v16114_v9, %v13181_v40  ;;  %v16155_v18 = vpop.f32.mrb[98].mxu1  ;;  %v16116_v5 = vpop.f32.mrb[99].mxu0 }
 0xf02   :  { %v16117_v29 = vadd.f32 %v16116_v5, %v13185_v56  ;;  %v16157_v15 = vpop.f32.mrb[99].mxu1 }
 0xf03   :  { %v16156_v8 = vadd.f32 %v16155_v18, %v16115_v52 }
 0xf04   :  { %v16158_v2 = vadd.f32 %v16157_v15, %v16117_v29 }
 0xf3e   :  { %v16194_v28 = vpop.f32.mrb[100].mxu0 }
 0xf3f   :  { %v16235_v61 = vpop.f32.mrb[100].mxu1  ;;  %v16195_v63 = vpop.f32.mrb[101].mxu0 }
 0xf40   :  { %v16236_v45 = vpop.f32.mrb[101].mxu1  ;;  %v16196_v13 = vpop.f32.mrb[102].mxu0 }
 0xf41   :  { %v16197_v36 = vadd.f32 %v16196_v13, %v16156_v8  ;;  %v16237_v51 = vpop.f32.mrb[102].mxu1  ;;  %v16198_v62 = vpop.f32.mrb[103].mxu0 }
 0xf42   :  { %v16199_v25 = vadd.f32 %v16198_v62, %v16158_v2  ;;  %v16239_v16 = vpop.f32.mrb[103].mxu1 }
 0xf43   :  { %v16238_v20 = vadd.f32 %v16237_v51, %v16197_v36 }
 0xf44   :  { %v16240_v57 = vadd.f32 %v16239_v16, %v16199_v25  ;;  %v16410_v25 = vld [vmem:[#allocation30] sm:$0xf]  ;;  %v16411_v16 = vld [vmem:[#allocation32] sm:$0xf] }
 0xf7e   :  { %v16276_v48 = vpop.f32.mrb[104].mxu0 }
 0xf7f   :  { %v16317_v53 = vpop.f32.mrb[104].mxu1  ;;  %v16277_v7 = vpop.f32.mrb[105].mxu0  ;;  %v16450_v48 = vrot.slane %v16410_v25, %v22093_v43 }
 0xf80   :  { %v16318_v21 = vpop.f32.mrb[105].mxu1  ;;  %v16278_v59 = vpop.f32.mrb[106].mxu0  ;;  %v16454_v53 = vrot.slane %v16410_v25, %v22096_v46  ;;  %v16458_v7 = vrot.slane %v16410_v25, %v22151_v32 }
 0xf81   :  { %v16279_v42 = vadd.f32 %v16278_v59, %v16238_v20  ;;  %v16319_v17 = vpop.f32.mrb[106].mxu1  ;;  %v16280_v4 = vpop.f32.mrb[107].mxu0  ;;  %v21662_v20 = vmov 1983009808   ;;  %v16462_v21 = vrot.slane %v16410_v25, %v22154_v55  ;;  %v16475_v59 = vrot.slane %v16411_v16, %v22093_v43 }
 0xf82   :  { %v16281_v47 = vadd.f32 %v16280_v4, %v16240_v57  ;;  %v16321_v11 = vpop.f32.mrb[107].mxu1  ;;  %v16503_v57 = vunpack.c.l.s4 %v21662_v20  ;;  %v16483_v4 = vrot.slane %v16411_v16, %v22151_v32 }
 0xf83   :  { %v16320_v31 = vadd.f32 %v16319_v17, %v16279_v42  ;;  %v16479_v17 = vrot.slane %v16411_v16, %v22096_v46 }
 0xf84   :  { %v16322_v26 = vadd.f32 %v16321_v11, %v16281_v47  ;;  %v16487_v47 = vrot.slane %v16411_v16, %v22154_v55  ;;  %v16504_v11 = vunpack.c.0.s8 %v16503_v57 }
 0xfbe   :  { %v16358_v6 = vpop.f32.mrb[108].mxu0 }
 0xfbf   :  { %v16399_v41 = vpop.f32.mrb[108].mxu1  ;;  %v16359_v34 = vpop.f32.mrb[109].mxu0 }
 0xfc0   :  { %v16400_v44 = vpop.f32.mrb[109].mxu1  ;;  %v16360_v27 = vpop.f32.mrb[110].mxu0 }
 0xfc1   :  { %v16361_v14 = vadd.f32 %v16360_v27, %v16320_v31  ;;  %v16401_v1 = vpop.f32.mrb[110].mxu1  ;;  %v16362_v19 = vpop.f32.mrb[111].mxu0  ;;  %v16507_v27 = vsub.s32 %v16504_v11, %v22090_v39 }
 0xfc2   :  { %v16363_v58 = vadd.f32 %v16362_v19, %v16322_v26  ;;  %v16403_v23 = vpop.f32.mrb[111].mxu1 }
 0xfc3   :  { %v16402_v49 = vadd.f32 %v16401_v1, %v16361_v14 }
 0xfc4   :  { %v16404_v40 = vadd.f32 %v16403_v23, %v16363_v58 }
 0xfc5   :  { %v16408_v35 = vadd.f32 %v16402_v49, %v22523_v60 }
 0xfc6   :  { %v16409_v54 = vadd.f32 %v16404_v40, %v22521_v22 }
 0xfc7   :  { %v16415_v24 = vsel %vm8645_vm6, %v16408_v35, 0.0 }
 0xfc8   :  { %v16416_v33 = vadd.f32 %v16415_v24, %v16414_v50  ;;  %v16417_v56 = vsel %vm8645_vm6, %v16409_v54, 0.0 }
 0xfca   :  { %v16418_v3 = vadd.f32 %v16417_v56, %v16416_v33 }
 0xfcc   :  { %16419 = vadd.xlane.f32.xlu0 %v16418_v3 }
0x1059   :  { %v16420_v0 = vpop.xlane.xlu0 %16419 }
0x105a   :  { %v16421_v10 = vmul.f32 0.001953125, %v16420_v0 }
0x105c   :  { %v16422_v9 = vsub.f32 %v16406_v12, %v16421_v10  ;;  %v16423_v52 = vsub.f32 %v16407_v30, %v16421_v10  ;;  %v16424_v18 = vsub.f32 %v16408_v35, %v16421_v10  ;;  %v16425_v5 = vsub.f32 %v16409_v54, %v16421_v10 }
0x105e   :  { %v16426_v29 = vmul.f32 %v16422_v9, %v16422_v9  ;;  %v16427_v15 = vmul.f32 %v16423_v52, %v16423_v52  ;;  %v16428_v8 = vmul.f32 %v16424_v18, %v16424_v18  ;;  %v16429_v60 = vmul.f32 %v16425_v5, %v16425_v5 }
0x1060   :  { %v16430_v22 = vsel %vm8645_vm6, %v16426_v29, 0.0  ;;  %v16431_v2 = vsel %vm8645_vm6, %v16427_v15, 0.0  ;;  %v16433_v61 = vsel %vm8645_vm6, %v16428_v8, 0.0  ;;  %v16435_v45 = vsel %vm8645_vm6, %v16429_v60, 0.0 }
0x1061   :  { %v16432_v28 = vadd.f32 %v16431_v2, %v16430_v22 }
0x1063   :  { %v16434_v63 = vadd.f32 %v16433_v61, %v16432_v28 }
0x1065   :  { %v16436_v13 = vadd.f32 %v16435_v45, %v16434_v63 }
0x1067   :  { %16437 = vadd.xlane.f32.xlu1 %v16436_v13 }
0x10f4   :  { %v16438_v36 = vpop.xlane.xlu1 %16437 }
0x10f5   :  { %v16439_v51 = vmul.f32 0.001953125, %v16438_v36 }
0x10f7   :  { %v16440_v62 = vadd.f32 1e-05, %v16439_v51 }
0x10f9   :  { %21178 = vrsqrt.f32 %v16440_v62 }
0x1103   :  { %v21179_v42 = vpop.eup %21178 }
0x1104   :  { %v16442_v31 = vmul.f32 %v21179_v42, %v16422_v9  ;;  %v16443_v26 = vmul.f32 %v21179_v42, %v16423_v52  ;;  %v16444_v6 = vmul.f32 %v21179_v42, %v16424_v18  ;;  %v16445_v12 = vmul.f32 %v21179_v42, %v16425_v5 }
0x1106   :  { %v16467_v30 = vmul.f32 %v16450_v48, %v16442_v31  ;;  %v16468_v41 = vmul.f32 %v16454_v53, %v16443_v26  ;;  %v16469_v34 = vmul.f32 %v16458_v7, %v16444_v6  ;;  %v16470_v44 = vmul.f32 %v16462_v21, %v16445_v12 }
0x1108   :  { %v16492_v14 = vadd.f32 %v16475_v59, %v16467_v30  ;;  %v16493_v43 = vadd.f32 %v16479_v17, %v16468_v41  ;;  %v16494_v1 = vadd.f32 %v16483_v4, %v16469_v34  ;;  %v16495_v19 = vadd.f32 %v16487_v47, %v16470_v44 }
0x110a   :  { %v16500_v46 = vcombine.high %v16492_v14, %v16493_v43  ;;  %v16501_v58 = vcombine.high %v16494_v1, %v16495_v19 }
0x110c   :  { %v16508_v32 = vrot.slane %v16500_v46, %v16507_v27  ;;  %v16515_v23 = vrot.slane %v16501_v58, %v16507_v27 }
0x110e   :  { %v16516_v55 = vcombine.low %v16508_v32, %v16515_v23 }
0x1110   :  { %16518 = vst [vmem:[%s22775_s29] sm:$0xff] %v16516_v55 }
0x1111   :  { %16523 = vsyncpa [#allocation5], 1 }
0x1112   :  { %16524 = vsyncpa [#allocation7], 1 }
0x1113   :  { %16525 = vsyncpa [#allocation10], 1 }
0x1114   :  { %16526 = vsyncpa [#allocation13], 1 }
0x1115   :  { %16527 = vsyncpa [#allocation16], 1 }
0x1116   :  { %16528 = vsyncpa [#allocation19], 1 }
0x1117   :  { %16529 = vsyncpa [#allocation22], 1 }
0x1118   :  { %16530 = vsyncpa [#allocation25], 1 }
0x1119   :  { %16531 = vsyncpa [#allocation28], 1 }
0x111a   :  { %16532 = vsyncpa [#allocation31], 1 }

</bundles_post_ra>
